<compile_context>
chip_gen: v7x
topology: tpu7x:2x2x1
jax: 0.10.0
libtpu: 0.0.40
codegen_flags: <defaults>
</compile_context>

<pallas_src>
import functools
import math

import jax
import jax.numpy as jnp
import numpy as np
from jax import lax
from jax.experimental import pallas as pl
from jax.experimental.pallas import tpu as pltpu


# ----------------------------------------------------------------------------
# Pallas kernel: `group_size` heads of one GATv2 layer per grid step.
# Grid = (core_split, head_groups_per_core); axis 0 is "parallel" (megacore),
# axis 1 streams head groups and accumulates into the resident output block.
# ----------------------------------------------------------------------------
def gatv2_group_kernel(x_ref, ea_ref, src_ref, dst_ref,
                       wl_ref, wr_ref, we_ref, bl_ref, br_ref, att_ref,
                       out_ref, *, group_size):
    g = pl.program_id(1)

    @pl.when(g == 0)
    def _():
        out_ref[...] = jnp.zeros_like(out_ref)

    x = x_ref[...]        # [N, Fin]  f32
    ea = ea_ref[...]      # [E, De]   f32
    src = src_ref[...]    # [E, N]    f32 one-hot (edge -> source node)
    dst = dst_ref[...]    # [E, N]    f32 one-hot (edge -> target node)

    acc = jnp.zeros(out_ref.shape[1:], jnp.float32)   # [N, C]

    # Static unroll over the heads in this group (group_size is small).
    for i in range(group_size):
        wl = wl_ref[i].astype(jnp.float32)   # [Fin, C] (bf16 stream -> f32)
        wr = wr_ref[i].astype(jnp.float32)
        we = we_ref[i].astype(jnp.float32)   # [De,  C]
        bl = bl_ref[i]                       # [1, C]
        br = br_ref[i]                       # [1, C]
        att = att_ref[i]                     # [1, C]

        # Linear projections (MXU, f32 accumulation).
        xl = jnp.dot(x, wl, preferred_element_type=jnp.float32) + bl    # [N, C]
        xr = jnp.dot(x, wr, preferred_element_type=jnp.float32) + br    # [N, C]
        ee = jnp.dot(ea, we, preferred_element_type=jnp.float32)        # [E, C]

        # Gather per-edge endpoint features via one-hot matmuls.
        xl_src = jnp.dot(src, xl, preferred_element_type=jnp.float32)   # [E, C]
        xr_dst = jnp.dot(dst, xr, preferred_element_type=jnp.float32)   # [E, C]

        # GATv2 attention logits.
        z = xl_src + xr_dst + ee
        z = jnp.where(z > 0, z, 0.2 * z)                                 # LeakyReLU(0.2)
        logits = jnp.sum(z * att, axis=-1, keepdims=True)                # [E, 1]

        # Segment softmax over incoming edges of each target node.
        neg_big = jnp.float32(-1e30)
        masked = jnp.where(dst > 0, logits, neg_big)                     # [E, N]
        m = jnp.max(masked, axis=0, keepdims=True)                       # [1, N]
        m_edge = jnp.sum(dst * m, axis=1, keepdims=True)                 # [E, 1]
        p = jnp.exp(logits - m_edge)                                     # [E, 1]
        denom = jnp.sum(dst * p, axis=0, keepdims=True)                  # [1, N]
        denom_edge = jnp.sum(dst * denom, axis=1, keepdims=True)         # [E, 1]
        alpha = p * pl.reciprocal(denom_edge, approx=True)               # EUP rcp

        # Message + scatter-add to targets (contract over E on the MXU;
        # no transposed copy of dst needed).
        msg = xl_src * alpha                                             # [E, C]
        contrib = lax.dot_general(
            dst, msg, dimension_numbers=(((0,), (0,)), ((), ())),
            preferred_element_type=jnp.float32)                          # [N, C]

        acc = acc + contrib

    out_ref[...] += acc[None]


def gatv2_layer_pallas(x, edge_attr, src_oh, dst_oh, params, apply_act, *,
                       group_size, core_split=2):
    wl, bl, wr, br, we, att, bias = params
    heads, fin, c = wl.shape
    de = we.shape[1]
    n = x.shape[0]
    e = edge_attr.shape[0]

    bl3 = bl[:, None, :]          # [H, 1, C] f32
    br3 = br[:, None, :]          # [H, 1, C] f32
    att3 = att[:, None, :]        # [H, 1, C] f32

    assert heads % (core_split * group_size) == 0
    steps = heads // (core_split * group_size)   # head groups per core

    def w_map(p_, g_):
        return (p_ * steps + g_, 0, 0)

    kernel = functools.partial(gatv2_group_kernel, group_size=group_size)

    partial_out = pl.pallas_call(
        kernel,
        out_shape=jax.ShapeDtypeStruct((core_split, n, c), jnp.float32),
        grid_spec=pltpu.PrefetchScalarGridSpec(
            num_scalar_prefetch=0,
            grid=(core_split, steps),
            in_specs=[
                pl.BlockSpec((n, fin), lambda p_, g_: (0, 0)),        # x
                pl.BlockSpec((e, de), lambda p_, g_: (0, 0)),         # edge_attr
                pl.BlockSpec((e, n), lambda p_, g_: (0, 0)),          # src one-hot
                pl.BlockSpec((e, n), lambda p_, g_: (0, 0)),          # dst one-hot
                pl.BlockSpec((group_size, fin, c), w_map),            # Wl (bf16)
                pl.BlockSpec((group_size, fin, c), w_map),            # Wr (bf16)
                pl.BlockSpec((group_size, de, c), w_map),             # We (bf16)
                pl.BlockSpec((group_size, 1, c), w_map),              # bl
                pl.BlockSpec((group_size, 1, c), w_map),              # br
                pl.BlockSpec((group_size, 1, c), w_map),              # att
            ],
            out_specs=pl.BlockSpec((1, n, c), lambda p_, g_: (p_, 0, 0)),
        ),
        compiler_params=pltpu.CompilerParams(
            dimension_semantics=("parallel", "arbitrary"),
            vmem_limit_bytes=48 * 1024 * 1024,   # fits v7x's 64 MiB physical
        ),
    )(x, edge_attr, src_oh, dst_oh, wl, wr, we, bl3, br3, att3)

    # Tiny JAX epilogue: combine core partials, mean over heads, bias,
    # module activation.
    out = partial_out.sum(axis=0) * (1.0 / heads) + bias
    if apply_act:
        out = jnp.where(out > 0, out, 0.01 * out)                    # LeakyReLU()
    return out


# ----------------------------------------------------------------------------
# Parameter init (deterministic, synthetic; PyG-style glorot weights).
# Linear weights are stored in bf16 (streaming dtype); math is f32.
# ----------------------------------------------------------------------------
def _glorot(key, shape, fan_in, fan_out):
    lim = math.sqrt(6.0 / (fan_in + fan_out))
    return jax.random.uniform(key, shape, jnp.float32, -lim, lim)


def init_gatv2_params(key, fin, de, c, heads):
    ks = jax.random.split(key, 7)
    wl = _glorot(ks[0], (heads, fin, c), fin, heads * c).astype(jnp.bfloat16)
    wr = _glorot(ks[1], (heads, fin, c), fin, heads * c).astype(jnp.bfloat16)
    we = _glorot(ks[2], (heads, de, c), de, heads * c).astype(jnp.bfloat16)
    att = _glorot(ks[3], (heads, c), c, 1)
    bl = 0.01 * jax.random.normal(ks[4], (heads, c), jnp.float32)
    br = 0.01 * jax.random.normal(ks[5], (heads, c), jnp.float32)
    bias = 0.01 * jax.random.normal(ks[6], (1, c), jnp.float32)
    return (wl, bl, wr, br, we, att, bias)


# ----------------------------------------------------------------------------
# Pure-JAX reference for one GATv2 layer (independent path: segment ops).
# Uses the same bf16-rounded weights (upcast to f32) as the kernel.
# ----------------------------------------------------------------------------
def gatv2_layer_ref(x, src, dst, edge_attr, params, apply_act):
    wl, bl, wr, br, we, att, bias = params
    wl = wl.astype(jnp.float32)
    wr = wr.astype(jnp.float32)
    we = we.astype(jnp.float32)
    n = x.shape[0]
    xl = jnp.einsum('nf,hfc->nhc', x, wl) + bl[None]       # [N,H,C]
    xr = jnp.einsum('nf,hfc->nhc', x, wr) + br[None]
    ee = jnp.einsum('ed,hdc->ehc', edge_attr, we)          # [E,H,C]
    z = xl[src] + xr[dst] + ee
    z = jnp.where(z > 0, z, 0.2 * z)
    logits = jnp.sum(z * att[None], axis=-1)               # [E,H]
    m = jax.ops.segment_max(logits, dst, num_segments=n)
    p = jnp.exp(logits - m[dst])
    denom = jax.ops.segment_sum(p, dst, num_segments=n)
    alpha = p / denom[dst]
    out = jax.ops.segment_sum(alpha[:, :, None] * xl[src], dst, num_segments=n)
    out = out.mean(axis=1) + bias
    if apply_act:
        out = jnp.where(out > 0, out, 0.01 * out)
    return out


# ----------------------------------------------------------------------------
# ANEncoder forward.
# ----------------------------------------------------------------------------
def an_encoder_forward(x, edge_index, edge_attr, all_params, use_ref=False):
    n = x.shape[0]
    n_edges = edge_attr.shape[0]
    # add_self_loops=True, fill_value='mean' (PyG GATv2Conv default):
    # self-loop attr for node i = mean of edge_attr over edges INTO node i
    # (0 for nodes with no incoming edges).
    src0 = edge_index[0]
    dst0 = edge_index[1]
    deg = jax.ops.segment_sum(jnp.ones((n_edges,), jnp.float32), dst0,
                              num_segments=n)
    loop_attr = (jax.ops.segment_sum(edge_attr, dst0, num_segments=n)
                 / jnp.maximum(deg, 1.0)[:, None])

    loop_idx = jnp.arange(n, dtype=edge_index.dtype)
    src = jnp.concatenate([src0, loop_idx])
    dst = jnp.concatenate([dst0, loop_idx])
    ea = jnp.concatenate([edge_attr, loop_attr], axis=0)

    src_oh = jax.nn.one_hot(src, n, dtype=jnp.float32)     # [E', N]
    dst_oh = jax.nn.one_hot(dst, n, dtype=jnp.float32)     # [E', N]

    h = x
    acts = (True, True, False)      # LeakyReLU after conv1/conv2, none after conv3
    group_sizes = (16, 16, 4)       # heads per grid step (conv1, conv2, conv3)
    for params, apply_act, gsz in zip(all_params, acts, group_sizes):
        if use_ref:
            h = gatv2_layer_ref(h, src, dst, ea, params, apply_act)
        else:
            h = gatv2_layer_pallas(h, ea, src_oh, dst_oh, params, apply_act,
                                   group_size=gsz, core_split=2)
    return h


if __name__ == "__main__":
    # Small graph consistent with the module: node_dim=16, edge_dim=8.
    node_dim, edge_dim, heads = 16, 8, 32
    n_nodes, n_edges = 8, 12

    key = jax.random.PRNGKey(0)
    kx, ke, ka, kp1, kp2, kp3 = jax.random.split(key, 6)

    x = jax.random.normal(kx, (n_nodes, node_dim), jnp.float32)
    src = jax.random.randint(ke, (n_edges,), 0, n_nodes, jnp.int32)
    dst = jax.random.randint(ka, (n_edges,), 0, n_nodes, jnp.int32)
    edge_index = jnp.stack([src, dst], axis=0)                      # [2, E]
    edge_attr = jax.random.normal(
        jax.random.fold_in(key, 7), (n_edges, edge_dim), jnp.float32)

    params = (
        init_gatv2_params(kp1, node_dim, edge_dim, 128, heads),   # conv1
        init_gatv2_params(kp2, 128, edge_dim, 512, heads),        # conv2
        init_gatv2_params(kp3, 512, edge_dim, 1028, heads),       # conv3
    )

    out = an_encoder_forward(x, edge_index, edge_attr, params, use_ref=False)
    out = jax.block_until_ready(out)

    ref = an_encoder_forward(x, edge_index, edge_attr, params, use_ref=True)
    ref = jax.block_until_ready(ref)

    assert out.shape == (n_nodes, 1028), out.shape
    np.testing.assert_allclose(np.asarray(out), np.asarray(ref),
                               rtol=5e-3, atol=5e-3)
    print("KERNEL_OK")
</pallas_src>

<mosaic_0001>
module attributes {stable_mosaic.version = 11 : i64} {
  func.func @gatv2_group_kernel(%arg0: i32, %arg1: i32, %arg2: memref<8x16xf32, #tpu.memory_space<vmem>>, %arg3: memref<20x8xf32, #tpu.memory_space<vmem>>, %arg4: memref<20x8xf32, #tpu.memory_space<vmem>>, %arg5: memref<20x8xf32, #tpu.memory_space<vmem>>, %arg6: memref<16x16x128xbf16, #tpu.memory_space<vmem>>, %arg7: memref<16x16x128xbf16, #tpu.memory_space<vmem>>, %arg8: memref<16x8x128xbf16, #tpu.memory_space<vmem>>, %arg9: memref<16x1x128xf32, #tpu.memory_space<vmem>>, %arg10: memref<16x1x128xf32, #tpu.memory_space<vmem>>, %arg11: memref<16x1x128xf32, #tpu.memory_space<vmem>>, %arg12: memref<1x8x128xf32, #tpu.memory_space<vmem>>) attributes {dimension_semantics = [#tpu.dimension_semantics<parallel>, #tpu.dimension_semantics<arbitrary>], iteration_bounds = array<i64: 2, 1>, scalar_prefetch = 0 : i64, scratch_operands = 0 : i64, tpu.core_type = #tpu.core_type<tc>, window_params = [{pipeline_mode = #tpu.pipeline_mode<synchronous>, transform_indices = @transform_0, window_bounds = array<i64: 8, 16>}, {pipeline_mode = #tpu.pipeline_mode<synchronous>, transform_indices = @transform_1, window_bounds = array<i64: 20, 8>}, {pipeline_mode = #tpu.pipeline_mode<synchronous>, transform_indices = @transform_2, window_bounds = array<i64: 20, 8>}, {pipeline_mode = #tpu.pipeline_mode<synchronous>, transform_indices = @transform_3, window_bounds = array<i64: 20, 8>}, {transform_indices = @transform_4, window_bounds = array<i64: 16, 16, 128>}, {transform_indices = @transform_5, window_bounds = array<i64: 16, 16, 128>}, {transform_indices = @transform_6, window_bounds = array<i64: 16, 8, 128>}, {transform_indices = @transform_7, window_bounds = array<i64: 16, 1, 128>}, {transform_indices = @transform_8, window_bounds = array<i64: 16, 1, 128>}, {transform_indices = @transform_9, window_bounds = array<i64: 16, 1, 128>}, {transform_indices = @transform_10, window_bounds = array<i64: 1, 8, 128>}]} {
    %c0_i32 = arith.constant 0 : i32
    %0 = arith.cmpi eq, %arg1, %c0_i32 : i32
    %1 = arith.extui %0 : i1 to i32
    %c0_i32_0 = arith.constant 0 : i32
    %2 = arith.cmpi ne, %1, %c0_i32_0 : i32
    scf.if %2 {
      %cst_527 = arith.constant 0.000000e+00 : f32
      %1020 = vector.broadcast %cst_527 : f32 to vector<1x8x128xf32>
      %c0_528 = arith.constant 0 : index
      %c0_529 = arith.constant 0 : index
      %c0_530 = arith.constant 0 : index
      %1021 = vector.load %arg12[%c0_528, %c0_529, %c0_530] : memref<1x8x128xf32, #tpu.memory_space<vmem>>, vector<1x8x128xf32>
      tpu.vector_store %arg12[%c0_528, %c0_529, %c0_530], %1020 {strides = array<i32>} : memref<1x8x128xf32, #tpu.memory_space<vmem>>, vector<1x8x128xf32>,
    } else {
    }
    %c0 = arith.constant 0 : index
    %c0_1 = arith.constant 0 : index
    %3 = vector.load %arg2[%c0, %c0_1] : memref<8x16xf32, #tpu.memory_space<vmem>>, vector<8x16xf32>
    %c0_2 = arith.constant 0 : index
    %c0_3 = arith.constant 0 : index
    %4 = vector.load %arg3[%c0_2, %c0_3] : memref<20x8xf32, #tpu.memory_space<vmem>>, vector<20x8xf32>
    %c0_4 = arith.constant 0 : index
    %c0_5 = arith.constant 0 : index
    %5 = vector.load %arg4[%c0_4, %c0_5] : memref<20x8xf32, #tpu.memory_space<vmem>>, vector<20x8xf32>
    %c0_6 = arith.constant 0 : index
    %c0_7 = arith.constant 0 : index
    %6 = vector.load %arg5[%c0_6, %c0_7] : memref<20x8xf32, #tpu.memory_space<vmem>>, vector<20x8xf32>
    %cst = arith.constant 0.000000e+00 : f32
    %7 = vector.broadcast %cst : f32 to vector<8x128xf32>
    %c0_8 = arith.constant 0 : index
    %c0_9 = arith.constant 0 : index
    %c0_10 = arith.constant 0 : index
    %8 = vector.load %arg6[%c0_8, %c0_9, %c0_10] : memref<16x16x128xbf16, #tpu.memory_space<vmem>>, vector<1x16x128xbf16>
    %9 = vector.shape_cast %8 : vector<1x16x128xbf16> to vector<16x128xbf16>
    %10 = arith.extf %9 : vector<16x128xbf16> to vector<16x128xf32>
    %c0_11 = arith.constant 0 : index
    %c0_12 = arith.constant 0 : index
    %c0_13 = arith.constant 0 : index
    %11 = vector.load %arg7[%c0_11, %c0_12, %c0_13] : memref<16x16x128xbf16, #tpu.memory_space<vmem>>, vector<1x16x128xbf16>
    %12 = vector.shape_cast %11 : vector<1x16x128xbf16> to vector<16x128xbf16>
    %13 = arith.extf %12 : vector<16x128xbf16> to vector<16x128xf32>
    %c0_14 = arith.constant 0 : index
    %c0_15 = arith.constant 0 : index
    %c0_16 = arith.constant 0 : index
    %14 = vector.load %arg8[%c0_14, %c0_15, %c0_16] : memref<16x8x128xbf16, #tpu.memory_space<vmem>>, vector<1x8x128xbf16>
    %15 = vector.shape_cast %14 : vector<1x8x128xbf16> to vector<8x128xbf16>
    %16 = arith.extf %15 : vector<8x128xbf16> to vector<8x128xf32>
    %c0_17 = arith.constant 0 : index
    %c0_18 = arith.constant 0 : index
    %c0_19 = arith.constant 0 : index
    %17 = vector.load %arg9[%c0_17, %c0_18, %c0_19] : memref<16x1x128xf32, #tpu.memory_space<vmem>>, vector<1x1x128xf32>
    %18 = vector.shape_cast %17 : vector<1x1x128xf32> to vector<1x128xf32>
    %c0_20 = arith.constant 0 : index
    %c0_21 = arith.constant 0 : index
    %c0_22 = arith.constant 0 : index
    %19 = vector.load %arg10[%c0_20, %c0_21, %c0_22] : memref<16x1x128xf32, #tpu.memory_space<vmem>>, vector<1x1x128xf32>
    %20 = vector.shape_cast %19 : vector<1x1x128xf32> to vector<1x128xf32>
    %c0_23 = arith.constant 0 : index
    %c0_24 = arith.constant 0 : index
    %c0_25 = arith.constant 0 : index
    %21 = vector.load %arg11[%c0_23, %c0_24, %c0_25] : memref<16x1x128xf32, #tpu.memory_space<vmem>>, vector<1x1x128xf32>
    %22 = vector.shape_cast %21 : vector<1x1x128xf32> to vector<1x128xf32>
    %cst_26 = arith.constant dense<0.000000e+00> : vector<8x128xf32>
    %23 = tpu.matmul %3, %10, %cst_26 {dimension_numbers = #tpu.dot_dimension_numbers<[1], [0], [0], [1], [0, 0, 1, 1], [], []>} : vector<8x16xf32>, vector<16x128xf32>, vector<8x128xf32> -> vector<8x128xf32>
    %24 = vector.broadcast %18 : vector<1x128xf32> to vector<8x128xf32>
    %25 = arith.addf %23, %24 : vector<8x128xf32>
    %cst_27 = arith.constant dense<0.000000e+00> : vector<8x128xf32>
    %26 = tpu.matmul %3, %13, %cst_27 {dimension_numbers = #tpu.dot_dimension_numbers<[1], [0], [0], [1], [0, 0, 1, 1], [], []>} : vector<8x16xf32>, vector<16x128xf32>, vector<8x128xf32> -> vector<8x128xf32>
    %27 = vector.broadcast %20 : vector<1x128xf32> to vector<8x128xf32>
    %28 = arith.addf %26, %27 : vector<8x128xf32>
    %cst_28 = arith.constant dense<0.000000e+00> : vector<20x128xf32>
    %29 = tpu.matmul %4, %16, %cst_28 {dimension_numbers = #tpu.dot_dimension_numbers<[1], [0], [0], [1], [0, 0, 1, 1], [], []>} : vector<20x8xf32>, vector<8x128xf32>, vector<20x128xf32> -> vector<20x128xf32>
    %cst_29 = arith.constant dense<0.000000e+00> : vector<20x128xf32>
    %30 = tpu.matmul %5, %25, %cst_29 {dimension_numbers = #tpu.dot_dimension_numbers<[1], [0], [0], [1], [0, 0, 1, 1], [], []>} : vector<20x8xf32>, vector<8x128xf32>, vector<20x128xf32> -> vector<20x128xf32>
    %cst_30 = arith.constant dense<0.000000e+00> : vector<20x128xf32>
    %31 = tpu.matmul %6, %28, %cst_30 {dimension_numbers = #tpu.dot_dimension_numbers<[1], [0], [0], [1], [0, 0, 1, 1], [], []>} : vector<20x8xf32>, vector<8x128xf32>, vector<20x128xf32> -> vector<20x128xf32>
    %32 = arith.addf %30, %31 : vector<20x128xf32>
    %33 = arith.addf %32, %29 : vector<20x128xf32>
    %cst_31 = arith.constant 0.000000e+00 : f32
    %34 = vector.broadcast %cst_31 : f32 to vector<20x128xf32>
    %35 = arith.cmpf ogt, %33, %34 : vector<20x128xf32>
    %cst_32 = arith.constant 2.000000e-01 : f32
    %36 = vector.broadcast %cst_32 : f32 to vector<20x128xf32>
    %37 = arith.mulf %36, %33 : vector<20x128xf32>
    %38 = arith.select %35, %33, %37 : vector<20x128xi1>, vector<20x128xf32>
    %39 = vector.broadcast %22 : vector<1x128xf32> to vector<20x128xf32>
    %40 = arith.mulf %38, %39 : vector<20x128xf32>
    %cst_33 = arith.constant dense<0.000000e+00> : vector<20xf32>
    %41 = vector.multi_reduction <add>, %40, %cst_33 [1] : vector<20x128xf32> to vector<20xf32>
    %42 = vector.shape_cast %41 : vector<20xf32> to vector<20x1xf32>
    %cst_34 = arith.constant 0.000000e+00 : f32
    %43 = vector.broadcast %cst_34 : f32 to vector<20x8xf32>
    %44 = arith.cmpf ogt, %6, %43 : vector<20x8xf32>
    %cst_35 = arith.constant -1.000000e+30 : f32
    %45 = vector.shape_cast %42 : vector<20x1xf32> to vector<20x1xf32>
    %46 = vector.broadcast %45 : vector<20x1xf32> to vector<20x8xf32>
    %47 = vector.broadcast %cst_35 : f32 to vector<20x8xf32>
    %48 = arith.select %44, %46, %47 : vector<20x8xi1>, vector<20x8xf32>
    %cst_36 = arith.constant dense<0xFF800000> : vector<8xf32>
    %49 = vector.multi_reduction <maximumf>, %48, %cst_36 [0] : vector<20x8xf32> to vector<8xf32>
    %50 = vector.shape_cast %49 : vector<8xf32> to vector<1x8xf32>
    %51 = vector.broadcast %50 : vector<1x8xf32> to vector<20x8xf32>
    %52 = arith.mulf %6, %51 : vector<20x8xf32>
    %cst_37 = arith.constant dense<0.000000e+00> : vector<20xf32>
    %53 = vector.multi_reduction <add>, %52, %cst_37 [1] : vector<20x8xf32> to vector<20xf32>
    %54 = vector.shape_cast %53 : vector<20xf32> to vector<20x1xf32>
    %55 = arith.subf %42, %54 : vector<20x1xf32>
    %56 = math.exp %55 : vector<20x1xf32>
    %57 = vector.broadcast %56 : vector<20x1xf32> to vector<20x8xf32>
    %58 = arith.mulf %6, %57 : vector<20x8xf32>
    %cst_38 = arith.constant dense<0.000000e+00> : vector<8xf32>
    %59 = vector.multi_reduction <add>, %58, %cst_38 [0] : vector<20x8xf32> to vector<8xf32>
    %60 = vector.shape_cast %59 : vector<8xf32> to vector<1x8xf32>
    %61 = vector.broadcast %60 : vector<1x8xf32> to vector<20x8xf32>
    %62 = arith.mulf %6, %61 : vector<20x8xf32>
    %cst_39 = arith.constant dense<0.000000e+00> : vector<20xf32>
    %63 = vector.multi_reduction <add>, %62, %cst_39 [1] : vector<20x8xf32> to vector<20xf32>
    %64 = vector.shape_cast %63 : vector<20xf32> to vector<20x1xf32>
    %65 = tpu.reciprocal %64 {approx = true} : vector<20x1xf32> -> vector<20x1xf32>
    %66 = arith.mulf %56, %65 : vector<20x1xf32>
    %67 = vector.broadcast %66 : vector<20x1xf32> to vector<20x128xf32>
    %68 = arith.mulf %30, %67 : vector<20x128xf32>
    %cst_40 = arith.constant dense<0.000000e+00> : vector<8x128xf32>
    %69 = tpu.matmul %6, %68, %cst_40 {dimension_numbers = #tpu.dot_dimension_numbers<[0], [0], [1], [1], [0, 1, 1, 1], [], []>} : vector<20x8xf32>, vector<20x128xf32>, vector<8x128xf32> -> vector<8x128xf32>
    %70 = arith.addf %7, %69 : vector<8x128xf32>
    %c1 = arith.constant 1 : index
    %c0_41 = arith.constant 0 : index
    %c0_42 = arith.constant 0 : index
    %71 = vector.load %arg6[%c1, %c0_41, %c0_42] : memref<16x16x128xbf16, #tpu.memory_space<vmem>>, vector<1x16x128xbf16>
    %72 = vector.shape_cast %71 : vector<1x16x128xbf16> to vector<16x128xbf16>
    %73 = arith.extf %72 : vector<16x128xbf16> to vector<16x128xf32>
    %c1_43 = arith.constant 1 : index
    %c0_44 = arith.constant 0 : index
    %c0_45 = arith.constant 0 : index
    %74 = vector.load %arg7[%c1_43, %c0_44, %c0_45] : memref<16x16x128xbf16, #tpu.memory_space<vmem>>, vector<1x16x128xbf16>
    %75 = vector.shape_cast %74 : vector<1x16x128xbf16> to vector<16x128xbf16>
    %76 = arith.extf %75 : vector<16x128xbf16> to vector<16x128xf32>
    %c1_46 = arith.constant 1 : index
    %c0_47 = arith.constant 0 : index
    %c0_48 = arith.constant 0 : index
    %77 = vector.load %arg8[%c1_46, %c0_47, %c0_48] : memref<16x8x128xbf16, #tpu.memory_space<vmem>>, vector<1x8x128xbf16>
    %78 = vector.shape_cast %77 : vector<1x8x128xbf16> to vector<8x128xbf16>
    %79 = arith.extf %78 : vector<8x128xbf16> to vector<8x128xf32>
    %c1_49 = arith.constant 1 : index
    %c0_50 = arith.constant 0 : index
    %c0_51 = arith.constant 0 : index
    %80 = vector.load %arg9[%c1_49, %c0_50, %c0_51] : memref<16x1x128xf32, #tpu.memory_space<vmem>>, vector<1x1x128xf32>
    %81 = vector.shape_cast %80 : vector<1x1x128xf32> to vector<1x128xf32>
    %c1_52 = arith.constant 1 : index
    %c0_53 = arith.constant 0 : index
    %c0_54 = arith.constant 0 : index
    %82 = vector.load %arg10[%c1_52, %c0_53, %c0_54] : memref<16x1x128xf32, #tpu.memory_space<vmem>>, vector<1x1x128xf32>
    %83 = vector.shape_cast %82 : vector<1x1x128xf32> to vector<1x128xf32>
    %c1_55 = arith.constant 1 : index
    %c0_56 = arith.constant 0 : index
    %c0_57 = arith.constant 0 : index
    %84 = vector.load %arg11[%c1_55, %c0_56, %c0_57] : memref<16x1x128xf32, #tpu.memory_space<vmem>>, vector<1x1x128xf32>
    %85 = vector.shape_cast %84 : vector<1x1x128xf32> to vector<1x128xf32>
    %cst_58 = arith.constant dense<0.000000e+00> : vector<8x128xf32>
    %86 = tpu.matmul %3, %73, %cst_58 {dimension_numbers = #tpu.dot_dimension_numbers<[1], [0], [0], [1], [0, 0, 1, 1], [], []>} : vector<8x16xf32>, vector<16x128xf32>, vector<8x128xf32> -> vector<8x128xf32>
    %87 = vector.broadcast %81 : vector<1x128xf32> to vector<8x128xf32>
    %88 = arith.addf %86, %87 : vector<8x128xf32>
    %cst_59 = arith.constant dense<0.000000e+00> : vector<8x128xf32>
    %89 = tpu.matmul %3, %76, %cst_59 {dimension_numbers = #tpu.dot_dimension_numbers<[1], [0], [0], [1], [0, 0, 1, 1], [], []>} : vector<8x16xf32>, vector<16x128xf32>, vector<8x128xf32> -> vector<8x128xf32>
    %90 = vector.broadcast %83 : vector<1x128xf32> to vector<8x128xf32>
    %91 = arith.addf %89, %90 : vector<8x128xf32>
    %cst_60 = arith.constant dense<0.000000e+00> : vector<20x128xf32>
    %92 = tpu.matmul %4, %79, %cst_60 {dimension_numbers = #tpu.dot_dimension_numbers<[1], [0], [0], [1], [0, 0, 1, 1], [], []>} : vector<20x8xf32>, vector<8x128xf32>, vector<20x128xf32> -> vector<20x128xf32>
    %cst_61 = arith.constant dense<0.000000e+00> : vector<20x128xf32>
    %93 = tpu.matmul %5, %88, %cst_61 {dimension_numbers = #tpu.dot_dimension_numbers<[1], [0], [0], [1], [0, 0, 1, 1], [], []>} : vector<20x8xf32>, vector<8x128xf32>, vector<20x128xf32> -> vector<20x128xf32>
    %cst_62 = arith.constant dense<0.000000e+00> : vector<20x128xf32>
    %94 = tpu.matmul %6, %91, %cst_62 {dimension_numbers = #tpu.dot_dimension_numbers<[1], [0], [0], [1], [0, 0, 1, 1], [], []>} : vector<20x8xf32>, vector<8x128xf32>, vector<20x128xf32> -> vector<20x128xf32>
    %95 = arith.addf %93, %94 : vector<20x128xf32>
    %96 = arith.addf %95, %92 : vector<20x128xf32>
    %cst_63 = arith.constant 0.000000e+00 : f32
    %97 = vector.broadcast %cst_63 : f32 to vector<20x128xf32>
    %98 = arith.cmpf ogt, %96, %97 : vector<20x128xf32>
    %cst_64 = arith.constant 2.000000e-01 : f32
    %99 = vector.broadcast %cst_64 : f32 to vector<20x128xf32>
    %100 = arith.mulf %99, %96 : vector<20x128xf32>
    %101 = arith.select %98, %96, %100 : vector<20x128xi1>, vector<20x128xf32>
    %102 = vector.broadcast %85 : vector<1x128xf32> to vector<20x128xf32>
    %103 = arith.mulf %101, %102 : vector<20x128xf32>
    %cst_65 = arith.constant dense<0.000000e+00> : vector<20xf32>
    %104 = vector.multi_reduction <add>, %103, %cst_65 [1] : vector<20x128xf32> to vector<20xf32>
    %105 = vector.shape_cast %104 : vector<20xf32> to vector<20x1xf32>
    %cst_66 = arith.constant 0.000000e+00 : f32
    %106 = vector.broadcast %cst_66 : f32 to vector<20x8xf32>
    %107 = arith.cmpf ogt, %6, %106 : vector<20x8xf32>
    %cst_67 = arith.constant -1.000000e+30 : f32
    %108 = vector.shape_cast %105 : vector<20x1xf32> to vector<20x1xf32>
    %109 = vector.broadcast %108 : vector<20x1xf32> to vector<20x8xf32>
    %110 = vector.broadcast %cst_67 : f32 to vector<20x8xf32>
    %111 = arith.select %107, %109, %110 : vector<20x8xi1>, vector<20x8xf32>
    %cst_68 = arith.constant dense<0xFF800000> : vector<8xf32>
    %112 = vector.multi_reduction <maximumf>, %111, %cst_68 [0] : vector<20x8xf32> to vector<8xf32>
    %113 = vector.shape_cast %112 : vector<8xf32> to vector<1x8xf32>
    %114 = vector.broadcast %113 : vector<1x8xf32> to vector<20x8xf32>
    %115 = arith.mulf %6, %114 : vector<20x8xf32>
    %cst_69 = arith.constant dense<0.000000e+00> : vector<20xf32>
    %116 = vector.multi_reduction <add>, %115, %cst_69 [1] : vector<20x8xf32> to vector<20xf32>
    %117 = vector.shape_cast %116 : vector<20xf32> to vector<20x1xf32>
    %118 = arith.subf %105, %117 : vector<20x1xf32>
    %119 = math.exp %118 : vector<20x1xf32>
    %120 = vector.broadcast %119 : vector<20x1xf32> to vector<20x8xf32>
    %121 = arith.mulf %6, %120 : vector<20x8xf32>
    %cst_70 = arith.constant dense<0.000000e+00> : vector<8xf32>
    %122 = vector.multi_reduction <add>, %121, %cst_70 [0] : vector<20x8xf32> to vector<8xf32>
    %123 = vector.shape_cast %122 : vector<8xf32> to vector<1x8xf32>
    %124 = vector.broadcast %123 : vector<1x8xf32> to vector<20x8xf32>
    %125 = arith.mulf %6, %124 : vector<20x8xf32>
    %cst_71 = arith.constant dense<0.000000e+00> : vector<20xf32>
    %126 = vector.multi_reduction <add>, %125, %cst_71 [1] : vector<20x8xf32> to vector<20xf32>
    %127 = vector.shape_cast %126 : vector<20xf32> to vector<20x1xf32>
    %128 = tpu.reciprocal %127 {approx = true} : vector<20x1xf32> -> vector<20x1xf32>
    %129 = arith.mulf %119, %128 : vector<20x1xf32>
    %130 = vector.broadcast %129 : vector<20x1xf32> to vector<20x128xf32>
    %131 = arith.mulf %93, %130 : vector<20x128xf32>
    %cst_72 = arith.constant dense<0.000000e+00> : vector<8x128xf32>
    %132 = tpu.matmul %6, %131, %cst_72 {dimension_numbers = #tpu.dot_dimension_numbers<[0], [0], [1], [1], [0, 1, 1, 1], [], []>} : vector<20x8xf32>, vector<20x128xf32>, vector<8x128xf32> -> vector<8x128xf32>
    %133 = arith.addf %70, %132 : vector<8x128xf32>
    %c2 = arith.constant 2 : index
    %c0_73 = arith.constant 0 : index
    %c0_74 = arith.constant 0 : index
    %134 = vector.load %arg6[%c2, %c0_73, %c0_74] : memref<16x16x128xbf16, #tpu.memory_space<vmem>>, vector<1x16x128xbf16>
    %135 = vector.shape_cast %134 : vector<1x16x128xbf16> to vector<16x128xbf16>
    %136 = arith.extf %135 : vector<16x128xbf16> to vector<16x128xf32>
    %c2_75 = arith.constant 2 : index
    %c0_76 = arith.constant 0 : index
    %c0_77 = arith.constant 0 : index
    %137 = vector.load %arg7[%c2_75, %c0_76, %c0_77] : memref<16x16x128xbf16, #tpu.memory_space<vmem>>, vector<1x16x128xbf16>
    %138 = vector.shape_cast %137 : vector<1x16x128xbf16> to vector<16x128xbf16>
    %139 = arith.extf %138 : vector<16x128xbf16> to vector<16x128xf32>
    %c2_78 = arith.constant 2 : index
    %c0_79 = arith.constant 0 : index
    %c0_80 = arith.constant 0 : index
    %140 = vector.load %arg8[%c2_78, %c0_79, %c0_80] : memref<16x8x128xbf16, #tpu.memory_space<vmem>>, vector<1x8x128xbf16>
    %141 = vector.shape_cast %140 : vector<1x8x128xbf16> to vector<8x128xbf16>
    %142 = arith.extf %141 : vector<8x128xbf16> to vector<8x128xf32>
    %c2_81 = arith.constant 2 : index
    %c0_82 = arith.constant 0 : index
    %c0_83 = arith.constant 0 : index
    %143 = vector.load %arg9[%c2_81, %c0_82, %c0_83] : memref<16x1x128xf32, #tpu.memory_space<vmem>>, vector<1x1x128xf32>
    %144 = vector.shape_cast %143 : vector<1x1x128xf32> to vector<1x128xf32>
    %c2_84 = arith.constant 2 : index
    %c0_85 = arith.constant 0 : index
    %c0_86 = arith.constant 0 : index
    %145 = vector.load %arg10[%c2_84, %c0_85, %c0_86] : memref<16x1x128xf32, #tpu.memory_space<vmem>>, vector<1x1x128xf32>
    %146 = vector.shape_cast %145 : vector<1x1x128xf32> to vector<1x128xf32>
    %c2_87 = arith.constant 2 : index
    %c0_88 = arith.constant 0 : index
    %c0_89 = arith.constant 0 : index
    %147 = vector.load %arg11[%c2_87, %c0_88, %c0_89] : memref<16x1x128xf32, #tpu.memory_space<vmem>>, vector<1x1x128xf32>
    %148 = vector.shape_cast %147 : vector<1x1x128xf32> to vector<1x128xf32>
    %cst_90 = arith.constant dense<0.000000e+00> : vector<8x128xf32>
    %149 = tpu.matmul %3, %136, %cst_90 {dimension_numbers = #tpu.dot_dimension_numbers<[1], [0], [0], [1], [0, 0, 1, 1], [], []>} : vector<8x16xf32>, vector<16x128xf32>, vector<8x128xf32> -> vector<8x128xf32>
    %150 = vector.broadcast %144 : vector<1x128xf32> to vector<8x128xf32>
    %151 = arith.addf %149, %150 : vector<8x128xf32>
    %cst_91 = arith.constant dense<0.000000e+00> : vector<8x128xf32>
    %152 = tpu.matmul %3, %139, %cst_91 {dimension_numbers = #tpu.dot_dimension_numbers<[1], [0], [0], [1], [0, 0, 1, 1], [], []>} : vector<8x16xf32>, vector<16x128xf32>, vector<8x128xf32> -> vector<8x128xf32>
    %153 = vector.broadcast %146 : vector<1x128xf32> to vector<8x128xf32>
    %154 = arith.addf %152, %153 : vector<8x128xf32>
    %cst_92 = arith.constant dense<0.000000e+00> : vector<20x128xf32>
    %155 = tpu.matmul %4, %142, %cst_92 {dimension_numbers = #tpu.dot_dimension_numbers<[1], [0], [0], [1], [0, 0, 1, 1], [], []>} : vector<20x8xf32>, vector<8x128xf32>, vector<20x128xf32> -> vector<20x128xf32>
    %cst_93 = arith.constant dense<0.000000e+00> : vector<20x128xf32>
    %156 = tpu.matmul %5, %151, %cst_93 {dimension_numbers = #tpu.dot_dimension_numbers<[1], [0], [0], [1], [0, 0, 1, 1], [], []>} : vector<20x8xf32>, vector<8x128xf32>, vector<20x128xf32> -> vector<20x128xf32>
    %cst_94 = arith.constant dense<0.000000e+00> : vector<20x128xf32>
    %157 = tpu.matmul %6, %154, %cst_94 {dimension_numbers = #tpu.dot_dimension_numbers<[1], [0], [0], [1], [0, 0, 1, 1], [], []>} : vector<20x8xf32>, vector<8x128xf32>, vector<20x128xf32> -> vector<20x128xf32>
    %158 = arith.addf %156, %157 : vector<20x128xf32>
    %159 = arith.addf %158, %155 : vector<20x128xf32>
    %cst_95 = arith.constant 0.000000e+00 : f32
    %160 = vector.broadcast %cst_95 : f32 to vector<20x128xf32>
    %161 = arith.cmpf ogt, %159, %160 : vector<20x128xf32>
    %cst_96 = arith.constant 2.000000e-01 : f32
    %162 = vector.broadcast %cst_96 : f32 to vector<20x128xf32>
    %163 = arith.mulf %162, %159 : vector<20x128xf32>
    %164 = arith.select %161, %159, %163 : vector<20x128xi1>, vector<20x128xf32>
    %165 = vector.broadcast %148 : vector<1x128xf32> to vector<20x128xf32>
    %166 = arith.mulf %164, %165 : vector<20x128xf32>
    %cst_97 = arith.constant dense<0.000000e+00> : vector<20xf32>
    %167 = vector.multi_reduction <add>, %166, %cst_97 [1] : vector<20x128xf32> to vector<20xf32>
    %168 = vector.shape_cast %167 : vector<20xf32> to vector<20x1xf32>
    %cst_98 = arith.constant 0.000000e+00 : f32
    %169 = vector.broadcast %cst_98 : f32 to vector<20x8xf32>
    %170 = arith.cmpf ogt, %6, %169 : vector<20x8xf32>
    %cst_99 = arith.constant -1.000000e+30 : f32
    %171 = vector.shape_cast %168 : vector<20x1xf32> to vector<20x1xf32>
    %172 = vector.broadcast %171 : vector<20x1xf32> to vector<20x8xf32>
    %173 = vector.broadcast %cst_99 : f32 to vector<20x8xf32>
    %174 = arith.select %170, %172, %173 : vector<20x8xi1>, vector<20x8xf32>
    %cst_100 = arith.constant dense<0xFF800000> : vector<8xf32>
    %175 = vector.multi_reduction <maximumf>, %174, %cst_100 [0] : vector<20x8xf32> to vector<8xf32>
    %176 = vector.shape_cast %175 : vector<8xf32> to vector<1x8xf32>
    %177 = vector.broadcast %176 : vector<1x8xf32> to vector<20x8xf32>
    %178 = arith.mulf %6, %177 : vector<20x8xf32>
    %cst_101 = arith.constant dense<0.000000e+00> : vector<20xf32>
    %179 = vector.multi_reduction <add>, %178, %cst_101 [1] : vector<20x8xf32> to vector<20xf32>
    %180 = vector.shape_cast %179 : vector<20xf32> to vector<20x1xf32>
    %181 = arith.subf %168, %180 : vector<20x1xf32>
    %182 = math.exp %181 : vector<20x1xf32>
    %183 = vector.broadcast %182 : vector<20x1xf32> to vector<20x8xf32>
    %184 = arith.mulf %6, %183 : vector<20x8xf32>
    %cst_102 = arith.constant dense<0.000000e+00> : vector<8xf32>
    %185 = vector.multi_reduction <add>, %184, %cst_102 [0] : vector<20x8xf32> to vector<8xf32>
    %186 = vector.shape_cast %185 : vector<8xf32> to vector<1x8xf32>
    %187 = vector.broadcast %186 : vector<1x8xf32> to vector<20x8xf32>
    %188 = arith.mulf %6, %187 : vector<20x8xf32>
    %cst_103 = arith.constant dense<0.000000e+00> : vector<20xf32>
    %189 = vector.multi_reduction <add>, %188, %cst_103 [1] : vector<20x8xf32> to vector<20xf32>
    %190 = vector.shape_cast %189 : vector<20xf32> to vector<20x1xf32>
    %191 = tpu.reciprocal %190 {approx = true} : vector<20x1xf32> -> vector<20x1xf32>
    %192 = arith.mulf %182, %191 : vector<20x1xf32>
    %193 = vector.broadcast %192 : vector<20x1xf32> to vector<20x128xf32>
    %194 = arith.mulf %156, %193 : vector<20x128xf32>
    %cst_104 = arith.constant dense<0.000000e+00> : vector<8x128xf32>
    %195 = tpu.matmul %6, %194, %cst_104 {dimension_numbers = #tpu.dot_dimension_numbers<[0], [0], [1], [1], [0, 1, 1, 1], [], []>} : vector<20x8xf32>, vector<20x128xf32>, vector<8x128xf32> -> vector<8x128xf32>
    %196 = arith.addf %133, %195 : vector<8x128xf32>
    %c3 = arith.constant 3 : index
    %c0_105 = arith.constant 0 : index
    %c0_106 = arith.constant 0 : index
    %197 = vector.load %arg6[%c3, %c0_105, %c0_106] : memref<16x16x128xbf16, #tpu.memory_space<vmem>>, vector<1x16x128xbf16>
    %198 = vector.shape_cast %197 : vector<1x16x128xbf16> to vector<16x128xbf16>
    %199 = arith.extf %198 : vector<16x128xbf16> to vector<16x128xf32>
    %c3_107 = arith.constant 3 : index
    %c0_108 = arith.constant 0 : index
    %c0_109 = arith.constant 0 : index
    %200 = vector.load %arg7[%c3_107, %c0_108, %c0_109] : memref<16x16x128xbf16, #tpu.memory_space<vmem>>, vector<1x16x128xbf16>
    %201 = vector.shape_cast %200 : vector<1x16x128xbf16> to vector<16x128xbf16>
    %202 = arith.extf %201 : vector<16x128xbf16> to vector<16x128xf32>
    %c3_110 = arith.constant 3 : index
    %c0_111 = arith.constant 0 : index
    %c0_112 = arith.constant 0 : index
    %203 = vector.load %arg8[%c3_110, %c0_111, %c0_112] : memref<16x8x128xbf16, #tpu.memory_space<vmem>>, vector<1x8x128xbf16>
    %204 = vector.shape_cast %203 : vector<1x8x128xbf16> to vector<8x128xbf16>
    %205 = arith.extf %204 : vector<8x128xbf16> to vector<8x128xf32>
    %c3_113 = arith.constant 3 : index
    %c0_114 = arith.constant 0 : index
    %c0_115 = arith.constant 0 : index
    %206 = vector.load %arg9[%c3_113, %c0_114, %c0_115] : memref<16x1x128xf32, #tpu.memory_space<vmem>>, vector<1x1x128xf32>
    %207 = vector.shape_cast %206 : vector<1x1x128xf32> to vector<1x128xf32>
    %c3_116 = arith.constant 3 : index
    %c0_117 = arith.constant 0 : index
    %c0_118 = arith.constant 0 : index
    %208 = vector.load %arg10[%c3_116, %c0_117, %c0_118] : memref<16x1x128xf32, #tpu.memory_space<vmem>>, vector<1x1x128xf32>
    %209 = vector.shape_cast %208 : vector<1x1x128xf32> to vector<1x128xf32>
    %c3_119 = arith.constant 3 : index
    %c0_120 = arith.constant 0 : index
    %c0_121 = arith.constant 0 : index
    %210 = vector.load %arg11[%c3_119, %c0_120, %c0_121] : memref<16x1x128xf32, #tpu.memory_space<vmem>>, vector<1x1x128xf32>
    %211 = vector.shape_cast %210 : vector<1x1x128xf32> to vector<1x128xf32>
    %cst_122 = arith.constant dense<0.000000e+00> : vector<8x128xf32>
    %212 = tpu.matmul %3, %199, %cst_122 {dimension_numbers = #tpu.dot_dimension_numbers<[1], [0], [0], [1], [0, 0, 1, 1], [], []>} : vector<8x16xf32>, vector<16x128xf32>, vector<8x128xf32> -> vector<8x128xf32>
    %213 = vector.broadcast %207 : vector<1x128xf32> to vector<8x128xf32>
    %214 = arith.addf %212, %213 : vector<8x128xf32>
    %cst_123 = arith.constant dense<0.000000e+00> : vector<8x128xf32>
    %215 = tpu.matmul %3, %202, %cst_123 {dimension_numbers = #tpu.dot_dimension_numbers<[1], [0], [0], [1], [0, 0, 1, 1], [], []>} : vector<8x16xf32>, vector<16x128xf32>, vector<8x128xf32> -> vector<8x128xf32>
    %216 = vector.broadcast %209 : vector<1x128xf32> to vector<8x128xf32>
    %217 = arith.addf %215, %216 : vector<8x128xf32>
    %cst_124 = arith.constant dense<0.000000e+00> : vector<20x128xf32>
    %218 = tpu.matmul %4, %205, %cst_124 {dimension_numbers = #tpu.dot_dimension_numbers<[1], [0], [0], [1], [0, 0, 1, 1], [], []>} : vector<20x8xf32>, vector<8x128xf32>, vector<20x128xf32> -> vector<20x128xf32>
    %cst_125 = arith.constant dense<0.000000e+00> : vector<20x128xf32>
    %219 = tpu.matmul %5, %214, %cst_125 {dimension_numbers = #tpu.dot_dimension_numbers<[1], [0], [0], [1], [0, 0, 1, 1], [], []>} : vector<20x8xf32>, vector<8x128xf32>, vector<20x128xf32> -> vector<20x128xf32>
    %cst_126 = arith.constant dense<0.000000e+00> : vector<20x128xf32>
    %220 = tpu.matmul %6, %217, %cst_126 {dimension_numbers = #tpu.dot_dimension_numbers<[1], [0], [0], [1], [0, 0, 1, 1], [], []>} : vector<20x8xf32>, vector<8x128xf32>, vector<20x128xf32> -> vector<20x128xf32>
    %221 = arith.addf %219, %220 : vector<20x128xf32>
    %222 = arith.addf %221, %218 : vector<20x128xf32>
    %cst_127 = arith.constant 0.000000e+00 : f32
    %223 = vector.broadcast %cst_127 : f32 to vector<20x128xf32>
    %224 = arith.cmpf ogt, %222, %223 : vector<20x128xf32>
    %cst_128 = arith.constant 2.000000e-01 : f32
    %225 = vector.broadcast %cst_128 : f32 to vector<20x128xf32>
    %226 = arith.mulf %225, %222 : vector<20x128xf32>
    %227 = arith.select %224, %222, %226 : vector<20x128xi1>, vector<20x128xf32>
    %228 = vector.broadcast %211 : vector<1x128xf32> to vector<20x128xf32>
    %229 = arith.mulf %227, %228 : vector<20x128xf32>
    %cst_129 = arith.constant dense<0.000000e+00> : vector<20xf32>
    %230 = vector.multi_reduction <add>, %229, %cst_129 [1] : vector<20x128xf32> to vector<20xf32>
    %231 = vector.shape_cast %230 : vector<20xf32> to vector<20x1xf32>
    %cst_130 = arith.constant 0.000000e+00 : f32
    %232 = vector.broadcast %cst_130 : f32 to vector<20x8xf32>
    %233 = arith.cmpf ogt, %6, %232 : vector<20x8xf32>
    %cst_131 = arith.constant -1.000000e+30 : f32
    %234 = vector.shape_cast %231 : vector<20x1xf32> to vector<20x1xf32>
    %235 = vector.broadcast %234 : vector<20x1xf32> to vector<20x8xf32>
    %236 = vector.broadcast %cst_131 : f32 to vector<20x8xf32>
    %237 = arith.select %233, %235, %236 : vector<20x8xi1>, vector<20x8xf32>
    %cst_132 = arith.constant dense<0xFF800000> : vector<8xf32>
    %238 = vector.multi_reduction <maximumf>, %237, %cst_132 [0] : vector<20x8xf32> to vector<8xf32>
    %239 = vector.shape_cast %238 : vector<8xf32> to vector<1x8xf32>
    %240 = vector.broadcast %239 : vector<1x8xf32> to vector<20x8xf32>
    %241 = arith.mulf %6, %240 : vector<20x8xf32>
    %cst_133 = arith.constant dense<0.000000e+00> : vector<20xf32>
    %242 = vector.multi_reduction <add>, %241, %cst_133 [1] : vector<20x8xf32> to vector<20xf32>
    %243 = vector.shape_cast %242 : vector<20xf32> to vector<20x1xf32>
    %244 = arith.subf %231, %243 : vector<20x1xf32>
    %245 = math.exp %244 : vector<20x1xf32>
    %246 = vector.broadcast %245 : vector<20x1xf32> to vector<20x8xf32>
    %247 = arith.mulf %6, %246 : vector<20x8xf32>
    %cst_134 = arith.constant dense<0.000000e+00> : vector<8xf32>
    %248 = vector.multi_reduction <add>, %247, %cst_134 [0] : vector<20x8xf32> to vector<8xf32>
    %249 = vector.shape_cast %248 : vector<8xf32> to vector<1x8xf32>
    %250 = vector.broadcast %249 : vector<1x8xf32> to vector<20x8xf32>
    %251 = arith.mulf %6, %250 : vector<20x8xf32>
    %cst_135 = arith.constant dense<0.000000e+00> : vector<20xf32>
    %252 = vector.multi_reduction <add>, %251, %cst_135 [1] : vector<20x8xf32> to vector<20xf32>
    %253 = vector.shape_cast %252 : vector<20xf32> to vector<20x1xf32>
    %254 = tpu.reciprocal %253 {approx = true} : vector<20x1xf32> -> vector<20x1xf32>
    %255 = arith.mulf %245, %254 : vector<20x1xf32>
    %256 = vector.broadcast %255 : vector<20x1xf32> to vector<20x128xf32>
    %257 = arith.mulf %219, %256 : vector<20x128xf32>
    %cst_136 = arith.constant dense<0.000000e+00> : vector<8x128xf32>
    %258 = tpu.matmul %6, %257, %cst_136 {dimension_numbers = #tpu.dot_dimension_numbers<[0], [0], [1], [1], [0, 1, 1, 1], [], []>} : vector<20x8xf32>, vector<20x128xf32>, vector<8x128xf32> -> vector<8x128xf32>
    %259 = arith.addf %196, %258 : vector<8x128xf32>
    %c4 = arith.constant 4 : index
    %c0_137 = arith.constant 0 : index
    %c0_138 = arith.constant 0 : index
    %260 = vector.load %arg6[%c4, %c0_137, %c0_138] : memref<16x16x128xbf16, #tpu.memory_space<vmem>>, vector<1x16x128xbf16>
    %261 = vector.shape_cast %260 : vector<1x16x128xbf16> to vector<16x128xbf16>
    %262 = arith.extf %261 : vector<16x128xbf16> to vector<16x128xf32>
    %c4_139 = arith.constant 4 : index
    %c0_140 = arith.constant 0 : index
    %c0_141 = arith.constant 0 : index
    %263 = vector.load %arg7[%c4_139, %c0_140, %c0_141] : memref<16x16x128xbf16, #tpu.memory_space<vmem>>, vector<1x16x128xbf16>
    %264 = vector.shape_cast %263 : vector<1x16x128xbf16> to vector<16x128xbf16>
    %265 = arith.extf %264 : vector<16x128xbf16> to vector<16x128xf32>
    %c4_142 = arith.constant 4 : index
    %c0_143 = arith.constant 0 : index
    %c0_144 = arith.constant 0 : index
    %266 = vector.load %arg8[%c4_142, %c0_143, %c0_144] : memref<16x8x128xbf16, #tpu.memory_space<vmem>>, vector<1x8x128xbf16>
    %267 = vector.shape_cast %266 : vector<1x8x128xbf16> to vector<8x128xbf16>
    %268 = arith.extf %267 : vector<8x128xbf16> to vector<8x128xf32>
    %c4_145 = arith.constant 4 : index
    %c0_146 = arith.constant 0 : index
    %c0_147 = arith.constant 0 : index
    %269 = vector.load %arg9[%c4_145, %c0_146, %c0_147] : memref<16x1x128xf32, #tpu.memory_space<vmem>>, vector<1x1x128xf32>
    %270 = vector.shape_cast %269 : vector<1x1x128xf32> to vector<1x128xf32>
    %c4_148 = arith.constant 4 : index
    %c0_149 = arith.constant 0 : index
    %c0_150 = arith.constant 0 : index
    %271 = vector.load %arg10[%c4_148, %c0_149, %c0_150] : memref<16x1x128xf32, #tpu.memory_space<vmem>>, vector<1x1x128xf32>
    %272 = vector.shape_cast %271 : vector<1x1x128xf32> to vector<1x128xf32>
    %c4_151 = arith.constant 4 : index
    %c0_152 = arith.constant 0 : index
    %c0_153 = arith.constant 0 : index
    %273 = vector.load %arg11[%c4_151, %c0_152, %c0_153] : memref<16x1x128xf32, #tpu.memory_space<vmem>>, vector<1x1x128xf32>
    %274 = vector.shape_cast %273 : vector<1x1x128xf32> to vector<1x128xf32>
    %cst_154 = arith.constant dense<0.000000e+00> : vector<8x128xf32>
    %275 = tpu.matmul %3, %262, %cst_154 {dimension_numbers = #tpu.dot_dimension_numbers<[1], [0], [0], [1], [0, 0, 1, 1], [], []>} : vector<8x16xf32>, vector<16x128xf32>, vector<8x128xf32> -> vector<8x128xf32>
    %276 = vector.broadcast %270 : vector<1x128xf32> to vector<8x128xf32>
    %277 = arith.addf %275, %276 : vector<8x128xf32>
    %cst_155 = arith.constant dense<0.000000e+00> : vector<8x128xf32>
    %278 = tpu.matmul %3, %265, %cst_155 {dimension_numbers = #tpu.dot_dimension_numbers<[1], [0], [0], [1], [0, 0, 1, 1], [], []>} : vector<8x16xf32>, vector<16x128xf32>, vector<8x128xf32> -> vector<8x128xf32>
    %279 = vector.broadcast %272 : vector<1x128xf32> to vector<8x128xf32>
    %280 = arith.addf %278, %279 : vector<8x128xf32>
    %cst_156 = arith.constant dense<0.000000e+00> : vector<20x128xf32>
    %281 = tpu.matmul %4, %268, %cst_156 {dimension_numbers = #tpu.dot_dimension_numbers<[1], [0], [0], [1], [0, 0, 1, 1], [], []>} : vector<20x8xf32>, vector<8x128xf32>, vector<20x128xf32> -> vector<20x128xf32>
    %cst_157 = arith.constant dense<0.000000e+00> : vector<20x128xf32>
    %282 = tpu.matmul %5, %277, %cst_157 {dimension_numbers = #tpu.dot_dimension_numbers<[1], [0], [0], [1], [0, 0, 1, 1], [], []>} : vector<20x8xf32>, vector<8x128xf32>, vector<20x128xf32> -> vector<20x128xf32>
    %cst_158 = arith.constant dense<0.000000e+00> : vector<20x128xf32>
    %283 = tpu.matmul %6, %280, %cst_158 {dimension_numbers = #tpu.dot_dimension_numbers<[1], [0], [0], [1], [0, 0, 1, 1], [], []>} : vector<20x8xf32>, vector<8x128xf32>, vector<20x128xf32> -> vector<20x128xf32>
    %284 = arith.addf %282, %283 : vector<20x128xf32>
    %285 = arith.addf %284, %281 : vector<20x128xf32>
    %cst_159 = arith.constant 0.000000e+00 : f32
    %286 = vector.broadcast %cst_159 : f32 to vector<20x128xf32>
    %287 = arith.cmpf ogt, %285, %286 : vector<20x128xf32>
    %cst_160 = arith.constant 2.000000e-01 : f32
    %288 = vector.broadcast %cst_160 : f32 to vector<20x128xf32>
    %289 = arith.mulf %288, %285 : vector<20x128xf32>
    %290 = arith.select %287, %285, %289 : vector<20x128xi1>, vector<20x128xf32>
    %291 = vector.broadcast %274 : vector<1x128xf32> to vector<20x128xf32>
    %292 = arith.mulf %290, %291 : vector<20x128xf32>
    %cst_161 = arith.constant dense<0.000000e+00> : vector<20xf32>
    %293 = vector.multi_reduction <add>, %292, %cst_161 [1] : vector<20x128xf32> to vector<20xf32>
    %294 = vector.shape_cast %293 : vector<20xf32> to vector<20x1xf32>
    %cst_162 = arith.constant 0.000000e+00 : f32
    %295 = vector.broadcast %cst_162 : f32 to vector<20x8xf32>
    %296 = arith.cmpf ogt, %6, %295 : vector<20x8xf32>
    %cst_163 = arith.constant -1.000000e+30 : f32
    %297 = vector.shape_cast %294 : vector<20x1xf32> to vector<20x1xf32>
    %298 = vector.broadcast %297 : vector<20x1xf32> to vector<20x8xf32>
    %299 = vector.broadcast %cst_163 : f32 to vector<20x8xf32>
    %300 = arith.select %296, %298, %299 : vector<20x8xi1>, vector<20x8xf32>
    %cst_164 = arith.constant dense<0xFF800000> : vector<8xf32>
    %301 = vector.multi_reduction <maximumf>, %300, %cst_164 [0] : vector<20x8xf32> to vector<8xf32>
    %302 = vector.shape_cast %301 : vector<8xf32> to vector<1x8xf32>
    %303 = vector.broadcast %302 : vector<1x8xf32> to vector<20x8xf32>
    %304 = arith.mulf %6, %303 : vector<20x8xf32>
    %cst_165 = arith.constant dense<0.000000e+00> : vector<20xf32>
    %305 = vector.multi_reduction <add>, %304, %cst_165 [1] : vector<20x8xf32> to vector<20xf32>
    %306 = vector.shape_cast %305 : vector<20xf32> to vector<20x1xf32>
    %307 = arith.subf %294, %306 : vector<20x1xf32>
    %308 = math.exp %307 : vector<20x1xf32>
    %309 = vector.broadcast %308 : vector<20x1xf32> to vector<20x8xf32>
    %310 = arith.mulf %6, %309 : vector<20x8xf32>
    %cst_166 = arith.constant dense<0.000000e+00> : vector<8xf32>
    %311 = vector.multi_reduction <add>, %310, %cst_166 [0] : vector<20x8xf32> to vector<8xf32>
    %312 = vector.shape_cast %311 : vector<8xf32> to vector<1x8xf32>
    %313 = vector.broadcast %312 : vector<1x8xf32> to vector<20x8xf32>
    %314 = arith.mulf %6, %313 : vector<20x8xf32>
    %cst_167 = arith.constant dense<0.000000e+00> : vector<20xf32>
    %315 = vector.multi_reduction <add>, %314, %cst_167 [1] : vector<20x8xf32> to vector<20xf32>
    %316 = vector.shape_cast %315 : vector<20xf32> to vector<20x1xf32>
    %317 = tpu.reciprocal %316 {approx = true} : vector<20x1xf32> -> vector<20x1xf32>
    %318 = arith.mulf %308, %317 : vector<20x1xf32>
    %319 = vector.broadcast %318 : vector<20x1xf32> to vector<20x128xf32>
    %320 = arith.mulf %282, %319 : vector<20x128xf32>
    %cst_168 = arith.constant dense<0.000000e+00> : vector<8x128xf32>
    %321 = tpu.matmul %6, %320, %cst_168 {dimension_numbers = #tpu.dot_dimension_numbers<[0], [0], [1], [1], [0, 1, 1, 1], [], []>} : vector<20x8xf32>, vector<20x128xf32>, vector<8x128xf32> -> vector<8x128xf32>
    %322 = arith.addf %259, %321 : vector<8x128xf32>
    %c5 = arith.constant 5 : index
    %c0_169 = arith.constant 0 : index
    %c0_170 = arith.constant 0 : index
    %323 = vector.load %arg6[%c5, %c0_169, %c0_170] : memref<16x16x128xbf16, #tpu.memory_space<vmem>>, vector<1x16x128xbf16>
    %324 = vector.shape_cast %323 : vector<1x16x128xbf16> to vector<16x128xbf16>
    %325 = arith.extf %324 : vector<16x128xbf16> to vector<16x128xf32>
    %c5_171 = arith.constant 5 : index
    %c0_172 = arith.constant 0 : index
    %c0_173 = arith.constant 0 : index
    %326 = vector.load %arg7[%c5_171, %c0_172, %c0_173] : memref<16x16x128xbf16, #tpu.memory_space<vmem>>, vector<1x16x128xbf16>
    %327 = vector.shape_cast %326 : vector<1x16x128xbf16> to vector<16x128xbf16>
    %328 = arith.extf %327 : vector<16x128xbf16> to vector<16x128xf32>
    %c5_174 = arith.constant 5 : index
    %c0_175 = arith.constant 0 : index
    %c0_176 = arith.constant 0 : index
    %329 = vector.load %arg8[%c5_174, %c0_175, %c0_176] : memref<16x8x128xbf16, #tpu.memory_space<vmem>>, vector<1x8x128xbf16>
    %330 = vector.shape_cast %329 : vector<1x8x128xbf16> to vector<8x128xbf16>
    %331 = arith.extf %330 : vector<8x128xbf16> to vector<8x128xf32>
    %c5_177 = arith.constant 5 : index
    %c0_178 = arith.constant 0 : index
    %c0_179 = arith.constant 0 : index
    %332 = vector.load %arg9[%c5_177, %c0_178, %c0_179] : memref<16x1x128xf32, #tpu.memory_space<vmem>>, vector<1x1x128xf32>
    %333 = vector.shape_cast %332 : vector<1x1x128xf32> to vector<1x128xf32>
    %c5_180 = arith.constant 5 : index
    %c0_181 = arith.constant 0 : index
    %c0_182 = arith.constant 0 : index
    %334 = vector.load %arg10[%c5_180, %c0_181, %c0_182] : memref<16x1x128xf32, #tpu.memory_space<vmem>>, vector<1x1x128xf32>
    %335 = vector.shape_cast %334 : vector<1x1x128xf32> to vector<1x128xf32>
    %c5_183 = arith.constant 5 : index
    %c0_184 = arith.constant 0 : index
    %c0_185 = arith.constant 0 : index
    %336 = vector.load %arg11[%c5_183, %c0_184, %c0_185] : memref<16x1x128xf32, #tpu.memory_space<vmem>>, vector<1x1x128xf32>
    %337 = vector.shape_cast %336 : vector<1x1x128xf32> to vector<1x128xf32>
    %cst_186 = arith.constant dense<0.000000e+00> : vector<8x128xf32>
    %338 = tpu.matmul %3, %325, %cst_186 {dimension_numbers = #tpu.dot_dimension_numbers<[1], [0], [0], [1], [0, 0, 1, 1], [], []>} : vector<8x16xf32>, vector<16x128xf32>, vector<8x128xf32> -> vector<8x128xf32>
    %339 = vector.broadcast %333 : vector<1x128xf32> to vector<8x128xf32>
    %340 = arith.addf %338, %339 : vector<8x128xf32>
    %cst_187 = arith.constant dense<0.000000e+00> : vector<8x128xf32>
    %341 = tpu.matmul %3, %328, %cst_187 {dimension_numbers = #tpu.dot_dimension_numbers<[1], [0], [0], [1], [0, 0, 1, 1], [], []>} : vector<8x16xf32>, vector<16x128xf32>, vector<8x128xf32> -> vector<8x128xf32>
    %342 = vector.broadcast %335 : vector<1x128xf32> to vector<8x128xf32>
    %343 = arith.addf %341, %342 : vector<8x128xf32>
    %cst_188 = arith.constant dense<0.000000e+00> : vector<20x128xf32>
    %344 = tpu.matmul %4, %331, %cst_188 {dimension_numbers = #tpu.dot_dimension_numbers<[1], [0], [0], [1], [0, 0, 1, 1], [], []>} : vector<20x8xf32>, vector<8x128xf32>, vector<20x128xf32> -> vector<20x128xf32>
    %cst_189 = arith.constant dense<0.000000e+00> : vector<20x128xf32>
    %345 = tpu.matmul %5, %340, %cst_189 {dimension_numbers = #tpu.dot_dimension_numbers<[1], [0], [0], [1], [0, 0, 1, 1], [], []>} : vector<20x8xf32>, vector<8x128xf32>, vector<20x128xf32> -> vector<20x128xf32>
    %cst_190 = arith.constant dense<0.000000e+00> : vector<20x128xf32>
    %346 = tpu.matmul %6, %343, %cst_190 {dimension_numbers = #tpu.dot_dimension_numbers<[1], [0], [0], [1], [0, 0, 1, 1], [], []>} : vector<20x8xf32>, vector<8x128xf32>, vector<20x128xf32> -> vector<20x128xf32>
    %347 = arith.addf %345, %346 : vector<20x128xf32>
    %348 = arith.addf %347, %344 : vector<20x128xf32>
    %cst_191 = arith.constant 0.000000e+00 : f32
    %349 = vector.broadcast %cst_191 : f32 to vector<20x128xf32>
    %350 = arith.cmpf ogt, %348, %349 : vector<20x128xf32>
    %cst_192 = arith.constant 2.000000e-01 : f32
    %351 = vector.broadcast %cst_192 : f32 to vector<20x128xf32>
    %352 = arith.mulf %351, %348 : vector<20x128xf32>
    %353 = arith.select %350, %348, %352 : vector<20x128xi1>, vector<20x128xf32>
    %354 = vector.broadcast %337 : vector<1x128xf32> to vector<20x128xf32>
    %355 = arith.mulf %353, %354 : vector<20x128xf32>
    %cst_193 = arith.constant dense<0.000000e+00> : vector<20xf32>
    %356 = vector.multi_reduction <add>, %355, %cst_193 [1] : vector<20x128xf32> to vector<20xf32>
    %357 = vector.shape_cast %356 : vector<20xf32> to vector<20x1xf32>
    %cst_194 = arith.constant 0.000000e+00 : f32
    %358 = vector.broadcast %cst_194 : f32 to vector<20x8xf32>
    %359 = arith.cmpf ogt, %6, %358 : vector<20x8xf32>
    %cst_195 = arith.constant -1.000000e+30 : f32
    %360 = vector.shape_cast %357 : vector<20x1xf32> to vector<20x1xf32>
    %361 = vector.broadcast %360 : vector<20x1xf32> to vector<20x8xf32>
    %362 = vector.broadcast %cst_195 : f32 to vector<20x8xf32>
    %363 = arith.select %359, %361, %362 : vector<20x8xi1>, vector<20x8xf32>
    %cst_196 = arith.constant dense<0xFF800000> : vector<8xf32>
    %364 = vector.multi_reduction <maximumf>, %363, %cst_196 [0] : vector<20x8xf32> to vector<8xf32>
    %365 = vector.shape_cast %364 : vector<8xf32> to vector<1x8xf32>
    %366 = vector.broadcast %365 : vector<1x8xf32> to vector<20x8xf32>
    %367 = arith.mulf %6, %366 : vector<20x8xf32>
    %cst_197 = arith.constant dense<0.000000e+00> : vector<20xf32>
    %368 = vector.multi_reduction <add>, %367, %cst_197 [1] : vector<20x8xf32> to vector<20xf32>
    %369 = vector.shape_cast %368 : vector<20xf32> to vector<20x1xf32>
    %370 = arith.subf %357, %369 : vector<20x1xf32>
    %371 = math.exp %370 : vector<20x1xf32>
    %372 = vector.broadcast %371 : vector<20x1xf32> to vector<20x8xf32>
    %373 = arith.mulf %6, %372 : vector<20x8xf32>
    %cst_198 = arith.constant dense<0.000000e+00> : vector<8xf32>
    %374 = vector.multi_reduction <add>, %373, %cst_198 [0] : vector<20x8xf32> to vector<8xf32>
    %375 = vector.shape_cast %374 : vector<8xf32> to vector<1x8xf32>
    %376 = vector.broadcast %375 : vector<1x8xf32> to vector<20x8xf32>
    %377 = arith.mulf %6, %376 : vector<20x8xf32>
    %cst_199 = arith.constant dense<0.000000e+00> : vector<20xf32>
    %378 = vector.multi_reduction <add>, %377, %cst_199 [1] : vector<20x8xf32> to vector<20xf32>
    %379 = vector.shape_cast %378 : vector<20xf32> to vector<20x1xf32>
    %380 = tpu.reciprocal %379 {approx = true} : vector<20x1xf32> -> vector<20x1xf32>
    %381 = arith.mulf %371, %380 : vector<20x1xf32>
    %382 = vector.broadcast %381 : vector<20x1xf32> to vector<20x128xf32>
    %383 = arith.mulf %345, %382 : vector<20x128xf32>
    %cst_200 = arith.constant dense<0.000000e+00> : vector<8x128xf32>
    %384 = tpu.matmul %6, %383, %cst_200 {dimension_numbers = #tpu.dot_dimension_numbers<[0], [0], [1], [1], [0, 1, 1, 1], [], []>} : vector<20x8xf32>, vector<20x128xf32>, vector<8x128xf32> -> vector<8x128xf32>
    %385 = arith.addf %322, %384 : vector<8x128xf32>
    %c6 = arith.constant 6 : index
    %c0_201 = arith.constant 0 : index
    %c0_202 = arith.constant 0 : index
    %386 = vector.load %arg6[%c6, %c0_201, %c0_202] : memref<16x16x128xbf16, #tpu.memory_space<vmem>>, vector<1x16x128xbf16>
    %387 = vector.shape_cast %386 : vector<1x16x128xbf16> to vector<16x128xbf16>
    %388 = arith.extf %387 : vector<16x128xbf16> to vector<16x128xf32>
    %c6_203 = arith.constant 6 : index
    %c0_204 = arith.constant 0 : index
    %c0_205 = arith.constant 0 : index
    %389 = vector.load %arg7[%c6_203, %c0_204, %c0_205] : memref<16x16x128xbf16, #tpu.memory_space<vmem>>, vector<1x16x128xbf16>
    %390 = vector.shape_cast %389 : vector<1x16x128xbf16> to vector<16x128xbf16>
    %391 = arith.extf %390 : vector<16x128xbf16> to vector<16x128xf32>
    %c6_206 = arith.constant 6 : index
    %c0_207 = arith.constant 0 : index
    %c0_208 = arith.constant 0 : index
    %392 = vector.load %arg8[%c6_206, %c0_207, %c0_208] : memref<16x8x128xbf16, #tpu.memory_space<vmem>>, vector<1x8x128xbf16>
    %393 = vector.shape_cast %392 : vector<1x8x128xbf16> to vector<8x128xbf16>
    %394 = arith.extf %393 : vector<8x128xbf16> to vector<8x128xf32>
    %c6_209 = arith.constant 6 : index
    %c0_210 = arith.constant 0 : index
    %c0_211 = arith.constant 0 : index
    %395 = vector.load %arg9[%c6_209, %c0_210, %c0_211] : memref<16x1x128xf32, #tpu.memory_space<vmem>>, vector<1x1x128xf32>
    %396 = vector.shape_cast %395 : vector<1x1x128xf32> to vector<1x128xf32>
    %c6_212 = arith.constant 6 : index
    %c0_213 = arith.constant 0 : index
    %c0_214 = arith.constant 0 : index
    %397 = vector.load %arg10[%c6_212, %c0_213, %c0_214] : memref<16x1x128xf32, #tpu.memory_space<vmem>>, vector<1x1x128xf32>
    %398 = vector.shape_cast %397 : vector<1x1x128xf32> to vector<1x128xf32>
    %c6_215 = arith.constant 6 : index
    %c0_216 = arith.constant 0 : index
    %c0_217 = arith.constant 0 : index
    %399 = vector.load %arg11[%c6_215, %c0_216, %c0_217] : memref<16x1x128xf32, #tpu.memory_space<vmem>>, vector<1x1x128xf32>
    %400 = vector.shape_cast %399 : vector<1x1x128xf32> to vector<1x128xf32>
    %cst_218 = arith.constant dense<0.000000e+00> : vector<8x128xf32>
    %401 = tpu.matmul %3, %388, %cst_218 {dimension_numbers = #tpu.dot_dimension_numbers<[1], [0], [0], [1], [0, 0, 1, 1], [], []>} : vector<8x16xf32>, vector<16x128xf32>, vector<8x128xf32> -> vector<8x128xf32>
    %402 = vector.broadcast %396 : vector<1x128xf32> to vector<8x128xf32>
    %403 = arith.addf %401, %402 : vector<8x128xf32>
    %cst_219 = arith.constant dense<0.000000e+00> : vector<8x128xf32>
    %404 = tpu.matmul %3, %391, %cst_219 {dimension_numbers = #tpu.dot_dimension_numbers<[1], [0], [0], [1], [0, 0, 1, 1], [], []>} : vector<8x16xf32>, vector<16x128xf32>, vector<8x128xf32> -> vector<8x128xf32>
    %405 = vector.broadcast %398 : vector<1x128xf32> to vector<8x128xf32>
    %406 = arith.addf %404, %405 : vector<8x128xf32>
    %cst_220 = arith.constant dense<0.000000e+00> : vector<20x128xf32>
    %407 = tpu.matmul %4, %394, %cst_220 {dimension_numbers = #tpu.dot_dimension_numbers<[1], [0], [0], [1], [0, 0, 1, 1], [], []>} : vector<20x8xf32>, vector<8x128xf32>, vector<20x128xf32> -> vector<20x128xf32>
    %cst_221 = arith.constant dense<0.000000e+00> : vector<20x128xf32>
    %408 = tpu.matmul %5, %403, %cst_221 {dimension_numbers = #tpu.dot_dimension_numbers<[1], [0], [0], [1], [0, 0, 1, 1], [], []>} : vector<20x8xf32>, vector<8x128xf32>, vector<20x128xf32> -> vector<20x128xf32>
    %cst_222 = arith.constant dense<0.000000e+00> : vector<20x128xf32>
    %409 = tpu.matmul %6, %406, %cst_222 {dimension_numbers = #tpu.dot_dimension_numbers<[1], [0], [0], [1], [0, 0, 1, 1], [], []>} : vector<20x8xf32>, vector<8x128xf32>, vector<20x128xf32> -> vector<20x128xf32>
    %410 = arith.addf %408, %409 : vector<20x128xf32>
    %411 = arith.addf %410, %407 : vector<20x128xf32>
    %cst_223 = arith.constant 0.000000e+00 : f32
    %412 = vector.broadcast %cst_223 : f32 to vector<20x128xf32>
    %413 = arith.cmpf ogt, %411, %412 : vector<20x128xf32>
    %cst_224 = arith.constant 2.000000e-01 : f32
    %414 = vector.broadcast %cst_224 : f32 to vector<20x128xf32>
    %415 = arith.mulf %414, %411 : vector<20x128xf32>
    %416 = arith.select %413, %411, %415 : vector<20x128xi1>, vector<20x128xf32>
    %417 = vector.broadcast %400 : vector<1x128xf32> to vector<20x128xf32>
    %418 = arith.mulf %416, %417 : vector<20x128xf32>
    %cst_225 = arith.constant dense<0.000000e+00> : vector<20xf32>
    %419 = vector.multi_reduction <add>, %418, %cst_225 [1] : vector<20x128xf32> to vector<20xf32>
    %420 = vector.shape_cast %419 : vector<20xf32> to vector<20x1xf32>
    %cst_226 = arith.constant 0.000000e+00 : f32
    %421 = vector.broadcast %cst_226 : f32 to vector<20x8xf32>
    %422 = arith.cmpf ogt, %6, %421 : vector<20x8xf32>
    %cst_227 = arith.constant -1.000000e+30 : f32
    %423 = vector.shape_cast %420 : vector<20x1xf32> to vector<20x1xf32>
    %424 = vector.broadcast %423 : vector<20x1xf32> to vector<20x8xf32>
    %425 = vector.broadcast %cst_227 : f32 to vector<20x8xf32>
    %426 = arith.select %422, %424, %425 : vector<20x8xi1>, vector<20x8xf32>
    %cst_228 = arith.constant dense<0xFF800000> : vector<8xf32>
    %427 = vector.multi_reduction <maximumf>, %426, %cst_228 [0] : vector<20x8xf32> to vector<8xf32>
    %428 = vector.shape_cast %427 : vector<8xf32> to vector<1x8xf32>
    %429 = vector.broadcast %428 : vector<1x8xf32> to vector<20x8xf32>
    %430 = arith.mulf %6, %429 : vector<20x8xf32>
    %cst_229 = arith.constant dense<0.000000e+00> : vector<20xf32>
    %431 = vector.multi_reduction <add>, %430, %cst_229 [1] : vector<20x8xf32> to vector<20xf32>
    %432 = vector.shape_cast %431 : vector<20xf32> to vector<20x1xf32>
    %433 = arith.subf %420, %432 : vector<20x1xf32>
    %434 = math.exp %433 : vector<20x1xf32>
    %435 = vector.broadcast %434 : vector<20x1xf32> to vector<20x8xf32>
    %436 = arith.mulf %6, %435 : vector<20x8xf32>
    %cst_230 = arith.constant dense<0.000000e+00> : vector<8xf32>
    %437 = vector.multi_reduction <add>, %436, %cst_230 [0] : vector<20x8xf32> to vector<8xf32>
    %438 = vector.shape_cast %437 : vector<8xf32> to vector<1x8xf32>
    %439 = vector.broadcast %438 : vector<1x8xf32> to vector<20x8xf32>
    %440 = arith.mulf %6, %439 : vector<20x8xf32>
    %cst_231 = arith.constant dense<0.000000e+00> : vector<20xf32>
    %441 = vector.multi_reduction <add>, %440, %cst_231 [1] : vector<20x8xf32> to vector<20xf32>
    %442 = vector.shape_cast %441 : vector<20xf32> to vector<20x1xf32>
    %443 = tpu.reciprocal %442 {approx = true} : vector<20x1xf32> -> vector<20x1xf32>
    %444 = arith.mulf %434, %443 : vector<20x1xf32>
    %445 = vector.broadcast %444 : vector<20x1xf32> to vector<20x128xf32>
    %446 = arith.mulf %408, %445 : vector<20x128xf32>
    %cst_232 = arith.constant dense<0.000000e+00> : vector<8x128xf32>
    %447 = tpu.matmul %6, %446, %cst_232 {dimension_numbers = #tpu.dot_dimension_numbers<[0], [0], [1], [1], [0, 1, 1, 1], [], []>} : vector<20x8xf32>, vector<20x128xf32>, vector<8x128xf32> -> vector<8x128xf32>
    %448 = arith.addf %385, %447 : vector<8x128xf32>
    %c7 = arith.constant 7 : index
    %c0_233 = arith.constant 0 : index
    %c0_234 = arith.constant 0 : index
    %449 = vector.load %arg6[%c7, %c0_233, %c0_234] : memref<16x16x128xbf16, #tpu.memory_space<vmem>>, vector<1x16x128xbf16>
    %450 = vector.shape_cast %449 : vector<1x16x128xbf16> to vector<16x128xbf16>
    %451 = arith.extf %450 : vector<16x128xbf16> to vector<16x128xf32>
    %c7_235 = arith.constant 7 : index
    %c0_236 = arith.constant 0 : index
    %c0_237 = arith.constant 0 : index
    %452 = vector.load %arg7[%c7_235, %c0_236, %c0_237] : memref<16x16x128xbf16, #tpu.memory_space<vmem>>, vector<1x16x128xbf16>
    %453 = vector.shape_cast %452 : vector<1x16x128xbf16> to vector<16x128xbf16>
    %454 = arith.extf %453 : vector<16x128xbf16> to vector<16x128xf32>
    %c7_238 = arith.constant 7 : index
    %c0_239 = arith.constant 0 : index
    %c0_240 = arith.constant 0 : index
    %455 = vector.load %arg8[%c7_238, %c0_239, %c0_240] : memref<16x8x128xbf16, #tpu.memory_space<vmem>>, vector<1x8x128xbf16>
    %456 = vector.shape_cast %455 : vector<1x8x128xbf16> to vector<8x128xbf16>
    %457 = arith.extf %456 : vector<8x128xbf16> to vector<8x128xf32>
    %c7_241 = arith.constant 7 : index
    %c0_242 = arith.constant 0 : index
    %c0_243 = arith.constant 0 : index
    %458 = vector.load %arg9[%c7_241, %c0_242, %c0_243] : memref<16x1x128xf32, #tpu.memory_space<vmem>>, vector<1x1x128xf32>
    %459 = vector.shape_cast %458 : vector<1x1x128xf32> to vector<1x128xf32>
    %c7_244 = arith.constant 7 : index
    %c0_245 = arith.constant 0 : index
    %c0_246 = arith.constant 0 : index
    %460 = vector.load %arg10[%c7_244, %c0_245, %c0_246] : memref<16x1x128xf32, #tpu.memory_space<vmem>>, vector<1x1x128xf32>
    %461 = vector.shape_cast %460 : vector<1x1x128xf32> to vector<1x128xf32>
    %c7_247 = arith.constant 7 : index
    %c0_248 = arith.constant 0 : index
    %c0_249 = arith.constant 0 : index
    %462 = vector.load %arg11[%c7_247, %c0_248, %c0_249] : memref<16x1x128xf32, #tpu.memory_space<vmem>>, vector<1x1x128xf32>
    %463 = vector.shape_cast %462 : vector<1x1x128xf32> to vector<1x128xf32>
    %cst_250 = arith.constant dense<0.000000e+00> : vector<8x128xf32>
    %464 = tpu.matmul %3, %451, %cst_250 {dimension_numbers = #tpu.dot_dimension_numbers<[1], [0], [0], [1], [0, 0, 1, 1], [], []>} : vector<8x16xf32>, vector<16x128xf32>, vector<8x128xf32> -> vector<8x128xf32>
    %465 = vector.broadcast %459 : vector<1x128xf32> to vector<8x128xf32>
    %466 = arith.addf %464, %465 : vector<8x128xf32>
    %cst_251 = arith.constant dense<0.000000e+00> : vector<8x128xf32>
    %467 = tpu.matmul %3, %454, %cst_251 {dimension_numbers = #tpu.dot_dimension_numbers<[1], [0], [0], [1], [0, 0, 1, 1], [], []>} : vector<8x16xf32>, vector<16x128xf32>, vector<8x128xf32> -> vector<8x128xf32>
    %468 = vector.broadcast %461 : vector<1x128xf32> to vector<8x128xf32>
    %469 = arith.addf %467, %468 : vector<8x128xf32>
    %cst_252 = arith.constant dense<0.000000e+00> : vector<20x128xf32>
    %470 = tpu.matmul %4, %457, %cst_252 {dimension_numbers = #tpu.dot_dimension_numbers<[1], [0], [0], [1], [0, 0, 1, 1], [], []>} : vector<20x8xf32>, vector<8x128xf32>, vector<20x128xf32> -> vector<20x128xf32>
    %cst_253 = arith.constant dense<0.000000e+00> : vector<20x128xf32>
    %471 = tpu.matmul %5, %466, %cst_253 {dimension_numbers = #tpu.dot_dimension_numbers<[1], [0], [0], [1], [0, 0, 1, 1], [], []>} : vector<20x8xf32>, vector<8x128xf32>, vector<20x128xf32> -> vector<20x128xf32>
    %cst_254 = arith.constant dense<0.000000e+00> : vector<20x128xf32>
    %472 = tpu.matmul %6, %469, %cst_254 {dimension_numbers = #tpu.dot_dimension_numbers<[1], [0], [0], [1], [0, 0, 1, 1], [], []>} : vector<20x8xf32>, vector<8x128xf32>, vector<20x128xf32> -> vector<20x128xf32>
    %473 = arith.addf %471, %472 : vector<20x128xf32>
    %474 = arith.addf %473, %470 : vector<20x128xf32>
    %cst_255 = arith.constant 0.000000e+00 : f32
    %475 = vector.broadcast %cst_255 : f32 to vector<20x128xf32>
    %476 = arith.cmpf ogt, %474, %475 : vector<20x128xf32>
    %cst_256 = arith.constant 2.000000e-01 : f32
    %477 = vector.broadcast %cst_256 : f32 to vector<20x128xf32>
    %478 = arith.mulf %477, %474 : vector<20x128xf32>
    %479 = arith.select %476, %474, %478 : vector<20x128xi1>, vector<20x128xf32>
    %480 = vector.broadcast %463 : vector<1x128xf32> to vector<20x128xf32>
    %481 = arith.mulf %479, %480 : vector<20x128xf32>
    %cst_257 = arith.constant dense<0.000000e+00> : vector<20xf32>
    %482 = vector.multi_reduction <add>, %481, %cst_257 [1] : vector<20x128xf32> to vector<20xf32>
    %483 = vector.shape_cast %482 : vector<20xf32> to vector<20x1xf32>
    %cst_258 = arith.constant 0.000000e+00 : f32
    %484 = vector.broadcast %cst_258 : f32 to vector<20x8xf32>
    %485 = arith.cmpf ogt, %6, %484 : vector<20x8xf32>
    %cst_259 = arith.constant -1.000000e+30 : f32
    %486 = vector.shape_cast %483 : vector<20x1xf32> to vector<20x1xf32>
    %487 = vector.broadcast %486 : vector<20x1xf32> to vector<20x8xf32>
    %488 = vector.broadcast %cst_259 : f32 to vector<20x8xf32>
    %489 = arith.select %485, %487, %488 : vector<20x8xi1>, vector<20x8xf32>
    %cst_260 = arith.constant dense<0xFF800000> : vector<8xf32>
    %490 = vector.multi_reduction <maximumf>, %489, %cst_260 [0] : vector<20x8xf32> to vector<8xf32>
    %491 = vector.shape_cast %490 : vector<8xf32> to vector<1x8xf32>
    %492 = vector.broadcast %491 : vector<1x8xf32> to vector<20x8xf32>
    %493 = arith.mulf %6, %492 : vector<20x8xf32>
    %cst_261 = arith.constant dense<0.000000e+00> : vector<20xf32>
    %494 = vector.multi_reduction <add>, %493, %cst_261 [1] : vector<20x8xf32> to vector<20xf32>
    %495 = vector.shape_cast %494 : vector<20xf32> to vector<20x1xf32>
    %496 = arith.subf %483, %495 : vector<20x1xf32>
    %497 = math.exp %496 : vector<20x1xf32>
    %498 = vector.broadcast %497 : vector<20x1xf32> to vector<20x8xf32>
    %499 = arith.mulf %6, %498 : vector<20x8xf32>
    %cst_262 = arith.constant dense<0.000000e+00> : vector<8xf32>
    %500 = vector.multi_reduction <add>, %499, %cst_262 [0] : vector<20x8xf32> to vector<8xf32>
    %501 = vector.shape_cast %500 : vector<8xf32> to vector<1x8xf32>
    %502 = vector.broadcast %501 : vector<1x8xf32> to vector<20x8xf32>
    %503 = arith.mulf %6, %502 : vector<20x8xf32>
    %cst_263 = arith.constant dense<0.000000e+00> : vector<20xf32>
    %504 = vector.multi_reduction <add>, %503, %cst_263 [1] : vector<20x8xf32> to vector<20xf32>
    %505 = vector.shape_cast %504 : vector<20xf32> to vector<20x1xf32>
    %506 = tpu.reciprocal %505 {approx = true} : vector<20x1xf32> -> vector<20x1xf32>
    %507 = arith.mulf %497, %506 : vector<20x1xf32>
    %508 = vector.broadcast %507 : vector<20x1xf32> to vector<20x128xf32>
    %509 = arith.mulf %471, %508 : vector<20x128xf32>
    %cst_264 = arith.constant dense<0.000000e+00> : vector<8x128xf32>
    %510 = tpu.matmul %6, %509, %cst_264 {dimension_numbers = #tpu.dot_dimension_numbers<[0], [0], [1], [1], [0, 1, 1, 1], [], []>} : vector<20x8xf32>, vector<20x128xf32>, vector<8x128xf32> -> vector<8x128xf32>
    %511 = arith.addf %448, %510 : vector<8x128xf32>
    %c8 = arith.constant 8 : index
    %c0_265 = arith.constant 0 : index
    %c0_266 = arith.constant 0 : index
    %512 = vector.load %arg6[%c8, %c0_265, %c0_266] : memref<16x16x128xbf16, #tpu.memory_space<vmem>>, vector<1x16x128xbf16>
    %513 = vector.shape_cast %512 : vector<1x16x128xbf16> to vector<16x128xbf16>
    %514 = arith.extf %513 : vector<16x128xbf16> to vector<16x128xf32>
    %c8_267 = arith.constant 8 : index
    %c0_268 = arith.constant 0 : index
    %c0_269 = arith.constant 0 : index
    %515 = vector.load %arg7[%c8_267, %c0_268, %c0_269] : memref<16x16x128xbf16, #tpu.memory_space<vmem>>, vector<1x16x128xbf16>
    %516 = vector.shape_cast %515 : vector<1x16x128xbf16> to vector<16x128xbf16>
    %517 = arith.extf %516 : vector<16x128xbf16> to vector<16x128xf32>
    %c8_270 = arith.constant 8 : index
    %c0_271 = arith.constant 0 : index
    %c0_272 = arith.constant 0 : index
    %518 = vector.load %arg8[%c8_270, %c0_271, %c0_272] : memref<16x8x128xbf16, #tpu.memory_space<vmem>>, vector<1x8x128xbf16>
    %519 = vector.shape_cast %518 : vector<1x8x128xbf16> to vector<8x128xbf16>
    %520 = arith.extf %519 : vector<8x128xbf16> to vector<8x128xf32>
    %c8_273 = arith.constant 8 : index
    %c0_274 = arith.constant 0 : index
    %c0_275 = arith.constant 0 : index
    %521 = vector.load %arg9[%c8_273, %c0_274, %c0_275] : memref<16x1x128xf32, #tpu.memory_space<vmem>>, vector<1x1x128xf32>
    %522 = vector.shape_cast %521 : vector<1x1x128xf32> to vector<1x128xf32>
    %c8_276 = arith.constant 8 : index
    %c0_277 = arith.constant 0 : index
    %c0_278 = arith.constant 0 : index
    %523 = vector.load %arg10[%c8_276, %c0_277, %c0_278] : memref<16x1x128xf32, #tpu.memory_space<vmem>>, vector<1x1x128xf32>
    %524 = vector.shape_cast %523 : vector<1x1x128xf32> to vector<1x128xf32>
    %c8_279 = arith.constant 8 : index
    %c0_280 = arith.constant 0 : index
    %c0_281 = arith.constant 0 : index
    %525 = vector.load %arg11[%c8_279, %c0_280, %c0_281] : memref<16x1x128xf32, #tpu.memory_space<vmem>>, vector<1x1x128xf32>
    %526 = vector.shape_cast %525 : vector<1x1x128xf32> to vector<1x128xf32>
    %cst_282 = arith.constant dense<0.000000e+00> : vector<8x128xf32>
    %527 = tpu.matmul %3, %514, %cst_282 {dimension_numbers = #tpu.dot_dimension_numbers<[1], [0], [0], [1], [0, 0, 1, 1], [], []>} : vector<8x16xf32>, vector<16x128xf32>, vector<8x128xf32> -> vector<8x128xf32>
    %528 = vector.broadcast %522 : vector<1x128xf32> to vector<8x128xf32>
    %529 = arith.addf %527, %528 : vector<8x128xf32>
    %cst_283 = arith.constant dense<0.000000e+00> : vector<8x128xf32>
    %530 = tpu.matmul %3, %517, %cst_283 {dimension_numbers = #tpu.dot_dimension_numbers<[1], [0], [0], [1], [0, 0, 1, 1], [], []>} : vector<8x16xf32>, vector<16x128xf32>, vector<8x128xf32> -> vector<8x128xf32>
    %531 = vector.broadcast %524 : vector<1x128xf32> to vector<8x128xf32>
    %532 = arith.addf %530, %531 : vector<8x128xf32>
    %cst_284 = arith.constant dense<0.000000e+00> : vector<20x128xf32>
    %533 = tpu.matmul %4, %520, %cst_284 {dimension_numbers = #tpu.dot_dimension_numbers<[1], [0], [0], [1], [0, 0, 1, 1], [], []>} : vector<20x8xf32>, vector<8x128xf32>, vector<20x128xf32> -> vector<20x128xf32>
    %cst_285 = arith.constant dense<0.000000e+00> : vector<20x128xf32>
    %534 = tpu.matmul %5, %529, %cst_285 {dimension_numbers = #tpu.dot_dimension_numbers<[1], [0], [0], [1], [0, 0, 1, 1], [], []>} : vector<20x8xf32>, vector<8x128xf32>, vector<20x128xf32> -> vector<20x128xf32>
    %cst_286 = arith.constant dense<0.000000e+00> : vector<20x128xf32>
    %535 = tpu.matmul %6, %532, %cst_286 {dimension_numbers = #tpu.dot_dimension_numbers<[1], [0], [0], [1], [0, 0, 1, 1], [], []>} : vector<20x8xf32>, vector<8x128xf32>, vector<20x128xf32> -> vector<20x128xf32>
    %536 = arith.addf %534, %535 : vector<20x128xf32>
    %537 = arith.addf %536, %533 : vector<20x128xf32>
    %cst_287 = arith.constant 0.000000e+00 : f32
    %538 = vector.broadcast %cst_287 : f32 to vector<20x128xf32>
    %539 = arith.cmpf ogt, %537, %538 : vector<20x128xf32>
    %cst_288 = arith.constant 2.000000e-01 : f32
    %540 = vector.broadcast %cst_288 : f32 to vector<20x128xf32>
    %541 = arith.mulf %540, %537 : vector<20x128xf32>
    %542 = arith.select %539, %537, %541 : vector<20x128xi1>, vector<20x128xf32>
    %543 = vector.broadcast %526 : vector<1x128xf32> to vector<20x128xf32>
    %544 = arith.mulf %542, %543 : vector<20x128xf32>
    %cst_289 = arith.constant dense<0.000000e+00> : vector<20xf32>
    %545 = vector.multi_reduction <add>, %544, %cst_289 [1] : vector<20x128xf32> to vector<20xf32>
    %546 = vector.shape_cast %545 : vector<20xf32> to vector<20x1xf32>
    %cst_290 = arith.constant 0.000000e+00 : f32
    %547 = vector.broadcast %cst_290 : f32 to vector<20x8xf32>
    %548 = arith.cmpf ogt, %6, %547 : vector<20x8xf32>
    %cst_291 = arith.constant -1.000000e+30 : f32
    %549 = vector.shape_cast %546 : vector<20x1xf32> to vector<20x1xf32>
    %550 = vector.broadcast %549 : vector<20x1xf32> to vector<20x8xf32>
    %551 = vector.broadcast %cst_291 : f32 to vector<20x8xf32>
    %552 = arith.select %548, %550, %551 : vector<20x8xi1>, vector<20x8xf32>
    %cst_292 = arith.constant dense<0xFF800000> : vector<8xf32>
    %553 = vector.multi_reduction <maximumf>, %552, %cst_292 [0] : vector<20x8xf32> to vector<8xf32>
    %554 = vector.shape_cast %553 : vector<8xf32> to vector<1x8xf32>
    %555 = vector.broadcast %554 : vector<1x8xf32> to vector<20x8xf32>
    %556 = arith.mulf %6, %555 : vector<20x8xf32>
    %cst_293 = arith.constant dense<0.000000e+00> : vector<20xf32>
    %557 = vector.multi_reduction <add>, %556, %cst_293 [1] : vector<20x8xf32> to vector<20xf32>
    %558 = vector.shape_cast %557 : vector<20xf32> to vector<20x1xf32>
    %559 = arith.subf %546, %558 : vector<20x1xf32>
    %560 = math.exp %559 : vector<20x1xf32>
    %561 = vector.broadcast %560 : vector<20x1xf32> to vector<20x8xf32>
    %562 = arith.mulf %6, %561 : vector<20x8xf32>
    %cst_294 = arith.constant dense<0.000000e+00> : vector<8xf32>
    %563 = vector.multi_reduction <add>, %562, %cst_294 [0] : vector<20x8xf32> to vector<8xf32>
    %564 = vector.shape_cast %563 : vector<8xf32> to vector<1x8xf32>
    %565 = vector.broadcast %564 : vector<1x8xf32> to vector<20x8xf32>
    %566 = arith.mulf %6, %565 : vector<20x8xf32>
    %cst_295 = arith.constant dense<0.000000e+00> : vector<20xf32>
    %567 = vector.multi_reduction <add>, %566, %cst_295 [1] : vector<20x8xf32> to vector<20xf32>
    %568 = vector.shape_cast %567 : vector<20xf32> to vector<20x1xf32>
    %569 = tpu.reciprocal %568 {approx = true} : vector<20x1xf32> -> vector<20x1xf32>
    %570 = arith.mulf %560, %569 : vector<20x1xf32>
    %571 = vector.broadcast %570 : vector<20x1xf32> to vector<20x128xf32>
    %572 = arith.mulf %534, %571 : vector<20x128xf32>
    %cst_296 = arith.constant dense<0.000000e+00> : vector<8x128xf32>
    %573 = tpu.matmul %6, %572, %cst_296 {dimension_numbers = #tpu.dot_dimension_numbers<[0], [0], [1], [1], [0, 1, 1, 1], [], []>} : vector<20x8xf32>, vector<20x128xf32>, vector<8x128xf32> -> vector<8x128xf32>
    %574 = arith.addf %511, %573 : vector<8x128xf32>
    %c9 = arith.constant 9 : index
    %c0_297 = arith.constant 0 : index
    %c0_298 = arith.constant 0 : index
    %575 = vector.load %arg6[%c9, %c0_297, %c0_298] : memref<16x16x128xbf16, #tpu.memory_space<vmem>>, vector<1x16x128xbf16>
    %576 = vector.shape_cast %575 : vector<1x16x128xbf16> to vector<16x128xbf16>
    %577 = arith.extf %576 : vector<16x128xbf16> to vector<16x128xf32>
    %c9_299 = arith.constant 9 : index
    %c0_300 = arith.constant 0 : index
    %c0_301 = arith.constant 0 : index
    %578 = vector.load %arg7[%c9_299, %c0_300, %c0_301] : memref<16x16x128xbf16, #tpu.memory_space<vmem>>, vector<1x16x128xbf16>
    %579 = vector.shape_cast %578 : vector<1x16x128xbf16> to vector<16x128xbf16>
    %580 = arith.extf %579 : vector<16x128xbf16> to vector<16x128xf32>
    %c9_302 = arith.constant 9 : index
    %c0_303 = arith.constant 0 : index
    %c0_304 = arith.constant 0 : index
    %581 = vector.load %arg8[%c9_302, %c0_303, %c0_304] : memref<16x8x128xbf16, #tpu.memory_space<vmem>>, vector<1x8x128xbf16>
    %582 = vector.shape_cast %581 : vector<1x8x128xbf16> to vector<8x128xbf16>
    %583 = arith.extf %582 : vector<8x128xbf16> to vector<8x128xf32>
    %c9_305 = arith.constant 9 : index
    %c0_306 = arith.constant 0 : index
    %c0_307 = arith.constant 0 : index
    %584 = vector.load %arg9[%c9_305, %c0_306, %c0_307] : memref<16x1x128xf32, #tpu.memory_space<vmem>>, vector<1x1x128xf32>
    %585 = vector.shape_cast %584 : vector<1x1x128xf32> to vector<1x128xf32>
    %c9_308 = arith.constant 9 : index
    %c0_309 = arith.constant 0 : index
    %c0_310 = arith.constant 0 : index
    %586 = vector.load %arg10[%c9_308, %c0_309, %c0_310] : memref<16x1x128xf32, #tpu.memory_space<vmem>>, vector<1x1x128xf32>
    %587 = vector.shape_cast %586 : vector<1x1x128xf32> to vector<1x128xf32>
    %c9_311 = arith.constant 9 : index
    %c0_312 = arith.constant 0 : index
    %c0_313 = arith.constant 0 : index
    %588 = vector.load %arg11[%c9_311, %c0_312, %c0_313] : memref<16x1x128xf32, #tpu.memory_space<vmem>>, vector<1x1x128xf32>
    %589 = vector.shape_cast %588 : vector<1x1x128xf32> to vector<1x128xf32>
    %cst_314 = arith.constant dense<0.000000e+00> : vector<8x128xf32>
    %590 = tpu.matmul %3, %577, %cst_314 {dimension_numbers = #tpu.dot_dimension_numbers<[1], [0], [0], [1], [0, 0, 1, 1], [], []>} : vector<8x16xf32>, vector<16x128xf32>, vector<8x128xf32> -> vector<8x128xf32>
    %591 = vector.broadcast %585 : vector<1x128xf32> to vector<8x128xf32>
    %592 = arith.addf %590, %591 : vector<8x128xf32>
    %cst_315 = arith.constant dense<0.000000e+00> : vector<8x128xf32>
    %593 = tpu.matmul %3, %580, %cst_315 {dimension_numbers = #tpu.dot_dimension_numbers<[1], [0], [0], [1], [0, 0, 1, 1], [], []>} : vector<8x16xf32>, vector<16x128xf32>, vector<8x128xf32> -> vector<8x128xf32>
    %594 = vector.broadcast %587 : vector<1x128xf32> to vector<8x128xf32>
    %595 = arith.addf %593, %594 : vector<8x128xf32>
    %cst_316 = arith.constant dense<0.000000e+00> : vector<20x128xf32>
    %596 = tpu.matmul %4, %583, %cst_316 {dimension_numbers = #tpu.dot_dimension_numbers<[1], [0], [0], [1], [0, 0, 1, 1], [], []>} : vector<20x8xf32>, vector<8x128xf32>, vector<20x128xf32> -> vector<20x128xf32>
    %cst_317 = arith.constant dense<0.000000e+00> : vector<20x128xf32>
    %597 = tpu.matmul %5, %592, %cst_317 {dimension_numbers = #tpu.dot_dimension_numbers<[1], [0], [0], [1], [0, 0, 1, 1], [], []>} : vector<20x8xf32>, vector<8x128xf32>, vector<20x128xf32> -> vector<20x128xf32>
    %cst_318 = arith.constant dense<0.000000e+00> : vector<20x128xf32>
    %598 = tpu.matmul %6, %595, %cst_318 {dimension_numbers = #tpu.dot_dimension_numbers<[1], [0], [0], [1], [0, 0, 1, 1], [], []>} : vector<20x8xf32>, vector<8x128xf32>, vector<20x128xf32> -> vector<20x128xf32>
    %599 = arith.addf %597, %598 : vector<20x128xf32>
    %600 = arith.addf %599, %596 : vector<20x128xf32>
    %cst_319 = arith.constant 0.000000e+00 : f32
    %601 = vector.broadcast %cst_319 : f32 to vector<20x128xf32>
    %602 = arith.cmpf ogt, %600, %601 : vector<20x128xf32>
    %cst_320 = arith.constant 2.000000e-01 : f32
    %603 = vector.broadcast %cst_320 : f32 to vector<20x128xf32>
    %604 = arith.mulf %603, %600 : vector<20x128xf32>
    %605 = arith.select %602, %600, %604 : vector<20x128xi1>, vector<20x128xf32>
    %606 = vector.broadcast %589 : vector<1x128xf32> to vector<20x128xf32>
    %607 = arith.mulf %605, %606 : vector<20x128xf32>
    %cst_321 = arith.constant dense<0.000000e+00> : vector<20xf32>
    %608 = vector.multi_reduction <add>, %607, %cst_321 [1] : vector<20x128xf32> to vector<20xf32>
    %609 = vector.shape_cast %608 : vector<20xf32> to vector<20x1xf32>
    %cst_322 = arith.constant 0.000000e+00 : f32
    %610 = vector.broadcast %cst_322 : f32 to vector<20x8xf32>
    %611 = arith.cmpf ogt, %6, %610 : vector<20x8xf32>
    %cst_323 = arith.constant -1.000000e+30 : f32
    %612 = vector.shape_cast %609 : vector<20x1xf32> to vector<20x1xf32>
    %613 = vector.broadcast %612 : vector<20x1xf32> to vector<20x8xf32>
    %614 = vector.broadcast %cst_323 : f32 to vector<20x8xf32>
    %615 = arith.select %611, %613, %614 : vector<20x8xi1>, vector<20x8xf32>
    %cst_324 = arith.constant dense<0xFF800000> : vector<8xf32>
    %616 = vector.multi_reduction <maximumf>, %615, %cst_324 [0] : vector<20x8xf32> to vector<8xf32>
    %617 = vector.shape_cast %616 : vector<8xf32> to vector<1x8xf32>
    %618 = vector.broadcast %617 : vector<1x8xf32> to vector<20x8xf32>
    %619 = arith.mulf %6, %618 : vector<20x8xf32>
    %cst_325 = arith.constant dense<0.000000e+00> : vector<20xf32>
    %620 = vector.multi_reduction <add>, %619, %cst_325 [1] : vector<20x8xf32> to vector<20xf32>
    %621 = vector.shape_cast %620 : vector<20xf32> to vector<20x1xf32>
    %622 = arith.subf %609, %621 : vector<20x1xf32>
    %623 = math.exp %622 : vector<20x1xf32>
    %624 = vector.broadcast %623 : vector<20x1xf32> to vector<20x8xf32>
    %625 = arith.mulf %6, %624 : vector<20x8xf32>
    %cst_326 = arith.constant dense<0.000000e+00> : vector<8xf32>
    %626 = vector.multi_reduction <add>, %625, %cst_326 [0] : vector<20x8xf32> to vector<8xf32>
    %627 = vector.shape_cast %626 : vector<8xf32> to vector<1x8xf32>
    %628 = vector.broadcast %627 : vector<1x8xf32> to vector<20x8xf32>
    %629 = arith.mulf %6, %628 : vector<20x8xf32>
    %cst_327 = arith.constant dense<0.000000e+00> : vector<20xf32>
    %630 = vector.multi_reduction <add>, %629, %cst_327 [1] : vector<20x8xf32> to vector<20xf32>
    %631 = vector.shape_cast %630 : vector<20xf32> to vector<20x1xf32>
    %632 = tpu.reciprocal %631 {approx = true} : vector<20x1xf32> -> vector<20x1xf32>
    %633 = arith.mulf %623, %632 : vector<20x1xf32>
    %634 = vector.broadcast %633 : vector<20x1xf32> to vector<20x128xf32>
    %635 = arith.mulf %597, %634 : vector<20x128xf32>
    %cst_328 = arith.constant dense<0.000000e+00> : vector<8x128xf32>
    %636 = tpu.matmul %6, %635, %cst_328 {dimension_numbers = #tpu.dot_dimension_numbers<[0], [0], [1], [1], [0, 1, 1, 1], [], []>} : vector<20x8xf32>, vector<20x128xf32>, vector<8x128xf32> -> vector<8x128xf32>
    %637 = arith.addf %574, %636 : vector<8x128xf32>
    %c10 = arith.constant 10 : index
    %c0_329 = arith.constant 0 : index
    %c0_330 = arith.constant 0 : index
    %638 = vector.load %arg6[%c10, %c0_329, %c0_330] : memref<16x16x128xbf16, #tpu.memory_space<vmem>>, vector<1x16x128xbf16>
    %639 = vector.shape_cast %638 : vector<1x16x128xbf16> to vector<16x128xbf16>
    %640 = arith.extf %639 : vector<16x128xbf16> to vector<16x128xf32>
    %c10_331 = arith.constant 10 : index
    %c0_332 = arith.constant 0 : index
    %c0_333 = arith.constant 0 : index
    %641 = vector.load %arg7[%c10_331, %c0_332, %c0_333] : memref<16x16x128xbf16, #tpu.memory_space<vmem>>, vector<1x16x128xbf16>
    %642 = vector.shape_cast %641 : vector<1x16x128xbf16> to vector<16x128xbf16>
    %643 = arith.extf %642 : vector<16x128xbf16> to vector<16x128xf32>
    %c10_334 = arith.constant 10 : index
    %c0_335 = arith.constant 0 : index
    %c0_336 = arith.constant 0 : index
    %644 = vector.load %arg8[%c10_334, %c0_335, %c0_336] : memref<16x8x128xbf16, #tpu.memory_space<vmem>>, vector<1x8x128xbf16>
    %645 = vector.shape_cast %644 : vector<1x8x128xbf16> to vector<8x128xbf16>
    %646 = arith.extf %645 : vector<8x128xbf16> to vector<8x128xf32>
    %c10_337 = arith.constant 10 : index
    %c0_338 = arith.constant 0 : index
    %c0_339 = arith.constant 0 : index
    %647 = vector.load %arg9[%c10_337, %c0_338, %c0_339] : memref<16x1x128xf32, #tpu.memory_space<vmem>>, vector<1x1x128xf32>
    %648 = vector.shape_cast %647 : vector<1x1x128xf32> to vector<1x128xf32>
    %c10_340 = arith.constant 10 : index
    %c0_341 = arith.constant 0 : index
    %c0_342 = arith.constant 0 : index
    %649 = vector.load %arg10[%c10_340, %c0_341, %c0_342] : memref<16x1x128xf32, #tpu.memory_space<vmem>>, vector<1x1x128xf32>
    %650 = vector.shape_cast %649 : vector<1x1x128xf32> to vector<1x128xf32>
    %c10_343 = arith.constant 10 : index
    %c0_344 = arith.constant 0 : index
    %c0_345 = arith.constant 0 : index
    %651 = vector.load %arg11[%c10_343, %c0_344, %c0_345] : memref<16x1x128xf32, #tpu.memory_space<vmem>>, vector<1x1x128xf32>
    %652 = vector.shape_cast %651 : vector<1x1x128xf32> to vector<1x128xf32>
    %cst_346 = arith.constant dense<0.000000e+00> : vector<8x128xf32>
    %653 = tpu.matmul %3, %640, %cst_346 {dimension_numbers = #tpu.dot_dimension_numbers<[1], [0], [0], [1], [0, 0, 1, 1], [], []>} : vector<8x16xf32>, vector<16x128xf32>, vector<8x128xf32> -> vector<8x128xf32>
    %654 = vector.broadcast %648 : vector<1x128xf32> to vector<8x128xf32>
    %655 = arith.addf %653, %654 : vector<8x128xf32>
    %cst_347 = arith.constant dense<0.000000e+00> : vector<8x128xf32>
    %656 = tpu.matmul %3, %643, %cst_347 {dimension_numbers = #tpu.dot_dimension_numbers<[1], [0], [0], [1], [0, 0, 1, 1], [], []>} : vector<8x16xf32>, vector<16x128xf32>, vector<8x128xf32> -> vector<8x128xf32>
    %657 = vector.broadcast %650 : vector<1x128xf32> to vector<8x128xf32>
    %658 = arith.addf %656, %657 : vector<8x128xf32>
    %cst_348 = arith.constant dense<0.000000e+00> : vector<20x128xf32>
    %659 = tpu.matmul %4, %646, %cst_348 {dimension_numbers = #tpu.dot_dimension_numbers<[1], [0], [0], [1], [0, 0, 1, 1], [], []>} : vector<20x8xf32>, vector<8x128xf32>, vector<20x128xf32> -> vector<20x128xf32>
    %cst_349 = arith.constant dense<0.000000e+00> : vector<20x128xf32>
    %660 = tpu.matmul %5, %655, %cst_349 {dimension_numbers = #tpu.dot_dimension_numbers<[1], [0], [0], [1], [0, 0, 1, 1], [], []>} : vector<20x8xf32>, vector<8x128xf32>, vector<20x128xf32> -> vector<20x128xf32>
    %cst_350 = arith.constant dense<0.000000e+00> : vector<20x128xf32>
    %661 = tpu.matmul %6, %658, %cst_350 {dimension_numbers = #tpu.dot_dimension_numbers<[1], [0], [0], [1], [0, 0, 1, 1], [], []>} : vector<20x8xf32>, vector<8x128xf32>, vector<20x128xf32> -> vector<20x128xf32>
    %662 = arith.addf %660, %661 : vector<20x128xf32>
    %663 = arith.addf %662, %659 : vector<20x128xf32>
    %cst_351 = arith.constant 0.000000e+00 : f32
    %664 = vector.broadcast %cst_351 : f32 to vector<20x128xf32>
    %665 = arith.cmpf ogt, %663, %664 : vector<20x128xf32>
    %cst_352 = arith.constant 2.000000e-01 : f32
    %666 = vector.broadcast %cst_352 : f32 to vector<20x128xf32>
    %667 = arith.mulf %666, %663 : vector<20x128xf32>
    %668 = arith.select %665, %663, %667 : vector<20x128xi1>, vector<20x128xf32>
    %669 = vector.broadcast %652 : vector<1x128xf32> to vector<20x128xf32>
    %670 = arith.mulf %668, %669 : vector<20x128xf32>
    %cst_353 = arith.constant dense<0.000000e+00> : vector<20xf32>
    %671 = vector.multi_reduction <add>, %670, %cst_353 [1] : vector<20x128xf32> to vector<20xf32>
    %672 = vector.shape_cast %671 : vector<20xf32> to vector<20x1xf32>
    %cst_354 = arith.constant 0.000000e+00 : f32
    %673 = vector.broadcast %cst_354 : f32 to vector<20x8xf32>
    %674 = arith.cmpf ogt, %6, %673 : vector<20x8xf32>
    %cst_355 = arith.constant -1.000000e+30 : f32
    %675 = vector.shape_cast %672 : vector<20x1xf32> to vector<20x1xf32>
    %676 = vector.broadcast %675 : vector<20x1xf32> to vector<20x8xf32>
    %677 = vector.broadcast %cst_355 : f32 to vector<20x8xf32>
    %678 = arith.select %674, %676, %677 : vector<20x8xi1>, vector<20x8xf32>
    %cst_356 = arith.constant dense<0xFF800000> : vector<8xf32>
    %679 = vector.multi_reduction <maximumf>, %678, %cst_356 [0] : vector<20x8xf32> to vector<8xf32>
    %680 = vector.shape_cast %679 : vector<8xf32> to vector<1x8xf32>
    %681 = vector.broadcast %680 : vector<1x8xf32> to vector<20x8xf32>
    %682 = arith.mulf %6, %681 : vector<20x8xf32>
    %cst_357 = arith.constant dense<0.000000e+00> : vector<20xf32>
    %683 = vector.multi_reduction <add>, %682, %cst_357 [1] : vector<20x8xf32> to vector<20xf32>
    %684 = vector.shape_cast %683 : vector<20xf32> to vector<20x1xf32>
    %685 = arith.subf %672, %684 : vector<20x1xf32>
    %686 = math.exp %685 : vector<20x1xf32>
    %687 = vector.broadcast %686 : vector<20x1xf32> to vector<20x8xf32>
    %688 = arith.mulf %6, %687 : vector<20x8xf32>
    %cst_358 = arith.constant dense<0.000000e+00> : vector<8xf32>
    %689 = vector.multi_reduction <add>, %688, %cst_358 [0] : vector<20x8xf32> to vector<8xf32>
    %690 = vector.shape_cast %689 : vector<8xf32> to vector<1x8xf32>
    %691 = vector.broadcast %690 : vector<1x8xf32> to vector<20x8xf32>
    %692 = arith.mulf %6, %691 : vector<20x8xf32>
    %cst_359 = arith.constant dense<0.000000e+00> : vector<20xf32>
    %693 = vector.multi_reduction <add>, %692, %cst_359 [1] : vector<20x8xf32> to vector<20xf32>
    %694 = vector.shape_cast %693 : vector<20xf32> to vector<20x1xf32>
    %695 = tpu.reciprocal %694 {approx = true} : vector<20x1xf32> -> vector<20x1xf32>
    %696 = arith.mulf %686, %695 : vector<20x1xf32>
    %697 = vector.broadcast %696 : vector<20x1xf32> to vector<20x128xf32>
    %698 = arith.mulf %660, %697 : vector<20x128xf32>
    %cst_360 = arith.constant dense<0.000000e+00> : vector<8x128xf32>
    %699 = tpu.matmul %6, %698, %cst_360 {dimension_numbers = #tpu.dot_dimension_numbers<[0], [0], [1], [1], [0, 1, 1, 1], [], []>} : vector<20x8xf32>, vector<20x128xf32>, vector<8x128xf32> -> vector<8x128xf32>
    %700 = arith.addf %637, %699 : vector<8x128xf32>
    %c11 = arith.constant 11 : index
    %c0_361 = arith.constant 0 : index
    %c0_362 = arith.constant 0 : index
    %701 = vector.load %arg6[%c11, %c0_361, %c0_362] : memref<16x16x128xbf16, #tpu.memory_space<vmem>>, vector<1x16x128xbf16>
    %702 = vector.shape_cast %701 : vector<1x16x128xbf16> to vector<16x128xbf16>
    %703 = arith.extf %702 : vector<16x128xbf16> to vector<16x128xf32>
    %c11_363 = arith.constant 11 : index
    %c0_364 = arith.constant 0 : index
    %c0_365 = arith.constant 0 : index
    %704 = vector.load %arg7[%c11_363, %c0_364, %c0_365] : memref<16x16x128xbf16, #tpu.memory_space<vmem>>, vector<1x16x128xbf16>
    %705 = vector.shape_cast %704 : vector<1x16x128xbf16> to vector<16x128xbf16>
    %706 = arith.extf %705 : vector<16x128xbf16> to vector<16x128xf32>
    %c11_366 = arith.constant 11 : index
    %c0_367 = arith.constant 0 : index
    %c0_368 = arith.constant 0 : index
    %707 = vector.load %arg8[%c11_366, %c0_367, %c0_368] : memref<16x8x128xbf16, #tpu.memory_space<vmem>>, vector<1x8x128xbf16>
    %708 = vector.shape_cast %707 : vector<1x8x128xbf16> to vector<8x128xbf16>
    %709 = arith.extf %708 : vector<8x128xbf16> to vector<8x128xf32>
    %c11_369 = arith.constant 11 : index
    %c0_370 = arith.constant 0 : index
    %c0_371 = arith.constant 0 : index
    %710 = vector.load %arg9[%c11_369, %c0_370, %c0_371] : memref<16x1x128xf32, #tpu.memory_space<vmem>>, vector<1x1x128xf32>
    %711 = vector.shape_cast %710 : vector<1x1x128xf32> to vector<1x128xf32>
    %c11_372 = arith.constant 11 : index
    %c0_373 = arith.constant 0 : index
    %c0_374 = arith.constant 0 : index
    %712 = vector.load %arg10[%c11_372, %c0_373, %c0_374] : memref<16x1x128xf32, #tpu.memory_space<vmem>>, vector<1x1x128xf32>
    %713 = vector.shape_cast %712 : vector<1x1x128xf32> to vector<1x128xf32>
    %c11_375 = arith.constant 11 : index
    %c0_376 = arith.constant 0 : index
    %c0_377 = arith.constant 0 : index
    %714 = vector.load %arg11[%c11_375, %c0_376, %c0_377] : memref<16x1x128xf32, #tpu.memory_space<vmem>>, vector<1x1x128xf32>
    %715 = vector.shape_cast %714 : vector<1x1x128xf32> to vector<1x128xf32>
    %cst_378 = arith.constant dense<0.000000e+00> : vector<8x128xf32>
    %716 = tpu.matmul %3, %703, %cst_378 {dimension_numbers = #tpu.dot_dimension_numbers<[1], [0], [0], [1], [0, 0, 1, 1], [], []>} : vector<8x16xf32>, vector<16x128xf32>, vector<8x128xf32> -> vector<8x128xf32>
    %717 = vector.broadcast %711 : vector<1x128xf32> to vector<8x128xf32>
    %718 = arith.addf %716, %717 : vector<8x128xf32>
    %cst_379 = arith.constant dense<0.000000e+00> : vector<8x128xf32>
    %719 = tpu.matmul %3, %706, %cst_379 {dimension_numbers = #tpu.dot_dimension_numbers<[1], [0], [0], [1], [0, 0, 1, 1], [], []>} : vector<8x16xf32>, vector<16x128xf32>, vector<8x128xf32> -> vector<8x128xf32>
    %720 = vector.broadcast %713 : vector<1x128xf32> to vector<8x128xf32>
    %721 = arith.addf %719, %720 : vector<8x128xf32>
    %cst_380 = arith.constant dense<0.000000e+00> : vector<20x128xf32>
    %722 = tpu.matmul %4, %709, %cst_380 {dimension_numbers = #tpu.dot_dimension_numbers<[1], [0], [0], [1], [0, 0, 1, 1], [], []>} : vector<20x8xf32>, vector<8x128xf32>, vector<20x128xf32> -> vector<20x128xf32>
    %cst_381 = arith.constant dense<0.000000e+00> : vector<20x128xf32>
    %723 = tpu.matmul %5, %718, %cst_381 {dimension_numbers = #tpu.dot_dimension_numbers<[1], [0], [0], [1], [0, 0, 1, 1], [], []>} : vector<20x8xf32>, vector<8x128xf32>, vector<20x128xf32> -> vector<20x128xf32>
    %cst_382 = arith.constant dense<0.000000e+00> : vector<20x128xf32>
    %724 = tpu.matmul %6, %721, %cst_382 {dimension_numbers = #tpu.dot_dimension_numbers<[1], [0], [0], [1], [0, 0, 1, 1], [], []>} : vector<20x8xf32>, vector<8x128xf32>, vector<20x128xf32> -> vector<20x128xf32>
    %725 = arith.addf %723, %724 : vector<20x128xf32>
    %726 = arith.addf %725, %722 : vector<20x128xf32>
    %cst_383 = arith.constant 0.000000e+00 : f32
    %727 = vector.broadcast %cst_383 : f32 to vector<20x128xf32>
    %728 = arith.cmpf ogt, %726, %727 : vector<20x128xf32>
    %cst_384 = arith.constant 2.000000e-01 : f32
    %729 = vector.broadcast %cst_384 : f32 to vector<20x128xf32>
    %730 = arith.mulf %729, %726 : vector<20x128xf32>
    %731 = arith.select %728, %726, %730 : vector<20x128xi1>, vector<20x128xf32>
    %732 = vector.broadcast %715 : vector<1x128xf32> to vector<20x128xf32>
    %733 = arith.mulf %731, %732 : vector<20x128xf32>
    %cst_385 = arith.constant dense<0.000000e+00> : vector<20xf32>
    %734 = vector.multi_reduction <add>, %733, %cst_385 [1] : vector<20x128xf32> to vector<20xf32>
    %735 = vector.shape_cast %734 : vector<20xf32> to vector<20x1xf32>
    %cst_386 = arith.constant 0.000000e+00 : f32
    %736 = vector.broadcast %cst_386 : f32 to vector<20x8xf32>
    %737 = arith.cmpf ogt, %6, %736 : vector<20x8xf32>
    %cst_387 = arith.constant -1.000000e+30 : f32
    %738 = vector.shape_cast %735 : vector<20x1xf32> to vector<20x1xf32>
    %739 = vector.broadcast %738 : vector<20x1xf32> to vector<20x8xf32>
    %740 = vector.broadcast %cst_387 : f32 to vector<20x8xf32>
    %741 = arith.select %737, %739, %740 : vector<20x8xi1>, vector<20x8xf32>
    %cst_388 = arith.constant dense<0xFF800000> : vector<8xf32>
    %742 = vector.multi_reduction <maximumf>, %741, %cst_388 [0] : vector<20x8xf32> to vector<8xf32>
    %743 = vector.shape_cast %742 : vector<8xf32> to vector<1x8xf32>
    %744 = vector.broadcast %743 : vector<1x8xf32> to vector<20x8xf32>
    %745 = arith.mulf %6, %744 : vector<20x8xf32>
    %cst_389 = arith.constant dense<0.000000e+00> : vector<20xf32>
    %746 = vector.multi_reduction <add>, %745, %cst_389 [1] : vector<20x8xf32> to vector<20xf32>
    %747 = vector.shape_cast %746 : vector<20xf32> to vector<20x1xf32>
    %748 = arith.subf %735, %747 : vector<20x1xf32>
    %749 = math.exp %748 : vector<20x1xf32>
    %750 = vector.broadcast %749 : vector<20x1xf32> to vector<20x8xf32>
    %751 = arith.mulf %6, %750 : vector<20x8xf32>
    %cst_390 = arith.constant dense<0.000000e+00> : vector<8xf32>
    %752 = vector.multi_reduction <add>, %751, %cst_390 [0] : vector<20x8xf32> to vector<8xf32>
    %753 = vector.shape_cast %752 : vector<8xf32> to vector<1x8xf32>
    %754 = vector.broadcast %753 : vector<1x8xf32> to vector<20x8xf32>
    %755 = arith.mulf %6, %754 : vector<20x8xf32>
    %cst_391 = arith.constant dense<0.000000e+00> : vector<20xf32>
    %756 = vector.multi_reduction <add>, %755, %cst_391 [1] : vector<20x8xf32> to vector<20xf32>
    %757 = vector.shape_cast %756 : vector<20xf32> to vector<20x1xf32>
    %758 = tpu.reciprocal %757 {approx = true} : vector<20x1xf32> -> vector<20x1xf32>
    %759 = arith.mulf %749, %758 : vector<20x1xf32>
    %760 = vector.broadcast %759 : vector<20x1xf32> to vector<20x128xf32>
    %761 = arith.mulf %723, %760 : vector<20x128xf32>
    %cst_392 = arith.constant dense<0.000000e+00> : vector<8x128xf32>
    %762 = tpu.matmul %6, %761, %cst_392 {dimension_numbers = #tpu.dot_dimension_numbers<[0], [0], [1], [1], [0, 1, 1, 1], [], []>} : vector<20x8xf32>, vector<20x128xf32>, vector<8x128xf32> -> vector<8x128xf32>
    %763 = arith.addf %700, %762 : vector<8x128xf32>
    %c12 = arith.constant 12 : index
    %c0_393 = arith.constant 0 : index
    %c0_394 = arith.constant 0 : index
    %764 = vector.load %arg6[%c12, %c0_393, %c0_394] : memref<16x16x128xbf16, #tpu.memory_space<vmem>>, vector<1x16x128xbf16>
    %765 = vector.shape_cast %764 : vector<1x16x128xbf16> to vector<16x128xbf16>
    %766 = arith.extf %765 : vector<16x128xbf16> to vector<16x128xf32>
    %c12_395 = arith.constant 12 : index
    %c0_396 = arith.constant 0 : index
    %c0_397 = arith.constant 0 : index
    %767 = vector.load %arg7[%c12_395, %c0_396, %c0_397] : memref<16x16x128xbf16, #tpu.memory_space<vmem>>, vector<1x16x128xbf16>
    %768 = vector.shape_cast %767 : vector<1x16x128xbf16> to vector<16x128xbf16>
    %769 = arith.extf %768 : vector<16x128xbf16> to vector<16x128xf32>
    %c12_398 = arith.constant 12 : index
    %c0_399 = arith.constant 0 : index
    %c0_400 = arith.constant 0 : index
    %770 = vector.load %arg8[%c12_398, %c0_399, %c0_400] : memref<16x8x128xbf16, #tpu.memory_space<vmem>>, vector<1x8x128xbf16>
    %771 = vector.shape_cast %770 : vector<1x8x128xbf16> to vector<8x128xbf16>
    %772 = arith.extf %771 : vector<8x128xbf16> to vector<8x128xf32>
    %c12_401 = arith.constant 12 : index
    %c0_402 = arith.constant 0 : index
    %c0_403 = arith.constant 0 : index
    %773 = vector.load %arg9[%c12_401, %c0_402, %c0_403] : memref<16x1x128xf32, #tpu.memory_space<vmem>>, vector<1x1x128xf32>
    %774 = vector.shape_cast %773 : vector<1x1x128xf32> to vector<1x128xf32>
    %c12_404 = arith.constant 12 : index
    %c0_405 = arith.constant 0 : index
    %c0_406 = arith.constant 0 : index
    %775 = vector.load %arg10[%c12_404, %c0_405, %c0_406] : memref<16x1x128xf32, #tpu.memory_space<vmem>>, vector<1x1x128xf32>
    %776 = vector.shape_cast %775 : vector<1x1x128xf32> to vector<1x128xf32>
    %c12_407 = arith.constant 12 : index
    %c0_408 = arith.constant 0 : index
    %c0_409 = arith.constant 0 : index
    %777 = vector.load %arg11[%c12_407, %c0_408, %c0_409] : memref<16x1x128xf32, #tpu.memory_space<vmem>>, vector<1x1x128xf32>
    %778 = vector.shape_cast %777 : vector<1x1x128xf32> to vector<1x128xf32>
    %cst_410 = arith.constant dense<0.000000e+00> : vector<8x128xf32>
    %779 = tpu.matmul %3, %766, %cst_410 {dimension_numbers = #tpu.dot_dimension_numbers<[1], [0], [0], [1], [0, 0, 1, 1], [], []>} : vector<8x16xf32>, vector<16x128xf32>, vector<8x128xf32> -> vector<8x128xf32>
    %780 = vector.broadcast %774 : vector<1x128xf32> to vector<8x128xf32>
    %781 = arith.addf %779, %780 : vector<8x128xf32>
    %cst_411 = arith.constant dense<0.000000e+00> : vector<8x128xf32>
    %782 = tpu.matmul %3, %769, %cst_411 {dimension_numbers = #tpu.dot_dimension_numbers<[1], [0], [0], [1], [0, 0, 1, 1], [], []>} : vector<8x16xf32>, vector<16x128xf32>, vector<8x128xf32> -> vector<8x128xf32>
    %783 = vector.broadcast %776 : vector<1x128xf32> to vector<8x128xf32>
    %784 = arith.addf %782, %783 : vector<8x128xf32>
    %cst_412 = arith.constant dense<0.000000e+00> : vector<20x128xf32>
    %785 = tpu.matmul %4, %772, %cst_412 {dimension_numbers = #tpu.dot_dimension_numbers<[1], [0], [0], [1], [0, 0, 1, 1], [], []>} : vector<20x8xf32>, vector<8x128xf32>, vector<20x128xf32> -> vector<20x128xf32>
    %cst_413 = arith.constant dense<0.000000e+00> : vector<20x128xf32>
    %786 = tpu.matmul %5, %781, %cst_413 {dimension_numbers = #tpu.dot_dimension_numbers<[1], [0], [0], [1], [0, 0, 1, 1], [], []>} : vector<20x8xf32>, vector<8x128xf32>, vector<20x128xf32> -> vector<20x128xf32>
    %cst_414 = arith.constant dense<0.000000e+00> : vector<20x128xf32>
    %787 = tpu.matmul %6, %784, %cst_414 {dimension_numbers = #tpu.dot_dimension_numbers<[1], [0], [0], [1], [0, 0, 1, 1], [], []>} : vector<20x8xf32>, vector<8x128xf32>, vector<20x128xf32> -> vector<20x128xf32>
    %788 = arith.addf %786, %787 : vector<20x128xf32>
    %789 = arith.addf %788, %785 : vector<20x128xf32>
    %cst_415 = arith.constant 0.000000e+00 : f32
    %790 = vector.broadcast %cst_415 : f32 to vector<20x128xf32>
    %791 = arith.cmpf ogt, %789, %790 : vector<20x128xf32>
    %cst_416 = arith.constant 2.000000e-01 : f32
    %792 = vector.broadcast %cst_416 : f32 to vector<20x128xf32>
    %793 = arith.mulf %792, %789 : vector<20x128xf32>
    %794 = arith.select %791, %789, %793 : vector<20x128xi1>, vector<20x128xf32>
    %795 = vector.broadcast %778 : vector<1x128xf32> to vector<20x128xf32>
    %796 = arith.mulf %794, %795 : vector<20x128xf32>
    %cst_417 = arith.constant dense<0.000000e+00> : vector<20xf32>
    %797 = vector.multi_reduction <add>, %796, %cst_417 [1] : vector<20x128xf32> to vector<20xf32>
    %798 = vector.shape_cast %797 : vector<20xf32> to vector<20x1xf32>
    %cst_418 = arith.constant 0.000000e+00 : f32
    %799 = vector.broadcast %cst_418 : f32 to vector<20x8xf32>
    %800 = arith.cmpf ogt, %6, %799 : vector<20x8xf32>
    %cst_419 = arith.constant -1.000000e+30 : f32
    %801 = vector.shape_cast %798 : vector<20x1xf32> to vector<20x1xf32>
    %802 = vector.broadcast %801 : vector<20x1xf32> to vector<20x8xf32>
    %803 = vector.broadcast %cst_419 : f32 to vector<20x8xf32>
    %804 = arith.select %800, %802, %803 : vector<20x8xi1>, vector<20x8xf32>
    %cst_420 = arith.constant dense<0xFF800000> : vector<8xf32>
    %805 = vector.multi_reduction <maximumf>, %804, %cst_420 [0] : vector<20x8xf32> to vector<8xf32>
    %806 = vector.shape_cast %805 : vector<8xf32> to vector<1x8xf32>
    %807 = vector.broadcast %806 : vector<1x8xf32> to vector<20x8xf32>
    %808 = arith.mulf %6, %807 : vector<20x8xf32>
    %cst_421 = arith.constant dense<0.000000e+00> : vector<20xf32>
    %809 = vector.multi_reduction <add>, %808, %cst_421 [1] : vector<20x8xf32> to vector<20xf32>
    %810 = vector.shape_cast %809 : vector<20xf32> to vector<20x1xf32>
    %811 = arith.subf %798, %810 : vector<20x1xf32>
    %812 = math.exp %811 : vector<20x1xf32>
    %813 = vector.broadcast %812 : vector<20x1xf32> to vector<20x8xf32>
    %814 = arith.mulf %6, %813 : vector<20x8xf32>
    %cst_422 = arith.constant dense<0.000000e+00> : vector<8xf32>
    %815 = vector.multi_reduction <add>, %814, %cst_422 [0] : vector<20x8xf32> to vector<8xf32>
    %816 = vector.shape_cast %815 : vector<8xf32> to vector<1x8xf32>
    %817 = vector.broadcast %816 : vector<1x8xf32> to vector<20x8xf32>
    %818 = arith.mulf %6, %817 : vector<20x8xf32>
    %cst_423 = arith.constant dense<0.000000e+00> : vector<20xf32>
    %819 = vector.multi_reduction <add>, %818, %cst_423 [1] : vector<20x8xf32> to vector<20xf32>
    %820 = vector.shape_cast %819 : vector<20xf32> to vector<20x1xf32>
    %821 = tpu.reciprocal %820 {approx = true} : vector<20x1xf32> -> vector<20x1xf32>
    %822 = arith.mulf %812, %821 : vector<20x1xf32>
    %823 = vector.broadcast %822 : vector<20x1xf32> to vector<20x128xf32>
    %824 = arith.mulf %786, %823 : vector<20x128xf32>
    %cst_424 = arith.constant dense<0.000000e+00> : vector<8x128xf32>
    %825 = tpu.matmul %6, %824, %cst_424 {dimension_numbers = #tpu.dot_dimension_numbers<[0], [0], [1], [1], [0, 1, 1, 1], [], []>} : vector<20x8xf32>, vector<20x128xf32>, vector<8x128xf32> -> vector<8x128xf32>
    %826 = arith.addf %763, %825 : vector<8x128xf32>
    %c13 = arith.constant 13 : index
    %c0_425 = arith.constant 0 : index
    %c0_426 = arith.constant 0 : index
    %827 = vector.load %arg6[%c13, %c0_425, %c0_426] : memref<16x16x128xbf16, #tpu.memory_space<vmem>>, vector<1x16x128xbf16>
    %828 = vector.shape_cast %827 : vector<1x16x128xbf16> to vector<16x128xbf16>
    %829 = arith.extf %828 : vector<16x128xbf16> to vector<16x128xf32>
    %c13_427 = arith.constant 13 : index
    %c0_428 = arith.constant 0 : index
    %c0_429 = arith.constant 0 : index
    %830 = vector.load %arg7[%c13_427, %c0_428, %c0_429] : memref<16x16x128xbf16, #tpu.memory_space<vmem>>, vector<1x16x128xbf16>
    %831 = vector.shape_cast %830 : vector<1x16x128xbf16> to vector<16x128xbf16>
    %832 = arith.extf %831 : vector<16x128xbf16> to vector<16x128xf32>
    %c13_430 = arith.constant 13 : index
    %c0_431 = arith.constant 0 : index
    %c0_432 = arith.constant 0 : index
    %833 = vector.load %arg8[%c13_430, %c0_431, %c0_432] : memref<16x8x128xbf16, #tpu.memory_space<vmem>>, vector<1x8x128xbf16>
    %834 = vector.shape_cast %833 : vector<1x8x128xbf16> to vector<8x128xbf16>
    %835 = arith.extf %834 : vector<8x128xbf16> to vector<8x128xf32>
    %c13_433 = arith.constant 13 : index
    %c0_434 = arith.constant 0 : index
    %c0_435 = arith.constant 0 : index
    %836 = vector.load %arg9[%c13_433, %c0_434, %c0_435] : memref<16x1x128xf32, #tpu.memory_space<vmem>>, vector<1x1x128xf32>
    %837 = vector.shape_cast %836 : vector<1x1x128xf32> to vector<1x128xf32>
    %c13_436 = arith.constant 13 : index
    %c0_437 = arith.constant 0 : index
    %c0_438 = arith.constant 0 : index
    %838 = vector.load %arg10[%c13_436, %c0_437, %c0_438] : memref<16x1x128xf32, #tpu.memory_space<vmem>>, vector<1x1x128xf32>
    %839 = vector.shape_cast %838 : vector<1x1x128xf32> to vector<1x128xf32>
    %c13_439 = arith.constant 13 : index
    %c0_440 = arith.constant 0 : index
    %c0_441 = arith.constant 0 : index
    %840 = vector.load %arg11[%c13_439, %c0_440, %c0_441] : memref<16x1x128xf32, #tpu.memory_space<vmem>>, vector<1x1x128xf32>
    %841 = vector.shape_cast %840 : vector<1x1x128xf32> to vector<1x128xf32>
    %cst_442 = arith.constant dense<0.000000e+00> : vector<8x128xf32>
    %842 = tpu.matmul %3, %829, %cst_442 {dimension_numbers = #tpu.dot_dimension_numbers<[1], [0], [0], [1], [0, 0, 1, 1], [], []>} : vector<8x16xf32>, vector<16x128xf32>, vector<8x128xf32> -> vector<8x128xf32>
    %843 = vector.broadcast %837 : vector<1x128xf32> to vector<8x128xf32>
    %844 = arith.addf %842, %843 : vector<8x128xf32>
    %cst_443 = arith.constant dense<0.000000e+00> : vector<8x128xf32>
    %845 = tpu.matmul %3, %832, %cst_443 {dimension_numbers = #tpu.dot_dimension_numbers<[1], [0], [0], [1], [0, 0, 1, 1], [], []>} : vector<8x16xf32>, vector<16x128xf32>, vector<8x128xf32> -> vector<8x128xf32>
    %846 = vector.broadcast %839 : vector<1x128xf32> to vector<8x128xf32>
    %847 = arith.addf %845, %846 : vector<8x128xf32>
    %cst_444 = arith.constant dense<0.000000e+00> : vector<20x128xf32>
    %848 = tpu.matmul %4, %835, %cst_444 {dimension_numbers = #tpu.dot_dimension_numbers<[1], [0], [0], [1], [0, 0, 1, 1], [], []>} : vector<20x8xf32>, vector<8x128xf32>, vector<20x128xf32> -> vector<20x128xf32>
    %cst_445 = arith.constant dense<0.000000e+00> : vector<20x128xf32>
    %849 = tpu.matmul %5, %844, %cst_445 {dimension_numbers = #tpu.dot_dimension_numbers<[1], [0], [0], [1], [0, 0, 1, 1], [], []>} : vector<20x8xf32>, vector<8x128xf32>, vector<20x128xf32> -> vector<20x128xf32>
    %cst_446 = arith.constant dense<0.000000e+00> : vector<20x128xf32>
    %850 = tpu.matmul %6, %847, %cst_446 {dimension_numbers = #tpu.dot_dimension_numbers<[1], [0], [0], [1], [0, 0, 1, 1], [], []>} : vector<20x8xf32>, vector<8x128xf32>, vector<20x128xf32> -> vector<20x128xf32>
    %851 = arith.addf %849, %850 : vector<20x128xf32>
    %852 = arith.addf %851, %848 : vector<20x128xf32>
    %cst_447 = arith.constant 0.000000e+00 : f32
    %853 = vector.broadcast %cst_447 : f32 to vector<20x128xf32>
    %854 = arith.cmpf ogt, %852, %853 : vector<20x128xf32>
    %cst_448 = arith.constant 2.000000e-01 : f32
    %855 = vector.broadcast %cst_448 : f32 to vector<20x128xf32>
    %856 = arith.mulf %855, %852 : vector<20x128xf32>
    %857 = arith.select %854, %852, %856 : vector<20x128xi1>, vector<20x128xf32>
    %858 = vector.broadcast %841 : vector<1x128xf32> to vector<20x128xf32>
    %859 = arith.mulf %857, %858 : vector<20x128xf32>
    %cst_449 = arith.constant dense<0.000000e+00> : vector<20xf32>
    %860 = vector.multi_reduction <add>, %859, %cst_449 [1] : vector<20x128xf32> to vector<20xf32>
    %861 = vector.shape_cast %860 : vector<20xf32> to vector<20x1xf32>
    %cst_450 = arith.constant 0.000000e+00 : f32
    %862 = vector.broadcast %cst_450 : f32 to vector<20x8xf32>
    %863 = arith.cmpf ogt, %6, %862 : vector<20x8xf32>
    %cst_451 = arith.constant -1.000000e+30 : f32
    %864 = vector.shape_cast %861 : vector<20x1xf32> to vector<20x1xf32>
    %865 = vector.broadcast %864 : vector<20x1xf32> to vector<20x8xf32>
    %866 = vector.broadcast %cst_451 : f32 to vector<20x8xf32>
    %867 = arith.select %863, %865, %866 : vector<20x8xi1>, vector<20x8xf32>
    %cst_452 = arith.constant dense<0xFF800000> : vector<8xf32>
    %868 = vector.multi_reduction <maximumf>, %867, %cst_452 [0] : vector<20x8xf32> to vector<8xf32>
    %869 = vector.shape_cast %868 : vector<8xf32> to vector<1x8xf32>
    %870 = vector.broadcast %869 : vector<1x8xf32> to vector<20x8xf32>
    %871 = arith.mulf %6, %870 : vector<20x8xf32>
    %cst_453 = arith.constant dense<0.000000e+00> : vector<20xf32>
    %872 = vector.multi_reduction <add>, %871, %cst_453 [1] : vector<20x8xf32> to vector<20xf32>
    %873 = vector.shape_cast %872 : vector<20xf32> to vector<20x1xf32>
    %874 = arith.subf %861, %873 : vector<20x1xf32>
    %875 = math.exp %874 : vector<20x1xf32>
    %876 = vector.broadcast %875 : vector<20x1xf32> to vector<20x8xf32>
    %877 = arith.mulf %6, %876 : vector<20x8xf32>
    %cst_454 = arith.constant dense<0.000000e+00> : vector<8xf32>
    %878 = vector.multi_reduction <add>, %877, %cst_454 [0] : vector<20x8xf32> to vector<8xf32>
    %879 = vector.shape_cast %878 : vector<8xf32> to vector<1x8xf32>
    %880 = vector.broadcast %879 : vector<1x8xf32> to vector<20x8xf32>
    %881 = arith.mulf %6, %880 : vector<20x8xf32>
    %cst_455 = arith.constant dense<0.000000e+00> : vector<20xf32>
    %882 = vector.multi_reduction <add>, %881, %cst_455 [1] : vector<20x8xf32> to vector<20xf32>
    %883 = vector.shape_cast %882 : vector<20xf32> to vector<20x1xf32>
    %884 = tpu.reciprocal %883 {approx = true} : vector<20x1xf32> -> vector<20x1xf32>
    %885 = arith.mulf %875, %884 : vector<20x1xf32>
    %886 = vector.broadcast %885 : vector<20x1xf32> to vector<20x128xf32>
    %887 = arith.mulf %849, %886 : vector<20x128xf32>
    %cst_456 = arith.constant dense<0.000000e+00> : vector<8x128xf32>
    %888 = tpu.matmul %6, %887, %cst_456 {dimension_numbers = #tpu.dot_dimension_numbers<[0], [0], [1], [1], [0, 1, 1, 1], [], []>} : vector<20x8xf32>, vector<20x128xf32>, vector<8x128xf32> -> vector<8x128xf32>
    %889 = arith.addf %826, %888 : vector<8x128xf32>
    %c14 = arith.constant 14 : index
    %c0_457 = arith.constant 0 : index
    %c0_458 = arith.constant 0 : index
    %890 = vector.load %arg6[%c14, %c0_457, %c0_458] : memref<16x16x128xbf16, #tpu.memory_space<vmem>>, vector<1x16x128xbf16>
    %891 = vector.shape_cast %890 : vector<1x16x128xbf16> to vector<16x128xbf16>
    %892 = arith.extf %891 : vector<16x128xbf16> to vector<16x128xf32>
    %c14_459 = arith.constant 14 : index
    %c0_460 = arith.constant 0 : index
    %c0_461 = arith.constant 0 : index
    %893 = vector.load %arg7[%c14_459, %c0_460, %c0_461] : memref<16x16x128xbf16, #tpu.memory_space<vmem>>, vector<1x16x128xbf16>
    %894 = vector.shape_cast %893 : vector<1x16x128xbf16> to vector<16x128xbf16>
    %895 = arith.extf %894 : vector<16x128xbf16> to vector<16x128xf32>
    %c14_462 = arith.constant 14 : index
    %c0_463 = arith.constant 0 : index
    %c0_464 = arith.constant 0 : index
    %896 = vector.load %arg8[%c14_462, %c0_463, %c0_464] : memref<16x8x128xbf16, #tpu.memory_space<vmem>>, vector<1x8x128xbf16>
    %897 = vector.shape_cast %896 : vector<1x8x128xbf16> to vector<8x128xbf16>
    %898 = arith.extf %897 : vector<8x128xbf16> to vector<8x128xf32>
    %c14_465 = arith.constant 14 : index
    %c0_466 = arith.constant 0 : index
    %c0_467 = arith.constant 0 : index
    %899 = vector.load %arg9[%c14_465, %c0_466, %c0_467] : memref<16x1x128xf32, #tpu.memory_space<vmem>>, vector<1x1x128xf32>
    %900 = vector.shape_cast %899 : vector<1x1x128xf32> to vector<1x128xf32>
    %c14_468 = arith.constant 14 : index
    %c0_469 = arith.constant 0 : index
    %c0_470 = arith.constant 0 : index
    %901 = vector.load %arg10[%c14_468, %c0_469, %c0_470] : memref<16x1x128xf32, #tpu.memory_space<vmem>>, vector<1x1x128xf32>
    %902 = vector.shape_cast %901 : vector<1x1x128xf32> to vector<1x128xf32>
    %c14_471 = arith.constant 14 : index
    %c0_472 = arith.constant 0 : index
    %c0_473 = arith.constant 0 : index
    %903 = vector.load %arg11[%c14_471, %c0_472, %c0_473] : memref<16x1x128xf32, #tpu.memory_space<vmem>>, vector<1x1x128xf32>
    %904 = vector.shape_cast %903 : vector<1x1x128xf32> to vector<1x128xf32>
    %cst_474 = arith.constant dense<0.000000e+00> : vector<8x128xf32>
    %905 = tpu.matmul %3, %892, %cst_474 {dimension_numbers = #tpu.dot_dimension_numbers<[1], [0], [0], [1], [0, 0, 1, 1], [], []>} : vector<8x16xf32>, vector<16x128xf32>, vector<8x128xf32> -> vector<8x128xf32>
    %906 = vector.broadcast %900 : vector<1x128xf32> to vector<8x128xf32>
    %907 = arith.addf %905, %906 : vector<8x128xf32>
    %cst_475 = arith.constant dense<0.000000e+00> : vector<8x128xf32>
    %908 = tpu.matmul %3, %895, %cst_475 {dimension_numbers = #tpu.dot_dimension_numbers<[1], [0], [0], [1], [0, 0, 1, 1], [], []>} : vector<8x16xf32>, vector<16x128xf32>, vector<8x128xf32> -> vector<8x128xf32>
    %909 = vector.broadcast %902 : vector<1x128xf32> to vector<8x128xf32>
    %910 = arith.addf %908, %909 : vector<8x128xf32>
    %cst_476 = arith.constant dense<0.000000e+00> : vector<20x128xf32>
    %911 = tpu.matmul %4, %898, %cst_476 {dimension_numbers = #tpu.dot_dimension_numbers<[1], [0], [0], [1], [0, 0, 1, 1], [], []>} : vector<20x8xf32>, vector<8x128xf32>, vector<20x128xf32> -> vector<20x128xf32>
    %cst_477 = arith.constant dense<0.000000e+00> : vector<20x128xf32>
    %912 = tpu.matmul %5, %907, %cst_477 {dimension_numbers = #tpu.dot_dimension_numbers<[1], [0], [0], [1], [0, 0, 1, 1], [], []>} : vector<20x8xf32>, vector<8x128xf32>, vector<20x128xf32> -> vector<20x128xf32>
    %cst_478 = arith.constant dense<0.000000e+00> : vector<20x128xf32>
    %913 = tpu.matmul %6, %910, %cst_478 {dimension_numbers = #tpu.dot_dimension_numbers<[1], [0], [0], [1], [0, 0, 1, 1], [], []>} : vector<20x8xf32>, vector<8x128xf32>, vector<20x128xf32> -> vector<20x128xf32>
    %914 = arith.addf %912, %913 : vector<20x128xf32>
    %915 = arith.addf %914, %911 : vector<20x128xf32>
    %cst_479 = arith.constant 0.000000e+00 : f32
    %916 = vector.broadcast %cst_479 : f32 to vector<20x128xf32>
    %917 = arith.cmpf ogt, %915, %916 : vector<20x128xf32>
    %cst_480 = arith.constant 2.000000e-01 : f32
    %918 = vector.broadcast %cst_480 : f32 to vector<20x128xf32>
    %919 = arith.mulf %918, %915 : vector<20x128xf32>
    %920 = arith.select %917, %915, %919 : vector<20x128xi1>, vector<20x128xf32>
    %921 = vector.broadcast %904 : vector<1x128xf32> to vector<20x128xf32>
    %922 = arith.mulf %920, %921 : vector<20x128xf32>
    %cst_481 = arith.constant dense<0.000000e+00> : vector<20xf32>
    %923 = vector.multi_reduction <add>, %922, %cst_481 [1] : vector<20x128xf32> to vector<20xf32>
    %924 = vector.shape_cast %923 : vector<20xf32> to vector<20x1xf32>
    %cst_482 = arith.constant 0.000000e+00 : f32
    %925 = vector.broadcast %cst_482 : f32 to vector<20x8xf32>
    %926 = arith.cmpf ogt, %6, %925 : vector<20x8xf32>
    %cst_483 = arith.constant -1.000000e+30 : f32
    %927 = vector.shape_cast %924 : vector<20x1xf32> to vector<20x1xf32>
    %928 = vector.broadcast %927 : vector<20x1xf32> to vector<20x8xf32>
    %929 = vector.broadcast %cst_483 : f32 to vector<20x8xf32>
    %930 = arith.select %926, %928, %929 : vector<20x8xi1>, vector<20x8xf32>
    %cst_484 = arith.constant dense<0xFF800000> : vector<8xf32>
    %931 = vector.multi_reduction <maximumf>, %930, %cst_484 [0] : vector<20x8xf32> to vector<8xf32>
    %932 = vector.shape_cast %931 : vector<8xf32> to vector<1x8xf32>
    %933 = vector.broadcast %932 : vector<1x8xf32> to vector<20x8xf32>
    %934 = arith.mulf %6, %933 : vector<20x8xf32>
    %cst_485 = arith.constant dense<0.000000e+00> : vector<20xf32>
    %935 = vector.multi_reduction <add>, %934, %cst_485 [1] : vector<20x8xf32> to vector<20xf32>
    %936 = vector.shape_cast %935 : vector<20xf32> to vector<20x1xf32>
    %937 = arith.subf %924, %936 : vector<20x1xf32>
    %938 = math.exp %937 : vector<20x1xf32>
    %939 = vector.broadcast %938 : vector<20x1xf32> to vector<20x8xf32>
    %940 = arith.mulf %6, %939 : vector<20x8xf32>
    %cst_486 = arith.constant dense<0.000000e+00> : vector<8xf32>
    %941 = vector.multi_reduction <add>, %940, %cst_486 [0] : vector<20x8xf32> to vector<8xf32>
    %942 = vector.shape_cast %941 : vector<8xf32> to vector<1x8xf32>
    %943 = vector.broadcast %942 : vector<1x8xf32> to vector<20x8xf32>
    %944 = arith.mulf %6, %943 : vector<20x8xf32>
    %cst_487 = arith.constant dense<0.000000e+00> : vector<20xf32>
    %945 = vector.multi_reduction <add>, %944, %cst_487 [1] : vector<20x8xf32> to vector<20xf32>
    %946 = vector.shape_cast %945 : vector<20xf32> to vector<20x1xf32>
    %947 = tpu.reciprocal %946 {approx = true} : vector<20x1xf32> -> vector<20x1xf32>
    %948 = arith.mulf %938, %947 : vector<20x1xf32>
    %949 = vector.broadcast %948 : vector<20x1xf32> to vector<20x128xf32>
    %950 = arith.mulf %912, %949 : vector<20x128xf32>
    %cst_488 = arith.constant dense<0.000000e+00> : vector<8x128xf32>
    %951 = tpu.matmul %6, %950, %cst_488 {dimension_numbers = #tpu.dot_dimension_numbers<[0], [0], [1], [1], [0, 1, 1, 1], [], []>} : vector<20x8xf32>, vector<20x128xf32>, vector<8x128xf32> -> vector<8x128xf32>
    %952 = arith.addf %889, %951 : vector<8x128xf32>
    %c15 = arith.constant 15 : index
    %c0_489 = arith.constant 0 : index
    %c0_490 = arith.constant 0 : index
    %953 = vector.load %arg6[%c15, %c0_489, %c0_490] : memref<16x16x128xbf16, #tpu.memory_space<vmem>>, vector<1x16x128xbf16>
    %954 = vector.shape_cast %953 : vector<1x16x128xbf16> to vector<16x128xbf16>
    %955 = arith.extf %954 : vector<16x128xbf16> to vector<16x128xf32>
    %c15_491 = arith.constant 15 : index
    %c0_492 = arith.constant 0 : index
    %c0_493 = arith.constant 0 : index
    %956 = vector.load %arg7[%c15_491, %c0_492, %c0_493] : memref<16x16x128xbf16, #tpu.memory_space<vmem>>, vector<1x16x128xbf16>
    %957 = vector.shape_cast %956 : vector<1x16x128xbf16> to vector<16x128xbf16>
    %958 = arith.extf %957 : vector<16x128xbf16> to vector<16x128xf32>
    %c15_494 = arith.constant 15 : index
    %c0_495 = arith.constant 0 : index
    %c0_496 = arith.constant 0 : index
    %959 = vector.load %arg8[%c15_494, %c0_495, %c0_496] : memref<16x8x128xbf16, #tpu.memory_space<vmem>>, vector<1x8x128xbf16>
    %960 = vector.shape_cast %959 : vector<1x8x128xbf16> to vector<8x128xbf16>
    %961 = arith.extf %960 : vector<8x128xbf16> to vector<8x128xf32>
    %c15_497 = arith.constant 15 : index
    %c0_498 = arith.constant 0 : index
    %c0_499 = arith.constant 0 : index
    %962 = vector.load %arg9[%c15_497, %c0_498, %c0_499] : memref<16x1x128xf32, #tpu.memory_space<vmem>>, vector<1x1x128xf32>
    %963 = vector.shape_cast %962 : vector<1x1x128xf32> to vector<1x128xf32>
    %c15_500 = arith.constant 15 : index
    %c0_501 = arith.constant 0 : index
    %c0_502 = arith.constant 0 : index
    %964 = vector.load %arg10[%c15_500, %c0_501, %c0_502] : memref<16x1x128xf32, #tpu.memory_space<vmem>>, vector<1x1x128xf32>
    %965 = vector.shape_cast %964 : vector<1x1x128xf32> to vector<1x128xf32>
    %c15_503 = arith.constant 15 : index
    %c0_504 = arith.constant 0 : index
    %c0_505 = arith.constant 0 : index
    %966 = vector.load %arg11[%c15_503, %c0_504, %c0_505] : memref<16x1x128xf32, #tpu.memory_space<vmem>>, vector<1x1x128xf32>
    %967 = vector.shape_cast %966 : vector<1x1x128xf32> to vector<1x128xf32>
    %cst_506 = arith.constant dense<0.000000e+00> : vector<8x128xf32>
    %968 = tpu.matmul %3, %955, %cst_506 {dimension_numbers = #tpu.dot_dimension_numbers<[1], [0], [0], [1], [0, 0, 1, 1], [], []>} : vector<8x16xf32>, vector<16x128xf32>, vector<8x128xf32> -> vector<8x128xf32>
    %969 = vector.broadcast %963 : vector<1x128xf32> to vector<8x128xf32>
    %970 = arith.addf %968, %969 : vector<8x128xf32>
    %cst_507 = arith.constant dense<0.000000e+00> : vector<8x128xf32>
    %971 = tpu.matmul %3, %958, %cst_507 {dimension_numbers = #tpu.dot_dimension_numbers<[1], [0], [0], [1], [0, 0, 1, 1], [], []>} : vector<8x16xf32>, vector<16x128xf32>, vector<8x128xf32> -> vector<8x128xf32>
    %972 = vector.broadcast %965 : vector<1x128xf32> to vector<8x128xf32>
    %973 = arith.addf %971, %972 : vector<8x128xf32>
    %cst_508 = arith.constant dense<0.000000e+00> : vector<20x128xf32>
    %974 = tpu.matmul %4, %961, %cst_508 {dimension_numbers = #tpu.dot_dimension_numbers<[1], [0], [0], [1], [0, 0, 1, 1], [], []>} : vector<20x8xf32>, vector<8x128xf32>, vector<20x128xf32> -> vector<20x128xf32>
    %cst_509 = arith.constant dense<0.000000e+00> : vector<20x128xf32>
    %975 = tpu.matmul %5, %970, %cst_509 {dimension_numbers = #tpu.dot_dimension_numbers<[1], [0], [0], [1], [0, 0, 1, 1], [], []>} : vector<20x8xf32>, vector<8x128xf32>, vector<20x128xf32> -> vector<20x128xf32>
    %cst_510 = arith.constant dense<0.000000e+00> : vector<20x128xf32>
    %976 = tpu.matmul %6, %973, %cst_510 {dimension_numbers = #tpu.dot_dimension_numbers<[1], [0], [0], [1], [0, 0, 1, 1], [], []>} : vector<20x8xf32>, vector<8x128xf32>, vector<20x128xf32> -> vector<20x128xf32>
    %977 = arith.addf %975, %976 : vector<20x128xf32>
    %978 = arith.addf %977, %974 : vector<20x128xf32>
    %cst_511 = arith.constant 0.000000e+00 : f32
    %979 = vector.broadcast %cst_511 : f32 to vector<20x128xf32>
    %980 = arith.cmpf ogt, %978, %979 : vector<20x128xf32>
    %cst_512 = arith.constant 2.000000e-01 : f32
    %981 = vector.broadcast %cst_512 : f32 to vector<20x128xf32>
    %982 = arith.mulf %981, %978 : vector<20x128xf32>
    %983 = arith.select %980, %978, %982 : vector<20x128xi1>, vector<20x128xf32>
    %984 = vector.broadcast %967 : vector<1x128xf32> to vector<20x128xf32>
    %985 = arith.mulf %983, %984 : vector<20x128xf32>
    %cst_513 = arith.constant dense<0.000000e+00> : vector<20xf32>
    %986 = vector.multi_reduction <add>, %985, %cst_513 [1] : vector<20x128xf32> to vector<20xf32>
    %987 = vector.shape_cast %986 : vector<20xf32> to vector<20x1xf32>
    %cst_514 = arith.constant 0.000000e+00 : f32
    %988 = vector.broadcast %cst_514 : f32 to vector<20x8xf32>
    %989 = arith.cmpf ogt, %6, %988 : vector<20x8xf32>
    %cst_515 = arith.constant -1.000000e+30 : f32
    %990 = vector.shape_cast %987 : vector<20x1xf32> to vector<20x1xf32>
    %991 = vector.broadcast %990 : vector<20x1xf32> to vector<20x8xf32>
    %992 = vector.broadcast %cst_515 : f32 to vector<20x8xf32>
    %993 = arith.select %989, %991, %992 : vector<20x8xi1>, vector<20x8xf32>
    %cst_516 = arith.constant dense<0xFF800000> : vector<8xf32>
    %994 = vector.multi_reduction <maximumf>, %993, %cst_516 [0] : vector<20x8xf32> to vector<8xf32>
    %995 = vector.shape_cast %994 : vector<8xf32> to vector<1x8xf32>
    %996 = vector.broadcast %995 : vector<1x8xf32> to vector<20x8xf32>
    %997 = arith.mulf %6, %996 : vector<20x8xf32>
    %cst_517 = arith.constant dense<0.000000e+00> : vector<20xf32>
    %998 = vector.multi_reduction <add>, %997, %cst_517 [1] : vector<20x8xf32> to vector<20xf32>
    %999 = vector.shape_cast %998 : vector<20xf32> to vector<20x1xf32>
    %1000 = arith.subf %987, %999 : vector<20x1xf32>
    %1001 = math.exp %1000 : vector<20x1xf32>
    %1002 = vector.broadcast %1001 : vector<20x1xf32> to vector<20x8xf32>
    %1003 = arith.mulf %6, %1002 : vector<20x8xf32>
    %cst_518 = arith.constant dense<0.000000e+00> : vector<8xf32>
    %1004 = vector.multi_reduction <add>, %1003, %cst_518 [0] : vector<20x8xf32> to vector<8xf32>
    %1005 = vector.shape_cast %1004 : vector<8xf32> to vector<1x8xf32>
    %1006 = vector.broadcast %1005 : vector<1x8xf32> to vector<20x8xf32>
    %1007 = arith.mulf %6, %1006 : vector<20x8xf32>
    %cst_519 = arith.constant dense<0.000000e+00> : vector<20xf32>
    %1008 = vector.multi_reduction <add>, %1007, %cst_519 [1] : vector<20x8xf32> to vector<20xf32>
    %1009 = vector.shape_cast %1008 : vector<20xf32> to vector<20x1xf32>
    %1010 = tpu.reciprocal %1009 {approx = true} : vector<20x1xf32> -> vector<20x1xf32>
    %1011 = arith.mulf %1001, %1010 : vector<20x1xf32>
    %1012 = vector.broadcast %1011 : vector<20x1xf32> to vector<20x128xf32>
    %1013 = arith.mulf %975, %1012 : vector<20x128xf32>
    %cst_520 = arith.constant dense<0.000000e+00> : vector<8x128xf32>
    %1014 = tpu.matmul %6, %1013, %cst_520 {dimension_numbers = #tpu.dot_dimension_numbers<[0], [0], [1], [1], [0, 1, 1, 1], [], []>} : vector<20x8xf32>, vector<20x128xf32>, vector<8x128xf32> -> vector<8x128xf32>
    %1015 = arith.addf %952, %1014 : vector<8x128xf32>
    %c0_521 = arith.constant 0 : index
    %c0_522 = arith.constant 0 : index
    %c0_523 = arith.constant 0 : index
    %1016 = vector.load %arg12[%c0_521, %c0_522, %c0_523] : memref<1x8x128xf32, #tpu.memory_space<vmem>>, vector<1x8x128xf32>
    %1017 = vector.shape_cast %1015 : vector<8x128xf32> to vector<1x8x128xf32>
    %1018 = arith.addf %1016, %1017 : vector<1x8x128xf32>
    %c0_524 = arith.constant 0 : index
    %c0_525 = arith.constant 0 : index
    %c0_526 = arith.constant 0 : index
    %1019 = vector.load %arg12[%c0_524, %c0_525, %c0_526] : memref<1x8x128xf32, #tpu.memory_space<vmem>>, vector<1x8x128xf32>
    tpu.vector_store %arg12[%c0_524, %c0_525, %c0_526], %1018 {strides = array<i32>} : memref<1x8x128xf32, #tpu.memory_space<vmem>>, vector<1x8x128xf32>,
    return
  }
  func.func @transform_0(%arg0: i32, %arg1: i32) -> (i32, i32) {
    %c0_i32 = arith.constant 0 : i32
    %c0_i32_0 = arith.constant 0 : i32
    %c0_i32_1 = arith.constant 0 : i32
    return %c0_i32, %c0_i32_0 : i32, i32
  }
  func.func @transform_1(%arg0: i32, %arg1: i32) -> (i32, i32) {
    %c0_i32 = arith.constant 0 : i32
    %c0_i32_0 = arith.constant 0 : i32
    %c0_i32_1 = arith.constant 0 : i32
    return %c0_i32, %c0_i32_0 : i32, i32
  }
  func.func @transform_2(%arg0: i32, %arg1: i32) -> (i32, i32) {
    %c0_i32 = arith.constant 0 : i32
    %c0_i32_0 = arith.constant 0 : i32
    %c0_i32_1 = arith.constant 0 : i32
    return %c0_i32, %c0_i32_0 : i32, i32
  }
  func.func @transform_3(%arg0: i32, %arg1: i32) -> (i32, i32) {
    %c0_i32 = arith.constant 0 : i32
    %c0_i32_0 = arith.constant 0 : i32
    %c0_i32_1 = arith.constant 0 : i32
    return %c0_i32, %c0_i32_0 : i32, i32
  }
  func.func @transform_4(%arg0: i32, %arg1: i32) -> (i32, i32, i32) {
    %c1_i32 = arith.constant 1 : i32
    %0 = arith.muli %arg0, %c1_i32 : i32
    %1 = arith.addi %0, %arg1 : i32
    %c0_i32 = arith.constant 0 : i32
    %c0_i32_0 = arith.constant 0 : i32
    %c0_i32_1 = arith.constant 0 : i32
    return %1, %c0_i32, %c0_i32_0 : i32, i32, i32
  }
  func.func @transform_5(%arg0: i32, %arg1: i32) -> (i32, i32, i32) {
    %c1_i32 = arith.constant 1 : i32
    %0 = arith.muli %arg0, %c1_i32 : i32
    %1 = arith.addi %0, %arg1 : i32
    %c0_i32 = arith.constant 0 : i32
    %c0_i32_0 = arith.constant 0 : i32
    %c0_i32_1 = arith.constant 0 : i32
    return %1, %c0_i32, %c0_i32_0 : i32, i32, i32
  }
  func.func @transform_6(%arg0: i32, %arg1: i32) -> (i32, i32, i32) {
    %c1_i32 = arith.constant 1 : i32
    %0 = arith.muli %arg0, %c1_i32 : i32
    %1 = arith.addi %0, %arg1 : i32
    %c0_i32 = arith.constant 0 : i32
    %c0_i32_0 = arith.constant 0 : i32
    %c0_i32_1 = arith.constant 0 : i32
    return %1, %c0_i32, %c0_i32_0 : i32, i32, i32
  }
  func.func @transform_7(%arg0: i32, %arg1: i32) -> (i32, i32, i32) {
    %c1_i32 = arith.constant 1 : i32
    %0 = arith.muli %arg0, %c1_i32 : i32
    %1 = arith.addi %0, %arg1 : i32
    %c0_i32 = arith.constant 0 : i32
    %c0_i32_0 = arith.constant 0 : i32
    %c0_i32_1 = arith.constant 0 : i32
    return %1, %c0_i32, %c0_i32_0 : i32, i32, i32
  }
  func.func @transform_8(%arg0: i32, %arg1: i32) -> (i32, i32, i32) {
    %c1_i32 = arith.constant 1 : i32
    %0 = arith.muli %arg0, %c1_i32 : i32
    %1 = arith.addi %0, %arg1 : i32
    %c0_i32 = arith.constant 0 : i32
    %c0_i32_0 = arith.constant 0 : i32
    %c0_i32_1 = arith.constant 0 : i32
    return %1, %c0_i32, %c0_i32_0 : i32, i32, i32
  }
  func.func @transform_9(%arg0: i32, %arg1: i32) -> (i32, i32, i32) {
    %c1_i32 = arith.constant 1 : i32
    %0 = arith.muli %arg0, %c1_i32 : i32
    %1 = arith.addi %0, %arg1 : i32
    %c0_i32 = arith.constant 0 : i32
    %c0_i32_0 = arith.constant 0 : i32
    %c0_i32_1 = arith.constant 0 : i32
    return %1, %c0_i32, %c0_i32_0 : i32, i32, i32
  }
  func.func @transform_10(%arg0: i32, %arg1: i32) -> (i32, i32, i32) {
    %c0_i32 = arith.constant 0 : i32
    %c0_i32_0 = arith.constant 0 : i32
    %c0_i32_1 = arith.constant 0 : i32
    return %arg0, %c0_i32, %c0_i32_0 : i32, i32, i32
  }
}

</mosaic_0001>

<bundles_post_ra>
// kernel: tpu_custom_call.1
= control target key start
LH: loop header
LB: loop body
LE: loop exit
PB: predicated region body
PF: predicated region fallthrough
CT: control target
= control target key end

     0   :  { %s15190_s0 = inlined_call_operand.hbm [shape: f32[8,16], index: 0, kind: input, shape index: {}]   ;;  %s15191_s1 = inlined_call_operand.vmem [shape: f32[20,8], index: 1, kind: input, shape index: {}]   ;;  %s15192_s2 = inlined_call_operand.vmem [shape: f32[20,8], index: 2, kind: input, shape index: {}]   ;;  %s15193_s3 = inlined_call_operand.vmem [shape: f32[20,8], index: 3, kind: input, shape index: {}]   ;;  %s15194_s4 = inlined_call_operand.hbm [shape: bf16[32,16,128], index: 4, kind: input, shape index: {}]   ;;  %s15195_s5 = inlined_call_operand.hbm [shape: bf16[32,16,128], index: 5, kind: input, shape index: {}]   ;;  %s15196_s6 = inlined_call_operand.hbm [shape: bf16[32,8,128], index: 6, kind: input, shape index: {}]   ;;  %s15197_s7 = inlined_call_operand.vmem [shape: f32[32,1,128], index: 7, kind: input, shape index: {}]   ;;  %s15198_s8 = inlined_call_operand.vmem [shape: f32[32,1,128], index: 8, kind: input, shape index: {}]   ;;  %s15199_s9 = inlined_call_operand.vmem [shape: f32[32,1,128], index: 9, kind: input, shape index: {}]   ;;  %s15200_s10 = inlined_call_operand.hbm [shape: f32[2,8,128], index: 10, kind: output, shape index: {}]  }
   0x1   :  { %15227 = sst [smem:[#allocation23_spill]] %s15193_s3 }
   0x2   :  { %15228 = sst [smem:[#allocation24_spill]] %s15194_s4 }
   0x3   :  { %15229 = sst [smem:[#allocation25_spill]] %s15195_s5 }
   0x4   :  { %15230 = sst [smem:[#allocation26_spill]] %s15199_s9 }
   0x5   :  { %15231 = sst [smem:[#allocation27_spill]] %s15200_s10 }
   0x6   :  { %15 = vsyncpa [#allocation3], 0 }
   0x7   :  { %16 = vsyncpa [#allocation6], 0 }
   0x8   :  { %18 = vsyncpa [#allocation6 + $0x1], 0 }
   0x9   :  { %19 = vsyncpa [#allocation9], 0 }
   0xa   :  { %21 = vsyncpa [#allocation9 + $0x1], 0 }
   0xb   :  { %22 = vsyncpa [#allocation4], 0 }
   0xc   :  { %24 = vsyncpa [#allocation4 + $0x1], 0  ;;  %s12905_s13 = smov 0   ;;  %s12907_s14 = smov 0  }
   0xd   :  { %s12909_s15 = smov 0   ;;  %s12911_s16 = smov 0  }
   0xe   :  { %s12913_s17 = smov 0   ;;  %s12915_s18 = smov 0  }
   0xf LB: > { %15232 = sst [smem:[#allocation15_spill]] %s12818_s13  ;;  %s42_s19 = sadd.s32 1, %s12834_s17  ;;  %s12838_s18 = sphi %s12915_s18, %s30_s18   ;;  %s12834_s17 = sphi %s12913_s17, %s15276_s17   ;;  %s12830_s16 = sphi %s12911_s16, %s15275_s16   ;;  %s12826_s15 = sphi %s12909_s15, %s15274_s15   ;;  %s12822_s14 = sphi %s12907_s14, %s15278_s14   ;;  %s12818_s13 = sphi %s12905_s13, %s15277_s13  }
  0x10   : > { %15233 = sst [smem:[#allocation16_spill]] %s12826_s15  ;;  %s135_s20 = sadd.s32 1, %s12826_s15 }
  0x11   : > { %15234 = sst [smem:[#allocation17_spill]] %s12834_s17  ;;  %p44_p0 = scmp.ge.s32.totalorder %s42_s19, 2 }
  0x12   : > { %15235 = sst [smem:[#allocation18_spill]] %s12838_s18  ;;  %p15204_p1 = scmp.ne.s32.totalorder %s12826_s15, %s12822_s14 }
  0x13   : > { %p143_p2 = scmp.eq.s32.totalorder %s12838_s18, 0  ;;  %s15280_s19 = smov (%p44_p0, %s42_s19), 0 }
  0x14   : > { %15236 = sst [smem:[#allocation19_spill]] %s15280_s19  ;;  %p12346_p5 = scmp.lt.s32.totalorder %s12838_s18, 2 }
  0x15   : > { %p144_p4 = por %p143_p2, %p15204_p1  ;;  %s132_s21 = ssub.s32 %s12834_s17, %s15280_s19 }
  0x16   : > { %s358_s22 = sand.u32 1, %s12838_s18   ;;  %p133_p6 = scmp.eq.s32.totalorder %s132_s21, 0 }
  0x17   : > { %s12951_s23 = sand.u32 1, %s12826_s15   ;;  %s15201_s24 = sshll.u32 %s12834_s17, 11 }
  0x18   : > { %s12955_s25 = scalar_select %p133_p6, %s12826_s15, %s135_s20  }
  0x19   : > { %s15202_s26 = sshll.u32 %s12951_s23, 7  ;;  %s15238_s4 = sld [smem:[#allocation24_spill]] }
  0x1a   : > { %15237 = sst [smem:[#allocation20_spill]] %s12955_s25  ;;  %p12965_p7 = pnand %p12346_p5, %p144_p4 }
  0x1b   : > { %s362_s11 = scalar_lea.vmem [#allocation5], %s15202_s26  ;;  %s12973_s20 = scalar_lea.sflag [#allocation6], %s358_s22 }
  0x1c   : > { %s15239_s30 = scalar_select %p12965_p7, 1, 0 }
  0x1d   : > { %s371_s12 = sshll.u32 %s362_s11, 4  ;;  %p12979_p9 = pneg %p12965_p7  ;;  %s12971_s12 = int_to_ptr.vmem [resolvable:$true] %s371_s12 }
  0x1f   : > { %s12963_s29 = scalar_lea.hbm %s15238_s4, %s15201_s24  ;;  %s12635_s26 = scalar_lea.hbm %s15238_s4, 4096 }
  0x20   : > { %s12630_s21 = scalar_lea.hbm %s12963_s29, 2048  ;;  %p12636_p12 = scmp.lt.u32.totalorder %s12963_s29, %s15238_s4 }
  0x21   : > { %p12631_p8 = scmp.ne.s32.totalorder %s12963_s29, %s12630_s21  ;;  %p12637_p13 = scmp.lt.u32.totalorder %s12635_s26, %s12630_s21 }
  0x22   : > { %s15240_s27 = scalar_select %p12979_p9, 1, 0 }
  0x23   : > { %p12633_p10 = pnand %p12979_p9, %p12631_p8  ;;  %p12638_p0 = por %p12637_p13, %p12636_p12 }
  0x24   : > { %p12639_p2 = scmp.lt.u32.totalorder %s12630_s21, %s12963_s29 }
  0x25   : > { %p12634_p11 = pneg %p12633_p10 }
  0x26   : > { %p12640_p4 = por %p12639_p2, %p12638_p0 }
  0x28   : > { %p12641_p5 = pnand %p12640_p4, %p12634_p11 }
  0x2a   : > { %12644 = shalt.err (!%p12641_p5)
}
  0x2b   : > { %s12645_s22 = scalar_lea.vmem %s12971_s12, 2048  ;;  %s12840_s24 = smov [#allocation5]  }
  0x2c   : > { %p12646_p6 = scmp.ne.s32.totalorder %s12971_s12, %s12645_s22  ;;  %s12650_s28 = sshll.u32 %s12840_s24, 4  ;;  %s12651_s28 = int_to_ptr.vmem [resolvable:$false] %s12650_s28 }
  0x2d   : > { %s12652_s19 = scalar_lea.vmem %s12651_s28, 4096  ;;  %p12653_p3 = scmp.lt.s32.totalorder %s12971_s12, %s12651_s28 }
  0x2e   : > { %p12648_p8 = pnand %p12646_p6, %p12979_p9  ;;  %p12654_p1 = scmp.lt.s32.totalorder %s12652_s19, %s12645_s22 }
  0x30   : > { %p12649_p10 = pneg %p12648_p8  ;;  %p12655_p12 = por %p12654_p1, %p12653_p3 }
  0x32   : > { %p12656_p13 = pnand %p12655_p12, %p12649_p10 }
  0x34   : > { %12659 = shalt.err (!%p12656_p13)
}
  0x35   : > { %s15206_s26 = smov 64   ;;  %s15208_s21 = smov 4  }
  0x36   : > { %12334 = dma.hbm_to_vmem [thread:$0]  (!%p12965_p7), %s12963_s29, 2048, %s12971_s12, %s12973_s20, %s15206_s26, %s15206_s26, %s15208_s21  }
  0x37   : > { %s15241_s11 = sshll.u32 %s12834_s17, 11  ;;  %s15242_s5 = sld [smem:[#allocation25_spill]] }
  0x38   : > { %s15243_s19 = sshll.u32 %s12951_s23, 7  ;;  %s13018_s10 = sadd.s32 4294967295, %s12838_s18  }
  0x39   : > { %s385_s4 = scalar_lea.vmem [#allocation7], %s15243_s19  ;;  %s10212_s9 = sadd.s32 4294967294, %s12838_s18  }
  0x3a   : > { %s394_s25 = sshll.u32 %s385_s4, 4  ;;  %p148_p1 = scmp.ne.s32.totalorder %s12822_s14, %s12818_s13  ;;  %s13015_s25 = int_to_ptr.vmem [resolvable:$true] %s394_s25 }
  0x3b   : > { %p15214_p3 = scmp.eq.s32.totalorder %s13018_s10, 0  ;;  %p312_p11 = scmp.eq.s32.totalorder %s13018_s10, 1 }
  0x3c   : > { %p318_p0 = scmp.eq.s32.totalorder %s10212_s9, 1  ;;  %p10213_p2 = scmp.ge.s32.totalorder %s12838_s18, 1 }
  0x3d   : > { %s13011_s28 = scalar_lea.hbm %s15242_s5, %s15241_s11  ;;  %p13028_p4 = por %p15214_p3, %p148_p1 }
  0x3e   : > { %p15245_p5 = scmp.ne.s32.totalorder %s12826_s15, %s12822_s14  ;;  %p13039_p8 = por %p318_p0, %p148_p1 }
  0x3f   : > { %s15244_s4 = scalar_select %p13028_p4, 1, 0 }
  0x40   : > { %p13035_p6 = por %p312_p11, %p15245_p5  ;;  %p325_p10 = scmp.lt.s32.totalorder %s12838_s18, 3 }
  0x41   : > { %s15248_s12 = scalar_select %p13039_p8, 1, 0 }
  0x42   : > { %s15246_s29 = scalar_select %p13035_p6, 1, 0 }
  0x43   : > { %15249 = sst [smem:[#allocation22_spill]] %s15248_s12  ;;  %p13044_p12 = pnand %p10213_p2, %p325_p10 }
  0x44   : > { %15247 = sst [smem:[#allocation21_spill]] %s15246_s29  ;;  %s12843_s11 = smov [#allocation2]  }
  0x45   : > { %s15250_s9 = scalar_select %p13044_p12, 1, 0 }
  0x46   : > { %s338_s22 = sshll.u32 %s12843_s11, 4  ;;  %s10224_s24 = sshll.u32 %s12951_s23, 6  ;;  %s13048_s22 = int_to_ptr.vmem [resolvable:$true] %s338_s22 }
  0x47   : > { %s12660_s19 = scalar_lea.hbm %s13011_s28, 2048  ;;  %s12665_s15 = scalar_lea.hbm %s15242_s5, 4096 }
  0x48   : > { %p12661_p11 = scmp.ne.s32.totalorder %s13011_s28, %s12660_s19  ;;  %p12666_p2 = scmp.lt.u32.totalorder %s13011_s28, %s15242_s5 }
  0x49   : > { %p12667_p5 = scmp.lt.u32.totalorder %s12665_s15, %s12660_s19  ;;  %p12669_p3 = scmp.lt.u32.totalorder %s12660_s19, %s13011_s28 }
  0x4a   : > { %p12663_p1 = pnand %p12661_p11, %p12979_p9 }
  0x4b   : > { %p12668_p10 = por %p12667_p5, %p12666_p2 }
  0x4c   : > { %p12664_p0 = pneg %p12663_p1 }
  0x4d   : > { %p12670_p8 = por %p12669_p3, %p12668_p10 }
  0x4f   : > { %p12671_p6 = pnand %p12670_p8, %p12664_p0 }
  0x51   : > { %12674 = shalt.err (!%p12671_p6)
}
  0x52   : > { %s12675_s11 = scalar_lea.vmem %s13015_s25, 2048  ;;  %s12844_s26 = smov [#allocation7]  }
  0x53   : > { %p12676_p11 = scmp.ne.s32.totalorder %s13015_s25, %s12675_s11  ;;  %s12680_s21 = sshll.u32 %s12844_s26, 4  ;;  %s12681_s21 = int_to_ptr.vmem [resolvable:$false] %s12680_s21 }
  0x54   : > { %s12682_s18 = scalar_lea.vmem %s12681_s21, 4096  ;;  %p12683_p4 = scmp.lt.s32.totalorder %s13015_s25, %s12681_s21 }
  0x55   : > { %p12678_p1 = pnand %p12676_p11, %p12979_p9  ;;  %p12684_p12 = scmp.lt.s32.totalorder %s12682_s18, %s12675_s11 }
  0x57   : > { %p12679_p13 = pneg %p12678_p1  ;;  %p12685_p2 = por %p12684_p12, %p12683_p4 }
  0x59   : > { %p12686_p5 = pnand %p12685_p2, %p12679_p13 }
  0x5b   : > { %12689 = shalt.err (!%p12686_p5)
}
  0x5c   : > { %s15251_s15 = smov 4   ;;  %s15252_s12 = smov 64  }
  0x5d   : > { %12337 = dma.hbm_to_vmem [thread:$0]  (!%p12965_p7), %s13011_s28, 2048, %s13015_s25, %s12973_s20, %s15252_s12, %s15252_s12, %s15251_s15  }
  0x5e   : > { %p15253_p3 = scmp.eq.s32.totalorder %s13018_s10, 0  ;;  %p15254_p6 = scmp.ne.s32.totalorder %s15250_s9, 0 }
  0x5f   : > { %s10620_s11 = sshll.u32 %s12834_s17, 10  ;;  %s408_s26 = scalar_lea.vmem [#allocation8], %s10224_s24 }
  0x60   : > { %p15255_p8 = pneg %p15254_p6  ;;  %s416_s21 = sshll.u32 %s408_s26, 4  ;;  %s13116_s21 = int_to_ptr.vmem [resolvable:$true] %s416_s21 }
  0x61   : > { %s13093_s13 = scalar_lea.hbm %s15196_s6, %s10620_s11  ;;  %s12690_s25 = scalar_lea.hbm %s15190_s0, 128 }
  0x62   : > { %p13083_p0 = pnand %p15255_p8, %p15253_p3  ;;  %p12691_p4 = scmp.ne.s32.totalorder %s15190_s0, %s12690_s25 }
  0x63   : > { %p12697_p11 = scmp.lt.u32.totalorder %s12690_s25, %s15190_s0 }
  0x64   : > { %p12692_p12 = pneg %p13083_p0 }
  0x66   : > { %p12693_p13 = pnand %p12692_p12, %p12691_p4 }
  0x68   : > { %p12694_p10 = pneg %p12693_p13 }
  0x6a   : > { %p12699_p1 = pnand %p12697_p11, %p12694_p10 }
  0x6c   : > { %12702 = shalt.err (!%p12699_p1)
}
  0x6d   : > { %s12703_s5 = scalar_lea.vmem %s13048_s22, 128  ;;  %p12711_p8 = scmp.lt.s32.totalorder %s13048_s22, %s13048_s22 }
  0x6e   : > { %p12704_p2 = scmp.ne.s32.totalorder %s13048_s22, %s12703_s5  ;;  %p12712_p6 = scmp.lt.s32.totalorder %s12703_s5, %s12703_s5 }
  0x70   : > { %p12706_p5 = pnand %p12704_p2, %p12692_p12  ;;  %p12713_p7 = por %p12712_p6, %p12711_p8 }
  0x72   : > { %p12707_p3 = pneg %p12706_p5 }
  0x74   : > { %p12714_p9 = pnand %p12713_p7, %p12707_p3 }
  0x76   : > { %12717 = shalt.err (!%p12714_p9)
}
  0x77   : > { %12330 = dma.hbm_to_vmem [thread:$0]  (!%p13083_p0), %s15190_s0, 128, %s13048_s22, [#allocation3]  }
  0x78   : > { %s405_s29 = scalar_lea.sflag [#allocation9], %s12951_s23  ;;  %s12718_s11 = scalar_lea.hbm %s13093_s13, 1024 }
  0x79   : > { %p12719_p6 = scmp.ne.s32.totalorder %s13093_s13, %s12718_s11  ;;  %p15257_p7 = scmp.ne.s32.totalorder %s15240_s27, 0 }
  0x7a   : > { %s12723_s18 = scalar_lea.hbm %s15196_s6, 2048  ;;  %p12724_p12 = scmp.lt.u32.totalorder %s13093_s13, %s15196_s6 }
  0x7b   : > { %p12721_p9 = pnand %p12719_p6, %p15257_p7  ;;  %p12725_p13 = scmp.lt.u32.totalorder %s12723_s18, %s12718_s11 }
  0x7c   : > { %p12727_p11 = scmp.lt.u32.totalorder %s12718_s11, %s13093_s13 }
  0x7d   : > { %p12722_p4 = pneg %p12721_p9  ;;  %p12726_p10 = por %p12725_p13, %p12724_p12 }
  0x7f   : > { %p12728_p0 = por %p12727_p11, %p12726_p10 }
  0x81   : > { %p12729_p1 = pnand %p12728_p0, %p12722_p4 }
  0x83   : > { %12732 = shalt.err (!%p12729_p1)
}
  0x84   : > { %s12733_s22 = scalar_lea.vmem %s13116_s21, 1024  ;;  %s12845_s28 = smov [#allocation8]  }
  0x85   : > { %p12734_p2 = scmp.ne.s32.totalorder %s13116_s21, %s12733_s22  ;;  %s12738_s24 = sshll.u32 %s12845_s28, 4  ;;  %s12739_s24 = int_to_ptr.vmem [resolvable:$false] %s12738_s24 }
  0x86   : > { %s12740_s5 = scalar_lea.vmem %s12739_s24, 2048  ;;  %p12741_p8 = scmp.lt.s32.totalorder %s13116_s21, %s12739_s24 }
  0x87   : > { %p12736_p5 = pnand %p12734_p2, %p15257_p7  ;;  %p12742_p6 = scmp.lt.s32.totalorder %s12740_s5, %s12733_s22 }
  0x89   : > { %p12737_p3 = pneg %p12736_p5  ;;  %p12743_p9 = por %p12742_p6, %p12741_p8 }
  0x8b   : > { %p12744_p12 = pnand %p12743_p9, %p12737_p3 }
  0x8d   : > { %12747 = shalt.err (!%p12744_p12)
}
  0x8e   : > { %p15258_p4 = scmp.ne.s32.totalorder %s15239_s30, 0  ;;  %p15259_p7 = scmp.ne.s32.totalorder %s15250_s9, 0 }
  0x8f   : > { %p15260_p13 = scmp.eq.s32.totalorder (!%p15259_p7), %s13018_s10, 0 }
  0x90   : > { %12340 = dma.hbm_to_vmem [thread:$0]  (!%p15258_p4), %s13093_s13, 1024, %s13116_s21, %s405_s29, %s15252_s12, %s15252_s12, %s15251_s15  }
  0x91   : > { %458 = sbr.rel (%p15259_p7) target bundleno = 15030 (0x3ab6), region = 60 }
  0x98   : > { %12801 = dma.done.wait (%p15260_p13), [#allocation3], 128   ;;  %p15261_p10 = pmov %p15260_p13 }
  0x99   : > { %s464_s30 = sand.u32 1, %s13018_s10   ;;  %s13153_s27 = sand.u32 1, %s12822_s14  }
  0x9a   : > { %12803 = vsyncadd (%p15261_p10), [#allocation3], 4294967168  ;;  %s10229_s23 = sshll.u32 %s13153_s27, 7  ;;  %s465_s3 = scalar_lea.sflag [#allocation6], %s464_s30 }
  0x9b   : > { %s13156_s17 = scalar_lea.vmem [#allocation5], %s10229_s23  ;;  %p15262_p11 = scmp.ne.s32.totalorder %s15244_s4, 0 }
  0x9d   : > { %12805 = dma.done.wait (%p15262_p11), %s465_s3, 4096  }
  0x9e   : > { %12807 = vsyncadd (%p15262_p11), %s465_s3, 4294963200  ;;  %s10231_s13 = sshll.u32 %s13153_s27, 6  ;;  %s13163_s9 = scalar_lea.vmem [#allocation7], %s10229_s23 }
  0x9f   : > { %s483_s15 = scalar_lea.sflag [#allocation9], %s13153_s27  ;;  %s13166_s10 = scalar_lea.vmem [#allocation8], %s10231_s13 }
  0xa0   : > { %12809 = dma.done.wait (%p15262_p11), %s483_s15, 1024  }
  0xa1   : > { %12811 = vsyncadd (%p15262_p11), %s483_s15, 4294966272  ;;  %v12846_v0 = vmov 0.0|0.0   ;;  %vm12847_vm0 = vmmov 0   ;;  %v12848_v1 = vmov 0.0   ;;  %v10622_v2 = vld [vmem:[%s13156_s17] sm:$0xff]   ;;  %v13179_v3 = vld [vmem:[#allocation2] sm:$0xff] }
  0xa2   : > { %12027 = vmatprep.subr.bf16.mxu0 %v12846_v0  ;;  %11135 = vmatprep.mubr.msk.f32.mxu0 %vm12847_vm0, %v12848_v1  ;;  %vm609_vm1 = vcmask 130048   ;;  %v10626_v4 = vld [vmem:[%s13163_s9] sm:$0xff]   ;;  %v13199_v7 = vld [vmem:[%s15191_s1] sm:$0xff]  ;;  %vm759_vm2 = vcmask 64512   ;;  %v13218_v9 = vld [vmem:[%s15191_s1 + $0x10] sm:$0xf] }
  0xa3   : > { %11156 = vmatprep.subr.mxu1 %v12848_v1  ;;  %11158 = vmatprep.mubr.msk.f32.mxu1 %vm12847_vm0, %v12848_v1  ;;  %v13184_v5 = vld [vmem:[%s13166_s10] sm:$0xff]   ;;  %s10233_s26 = sshll.u32 %s12830_s16, 4  ;;  %v13243_v14 = vld [vmem:[%s15192_s2] sm:$0xff]  ;;  %v10749_v16 = vld [vmem:[%s13156_s17 + $0x8] sm:$0xff]   ;;  %s15263_s4 = sld [smem:[#allocation23_spill]]  ;;  %vm1055_vm9 = vcmask 1043456  }
  0xa4   : > { %12029 = vmatpush3.bf16.msra.mxu0 %v10622_v2  ;;  %v599_v6 = vunpack.c.l.bf16 %v13184_v5  ;;  %v13209_v8 = vld [vmem:[%s15191_s1 + $0x8] sm:$0xff]  ;;  %p556_p0 = scmp.lt.s32.totalorder %s10233_s26, 31  ;;  %v13274_v22 = vld [vmem:[%s15192_s2 + $0x10] sm:$0xf]  ;;  %v1145_v26 = vunpack.c.h.bf16 %v13184_v5  ;;  %s15264_s28 = sld [smem:[#allocation26_spill]]  ;;  %vm1067_vm13 = vcmask 60416  }
  0xa5   : > { %12030 = vmatprep.subr.bf16.mxu0 %v12846_v0  ;;  %v13255_v19 = vld [vmem:[%s15192_s2 + $0x8] sm:$0xff]  ;;  %v10750_v25 = vld [vmem:[%s13163_s9 + $0x8] sm:$0xff]   ;;  %vm1677_vm14 = vcmask 162816   ;;  %s15266_s3 = sld [smem:[#allocation27_spill]]  ;;  %s10035_s15 = scalar_lea.sflag [#allocation4], %s13153_s27 }
  0xa6   : > { %s15282_s26 = smov (!%p556_p0, %s10233_s26), 31 }
  0xa7   : > { %11136 = vmatmul.mubr.msk.f32.vlgmr.msra.gmra.mrb[0].mxu0 %vm609_vm1, %v13179_v3  ;;  %s13231_s20 = scalar_lea.vmem %s15197_s7, %s15282_s26  ;;  %s13238_s24 = scalar_lea.vmem %s15198_s8, %s15282_s26 }
  0xa8   : > { %12032 = vmatpush3.bf16.msra.mxu0 %v10626_v4  ;;  %11142 = vmatprep.mubr.msk.f32.mxu0 %vm12847_vm0, %v12848_v1  ;;  %v10236_v10 = vld [vmem:[%s13231_s20] ss:$0 sm:$0xff]  ;;  %v10258_v39 = vld [vmem:[%s13231_s20 + $0x1] ss:$0 sm:$0xff] }
  0xa9   : > { %11145 = vmatprep.subr.mxu0 %v12848_v1  ;;  %v10238_v15 = vld [vmem:[%s13238_s24] ss:$0 sm:$0xff]  ;;  %v13279_v23 = vld [vmem:[%s15263_s4 + $0x8] sm:$0xff]  ;;  %v13293_v24 = vld [vmem:[%s15263_s4 + $0x10] sm:$0xf] }
  0xaa   : > { %v13260_v20 = vld [vmem:[%s15263_s4] sm:$0xff]  ;;  %s13373_s5 = scalar_lea.vmem %s15264_s28, %s15282_s26  ;;  %vm1060_vm10 = vcmp.gt.f32.partialorder %v13279_v23, 0.0  ;;  %vm1061_vm12 = vcmp.gt.f32.partialorder %v13293_v24, 0.0 }
  0xab   : > { %11143 = vmatmul.mubr.msk.f32.vlgmr.msra.gmra.mrb[2].mxu0 %vm609_vm1, %v13179_v3  ;;  %v10260_v46 = vld [vmem:[%s13238_s24 + $0x1] ss:$0 sm:$0xff]  ;;  %vm1059_vm11 = vcmp.gt.f32.partialorder %v13260_v20, 0.0 }
  0xac   : > { %11146 = vmatpush3.msra.mxu0 %v599_v6  ;;  %11147 = vmatprep.mubr.msk.f32.mxu0 %vm12847_vm0, %v12848_v1  ;;  %v10271_v58 = vld [vmem:[%s13373_s5 + $0x1] ss:$0 sm:$0xff] }
  0xad   : > { %11167 = vmatprep.subr.mxu0 %v12848_v1 }
  0xaf   : > { %11148 = vmatmul.mubr.msk.f32.vlgmr.msra.gmra.mrb[4].mxu0 %vm759_vm2, %v13199_v7 }
  0xb0   : > { %11150 = vmatprep.mubr.msk.f32.mxu0 %vm12847_vm0, %v12848_v1 }
  0xb3   : > { %11151 = vmatmul.mubr.msk.f32.gmra.mrb[6].mxu0 %vm759_vm2, %v13209_v8 }
  0xb4   : > { %11153 = vmatprep.mubr.msk.f32.mxu0 %vm12847_vm0, %v12848_v1 }
  0xb7   : > { %11154 = vmatmul.mubr.msk.f32.gmra.mrb[8].mxu0 %vm759_vm2, %v13218_v9 }
  0xb8   : > { %11169 = vmatprep.mubr.msk.f32.mxu0 %vm12847_vm0, %v12848_v1 }
 0x17a   : > { %v679_v11 = vpop.f32.mrb[0].mxu0 }
 0x17b   : > { %v680_v12 = vadd.f32 %v10236_v10, %v679_v11  ;;  %v11137_v13 = vpop.f32.mrb[1].mxu0 }
 0x17d   : > { %11157 = vmatpush3.msra.mxu1 %v680_v12 }
 0x17e   : > { %v755_v17 = vpop.f32.mrb[2].mxu0  ;;  %11159 = vmatmul.mubr.msk.f32.vlgmr.msra.gmra.mrb[0].mxu1 %vm759_vm2, %v13243_v14  ;;  %12033 = vmatprep.subr.bf16.mxu1 %v12846_v0 }
 0x17f   : > { %v756_v18 = vadd.f32 %v10238_v15, %v755_v17  ;;  %11161 = vmatprep.mubr.msk.f32.mxu1 %vm12847_vm0, %v12848_v1  ;;  %12035 = vmatpush3.bf16.msra.mxu1 %v10749_v16  ;;  %v11144_v21 = vpop.f32.mrb[3].mxu0 }
 0x180   : > { %12036 = vmatprep.subr.bf16.mxu1 %v12846_v0 }
 0x181   : > { %11168 = vmatpush3.msra.mxu0 %v756_v18 }
 0x182   : > { %11162 = vmatmul.mubr.msk.f32.gmra.mrb[2].mxu1 %vm759_vm2, %v13255_v19  ;;  %11170 = vmatmul.mubr.msk.f32.vlgmr.msra.gmra.mrb[4].mxu0 %vm759_vm2, %v13260_v20 }
 0x183   : > { %11164 = vmatprep.mubr.msk.f32.mxu1 %vm12847_vm0, %v12848_v1  ;;  %11172 = vmatprep.mubr.msk.f32.mxu0 %vm12847_vm0, %v12848_v1 }
 0x184   : > { %11203 = vmatprep.subr.mxu0 %v12848_v1 }
 0x186   : > { %11165 = vmatmul.mubr.msk.f32.gmra.mrb[4].mxu1 %vm759_vm2, %v13274_v22  ;;  %11173 = vmatmul.mubr.msk.f32.gmra.mrb[6].mxu0 %vm759_vm2, %v13279_v23 }
 0x187   : > { %11175 = vmatprep.mubr.msk.f32.mxu0 %vm12847_vm0, %v12848_v1  ;;  %11182 = vmatprep.mubr.msk.f32.mxu1 %vm12847_vm0, %v12848_v1 }
 0x18a   : > { %11176 = vmatmul.mubr.msk.f32.gmra.mrb[8].mxu0 %vm759_vm2, %v13293_v24  ;;  %11183 = vmatmul.mubr.msk.f32.vlgmr.msra.gmra.mrb[6].mxu1 %vm609_vm1, %v13179_v3 }
 0x18b   : > { %12038 = vmatpush3.bf16.msra.mxu1 %v10750_v25  ;;  %11189 = vmatprep.mubr.msk.f32.mxu1 %vm12847_vm0, %v12848_v1  ;;  %v10249_v25 = vld [vmem:[%s13373_s5] ss:$0 sm:$0xff] }
 0x18c   : > { %11192 = vmatprep.subr.mxu1 %v12848_v1  ;;  %11205 = vmatprep.mubr.msk.f32.mxu0 %vm12847_vm0, %v12848_v1 }
 0x18e   : > { %11190 = vmatmul.mubr.msk.f32.vlgmr.msra.gmra.mrb[8].mxu1 %vm609_vm1, %v13179_v3 }
 0x18f   : > { %11194 = vmatprep.mubr.msk.f32.mxu1 %vm12847_vm0, %v12848_v1  ;;  %11193 = vmatpush3.msra.mxu1 %v1145_v26 }
 0x190   : > { %11214 = vmatprep.subr.mxu1 %v12848_v1 }
 0x192   : > { %11195 = vmatmul.mubr.msk.f32.vlgmr.msra.gmra.mrb[10].mxu1 %vm759_vm2, %v13199_v7 }
 0x193   : > { %11197 = vmatprep.mubr.msk.f32.mxu1 %vm12847_vm0, %v12848_v1 }
 0x196   : > { %11198 = vmatmul.mubr.msk.f32.gmra.mrb[12].mxu1 %vm759_vm2, %v13209_v8 }
 0x197   : > { %11200 = vmatprep.mubr.msk.f32.mxu1 %vm12847_vm0, %v12848_v1 }
 0x19a   : > { %11201 = vmatmul.mubr.msk.f32.gmra.mrb[14].mxu1 %vm759_vm2, %v13218_v9 }
 0x19b   : > { %11216 = vmatprep.mubr.msk.f32.mxu1 %vm12847_vm0, %v12848_v1 }
 0x251   : > { %v13323_v27 = vpop.f32.mrb[0].mxu1 }
 0x252   : > { %v11160_v28 = vpop.f32.mrb[1].mxu1 }
 0x255   : > { %v13325_v29 = vpop.f32.mrb[2].mxu1  ;;  %v1013_v30 = vpop.f32.mrb[4].mxu0 }
 0x256   : > { %v13328_v31 = vadd.f32 %v1013_v30, %v13323_v27  ;;  %v11163_v32 = vpop.f32.mrb[3].mxu1  ;;  %v11171_v33 = vpop.f32.mrb[5].mxu0 }
 0x258   : > { %v1036_v18 = vmul.f32 0.2, %v13328_v31  ;;  %vm1033_vm7 = vcmp.gt.f32.partialorder %v13328_v31, 0.0 }
 0x259   : > { %v13330_v34 = vpop.f32.mrb[4].mxu1  ;;  %v1018_v35 = vpop.f32.mrb[6].mxu0 }
 0x25a   : > { %v1028_v36 = vadd.f32 %v1018_v35, %v13325_v29  ;;  %v11166_v37 = vpop.f32.mrb[5].mxu1  ;;  %v11174_v38 = vpop.f32.mrb[7].mxu0  ;;  %v1039_v33 = vsel %vm1033_vm7, %v13328_v31, %v1036_v18 }
 0x25c   : > { %v1037_v5 = vmul.f32 0.2, %v1028_v36  ;;  %vm1034_vm5 = vcmp.gt.f32.partialorder %v1028_v36, 0.0 }
 0x25d   : > { %v1023_v40 = vpop.f32.mrb[8].mxu0  ;;  %v1224_v41 = vpop.f32.mrb[6].mxu1 }
 0x25e   : > { %v13335_v42 = vadd.f32 %v1023_v40, %v13330_v34  ;;  %v1225_v43 = vadd.f32 %v10258_v39, %v1224_v41  ;;  %v11184_v44 = vpop.f32.mrb[7].mxu1  ;;  %v11177_v45 = vpop.f32.mrb[9].mxu0  ;;  %v1040_v17 = vsel %vm1034_vm5, %v1028_v36, %v1037_v5  ;;  %v1048_v36 = vmul.f32 %v10249_v25, %v1039_v33 }
 0x25f   : > { %v1049_v28 = vmul.f32 %v10249_v25, %v1040_v17 }
 0x260   : > { %11204 = vmatpush3.msra.mxu0 %v1225_v43  ;;  %v1038_v21 = vmul.f32 0.2, %v13335_v42  ;;  %vm1035_vm8 = vcmp.gt.f32.partialorder %v13335_v42, 0.0 }
 0x261   : > { %v1300_v47 = vpop.f32.mrb[8].mxu1  ;;  %11206 = vmatmul.mubr.msk.f32.vlgmr.msra.gmra.mrb[10].mxu0 %vm759_vm2, %v13243_v14  ;;  %12039 = vmatprep.subr.bf16.mxu0 %v12846_v0 }
 0x262   : > { %v1301_v48 = vadd.f32 %v10260_v46, %v1300_v47  ;;  %v11191_v49 = vpop.f32.mrb[9].mxu1  ;;  %11208 = vmatprep.mubr.msk.f32.mxu0 %vm12847_vm0, %v12848_v1  ;;  %v1041_v35 = vsel %vm1035_vm8, %v13335_v42, %v1038_v21 }
 0x263   : > { %v1050_v37 = vmul.f32 %v10249_v25, %v1041_v35 }
 0x264   : > { %11215 = vmatpush3.msra.mxu1 %v1301_v48 }
 0x265   : > { %11217 = vmatmul.mubr.msk.f32.vlgmr.msra.gmra.mrb[10].mxu1 %vm759_vm2, %v13260_v20  ;;  %11209 = vmatmul.mubr.msk.f32.gmra.mrb[12].mxu0 %vm759_vm2, %v13255_v19  ;;  %v1056_v38 = vsel %vm1055_vm9, %v1050_v37, 0.0 }
 0x266   : > { %11219 = vmatprep.mubr.msk.f32.mxu1 %vm12847_vm0, %v12848_v1  ;;  %11211 = vmatprep.mubr.msk.f32.mxu0 %vm12847_vm0, %v12848_v1 }
 0x267   : > { %12045 = vmatprep.subr.bf16.mxu1 %v12846_v0 }
 0x269   : > { %11220 = vmatmul.mubr.msk.f32.gmra.mrb[12].mxu1 %vm759_vm2, %v13279_v23  ;;  %11212 = vmatmul.mubr.msk.f32.gmra.mrb[14].mxu0 %vm759_vm2, %v13274_v22 }
 0x26a   : > { %11222 = vmatprep.mubr.msk.f32.mxu1 %vm12847_vm0, %v12848_v1  ;;  %11231 = vmatprep.mubr.msk.f32.mxu0 %vm12847_vm0, %v12848_v1 }
 0x26d   : > { %11223 = vmatmul.mubr.msk.f32.gmra.mrb[14].mxu1 %vm759_vm2, %v13293_v24 }
 0x26e   : > { %11247 = vmatprep.mubr.msk.f32.mxu1 %vm12847_vm0, %v12848_v1 }
 0x334   : > { %v13364_v50 = vpop.f32.mrb[10].mxu0 }
 0x335   : > { %v11207_v51 = vpop.f32.mrb[11].mxu0 }
 0x338   : > { %v1530_v52 = vpop.f32.mrb[10].mxu1  ;;  %v13366_v53 = vpop.f32.mrb[12].mxu0 }
 0x339   : > { %v1544_v54 = vadd.f32 %v1530_v52, %v13364_v50  ;;  %v11218_v55 = vpop.f32.mrb[11].mxu1  ;;  %v11210_v56 = vpop.f32.mrb[13].mxu0 }
 0x33b   : > { %v1553_v57 = vmul.f32 0.2, %v1544_v54  ;;  %vm1550_vm3 = vcmp.gt.f32.partialorder %v1544_v54, 0.0 }
 0x33c   : > { %v1535_v59 = vpop.f32.mrb[12].mxu1  ;;  %v13376_v60 = vpop.f32.mrb[14].mxu0 }
 0x33d   : > { %v1545_v61 = vadd.f32 %v1535_v59, %v13366_v53  ;;  %v11221_v62 = vpop.f32.mrb[13].mxu1  ;;  %v1556_v63 = vsel %vm1550_vm3, %v1544_v54, %v1553_v57  ;;  %v11213_v2 = vpop.f32.mrb[15].mxu0 }
 0x33e   : > { %v1565_v4 = vmul.f32 %v10271_v58, %v1556_v63 }
 0x33f   : > { %v1554_v6 = vmul.f32 0.2, %v1545_v61  ;;  %vm1551_vm4 = vcmp.gt.f32.partialorder %v1545_v61, 0.0 }
 0x340   : > { %v1540_v10 = vpop.f32.mrb[14].mxu1  ;;  %1568 = vadd.xlane.f32.xlu0 %v1565_v4 }
 0x341   : > { %v1546_v11 = vadd.f32 %v1540_v10, %v13376_v60  ;;  %v11224_v12 = vpop.f32.mrb[15].mxu1  ;;  %v1557_v13 = vsel %vm1551_vm4, %v1545_v61, %v1554_v6 }
 0x342   : > { %v1566_v15 = vmul.f32 %v10271_v58, %v1557_v13 }
 0x343   : > { %v1555_v16 = vmul.f32 0.2, %v1546_v11  ;;  %vm1552_vm6 = vcmp.gt.f32.partialorder %v1546_v11, 0.0 }
 0x344   : > { %1570 = vadd.xlane.f32.xlu0 %v1566_v15 }
 0x345   : > { %v1558_v26 = vsel %vm1552_vm6, %v1546_v11, %v1555_v16 }
 0x346   : > { %v1567_v30 = vmul.f32 %v10271_v58, %v1558_v26 }
 0x348   : > { %1053 = vadd.xlane.f32.xlu0 %v1049_v28  ;;  %v1572_v32 = vsel %vm1055_vm9, %v1567_v30, 0.0 }
 0x349   : > { %1573 = vadd.xlane.f32.xlu1 %v1572_v32 }
 0x34d   : > { %1051 = vadd.xlane.f32.xlu1 %v1048_v36 }
 0x351   : > { %1057 = vadd.xlane.f32.xlu1 %v1056_v38 }
 0x3cd   : > { %v1569_v39 = vpop.xlane.xlu0 %1568 }
 0x3ce   : > { %v1575_v31 = vsel %vm1059_vm11, %v1569_v39, -1e+30 }
 0x3cf   : > { %v1578_v43 = vsel %vm759_vm2, %v1575_v31, -inf }
 0x3d1   : > { %v1571_v40 = vpop.xlane.xlu0 %1570 }
 0x3d2   : > { %v1576_v41 = vsel %vm1060_vm10, %v1571_v40, -1e+30 }
 0x3d3   : > { %v1579_v42 = vsel %vm759_vm2, %v1576_v41, -inf }
 0x3d4   : > { %v1581_v45 = vmax.f32 %v1578_v43, %v1579_v42 }
 0x3d5   : > { %v1054_v47 = vpop.xlane.xlu0 %1053 }
 0x3d6   : > { %v1574_v44 = vpop.xlane.xlu1 %1573  ;;  %v1063_v52 = vsel %vm1060_vm10, %v1054_v47, -1e+30 }
 0x3d7   : > { %v1577_v46 = vsel %vm1061_vm12, %v1574_v44, -1e+30  ;;  %v1066_v58 = vsel %vm759_vm2, %v1063_v52, -inf }
 0x3d8   : > { %v1580_v48 = vsel %vm1067_vm13, %v1577_v46, -inf }
 0x3d9   : > { %v1582_v49 = vmax.f32 %v1581_v45, %v1580_v48 }
 0x3da   : > { %v1052_v51 = vpop.xlane.xlu1 %1051 }
 0x3db   : > { %v1583_v54 = vrot.slane %v1582_v49, 4  ;;  %v1062_v55 = vsel %vm1059_vm11, %v1052_v51, -1e+30 }
 0x3dc   : > { %v1065_v56 = vsel %vm759_vm2, %v1062_v55, -inf }
 0x3dd   : > { %v1584_v57 = vmax.f32 %v1582_v49, %v1583_v54  ;;  %v1069_v62 = vmax.f32 %v1065_v56, %v1066_v58 }
 0x3de   : > { %v1058_v59 = vpop.xlane.xlu1 %1057 }
 0x3df   : > { %v1585_v61 = vrot.slane %v1584_v57, 2  ;;  %v1064_v63 = vsel %vm1061_vm12, %v1058_v59, -1e+30 }
 0x3e0   : > { %v1068_v2 = vsel %vm1067_vm13, %v1064_v63, -inf }
 0x3e1   : > { %v1070_v4 = vmax.f32 %v1069_v62, %v1068_v2  ;;  %v1586_v5 = vmax.f32 %v1584_v57, %v1585_v61 }
 0x3e3   : > { %v1071_v6 = vrot.slane %v1070_v4, 4  ;;  %v1587_v10 = vrot.slane %v1586_v5, 1 }
 0x3e5   : > { %v1072_v11 = vmax.f32 %v1070_v4, %v1071_v6  ;;  %v1588_v12 = vmax.f32 %v1586_v5, %v1587_v10 }
 0x3e7   : > { %v1073_v13 = vrot.slane %v1072_v11, 2  ;;  %v1590_v15 = vmul.f32 %v1588_v12, %v13279_v23  ;;  %v1589_v16 = vmul.f32 %v1588_v12, %v13260_v20  ;;  %v1591_v21 = vmul.f32 %v1588_v12, %v13293_v24 }
 0x3e9   : > { %v1595_v17 = vsel %vm759_vm2, %v1590_v15, 0.0  ;;  %v1592_v18 = vsel %vm759_vm2, %v1589_v16, 0.0  ;;  %v1074_v25 = vmax.f32 %v1072_v11, %v1073_v13  ;;  %v1598_v28 = vsel %vm1067_vm13, %v1591_v21, 0.0 }
 0x3ea   : > { %1596 = vadd.xlane.f32.xlu1 %v1595_v17  ;;  %1593 = vadd.xlane.f32.xlu0 %v1592_v18 }
 0x3eb   : > { %v1075_v26 = vrot.slane %v1074_v25, 1 }
 0x3ed   : > { %v1076_v30 = vmax.f32 %v1074_v25, %v1075_v26 }
 0x3ee   : > { %1599 = vadd.xlane.f32.xlu0 %v1598_v28 }
 0x3ef   : > { %v1078_v32 = vmul.f32 %v1076_v30, %v13279_v23  ;;  %v1077_v33 = vmul.f32 %v1076_v30, %v13260_v20  ;;  %v1079_v37 = vmul.f32 %v1076_v30, %v13293_v24 }
 0x3f1   : > { %v1083_v35 = vsel %vm759_vm2, %v1078_v32, 0.0  ;;  %v1080_v36 = vsel %vm759_vm2, %v1077_v33, 0.0  ;;  %v1086_v38 = vsel %vm1067_vm13, %v1079_v37, 0.0 }
 0x3f2   : > { %1084 = vadd.xlane.f32.xlu0 %v1083_v35  ;;  %1081 = vadd.xlane.f32.xlu1 %v1080_v36 }
 0x3f6   : > { %1087 = vadd.xlane.f32.xlu1 %v1086_v38 }
 0x477   : > { %v1594_v41 = vpop.xlane.xlu0 %1593  ;;  %v1597_v31 = vpop.xlane.xlu1 %1596 }
 0x478   : > { %v1601_v42 = vsub.f32 %v1569_v39, %v1594_v41  ;;  %v1602_v43 = vsub.f32 %v1571_v40, %v1597_v31 }
 0x47a   : > { %v1604_v45 = vmul.f32 1.442695, %v1601_v42  ;;  %v1606_v46 = vmul.f32 1.442695, %v1602_v43 }
 0x47b   : > { %v1600_v48 = vpop.xlane.xlu0 %1599 }
 0x47c   : > { %12403 = vpow2.f32 %v1604_v45  ;;  %v1603_v49 = vsub.f32 %v1574_v44, %v1600_v48 }
 0x47d   : > { %12405 = vpow2.f32 %v1606_v46 }
 0x47e   : > { %v1608_v52 = vmul.f32 1.442695, %v1603_v49 }
 0x47f   : > { %v1085_v54 = vpop.xlane.xlu0 %1084  ;;  %v1082_v55 = vpop.xlane.xlu1 %1081 }
 0x480   : > { %12407 = vpow2.f32 %v1608_v52  ;;  %v1090_v56 = vsub.f32 %v1054_v47, %v1085_v54  ;;  %v1089_v57 = vsub.f32 %v1052_v51, %v1082_v55 }
 0x482   : > { %v1094_v58 = vmul.f32 1.442695, %v1090_v56  ;;  %v1092_v61 = vmul.f32 1.442695, %v1089_v57 }
 0x483   : > { %v1088_v62 = vpop.xlane.xlu1 %1087 }
 0x484   : > { %12409 = vpow2.f32 %v1094_v58  ;;  %v1091_v63 = vsub.f32 %v1058_v59, %v1088_v62 }
 0x485   : > { %12411 = vpow2.f32 %v1092_v61 }
 0x486   : > { %v13422_v39 = vpop.eup %12403  ;;  %v1096_v40 = vmul.f32 1.442695, %v1091_v63 }
 0x487   : > { %v13424_v2 = vpop.eup %12405  ;;  %v1610_v44 = vmul.f32 %v13422_v39, %v13260_v20 }
 0x488   : > { %v1611_v4 = vmul.f32 %v13424_v2, %v13279_v23  ;;  %12413 = vpow2.f32 %v1096_v40 }
 0x489   : > { %v1613_v47 = vsel %vm759_vm2, %v1610_v44, 0.0  ;;  %v10751_v44 = vld [vmem:[%s13156_s17 + $0x10] sm:$0xff]  }
 0x48a   : > { %v13431_v51 = vpop.eup %12407  ;;  %v1614_v5 = vsel %vm759_vm2, %v1611_v4, 0.0  ;;  %12047 = vmatpush3.bf16.msra.mxu1 %v10751_v44  ;;  %v10297_v44 = vld [vmem:[%s13373_s5 + $0x2] ss:$0 sm:$0xff] }
 0x48b   : > { %v1612_v59 = vmul.f32 %v13431_v51, %v13293_v24  ;;  %v1615_v6 = vadd.f32 %v1614_v5, %v1613_v47  ;;  %11257 = vmatprep.subr.mxu1 %v12848_v1 }
 0x48d   : > { %v1616_v10 = vsel %vm1067_vm13, %v1612_v59, 0.0  ;;  %11248 = vmatmul.mubr.msk.f32.vlgmr.msra.gmra.mrb[16].mxu1 %vm609_vm1, %v13179_v3 }
 0x48e   : > { %v13437_v11 = vpop.eup %12409  ;;  %v1617_v12 = vadd.f32 %v1616_v10, %v1615_v6  ;;  %11259 = vmatprep.mubr.msk.f32.mxu1 %vm12847_vm0, %v12848_v1 }
 0x48f   : > { %v13439_v13 = vpop.eup %12411  ;;  %v1099_v15 = vmul.f32 %v13437_v11, %v13279_v23 }
 0x490   : > { %v1098_v16 = vmul.f32 %v13439_v13, %v13260_v20  ;;  %v1618_v17 = vrot.slane %v1617_v12, 4 }
 0x491   : > { %v1102_v18 = vsel %vm759_vm2, %v1099_v15, 0.0 }
 0x492   : > { %v13446_v21 = vpop.eup %12413  ;;  %v1101_v25 = vsel %vm759_vm2, %v1098_v16, 0.0  ;;  %v1619_v26 = vadd.f32 %v1618_v17, %v1617_v12 }
 0x493   : > { %v1100_v28 = vmul.f32 %v13446_v21, %v13293_v24  ;;  %v1103_v32 = vadd.f32 %v1102_v18, %v1101_v25 }
 0x494   : > { %v1620_v30 = vrot.slane %v1619_v26, 2 }
 0x495   : > { %v1104_v33 = vsel %vm1067_vm13, %v1100_v28, 0.0 }
 0x496   : > { %v1621_v35 = vadd.f32 %v1620_v30, %v1619_v26  ;;  %v1105_v36 = vadd.f32 %v1104_v33, %v1103_v32 }
 0x498   : > { %v1622_v37 = vrot.slane %v1621_v35, 1  ;;  %v1106_v38 = vrot.slane %v1105_v36, 4 }
 0x49a   : > { %v1623_v41 = vadd.f32 %v1622_v37, %v1621_v35  ;;  %v1107_v31 = vadd.f32 %v1106_v38, %v1105_v36 }
 0x49c   : > { %v1625_v42 = vmul.f32 %v1623_v41, %v13279_v23  ;;  %v1624_v43 = vmul.f32 %v1623_v41, %v13260_v20  ;;  %v1108_v45 = vrot.slane %v1107_v31, 2  ;;  %v1626_v62 = vmul.f32 %v1623_v41, %v13293_v24 }
 0x49e   : > { %v1630_v46 = vsel %vm759_vm2, %v1625_v42, 0.0  ;;  %v1627_v48 = vsel %vm759_vm2, %v1624_v43, 0.0  ;;  %v1109_v49 = vadd.f32 %v1108_v45, %v1107_v31  ;;  %v1633_v40 = vsel %vm1067_vm13, %v1626_v62, 0.0  ;;  %v10286_v45 = vld [vmem:[%s13238_s24 + $0x2] ss:$0 sm:$0xff] }
 0x49f   : > { %1631 = vadd.xlane.f32.xlu1 %v1630_v46  ;;  %1628 = vadd.xlane.f32.xlu0 %v1627_v48 }
 0x4a0   : > { %v1110_v52 = vrot.slane %v1109_v49, 1 }
 0x4a2   : > { %v1111_v54 = vadd.f32 %v1110_v52, %v1109_v49 }
 0x4a4   : > { %v1113_v55 = vmul.f32 %v1111_v54, %v13279_v23  ;;  %v1112_v56 = vmul.f32 %v1111_v54, %v13260_v20  ;;  %v1114_v61 = vmul.f32 %v1111_v54, %v13293_v24 }
 0x4a6   : > { %v1118_v57 = vsel %vm759_vm2, %v1113_v55, 0.0  ;;  %v1115_v58 = vsel %vm759_vm2, %v1112_v56, 0.0  ;;  %v1121_v63 = vsel %vm1067_vm13, %v1114_v61, 0.0 }
 0x4a7   : > { %1119 = vadd.xlane.f32.xlu1 %v1118_v57  ;;  %1116 = vadd.xlane.f32.xlu0 %v1115_v58 }
 0x4ab   : > { %1122 = vadd.xlane.f32.xlu1 %v1121_v63  ;;  %1634 = vadd.xlane.f32.xlu0 %v1633_v40 }
 0x4d8   : > { %1645 = vxpose.xlu0.b32.start [1/3] (short) (narrow) %v13260_v20, 8 }
 0x4dc   : > { %1646 = vxpose.xlu0.b32.cont [2/3] (short) (narrow) %v13279_v23, 8 }
 0x4e0   : > { %1647 = vxpose.xlu0.b32.end [3/3] (short) (narrow) %v13293_v24, 8 }
 0x52c   : > { %v1629_v4 = vpop.xlane.xlu0 %1628  ;;  %v1632_v47 = vpop.xlane.xlu1 %1631 }
 0x52d   : > { %12415 = vrcp.f32 %v1629_v4 }
 0x52e   : > { %12417 = vrcp.f32 %v1632_v47 }
 0x534   : > { %v1117_v5 = vpop.xlane.xlu0 %1116  ;;  %v1120_v59 = vpop.xlane.xlu1 %1119 }
 0x535   : > { %12419 = vrcp.f32 %v1117_v5 }
 0x536   : > { %12421 = vrcp.f32 %v1120_v59 }
 0x537   : > { %v12416_v6 = vpop.eup %12415 }
 0x538   : > { %v12418_v10 = vpop.eup %12417  ;;  %v1635_v12 = vpop.xlane.xlu0 %1634  ;;  %v1639_v15 = vmul.f32 %v12416_v6, %v13422_v39 }
 0x539   : > { %12423 = vrcp.f32 %v1635_v12  ;;  %v1640_v16 = vmul.f32 %v12418_v10, %v13424_v2  ;;  %v1123_v36 = vpop.xlane.xlu1 %1122 }
 0x53a   : > { %v1642_v17 = vmul.f32 %v1639_v15, %v13364_v50  ;;  %12425 = vrcp.f32 %v1123_v36 }
 0x53b   : > { %v1643_v18 = vmul.f32 %v1640_v16, %v13366_v53 }
 0x53d   : > { %v12040_v25 = vpack.c.bf16 %v1643_v18, %v1642_v17 }
 0x53f   : > { %v12420_v26 = vpop.eup %12419  ;;  %12041 = vmatpush3.bf16.msra.mxu0 %v12040_v25 }
 0x540   : > { %v12422_v28 = vpop.eup %12421  ;;  %11229 = vmatprep.subr.mxu0 %v12848_v1  ;;  %v1127_v30 = vmul.f32 %v12420_v26, %v13439_v13 }
 0x541   : > { %v1128_v32 = vmul.f32 %v12422_v28, %v13437_v11 }
 0x542   : > { %v1130_v33 = vmul.f32 %v1127_v30, %v13323_v27 }
 0x543   : > { %v12424_v39 = vpop.eup %12423  ;;  %v1131_v35 = vmul.f32 %v1128_v32, %v13325_v29 }
 0x544   : > { %v1641_v2 = vmul.f32 %v12424_v39, %v13431_v51  ;;  %v12426_v13 = vpop.eup %12425 }
 0x545   : > { %v12043_v50 = vpack.c.bf16 %v1131_v35, %v1130_v33  ;;  %v1129_v11 = vmul.f32 %v12426_v13, %v13446_v21 }
 0x546   : > { %v1644_v53 = vmul.f32 %v1641_v2, %v13376_v60  ;;  %v10752_v60 = vld [vmem:[%s13163_s9 + $0x10] sm:$0xff]  }
 0x547   : > { %v1132_v29 = vmul.f32 %v1129_v11, %v13330_v34  ;;  %v13508_v34 = vld [vmem:[%s13166_s10 + $0x8] sm:$0xff]  }
 0x548   : > { %11230 = vmatpush3.msk.msra.mxu0 %vm1055_vm9, %v1644_v53  ;;  %v1839_v51 = vunpack.c.l.bf16 %v13508_v34 }
 0x549   : > { %12042 = vmatprep.subr.bf16.mxu0 %v12846_v0 }
 0x54a   : > { %11258 = vmatpush3.msra.mxu1 %v1839_v51 }
 0x54b   : > { %11260 = vmatmul.mubr.msk.f32.vlgmr.msra.gmra.mrb[18].mxu1 %vm759_vm2, %v13199_v7  ;;  %11279 = vmatprep.subr.mxu1 %v12848_v1 }
 0x54c   : > { %11262 = vmatprep.mubr.msk.f32.mxu1 %vm12847_vm0, %v12848_v1 }
 0x54f   : > { %11263 = vmatmul.mubr.msk.f32.gmra.mrb[20].mxu1 %vm759_vm2, %v13209_v8 }
 0x550   : > { %11265 = vmatprep.mubr.msk.f32.mxu1 %vm12847_vm0, %v12848_v1 }
 0x553   : > { %11266 = vmatmul.mubr.msk.f32.gmra.mrb[22].mxu1 %vm759_vm2, %v13218_v9 }
 0x554   : > { %11281 = vmatprep.mubr.msk.f32.mxu1 %vm12847_vm0, %v12848_v1 }
 0x558   : > { %v13487_v27 = vpop.trf.xlu0 }
 0x559   : > { %11232 = vmatmul.mubr.msk.f32.vlgmr.msra.gmra.mrb[16].mxu0 %vm1677_vm14, %v13487_v27 }
 0x55a   : > { %12044 = vmatpush3.bf16.msra.mxu0 %v12043_v50  ;;  %11240 = vmatprep.mubr.msk.f32.mxu0 %vm12847_vm0, %v12848_v1 }
 0x55b   : > { %11238 = vmatprep.subr.mxu0 %v12848_v1 }
 0x55e   : > { %11239 = vmatpush3.msk.msra.mxu0 %vm1055_vm9, %v1132_v29 }
 0x55f   : > { %11241 = vmatmul.mubr.msk.f32.vlgmr.msra.gmra.mrb[18].mxu0 %vm1677_vm14, %v13487_v27  ;;  %12048 = vmatprep.subr.bf16.mxu0 %v12846_v0 }
 0x560   : > { %12050 = vmatpush3.bf16.msra.mxu0 %v10752_v60  ;;  %11254 = vmatprep.mubr.msk.f32.mxu0 %vm12847_vm0, %v12848_v1  ;;  %v1918_v21 = vpop.f32.mrb[16].mxu1 }
 0x561   : > { %11268 = vmatprep.subr.mxu0 %v12848_v1  ;;  %v11249_v38 = vpop.f32.mrb[17].mxu1 }
 0x563   : > { %11255 = vmatmul.mubr.msk.f32.vlgmr.msra.gmra.mrb[20].mxu0 %vm609_vm1, %v13179_v3  ;;  %v10284_v3 = vld [vmem:[%s13231_s20 + $0x2] ss:$0 sm:$0xff] }
 0x564   : > { %11270 = vmatprep.mubr.msk.f32.mxu0 %vm12847_vm0, %v12848_v1  ;;  %v1919_v37 = vadd.f32 %v10284_v3, %v1918_v21 }
 0x566   : > { %11269 = vmatpush3.msra.mxu0 %v1919_v37 }
 0x567   : > { %11271 = vmatmul.mubr.msk.f32.vlgmr.msra.gmra.mrb[22].mxu0 %vm759_vm2, %v13243_v14  ;;  %12051 = vmatprep.subr.bf16.mxu0 %v12846_v0 }
 0x568   : > { %11273 = vmatprep.mubr.msk.f32.mxu0 %vm12847_vm0, %v12848_v1 }
 0x56b   : > { %11274 = vmatmul.mubr.msk.f32.gmra.mrb[24].mxu0 %vm759_vm2, %v13255_v19 }
 0x56c   : > { %11276 = vmatprep.mubr.msk.f32.mxu0 %vm12847_vm0, %v12848_v1 }
 0x56f   : > { %11277 = vmatmul.mubr.msk.f32.gmra.mrb[26].mxu0 %vm759_vm2, %v13274_v22 }
 0x570   : > { %11296 = vmatprep.mubr.msk.f32.mxu0 %vm12847_vm0, %v12848_v1 }
 0x62c   : > { %v1750_v41 = vpop.f32.mrb[16].mxu0 }
 0x62d   : > { %v11233_v31 = vpop.f32.mrb[17].mxu0 }
 0x632   : > { %v1823_v14 = vpop.f32.mrb[18].mxu0 }
 0x633   : > { %v13538_v42 = vadd.f32 %v1823_v14, %v1750_v41  ;;  %v11242_v43 = vpop.f32.mrb[19].mxu0 }
 0x636   : > { %v1994_v46 = vpop.f32.mrb[20].mxu0 }
 0x637   : > { %v1995_v48 = vadd.f32 %v10286_v45, %v1994_v46  ;;  %v11256_v49 = vpop.f32.mrb[21].mxu0 }
 0x639   : > { %11280 = vmatpush3.msra.mxu1 %v1995_v48 }
 0x63a   : > { %11282 = vmatmul.mubr.msk.f32.vlgmr.msra.gmra.mrb[18].mxu1 %vm759_vm2, %v13260_v20  ;;  %11313 = vmatprep.subr.mxu1 %v12848_v1  ;;  %v13554_v52 = vpop.f32.mrb[22].mxu0 }
 0x63b   : > { %11284 = vmatprep.mubr.msk.f32.mxu1 %vm12847_vm0, %v12848_v1  ;;  %v11272_v54 = vpop.f32.mrb[23].mxu0 }
 0x63e   : > { %11285 = vmatmul.mubr.msk.f32.gmra.mrb[20].mxu1 %vm759_vm2, %v13279_v23  ;;  %v13556_v55 = vpop.f32.mrb[24].mxu0 }
 0x63f   : > { %11287 = vmatprep.mubr.msk.f32.mxu1 %vm12847_vm0, %v12848_v1  ;;  %v11275_v56 = vpop.f32.mrb[25].mxu0 }
 0x642   : > { %11288 = vmatmul.mubr.msk.f32.gmra.mrb[22].mxu1 %vm759_vm2, %v13293_v24  ;;  %v13558_v57 = vpop.f32.mrb[26].mxu0 }
 0x643   : > { %11315 = vmatprep.mubr.msk.f32.mxu1 %vm12847_vm0, %v12848_v1  ;;  %v11278_v58 = vpop.f32.mrb[27].mxu0 }
 0x70d   : > { %v2224_v61 = vpop.f32.mrb[18].mxu1 }
 0x70e   : > { %v2238_v62 = vadd.f32 %v2224_v61, %v13554_v52  ;;  %v11283_v63 = vpop.f32.mrb[19].mxu1 }
 0x710   : > { %v2247_v40 = vmul.f32 0.2, %v2238_v62  ;;  %vm2244_vm15 = vcmp.gt.f32.partialorder %v2238_v62, 0.0 }
 0x711   : > { %v2229_v4 = vpop.f32.mrb[20].mxu1 }
 0x712   : > { %v2239_v47 = vadd.f32 %v2229_v4, %v13556_v55  ;;  %v11286_v5 = vpop.f32.mrb[21].mxu1  ;;  %v2250_v59 = vsel %vm2244_vm15, %v2238_v62, %v2247_v40 }
 0x713   : > { %v2259_v6 = vmul.f32 %v10297_v44, %v2250_v59 }
 0x714   : > { %v2248_v10 = vmul.f32 0.2, %v2239_v47  ;;  %vm2245_vm3 = vcmp.gt.f32.partialorder %v2239_v47, 0.0 }
 0x715   : > { %v2234_v12 = vpop.f32.mrb[22].mxu1  ;;  %2262 = vadd.xlane.f32.xlu1 %v2259_v6 }
 0x716   : > { %v2240_v15 = vadd.f32 %v2234_v12, %v13558_v57  ;;  %v11289_v16 = vpop.f32.mrb[23].mxu1  ;;  %v2251_v17 = vsel %vm2245_vm3, %v2239_v47, %v2248_v10 }
 0x717   : > { %v2260_v18 = vmul.f32 %v10297_v44, %v2251_v17 }
 0x718   : > { %vm2246_vm4 = vcmp.gt.f32.partialorder %v2240_v15, 0.0  ;;  %v2249_v25 = vmul.f32 0.2, %v2240_v15 }
 0x719   : > { %2264 = vadd.xlane.f32.xlu1 %v2260_v18 }
 0x71a   : > { %v2252_v26 = vsel %vm2246_vm4, %v2240_v15, %v2249_v25 }
 0x71b   : > { %v2261_v28 = vmul.f32 %v10297_v44, %v2252_v26 }
 0x71d   : > { %v2266_v30 = vsel %vm1055_vm9, %v2261_v28, 0.0 }
 0x71e   : > { %2267 = vadd.xlane.f32.xlu1 %v2266_v30 }
 0x7a2   : > { %v2263_v32 = vpop.xlane.xlu1 %2262 }
 0x7a3   : > { %v2269_v35 = vsel %vm1059_vm11, %v2263_v32, -1e+30 }
 0x7a4   : > { %v2272_v50 = vsel %vm759_vm2, %v2269_v35, -inf }
 0x7a6   : > { %v2265_v33 = vpop.xlane.xlu1 %2264 }
 0x7a7   : > { %v2270_v39 = vsel %vm1060_vm10, %v2265_v33, -1e+30 }
 0x7a8   : > { %v2273_v2 = vsel %vm759_vm2, %v2270_v39, -inf }
 0x7a9   : > { %v2275_v36 = vmax.f32 %v2272_v50, %v2273_v2 }
 0x7ab   : > { %v2268_v53 = vpop.xlane.xlu1 %2267 }
 0x7ac   : > { %v2271_v13 = vsel %vm1061_vm12, %v2268_v53, -1e+30 }
 0x7ad   : > { %v2274_v11 = vsel %vm1067_vm13, %v2271_v13, -inf }
 0x7ae   : > { %v2276_v29 = vmax.f32 %v2275_v36, %v2274_v11  ;;  %v2425_v36 = vunpack.c.h.bf16 %v13508_v34 }
 0x7b0   : > { %v2277_v60 = vrot.slane %v2276_v29, 4  ;;  %11314 = vmatpush3.msra.mxu1 %v2425_v36 }
 0x7b1   : > { %11316 = vmatmul.mubr.msk.f32.vlgmr.msra.gmra.mrb[24].mxu1 %vm759_vm2, %v13199_v7  ;;  %11335 = vmatprep.subr.mxu1 %v12848_v1 }
 0x7b2   : > { %v2278_v51 = vmax.f32 %v2276_v29, %v2277_v60  ;;  %11318 = vmatprep.mubr.msk.f32.mxu1 %vm12847_vm0, %v12848_v1 }
 0x7b4   : > { %v2279_v3 = vrot.slane %v2278_v51, 2 }
 0x7b5   : > { %11319 = vmatmul.mubr.msk.f32.gmra.mrb[26].mxu1 %vm759_vm2, %v13209_v8 }
 0x7b6   : > { %v2280_v21 = vmax.f32 %v2278_v51, %v2279_v3  ;;  %11321 = vmatprep.mubr.msk.f32.mxu1 %vm12847_vm0, %v12848_v1 }
 0x7b8   : > { %v2281_v37 = vrot.slane %v2280_v21, 1 }
 0x7b9   : > { %11322 = vmatmul.mubr.msk.f32.gmra.mrb[28].mxu1 %vm759_vm2, %v13218_v9 }
 0x7ba   : > { %v2282_v38 = vmax.f32 %v2280_v21, %v2281_v37  ;;  %11337 = vmatprep.mubr.msk.f32.mxu1 %vm12847_vm0, %v12848_v1 }
 0x7bc   : > { %v2283_v41 = vmul.f32 %v2282_v38, %v13260_v20  ;;  %v2284_v14 = vmul.f32 %v2282_v38, %v13279_v23  ;;  %v2285_v45 = vmul.f32 %v2282_v38, %v13293_v24 }
 0x7be   : > { %v2286_v31 = vsel %vm759_vm2, %v2283_v41, 0.0  ;;  %v2289_v43 = vsel %vm759_vm2, %v2284_v14, 0.0  ;;  %v2292_v46 = vsel %vm1067_vm13, %v2285_v45, 0.0  ;;  %v10753_v41 = vld [vmem:[%s13156_s17 + $0x18] sm:$0xff]  }
 0x7bf   : > { %2287 = vadd.xlane.f32.xlu1 %v2286_v31 }
 0x7c3   : > { %2290 = vadd.xlane.f32.xlu1 %v2289_v43  ;;  %v10308_v43 = vld [vmem:[%s13231_s20 + $0x3] ss:$0 sm:$0xff] }
 0x7c7   : > { %2293 = vadd.xlane.f32.xlu1 %v2292_v46 }
 0x84c   : > { %v2288_v48 = vpop.xlane.xlu1 %2287 }
 0x84d   : > { %v2295_v49 = vsub.f32 %v2263_v32, %v2288_v48 }
 0x84f   : > { %v2298_v54 = vmul.f32 1.442695, %v2295_v49  ;;  %v10310_v49 = vld [vmem:[%s13238_s24 + $0x3] ss:$0 sm:$0xff] }
 0x850   : > { %v2291_v56 = vpop.xlane.xlu1 %2290 }
 0x851   : > { %v2296_v58 = vsub.f32 %v2265_v33, %v2291_v56  ;;  %12427 = vpow2.f32 %v2298_v54  ;;  %v13638_v56 = vld [vmem:[%s15192_s2] sm:$0xff] }
 0x853   : > { %v2300_v61 = vmul.f32 1.442695, %v2296_v58 }
 0x854   : > { %v2294_v62 = vpop.xlane.xlu1 %2293 }
 0x855   : > { %12429 = vpow2.f32 %v2300_v61  ;;  %v2297_v63 = vsub.f32 %v2268_v53, %v2294_v62 }
 0x857   : > { %v2302_v40 = vmul.f32 1.442695, %v2297_v63 }
 0x859   : > { %12431 = vpow2.f32 %v2302_v40 }
 0x85b   : > { %v12428_v44 = vpop.eup %12427 }
 0x85c   : > { %v2304_v47 = vmul.f32 %v12428_v44, %v13260_v20 }
 0x85e   : > { %v2307_v10 = vsel %vm759_vm2, %v2304_v47, 0.0  ;;  %v10321_v47 = vld [vmem:[%s13373_s5 + $0x3] ss:$0 sm:$0xff] }
 0x85f   : > { %v12430_v4 = vpop.eup %12429 }
 0x860   : > { %v2305_v5 = vmul.f32 %v12430_v4, %v13279_v23 }
 0x862   : > { %v2308_v59 = vsel %vm759_vm2, %v2305_v5, 0.0 }
 0x863   : > { %v12432_v6 = vpop.eup %12431  ;;  %v2309_v15 = vadd.f32 %v2308_v59, %v2307_v10 }
 0x864   : > { %v2306_v12 = vmul.f32 %v12432_v6, %v13293_v24 }
 0x866   : > { %v2310_v16 = vsel %vm1067_vm13, %v2306_v12, 0.0 }
 0x867   : > { %v2311_v17 = vadd.f32 %v2310_v16, %v2309_v15 }
 0x869   : > { %v2312_v18 = vrot.slane %v2311_v17, 4 }
 0x86b   : > { %v2313_v25 = vadd.f32 %v2312_v18, %v2311_v17 }
 0x86d   : > { %v2314_v26 = vrot.slane %v2313_v25, 2 }
 0x86f   : > { %v2315_v28 = vadd.f32 %v2314_v26, %v2313_v25 }
 0x871   : > { %v2316_v30 = vrot.slane %v2315_v28, 1 }
 0x873   : > { %v2317_v32 = vadd.f32 %v2316_v30, %v2315_v28 }
 0x875   : > { %v2318_v33 = vmul.f32 %v2317_v32, %v13260_v20  ;;  %v2319_v35 = vmul.f32 %v2317_v32, %v13279_v23  ;;  %v2320_v50 = vmul.f32 %v2317_v32, %v13293_v24 }
 0x877   : > { %v2321_v39 = vsel %vm759_vm2, %v2318_v33, 0.0  ;;  %v2324_v2 = vsel %vm759_vm2, %v2319_v35, 0.0  ;;  %v2327_v53 = vsel %vm1067_vm13, %v2320_v50, 0.0 }
 0x878   : > { %2322 = vadd.xlane.f32.xlu1 %v2321_v39 }
 0x87c   : > { %2325 = vadd.xlane.f32.xlu1 %v2324_v2 }
 0x880   : > { %2328 = vadd.xlane.f32.xlu1 %v2327_v53 }
 0x905   : > { %v2323_v34 = vpop.xlane.xlu1 %2322 }
 0x906   : > { %12433 = vrcp.f32 %v2323_v34 }
 0x909   : > { %v2326_v7 = vpop.xlane.xlu1 %2325 }
 0x90a   : > { %12435 = vrcp.f32 %v2326_v7 }
 0x90d   : > { %v2329_v13 = vpop.xlane.xlu1 %2328 }
 0x90e   : > { %12437 = vrcp.f32 %v2329_v13 }
 0x910   : > { %v12434_v11 = vpop.eup %12433 }
 0x911   : > { %v2333_v29 = vmul.f32 %v12434_v11, %v12428_v44 }
 0x913   : > { %v2336_v51 = vmul.f32 %v2333_v29, %v13554_v52  ;;  %v10754_v52 = vld [vmem:[%s13163_s9 + $0x18] sm:$0xff]  }
 0x914   : > { %v12436_v60 = vpop.eup %12435 }
 0x915   : > { %v2334_v8 = vmul.f32 %v12436_v60, %v12430_v4 }
 0x917   : > { %v2337_v3 = vmul.f32 %v2334_v8, %v13556_v55  ;;  %v13619_v55 = vld [vmem:[#allocation2] sm:$0xff] }
 0x918   : > { %v12438_v9 = vpop.eup %12437 }
 0x919   : > { %v2335_v21 = vmul.f32 %v12438_v9, %v12432_v6  ;;  %v12052_v37 = vpack.c.bf16 %v2337_v3, %v2336_v51 }
 0x91b   : > { %12053 = vmatpush3.bf16.msra.mxu0 %v12052_v37  ;;  %v2338_v38 = vmul.f32 %v2335_v21, %v13558_v57 }
 0x91c   : > { %11294 = vmatprep.subr.mxu0 %v12848_v1 }
 0x91f   : > { %11295 = vmatpush3.msk.msra.mxu0 %vm1055_vm9, %v2338_v38 }
 0x920   : > { %11297 = vmatmul.mubr.msk.f32.vlgmr.msra.gmra.mrb[28].mxu0 %vm1677_vm14, %v13487_v27  ;;  %12054 = vmatprep.subr.bf16.mxu0 %v12846_v0 }
 0x921   : > { %12056 = vmatpush3.bf16.msra.mxu0 %v10753_v41  ;;  %11303 = vmatprep.mubr.msk.f32.mxu0 %vm12847_vm0, %v12848_v1  ;;  %v13689_v41 = vld [vmem:[%s15263_s4 + $0x10] sm:$0xf] }
 0x922   : > { %12057 = vmatprep.subr.bf16.mxu0 %v12846_v0 }
 0x924   : > { %11304 = vmatmul.mubr.msk.f32.vlgmr.msra.gmra.mrb[30].mxu0 %vm609_vm1, %v13619_v55 }
 0x925   : > { %12059 = vmatpush3.bf16.msra.mxu0 %v10754_v52  ;;  %11310 = vmatprep.mubr.msk.f32.mxu0 %vm12847_vm0, %v12848_v1 }
 0x926   : > { %11324 = vmatprep.subr.mxu0 %v12848_v1 }
 0x928   : > { %11311 = vmatmul.mubr.msk.f32.vlgmr.msra.gmra.mrb[32].mxu0 %vm609_vm1, %v13619_v55 }
 0x929   : > { %11326 = vmatprep.mubr.msk.f32.mxu0 %vm12847_vm0, %v12848_v1 }
 0x9f3   : > { %v2408_v57 = vpop.f32.mrb[28].mxu0 }
 0x9f4   : > { %v13631_v31 = vadd.f32 %v2408_v57, %v13538_v42  ;;  %v11298_v14 = vpop.f32.mrb[29].mxu0  ;;  %v13695_v57 = vld [vmem:[%s15263_s4] sm:$0xff] }
 0x9f7   : > { %v2504_v45 = vpop.f32.mrb[30].mxu0 }
 0x9f8   : > { %v2505_v46 = vadd.f32 %v10308_v43, %v2504_v45  ;;  %v11305_v48 = vpop.f32.mrb[31].mxu0 }
 0x9fa   : > { %11325 = vmatpush3.msra.mxu0 %v2505_v46  ;;  %v13703_v46 = vld [vmem:[%s15263_s4 + $0x8] sm:$0xff] }
 0x9fb   : > { %v2580_v54 = vpop.f32.mrb[32].mxu0  ;;  %11327 = vmatmul.mubr.msk.f32.vlgmr.msra.gmra.mrb[34].mxu0 %vm759_vm2, %v13638_v56  ;;  %12060 = vmatprep.subr.bf16.mxu0 %v12846_v0 }
 0x9fc   : > { %v2581_v42 = vadd.f32 %v10310_v49, %v2580_v54  ;;  %v11312_v58 = vpop.f32.mrb[33].mxu0  ;;  %11329 = vmatprep.mubr.msk.f32.mxu0 %vm12847_vm0, %v12848_v1 }
 0x9fe   : > { %11336 = vmatpush3.msra.mxu1 %v2581_v42 }
 0x9ff   : > { %11338 = vmatmul.mubr.msk.f32.vlgmr.msra.gmra.mrb[24].mxu1 %vm759_vm2, %v13260_v20  ;;  %11330 = vmatmul.mubr.msk.f32.gmra.mrb[36].mxu0 %vm759_vm2, %v13255_v19 }
 0xa00   : > { %11340 = vmatprep.mubr.msk.f32.mxu1 %vm12847_vm0, %v12848_v1  ;;  %11332 = vmatprep.mubr.msk.f32.mxu0 %vm12847_vm0, %v12848_v1 }
 0xa01   : > { %11369 = vmatprep.subr.mxu1 %v12848_v1 }
 0xa03   : > { %11341 = vmatmul.mubr.msk.f32.gmra.mrb[26].mxu1 %vm759_vm2, %v13279_v23  ;;  %11333 = vmatmul.mubr.msk.f32.gmra.mrb[38].mxu0 %vm759_vm2, %v13274_v22 }
 0xa04   : > { %11343 = vmatprep.mubr.msk.f32.mxu1 %vm12847_vm0, %v12848_v1  ;;  %11352 = vmatprep.mubr.msk.f32.mxu0 %vm12847_vm0, %v12848_v1 }
 0xa07   : > { %11344 = vmatmul.mubr.msk.f32.gmra.mrb[28].mxu1 %vm759_vm2, %v13293_v24 }
 0xa08   : > { %11371 = vmatprep.mubr.msk.f32.mxu1 %vm12847_vm0, %v12848_v1 }
 0xace   : > { %v13666_v19 = vpop.f32.mrb[34].mxu0 }
 0xacf   : > { %v11328_v61 = vpop.f32.mrb[35].mxu0 }
 0xad2   : > { %v2810_v62 = vpop.f32.mrb[24].mxu1  ;;  %v13668_v63 = vpop.f32.mrb[36].mxu0 }
 0xad3   : > { %v2824_v22 = vadd.f32 %v2810_v62, %v13666_v19  ;;  %v11339_v40 = vpop.f32.mrb[25].mxu1  ;;  %v11331_v44 = vpop.f32.mrb[37].mxu0 }
 0xad5   : > { %v2833_v4 = vmul.f32 0.2, %v2824_v22  ;;  %vm2830_vm5 = vcmp.gt.f32.partialorder %v2824_v22, 0.0 }
 0xad6   : > { %v2815_v5 = vpop.f32.mrb[26].mxu1  ;;  %v13672_v59 = vpop.f32.mrb[38].mxu0 }
 0xad7   : > { %v2825_v6 = vadd.f32 %v2815_v5, %v13668_v63  ;;  %v11342_v10 = vpop.f32.mrb[27].mxu1  ;;  %v2836_v12 = vsel %vm2830_vm5, %v2824_v22, %v2833_v4  ;;  %v11334_v15 = vpop.f32.mrb[39].mxu0 }
 0xad8   : > { %v2845_v16 = vmul.f32 %v10321_v47, %v2836_v12 }
 0xad9   : > { %v2834_v17 = vmul.f32 0.2, %v2825_v6  ;;  %vm2831_vm6 = vcmp.gt.f32.partialorder %v2825_v6, 0.0 }
 0xada   : > { %v2820_v18 = vpop.f32.mrb[28].mxu1  ;;  %2848 = vadd.xlane.f32.xlu1 %v2845_v16 }
 0xadb   : > { %v2826_v25 = vadd.f32 %v2820_v18, %v13672_v59  ;;  %v11345_v26 = vpop.f32.mrb[29].mxu1  ;;  %v2837_v28 = vsel %vm2831_vm6, %v2825_v6, %v2834_v17 }
 0xadc   : > { %v2846_v30 = vmul.f32 %v10321_v47, %v2837_v28 }
 0xadd   : > { %vm2832_vm7 = vcmp.gt.f32.partialorder %v2826_v25, 0.0  ;;  %v2835_v32 = vmul.f32 0.2, %v2826_v25 }
 0xade   : > { %2850 = vadd.xlane.f32.xlu1 %v2846_v30 }
 0xadf   : > { %v2838_v33 = vsel %vm2832_vm7, %v2826_v25, %v2835_v32 }
 0xae0   : > { %v2847_v39 = vmul.f32 %v10321_v47, %v2838_v33 }
 0xae2   : > { %v2852_v35 = vsel %vm1055_vm9, %v2847_v39, 0.0 }
 0xae3   : > { %2853 = vadd.xlane.f32.xlu1 %v2852_v35 }
 0xb67   : > { %v2849_v2 = vpop.xlane.xlu1 %2848 }
 0xb68   : > { %v2855_v36 = vsel %vm1059_vm11, %v2849_v2, -1e+30 }
 0xb69   : > { %v2858_v7 = vsel %vm759_vm2, %v2855_v36, -inf }
 0xb6b   : > { %v2851_v50 = vpop.xlane.xlu1 %2850 }
 0xb6c   : > { %v2856_v53 = vsel %vm1060_vm10, %v2851_v50, -1e+30 }
 0xb6d   : > { %v2859_v34 = vsel %vm759_vm2, %v2856_v53, -inf }
 0xb6e   : > { %v2861_v11 = vmax.f32 %v2858_v7, %v2859_v34 }
 0xb70   : > { %v2854_v13 = vpop.xlane.xlu1 %2853 }
 0xb71   : > { %v2857_v29 = vsel %vm1061_vm12, %v2854_v13, -1e+30 }
 0xb72   : > { %v2860_v60 = vsel %vm1067_vm13, %v2857_v29, -inf  ;;  %v13726_v29 = vld [vmem:[%s15191_s1] sm:$0xff] }
 0xb73   : > { %v2862_v8 = vmax.f32 %v2861_v11, %v2860_v60  ;;  %v13736_v60 = vld [vmem:[%s15191_s1 + $0x8] sm:$0xff] }
 0xb75   : > { %v2863_v51 = vrot.slane %v2862_v8, 4 }
 0xb77   : > { %v2864_v3 = vmax.f32 %v2862_v8, %v2863_v51  ;;  %v13745_v8 = vld [vmem:[%s15191_s1 + $0x10] sm:$0xf] }
 0xb79   : > { %v2865_v9 = vrot.slane %v2864_v3, 2 }
 0xb7b   : > { %v2866_v21 = vmax.f32 %v2864_v3, %v2865_v9 }
 0xb7d   : > { %v2867_v37 = vrot.slane %v2866_v21, 1 }
 0xb7f   : > { %v2868_v38 = vmax.f32 %v2866_v21, %v2867_v37 }
 0xb81   : > { %v2871_v52 = vmul.f32 %v13689_v41, %v2868_v38  ;;  %v2869_v14 = vmul.f32 %v13695_v57, %v2868_v38  ;;  %v2870_v48 = vmul.f32 %v13703_v46, %v2868_v38 }
 0xb83   : > { %v2878_v43 = vsel %vm1067_vm13, %v2871_v52, 0.0  ;;  %v2872_v45 = vsel %vm759_vm2, %v2869_v14, 0.0  ;;  %v2875_v49 = vsel %vm759_vm2, %v2870_v48, 0.0 }
 0xb84   : > { %2879 = vadd.xlane.f32.xlu0 %v2878_v43  ;;  %2873 = vadd.xlane.f32.xlu1 %v2872_v45 }
 0xb88   : > { %2876 = vadd.xlane.f32.xlu1 %v2875_v49 }
 0xc11   : > { %v2880_v54 = vpop.xlane.xlu0 %2879  ;;  %v2874_v42 = vpop.xlane.xlu1 %2873 }
 0xc12   : > { %v2883_v58 = vsub.f32 %v2854_v13, %v2880_v54  ;;  %v2881_v61 = vsub.f32 %v2849_v2, %v2874_v42  ;;  %v13720_v13 = vld [vmem:[%s13166_s10 + $0x10] sm:$0xff]   ;;  %v10755_v42 = vld [vmem:[%s13156_s17 + $0x20] sm:$0xff]  }
 0xc13   : > { %v3011_v11 = vunpack.c.l.bf16 %v13720_v13 }
 0xc14   : > { %v2888_v62 = vmul.f32 1.442695, %v2883_v58  ;;  %v2884_v22 = vmul.f32 1.442695, %v2881_v61  ;;  %v10332_v61 = vld [vmem:[%s13231_s20 + $0x4] ss:$0 sm:$0xff] }
 0xc15   : > { %v2877_v40 = vpop.xlane.xlu1 %2876  ;;  %11370 = vmatpush3.msra.mxu1 %v3011_v11 }
 0xc16   : > { %v2882_v44 = vsub.f32 %v2851_v50, %v2877_v40  ;;  %12439 = vpow2.f32 %v2884_v22  ;;  %11372 = vmatmul.mubr.msk.f32.vlgmr.msra.gmra.mrb[30].mxu1 %vm759_vm2, %v13726_v29  ;;  %11391 = vmatprep.subr.mxu1 %v12848_v1 }
 0xc17   : > { %12441 = vpow2.f32 %v2888_v62  ;;  %11374 = vmatprep.mubr.msk.f32.mxu1 %vm12847_vm0, %v12848_v1 }
 0xc18   : > { %v2886_v4 = vmul.f32 1.442695, %v2882_v44  ;;  %v10334_v44 = vld [vmem:[%s13238_s24 + $0x4] ss:$0 sm:$0xff] }
 0xc1a   : > { %12443 = vpow2.f32 %v2886_v4  ;;  %11375 = vmatmul.mubr.msk.f32.gmra.mrb[32].mxu1 %vm759_vm2, %v13736_v60 }
 0xc1b   : > { %11377 = vmatprep.mubr.msk.f32.mxu1 %vm12847_vm0, %v12848_v1 }
 0xc1e   : > { %11378 = vmatmul.mubr.msk.f32.gmra.mrb[34].mxu1 %vm759_vm2, %v13745_v8 }
 0xc1f   : > { %11393 = vmatprep.mubr.msk.f32.mxu1 %vm12847_vm0, %v12848_v1 }
 0xc20   : > { %v12440_v47 = vpop.eup %12439 }
 0xc21   : > { %v12442_v5 = vpop.eup %12441  ;;  %v2890_v6 = vmul.f32 %v13695_v57, %v12440_v47 }
 0xc22   : > { %v2892_v12 = vmul.f32 %v13689_v41, %v12442_v5 }
 0xc23   : > { %v2893_v16 = vsel %vm759_vm2, %v2890_v6, 0.0  ;;  %v13802_v6 = vld [vmem:[%s15192_s2 + $0x10] sm:$0xf] }
 0xc24   : > { %v12444_v10 = vpop.eup %12443  ;;  %v2896_v25 = vsel %vm1067_vm13, %v2892_v12, 0.0 }
 0xc25   : > { %v2891_v15 = vmul.f32 %v13703_v46, %v12444_v10 }
 0xc27   : > { %v2894_v17 = vsel %vm759_vm2, %v2891_v15, 0.0 }
 0xc28   : > { %v2895_v18 = vadd.f32 %v2894_v17, %v2893_v16 }
 0xc2a   : > { %v2897_v26 = vadd.f32 %v2896_v25, %v2895_v18 }
 0xc2c   : > { %v2898_v28 = vrot.slane %v2897_v26, 4 }
 0xc2e   : > { %v2899_v30 = vadd.f32 %v2898_v28, %v2897_v26  ;;  %v10345_v28 = vld [vmem:[%s13373_s5 + $0x4] ss:$0 sm:$0xff] }
 0xc30   : > { %v2900_v32 = vrot.slane %v2899_v30, 2 }
 0xc32   : > { %v2901_v33 = vadd.f32 %v2900_v32, %v2899_v30 }
 0xc34   : > { %v2902_v39 = vrot.slane %v2901_v33, 1 }
 0xc36   : > { %v2903_v35 = vadd.f32 %v2902_v39, %v2901_v33 }
 0xc38   : > { %v2904_v2 = vmul.f32 %v13695_v57, %v2903_v35  ;;  %v2905_v53 = vmul.f32 %v13703_v46, %v2903_v35  ;;  %v2906_v34 = vmul.f32 %v13689_v41, %v2903_v35 }
 0xc3a   : > { %v2907_v50 = vsel %vm759_vm2, %v2904_v2, 0.0  ;;  %v2910_v36 = vsel %vm759_vm2, %v2905_v53, 0.0  ;;  %v2913_v7 = vsel %vm1067_vm13, %v2906_v34, 0.0 }
 0xc3b   : > { %2908 = vadd.xlane.f32.xlu1 %v2907_v50 }
 0xc3f   : > { %2911 = vadd.xlane.f32.xlu1 %v2910_v36 }
 0xc43   : > { %2914 = vadd.xlane.f32.xlu1 %v2913_v7 }
 0xcc8   : > { %v2909_v51 = vpop.xlane.xlu1 %2908 }
 0xcc9   : > { %12445 = vrcp.f32 %v2909_v51 }
 0xccc   : > { %v2912_v3 = vpop.xlane.xlu1 %2911 }
 0xccd   : > { %12447 = vrcp.f32 %v2912_v3 }
 0xcd0   : > { %v2915_v9 = vpop.xlane.xlu1 %2914 }
 0xcd1   : > { %12449 = vrcp.f32 %v2915_v9 }
 0xcd3   : > { %v12446_v21 = vpop.eup %12445 }
 0xcd4   : > { %v2919_v37 = vmul.f32 %v12446_v21, %v12440_v47 }
 0xcd6   : > { %v2922_v14 = vmul.f32 %v2919_v37, %v13666_v19  ;;  %v10756_v19 = vld [vmem:[%s13163_s9 + $0x20] sm:$0xff]  }
 0xcd7   : > { %v12448_v38 = vpop.eup %12447 }
 0xcd8   : > { %v2920_v52 = vmul.f32 %v12448_v38, %v12444_v10 }
 0xcda   : > { %v2923_v43 = vmul.f32 %v2920_v52, %v13668_v63 }
 0xcdb   : > { %v12450_v45 = vpop.eup %12449 }
 0xcdc   : > { %v2921_v48 = vmul.f32 %v12450_v45, %v12442_v5  ;;  %v12061_v49 = vpack.c.bf16 %v2923_v43, %v2922_v14 }
 0xcde   : > { %12062 = vmatpush3.bf16.msra.mxu0 %v12061_v49  ;;  %v2924_v54 = vmul.f32 %v2921_v48, %v13672_v59 }
 0xcdf   : > { %11350 = vmatprep.subr.mxu0 %v12848_v1 }
 0xce2   : > { %11351 = vmatpush3.msk.msra.mxu0 %vm1055_vm9, %v2924_v54 }
 0xce3   : > { %11353 = vmatmul.mubr.msk.f32.vlgmr.msra.gmra.mrb[40].mxu0 %vm1677_vm14, %v13487_v27  ;;  %12063 = vmatprep.subr.bf16.mxu0 %v12846_v0 }
 0xce4   : > { %12065 = vmatpush3.bf16.msra.mxu0 %v10755_v42  ;;  %11359 = vmatprep.mubr.msk.f32.mxu0 %vm12847_vm0, %v12848_v1 }
 0xce5   : > { %12066 = vmatprep.subr.bf16.mxu0 %v12846_v0 }
 0xce7   : > { %11360 = vmatmul.mubr.msk.f32.vlgmr.msra.gmra.mrb[42].mxu0 %vm609_vm1, %v13619_v55 }
 0xce8   : > { %12068 = vmatpush3.bf16.msra.mxu0 %v10756_v19  ;;  %11366 = vmatprep.mubr.msk.f32.mxu0 %vm12847_vm0, %v12848_v1 }
 0xce9   : > { %11380 = vmatprep.subr.mxu0 %v12848_v1 }
 0xceb   : > { %11367 = vmatmul.mubr.msk.f32.vlgmr.msra.gmra.mrb[44].mxu0 %vm609_vm1, %v13619_v55 }
 0xcec   : > { %11382 = vmatprep.mubr.msk.f32.mxu0 %vm12847_vm0, %v12848_v1 }
 0xdb6   : > { %v2994_v63 = vpop.f32.mrb[40].mxu0 }
 0xdb7   : > { %v13774_v59 = vadd.f32 %v2994_v63, %v13631_v31  ;;  %v11354_v58 = vpop.f32.mrb[41].mxu0  ;;  %v13788_v31 = vld [vmem:[%s15192_s2 + $0x8] sm:$0xff] }
 0xdba   : > { %v3090_v62 = vpop.f32.mrb[42].mxu0 }
 0xdbb   : > { %v3091_v22 = vadd.f32 %v10332_v61, %v3090_v62  ;;  %v11361_v40 = vpop.f32.mrb[43].mxu0 }
 0xdbd   : > { %11381 = vmatpush3.msra.mxu0 %v3091_v22 }
 0xdbe   : > { %v3166_v4 = vpop.f32.mrb[44].mxu0  ;;  %11383 = vmatmul.mubr.msk.f32.vlgmr.msra.gmra.mrb[46].mxu0 %vm759_vm2, %v13638_v56  ;;  %12069 = vmatprep.subr.bf16.mxu0 %v12846_v0 }
 0xdbf   : > { %v3167_v47 = vadd.f32 %v10334_v44, %v3166_v4  ;;  %v11368_v5 = vpop.f32.mrb[45].mxu0  ;;  %11385 = vmatprep.mubr.msk.f32.mxu0 %vm12847_vm0, %v12848_v1 }
 0xdc1   : > { %11392 = vmatpush3.msra.mxu1 %v3167_v47 }
 0xdc2   : > { %11394 = vmatmul.mubr.msk.f32.vlgmr.msra.gmra.mrb[30].mxu1 %vm759_vm2, %v13695_v57  ;;  %11386 = vmatmul.mubr.msk.f32.gmra.mrb[48].mxu0 %vm759_vm2, %v13788_v31 }
 0xdc3   : > { %11396 = vmatprep.mubr.msk.f32.mxu1 %vm12847_vm0, %v12848_v1  ;;  %11388 = vmatprep.mubr.msk.f32.mxu0 %vm12847_vm0, %v12848_v1 }
 0xdc4   : > { %11425 = vmatprep.subr.mxu1 %v12848_v1 }
 0xdc6   : > { %11397 = vmatmul.mubr.msk.f32.gmra.mrb[32].mxu1 %vm759_vm2, %v13703_v46  ;;  %11389 = vmatmul.mubr.msk.f32.gmra.mrb[50].mxu0 %vm759_vm2, %v13802_v6 }
 0xdc7   : > { %11399 = vmatprep.mubr.msk.f32.mxu1 %vm12847_vm0, %v12848_v1  ;;  %11408 = vmatprep.mubr.msk.f32.mxu0 %vm12847_vm0, %v12848_v1 }
 0xdca   : > { %11400 = vmatmul.mubr.msk.f32.gmra.mrb[34].mxu1 %vm759_vm2, %v13689_v41 }
 0xdcb   : > { %11427 = vmatprep.mubr.msk.f32.mxu1 %vm12847_vm0, %v12848_v1 }
 0xe91   : > { %v13814_v10 = vpop.f32.mrb[46].mxu0 }
 0xe92   : > { %v11384_v12 = vpop.f32.mrb[47].mxu0 }
 0xe95   : > { %v3396_v15 = vpop.f32.mrb[30].mxu1  ;;  %v13816_v16 = vpop.f32.mrb[48].mxu0 }
 0xe96   : > { %v3410_v17 = vadd.f32 %v3396_v15, %v13814_v10  ;;  %v11395_v18 = vpop.f32.mrb[31].mxu1  ;;  %v11387_v25 = vpop.f32.mrb[49].mxu0 }
 0xe98   : > { %v3419_v26 = vmul.f32 0.2, %v3410_v17  ;;  %vm3416_vm8 = vcmp.gt.f32.partialorder %v3410_v17, 0.0 }
 0xe99   : > { %v3401_v30 = vpop.f32.mrb[32].mxu1  ;;  %v13820_v32 = vpop.f32.mrb[50].mxu0 }
 0xe9a   : > { %v3411_v33 = vadd.f32 %v3401_v30, %v13816_v16  ;;  %v11398_v39 = vpop.f32.mrb[33].mxu1  ;;  %v3422_v35 = vsel %vm3416_vm8, %v3410_v17, %v3419_v26  ;;  %v11390_v2 = vpop.f32.mrb[51].mxu0 }
 0xe9b   : > { %v3431_v50 = vmul.f32 %v10345_v28, %v3422_v35 }
 0xe9c   : > { %v3420_v53 = vmul.f32 0.2, %v3411_v33  ;;  %vm3417_vm15 = vcmp.gt.f32.partialorder %v3411_v33, 0.0 }
 0xe9d   : > { %v3406_v36 = vpop.f32.mrb[34].mxu1  ;;  %3434 = vadd.xlane.f32.xlu1 %v3431_v50 }
 0xe9e   : > { %v3412_v34 = vadd.f32 %v3406_v36, %v13820_v32  ;;  %v11401_v7 = vpop.f32.mrb[35].mxu1  ;;  %v3423_v11 = vsel %vm3417_vm15, %v3411_v33, %v3420_v53 }
 0xe9f   : > { %v3432_v51 = vmul.f32 %v10345_v28, %v3423_v11 }
 0xea0   : > { %vm3418_vm3 = vcmp.gt.f32.partialorder %v3412_v34, 0.0  ;;  %v3421_v3 = vmul.f32 0.2, %v3412_v34 }
 0xea1   : > { %3436 = vadd.xlane.f32.xlu1 %v3432_v51 }
 0xea2   : > { %v3424_v9 = vsel %vm3418_vm3, %v3412_v34, %v3421_v3 }
 0xea3   : > { %v3433_v21 = vmul.f32 %v10345_v28, %v3424_v9 }
 0xea5   : > { %v3438_v37 = vsel %vm1055_vm9, %v3433_v21, 0.0 }
 0xea6   : > { %3439 = vadd.xlane.f32.xlu1 %v3438_v37 }
 0xf2a   : > { %v3435_v38 = vpop.xlane.xlu1 %3434 }
 0xf2b   : > { %v3441_v43 = vsel %vm1059_vm11, %v3435_v38, -1e+30 }
 0xf2c   : > { %v3444_v48 = vsel %vm759_vm2, %v3441_v43, -inf }
 0xf2e   : > { %v3437_v52 = vpop.xlane.xlu1 %3436 }
 0xf2f   : > { %v3442_v14 = vsel %vm1060_vm10, %v3437_v52, -1e+30 }
 0xf30   : > { %v3445_v45 = vsel %vm759_vm2, %v3442_v14, -inf }
 0xf31   : > { %v3447_v54 = vmax.f32 %v3444_v48, %v3445_v45 }
 0xf33   : > { %v3440_v49 = vpop.xlane.xlu1 %3439 }
 0xf34   : > { %v3443_v42 = vsel %vm1061_vm12, %v3440_v49, -1e+30 }
 0xf35   : > { %v3446_v19 = vsel %vm1067_vm13, %v3443_v42, -inf }
 0xf36   : > { %v3448_v63 = vmax.f32 %v3447_v54, %v3446_v19 }
 0xf38   : > { %v3449_v58 = vrot.slane %v3448_v63, 4 }
 0xf3a   : > { %v3450_v61 = vmax.f32 %v3448_v63, %v3449_v58 }
 0xf3c   : > { %v3451_v62 = vrot.slane %v3450_v61, 2 }
 0xf3e   : > { %v3452_v22 = vmax.f32 %v3450_v61, %v3451_v62  ;;  %v3597_v61 = vunpack.c.h.bf16 %v13720_v13 }
 0xf40   : > { %v3453_v40 = vrot.slane %v3452_v22, 1  ;;  %11426 = vmatpush3.msra.mxu1 %v3597_v61 }
 0xf41   : > { %11428 = vmatmul.mubr.msk.f32.vlgmr.msra.gmra.mrb[36].mxu1 %vm759_vm2, %v13726_v29  ;;  %11447 = vmatprep.subr.mxu1 %v12848_v1 }
 0xf42   : > { %v3454_v44 = vmax.f32 %v3452_v22, %v3453_v40  ;;  %11430 = vmatprep.mubr.msk.f32.mxu1 %vm12847_vm0, %v12848_v1 }
 0xf44   : > { %v3455_v4 = vmul.f32 %v13695_v57, %v3454_v44  ;;  %v3456_v5 = vmul.f32 %v13703_v46, %v3454_v44  ;;  %v3457_v15 = vmul.f32 %v13689_v41, %v3454_v44 }
 0xf45   : > { %11431 = vmatmul.mubr.msk.f32.gmra.mrb[38].mxu1 %vm759_vm2, %v13736_v60 }
 0xf46   : > { %v3458_v47 = vsel %vm759_vm2, %v3455_v4, 0.0  ;;  %v3461_v12 = vsel %vm759_vm2, %v3456_v5, 0.0  ;;  %v3464_v17 = vsel %vm1067_vm13, %v3457_v15, 0.0  ;;  %11433 = vmatprep.mubr.msk.f32.mxu1 %vm12847_vm0, %v12848_v1 }
 0xf47   : > { %3459 = vadd.xlane.f32.xlu1 %v3458_v47 }
 0xf49   : > { %11434 = vmatmul.mubr.msk.f32.gmra.mrb[40].mxu1 %vm759_vm2, %v13745_v8 }
 0xf4a   : > { %11449 = vmatprep.mubr.msk.f32.mxu1 %vm12847_vm0, %v12848_v1 }
 0xf4b   : > { %3462 = vadd.xlane.f32.xlu1 %v3461_v12 }
 0xf4f   : > { %3465 = vadd.xlane.f32.xlu1 %v3464_v17 }
 0xfd4   : > { %v3460_v18 = vpop.xlane.xlu1 %3459 }
 0xfd5   : > { %v3467_v25 = vsub.f32 %v3435_v38, %v3460_v18 }
 0xfd7   : > { %v3470_v26 = vmul.f32 1.442695, %v3467_v25 }
 0xfd8   : > { %v3463_v28 = vpop.xlane.xlu1 %3462 }
 0xfd9   : > { %v3468_v30 = vsub.f32 %v3437_v52, %v3463_v28  ;;  %12451 = vpow2.f32 %v3470_v26  ;;  %v10757_v26 = vld [vmem:[%s13156_s17 + $0x28] sm:$0xff]  }
 0xfdb   : > { %v3472_v33 = vmul.f32 1.442695, %v3468_v30  ;;  %v10356_v30 = vld [vmem:[%s13231_s20 + $0x5] ss:$0 sm:$0xff] }
 0xfdc   : > { %v3466_v39 = vpop.xlane.xlu1 %3465 }
 0xfdd   : > { %12453 = vpow2.f32 %v3472_v33  ;;  %v3469_v35 = vsub.f32 %v3440_v49, %v3466_v39 }
 0xfdf   : > { %v3474_v2 = vmul.f32 1.442695, %v3469_v35 }
 0xfe1   : > { %12455 = vpow2.f32 %v3474_v2  ;;  %v10358_v2 = vld [vmem:[%s13238_s24 + $0x5] ss:$0 sm:$0xff] }
 0xfe3   : > { %v12452_v50 = vpop.eup %12451 }
 0xfe4   : > { %v3476_v36 = vmul.f32 %v13695_v57, %v12452_v50 }
 0xfe6   : > { %v3479_v51 = vsel %vm759_vm2, %v3476_v36, 0.0 }
 0xfe7   : > { %v12454_v53 = vpop.eup %12453 }
 0xfe8   : > { %v3477_v34 = vmul.f32 %v13703_v46, %v12454_v53 }
 0xfea   : > { %v3480_v7 = vsel %vm759_vm2, %v3477_v34, 0.0 }
 0xfeb   : > { %v12456_v11 = vpop.eup %12455  ;;  %v3481_v9 = vadd.f32 %v3480_v7, %v3479_v51 }
 0xfec   : > { %v3478_v3 = vmul.f32 %v13689_v41, %v12456_v11 }
 0xfee   : > { %v3482_v21 = vsel %vm1067_vm13, %v3478_v3, 0.0 }
 0xfef   : > { %v3483_v37 = vadd.f32 %v3482_v21, %v3481_v9 }
 0xff1   : > { %v3484_v38 = vrot.slane %v3483_v37, 4 }
 0xff3   : > { %v3485_v52 = vadd.f32 %v3484_v38, %v3483_v37  ;;  %v10369_v37 = vld [vmem:[%s13373_s5 + $0x5] ss:$0 sm:$0xff] }
 0xff5   : > { %v3486_v14 = vrot.slane %v3485_v52, 2 }
 0xff7   : > { %v3487_v43 = vadd.f32 %v3486_v14, %v3485_v52 }
 0xff9   : > { %v3488_v45 = vrot.slane %v3487_v43, 1 }
 0xffb   : > { %v3489_v48 = vadd.f32 %v3488_v45, %v3487_v43 }
 0xffd   : > { %v3492_v49 = vmul.f32 %v13689_v41, %v3489_v48  ;;  %v3490_v54 = vmul.f32 %v13695_v57, %v3489_v48  ;;  %v3491_v63 = vmul.f32 %v13703_v46, %v3489_v48 }
 0xfff   : > { %v3499_v42 = vsel %vm1067_vm13, %v3492_v49, 0.0  ;;  %v3493_v19 = vsel %vm759_vm2, %v3490_v54, 0.0  ;;  %v3496_v58 = vsel %vm759_vm2, %v3491_v63, 0.0 }
0x1000   : > { %3500 = vadd.xlane.f32.xlu0 %v3499_v42  ;;  %3494 = vadd.xlane.f32.xlu1 %v3493_v19 }
0x1004   : > { %3497 = vadd.xlane.f32.xlu1 %v3496_v58 }
0x108d   : > { %v3495_v13 = vpop.xlane.xlu1 %3494  ;;  %v3501_v62 = vpop.xlane.xlu0 %3500 }
0x108e   : > { %12457 = vrcp.f32 %v3495_v13 }
0x1091   : > { %v3498_v22 = vpop.xlane.xlu1 %3497 }
0x1092   : > { %12459 = vrcp.f32 %v3498_v22 }
0x1093   : > { %12461 = vrcp.f32 %v3501_v62 }
0x1098   : > { %v12458_v40 = vpop.eup %12457 }
0x1099   : > { %v3505_v44 = vmul.f32 %v12458_v40, %v12452_v50 }
0x109b   : > { %v3508_v12 = vmul.f32 %v3505_v44, %v13814_v10  ;;  %v10758_v10 = vld [vmem:[%s13163_s9 + $0x28] sm:$0xff]  }
0x109c   : > { %v12460_v4 = vpop.eup %12459 }
0x109d   : > { %v3506_v47 = vmul.f32 %v12460_v4, %v12454_v53  ;;  %v12462_v5 = vpop.eup %12461 }
0x109e   : > { %v3507_v17 = vmul.f32 %v12462_v5, %v12456_v11 }
0x109f   : > { %v3509_v15 = vmul.f32 %v3506_v47, %v13816_v16 }
0x10a0   : > { %v3510_v25 = vmul.f32 %v3507_v17, %v13820_v32 }
0x10a1   : > { %v12070_v18 = vpack.c.bf16 %v3509_v15, %v3508_v12 }
0x10a3   : > { %12071 = vmatpush3.bf16.msra.mxu0 %v12070_v18 }
0x10a4   : > { %11406 = vmatprep.subr.mxu0 %v12848_v1 }
0x10a7   : > { %11407 = vmatpush3.msk.msra.mxu0 %vm1055_vm9, %v3510_v25 }
0x10a8   : > { %11409 = vmatmul.mubr.msk.f32.vlgmr.msra.gmra.mrb[52].mxu0 %vm1677_vm14, %v13487_v27  ;;  %12072 = vmatprep.subr.bf16.mxu0 %v12846_v0 }
0x10a9   : > { %12074 = vmatpush3.bf16.msra.mxu0 %v10757_v26  ;;  %11415 = vmatprep.mubr.msk.f32.mxu0 %vm12847_vm0, %v12848_v1 }
0x10aa   : > { %12075 = vmatprep.subr.bf16.mxu0 %v12846_v0 }
0x10ac   : > { %11416 = vmatmul.mubr.msk.f32.vlgmr.msra.gmra.mrb[54].mxu0 %vm609_vm1, %v13619_v55 }
0x10ad   : > { %12077 = vmatpush3.bf16.msra.mxu0 %v10758_v10  ;;  %11422 = vmatprep.mubr.msk.f32.mxu0 %vm12847_vm0, %v12848_v1 }
0x10ae   : > { %11436 = vmatprep.subr.mxu0 %v12848_v1 }
0x10b0   : > { %11423 = vmatmul.mubr.msk.f32.vlgmr.msra.gmra.mrb[56].mxu0 %vm609_vm1, %v13619_v55 }
0x10b1   : > { %11438 = vmatprep.mubr.msk.f32.mxu0 %vm12847_vm0, %v12848_v1 }
0x117b   : > { %v3580_v16 = vpop.f32.mrb[52].mxu0 }
0x117c   : > { %v13889_v32 = vadd.f32 %v3580_v16, %v13774_v59  ;;  %v11410_v28 = vpop.f32.mrb[53].mxu0 }
0x117f   : > { %v3676_v33 = vpop.f32.mrb[54].mxu0 }
0x1180   : > { %v3677_v39 = vadd.f32 %v10356_v30, %v3676_v33  ;;  %v11417_v35 = vpop.f32.mrb[55].mxu0 }
0x1182   : > { %11437 = vmatpush3.msra.mxu0 %v3677_v39 }
0x1183   : > { %v3752_v50 = vpop.f32.mrb[56].mxu0  ;;  %11439 = vmatmul.mubr.msk.f32.vlgmr.msra.gmra.mrb[58].mxu0 %vm759_vm2, %v13638_v56  ;;  %12078 = vmatprep.subr.bf16.mxu0 %v12846_v0 }
0x1184   : > { %v3753_v53 = vadd.f32 %v10358_v2, %v3752_v50  ;;  %v11424_v36 = vpop.f32.mrb[57].mxu0  ;;  %11441 = vmatprep.mubr.msk.f32.mxu0 %vm12847_vm0, %v12848_v1 }
0x1186   : > { %11448 = vmatpush3.msra.mxu1 %v3753_v53 }
0x1187   : > { %11450 = vmatmul.mubr.msk.f32.vlgmr.msra.gmra.mrb[36].mxu1 %vm759_vm2, %v13695_v57  ;;  %11442 = vmatmul.mubr.msk.f32.gmra.mrb[60].mxu0 %vm759_vm2, %v13788_v31 }
0x1188   : > { %11452 = vmatprep.mubr.msk.f32.mxu1 %vm12847_vm0, %v12848_v1  ;;  %11444 = vmatprep.mubr.msk.f32.mxu0 %vm12847_vm0, %v12848_v1 }
0x1189   : > { %11481 = vmatprep.subr.mxu1 %v12848_v1 }
0x118b   : > { %11453 = vmatmul.mubr.msk.f32.gmra.mrb[38].mxu1 %vm759_vm2, %v13703_v46  ;;  %11445 = vmatmul.mubr.msk.f32.gmra.mrb[62].mxu0 %vm759_vm2, %v13802_v6 }
0x118c   : > { %11455 = vmatprep.mubr.msk.f32.mxu1 %vm12847_vm0, %v12848_v1  ;;  %11464 = vmatprep.mubr.msk.f32.mxu0 %vm12847_vm0, %v12848_v1 }
0x118f   : > { %11456 = vmatmul.mubr.msk.f32.gmra.mrb[40].mxu1 %vm759_vm2, %v13689_v41 }
0x1190   : > { %11483 = vmatprep.mubr.msk.f32.mxu1 %vm12847_vm0, %v12848_v1 }
0x1256   : > { %v13919_v59 = vpop.f32.mrb[58].mxu0 }
0x1257   : > { %v11440_v34 = vpop.f32.mrb[59].mxu0 }
0x125a   : > { %v3982_v7 = vpop.f32.mrb[36].mxu1  ;;  %v13921_v11 = vpop.f32.mrb[60].mxu0 }
0x125b   : > { %v3996_v51 = vadd.f32 %v3982_v7, %v13919_v59  ;;  %v11451_v3 = vpop.f32.mrb[37].mxu1  ;;  %v11443_v9 = vpop.f32.mrb[61].mxu0 }
0x125d   : > { %v4005_v21 = vmul.f32 0.2, %v3996_v51  ;;  %vm4002_vm4 = vcmp.gt.f32.partialorder %v3996_v51, 0.0 }
0x125e   : > { %v3987_v38 = vpop.f32.mrb[38].mxu1  ;;  %v13925_v52 = vpop.f32.mrb[62].mxu0 }
0x125f   : > { %v3997_v14 = vadd.f32 %v3987_v38, %v13921_v11  ;;  %v11454_v43 = vpop.f32.mrb[39].mxu1  ;;  %v4008_v45 = vsel %vm4002_vm4, %v3996_v51, %v4005_v21  ;;  %v11446_v48 = vpop.f32.mrb[63].mxu0 }
0x1260   : > { %v4017_v49 = vmul.f32 %v10369_v37, %v4008_v45 }
0x1261   : > { %v4006_v54 = vmul.f32 0.2, %v3997_v14  ;;  %vm4003_vm5 = vcmp.gt.f32.partialorder %v3997_v14, 0.0 }
0x1262   : > { %v3992_v42 = vpop.f32.mrb[40].mxu1  ;;  %4020 = vadd.xlane.f32.xlu1 %v4017_v49 }
0x1263   : > { %v3998_v19 = vadd.f32 %v3992_v42, %v13925_v52  ;;  %v11457_v63 = vpop.f32.mrb[41].mxu1  ;;  %v4009_v58 = vsel %vm4003_vm5, %v3997_v14, %v4006_v54 }
0x1264   : > { %v4018_v61 = vmul.f32 %v10369_v37, %v4009_v58 }
0x1265   : > { %vm4004_vm6 = vcmp.gt.f32.partialorder %v3998_v19, 0.0  ;;  %v4007_v13 = vmul.f32 0.2, %v3998_v19 }
0x1266   : > { %4022 = vadd.xlane.f32.xlu0 %v4018_v61 }
0x1267   : > { %v4010_v62 = vsel %vm4004_vm6, %v3998_v19, %v4007_v13 }
0x1268   : > { %v4019_v22 = vmul.f32 %v10369_v37, %v4010_v62 }
0x126a   : > { %v4024_v40 = vsel %vm1055_vm9, %v4019_v22, 0.0 }
0x126b   : > { %4025 = vadd.xlane.f32.xlu1 %v4024_v40 }
0x12ef   : > { %v4021_v44 = vpop.xlane.xlu1 %4020 }
0x12f0   : > { %v4027_v5 = vsel %vm1059_vm11, %v4021_v44, -1e+30 }
0x12f1   : > { %v4030_v15 = vsel %vm759_vm2, %v4027_v5, -inf }
0x12f3   : > { %v4023_v4 = vpop.xlane.xlu0 %4022 }
0x12f4   : > { %v4028_v47 = vsel %vm1060_vm10, %v4023_v4, -1e+30 }
0x12f5   : > { %v4031_v12 = vsel %vm759_vm2, %v4028_v47, -inf }
0x12f6   : > { %v4033_v18 = vmax.f32 %v4030_v15, %v4031_v12 }
0x12f8   : > { %v4026_v17 = vpop.xlane.xlu1 %4025 }
0x12f9   : > { %v4029_v25 = vsel %vm1061_vm12, %v4026_v17, -1e+30 }
0x12fa   : > { %v4032_v26 = vsel %vm1067_vm13, %v4029_v25, -inf }
0x12fb   : > { %v4034_v10 = vmax.f32 %v4033_v18, %v4032_v26 }
0x12fd   : > { %v4035_v16 = vrot.slane %v4034_v10, 4 }
0x12ff   : > { %v4036_v28 = vmax.f32 %v4034_v10, %v4035_v16  ;;  %v13958_v16 = vld [vmem:[%s13166_s10 + $0x18] sm:$0xff]  }
0x1301   : > { %v4037_v30 = vrot.slane %v4036_v28, 2 }
0x1303   : > { %v4038_v33 = vmax.f32 %v4036_v28, %v4037_v30  ;;  %v4183_v28 = vunpack.c.l.bf16 %v13958_v16 }
0x1305   : > { %v4039_v39 = vrot.slane %v4038_v33, 1  ;;  %11482 = vmatpush3.msra.mxu1 %v4183_v28 }
0x1306   : > { %11484 = vmatmul.mubr.msk.f32.vlgmr.msra.gmra.mrb[42].mxu1 %vm759_vm2, %v13726_v29  ;;  %11503 = vmatprep.subr.mxu1 %v12848_v1 }
0x1307   : > { %v4040_v35 = vmax.f32 %v4038_v33, %v4039_v39  ;;  %11486 = vmatprep.mubr.msk.f32.mxu1 %vm12847_vm0, %v12848_v1 }
0x1309   : > { %v4042_v2 = vmul.f32 %v13703_v46, %v4040_v35  ;;  %v4041_v50 = vmul.f32 %v13695_v57, %v4040_v35  ;;  %v4043_v34 = vmul.f32 %v13689_v41, %v4040_v35 }
0x130a   : > { %11487 = vmatmul.mubr.msk.f32.gmra.mrb[44].mxu1 %vm759_vm2, %v13736_v60 }
0x130b   : > { %v4047_v53 = vsel %vm759_vm2, %v4042_v2, 0.0  ;;  %v4044_v36 = vsel %vm759_vm2, %v4041_v50, 0.0  ;;  %v4050_v7 = vsel %vm1067_vm13, %v4043_v34, 0.0  ;;  %11489 = vmatprep.mubr.msk.f32.mxu1 %vm12847_vm0, %v12848_v1 }
0x130c   : > { %4048 = vadd.xlane.f32.xlu1 %v4047_v53  ;;  %4045 = vadd.xlane.f32.xlu0 %v4044_v36 }
0x130e   : > { %11490 = vmatmul.mubr.msk.f32.gmra.mrb[46].mxu1 %vm759_vm2, %v13745_v8 }
0x130f   : > { %11505 = vmatprep.mubr.msk.f32.mxu1 %vm12847_vm0, %v12848_v1 }
0x1310   : > { %4051 = vadd.xlane.f32.xlu0 %v4050_v7 }
0x1399   : > { %v4049_v51 = vpop.xlane.xlu1 %4048  ;;  %v4046_v3 = vpop.xlane.xlu0 %4045 }
0x139a   : > { %v4054_v9 = vsub.f32 %v4023_v4, %v4049_v51  ;;  %v4053_v21 = vsub.f32 %v4021_v44, %v4046_v3 }
0x139c   : > { %v4058_v37 = vmul.f32 1.442695, %v4054_v9  ;;  %v4056_v38 = vmul.f32 1.442695, %v4053_v21  ;;  %v10759_v21 = vld [vmem:[%s13156_s17 + $0x30] sm:$0xff]  }
0x139d   : > { %v4052_v14 = vpop.xlane.xlu0 %4051 }
0x139e   : > { %12463 = vpow2.f32 %v4058_v37  ;;  %v4055_v43 = vsub.f32 %v4026_v17, %v4052_v14 }
0x139f   : > { %12465 = vpow2.f32 %v4056_v38  ;;  %v10380_v38 = vld [vmem:[%s13231_s20 + $0x6] ss:$0 sm:$0xff] }
0x13a0   : > { %v4060_v45 = vmul.f32 1.442695, %v4055_v43 }
0x13a2   : > { %12467 = vpow2.f32 %v4060_v45 }
0x13a8   : > { %v12464_v48 = vpop.eup %12463 }
0x13a9   : > { %v12466_v49 = vpop.eup %12465  ;;  %v4063_v54 = vmul.f32 %v13703_v46, %v12464_v48 }
0x13aa   : > { %v4062_v42 = vmul.f32 %v13695_v57, %v12466_v49 }
0x13ab   : > { %v4066_v19 = vsel %vm759_vm2, %v4063_v54, 0.0 }
0x13ac   : > { %v12468_v63 = vpop.eup %12467  ;;  %v4065_v58 = vsel %vm759_vm2, %v4062_v42, 0.0 }
0x13ad   : > { %v4064_v61 = vmul.f32 %v13689_v41, %v12468_v63  ;;  %v4067_v13 = vadd.f32 %v4066_v19, %v4065_v58 }
0x13af   : > { %v4068_v62 = vsel %vm1067_vm13, %v4064_v61, 0.0 }
0x13b0   : > { %v4069_v22 = vadd.f32 %v4068_v62, %v4067_v13  ;;  %v10393_v62 = vld [vmem:[%s13373_s5 + $0x6] ss:$0 sm:$0xff] }
0x13b2   : > { %v4070_v40 = vrot.slane %v4069_v22, 4 }
0x13b4   : > { %v4071_v44 = vadd.f32 %v4070_v40, %v4069_v22 }
0x13b6   : > { %v4072_v4 = vrot.slane %v4071_v44, 2 }
0x13b8   : > { %v4073_v47 = vadd.f32 %v4072_v4, %v4071_v44 }
0x13ba   : > { %v4074_v5 = vrot.slane %v4073_v47, 1 }
0x13bc   : > { %v4075_v12 = vadd.f32 %v4074_v5, %v4073_v47 }
0x13be   : > { %v4077_v15 = vmul.f32 %v13703_v46, %v4075_v12  ;;  %v4076_v17 = vmul.f32 %v13695_v57, %v4075_v12  ;;  %v4078_v26 = vmul.f32 %v13689_v41, %v4075_v12 }
0x13c0   : > { %v4082_v18 = vsel %vm759_vm2, %v4077_v15, 0.0  ;;  %v4079_v25 = vsel %vm759_vm2, %v4076_v17, 0.0  ;;  %v4085_v10 = vsel %vm1067_vm13, %v4078_v26, 0.0 }
0x13c1   : > { %4083 = vadd.xlane.f32.xlu0 %v4082_v18  ;;  %4080 = vadd.xlane.f32.xlu1 %v4079_v25 }
0x13c5   : > { %4086 = vadd.xlane.f32.xlu1 %v4085_v10 }
0x144e   : > { %v4084_v30 = vpop.xlane.xlu0 %4083  ;;  %v4081_v33 = vpop.xlane.xlu1 %4080 }
0x144f   : > { %12469 = vrcp.f32 %v4084_v30 }
0x1450   : > { %12471 = vrcp.f32 %v4081_v33 }
0x1452   : > { %v4087_v39 = vpop.xlane.xlu1 %4086 }
0x1453   : > { %12473 = vrcp.f32 %v4087_v39 }
0x1459   : > { %v12470_v35 = vpop.eup %12469 }
0x145a   : > { %v12472_v2 = vpop.eup %12471  ;;  %v4092_v50 = vmul.f32 %v12470_v35, %v12464_v48  ;;  %v10382_v48 = vld [vmem:[%s13238_s24 + $0x6] ss:$0 sm:$0xff] }
0x145b   : > { %v4091_v53 = vmul.f32 %v12472_v2, %v12466_v49 }
0x145c   : > { %v4095_v36 = vmul.f32 %v4092_v50, %v13921_v11 }
0x145d   : > { %v12474_v34 = vpop.eup %12473  ;;  %v4094_v7 = vmul.f32 %v4091_v53, %v13919_v59  ;;  %v10760_v59 = vld [vmem:[%s13163_s9 + $0x30] sm:$0xff]  }
0x145e   : > { %v4093_v51 = vmul.f32 %v12474_v34, %v12468_v63 }
0x145f   : > { %v12079_v3 = vpack.c.bf16 %v4095_v36, %v4094_v7 }
0x1460   : > { %v4096_v9 = vmul.f32 %v4093_v51, %v13925_v52 }
0x1461   : > { %12080 = vmatpush3.bf16.msra.mxu0 %v12079_v3 }
0x1462   : > { %11462 = vmatprep.subr.mxu0 %v12848_v1 }
0x1465   : > { %11463 = vmatpush3.msk.msra.mxu0 %vm1055_vm9, %v4096_v9 }
0x1466   : > { %11465 = vmatmul.mubr.msk.f32.vlgmr.msra.gmra.mrb[64].mxu0 %vm1677_vm14, %v13487_v27  ;;  %12081 = vmatprep.subr.bf16.mxu0 %v12846_v0 }
0x1467   : > { %12083 = vmatpush3.bf16.msra.mxu0 %v10759_v21  ;;  %11471 = vmatprep.mubr.msk.f32.mxu0 %vm12847_vm0, %v12848_v1 }
0x1468   : > { %12084 = vmatprep.subr.bf16.mxu0 %v12846_v0 }
0x146a   : > { %11472 = vmatmul.mubr.msk.f32.vlgmr.msra.gmra.mrb[66].mxu0 %vm609_vm1, %v13619_v55 }
0x146b   : > { %12086 = vmatpush3.bf16.msra.mxu0 %v10760_v59  ;;  %11478 = vmatprep.mubr.msk.f32.mxu0 %vm12847_vm0, %v12848_v1 }
0x146c   : > { %11492 = vmatprep.subr.mxu0 %v12848_v1 }
0x146e   : > { %11479 = vmatmul.mubr.msk.f32.vlgmr.msra.gmra.mrb[68].mxu0 %vm609_vm1, %v13619_v55 }
0x146f   : > { %11494 = vmatprep.mubr.msk.f32.mxu0 %vm12847_vm0, %v12848_v1 }
0x1539   : > { %v4166_v11 = vpop.f32.mrb[64].mxu0 }
0x153a   : > { %v13997_v52 = vadd.f32 %v4166_v11, %v13889_v32  ;;  %v11466_v37 = vpop.f32.mrb[65].mxu0 }
0x153d   : > { %v4262_v14 = vpop.f32.mrb[66].mxu0 }
0x153e   : > { %v4263_v43 = vadd.f32 %v10380_v38, %v4262_v14  ;;  %v11473_v45 = vpop.f32.mrb[67].mxu0 }
0x1540   : > { %11493 = vmatpush3.msra.mxu0 %v4263_v43 }
0x1541   : > { %v4338_v49 = vpop.f32.mrb[68].mxu0  ;;  %11495 = vmatmul.mubr.msk.f32.vlgmr.msra.gmra.mrb[70].mxu0 %vm759_vm2, %v13638_v56  ;;  %12087 = vmatprep.subr.bf16.mxu0 %v12846_v0 }
0x1542   : > { %v4339_v55 = vadd.f32 %v10382_v48, %v4338_v49  ;;  %v11480_v54 = vpop.f32.mrb[69].mxu0  ;;  %11497 = vmatprep.mubr.msk.f32.mxu0 %vm12847_vm0, %v12848_v1 }
0x1544   : > { %11504 = vmatpush3.msra.mxu1 %v4339_v55 }
0x1545   : > { %11506 = vmatmul.mubr.msk.f32.vlgmr.msra.gmra.mrb[42].mxu1 %vm759_vm2, %v13695_v57  ;;  %11498 = vmatmul.mubr.msk.f32.gmra.mrb[72].mxu0 %vm759_vm2, %v13788_v31 }
0x1546   : > { %11508 = vmatprep.mubr.msk.f32.mxu1 %vm12847_vm0, %v12848_v1  ;;  %11500 = vmatprep.mubr.msk.f32.mxu0 %vm12847_vm0, %v12848_v1 }
0x1547   : > { %11537 = vmatprep.subr.mxu1 %v12848_v1 }
0x1549   : > { %11509 = vmatmul.mubr.msk.f32.gmra.mrb[44].mxu1 %vm759_vm2, %v13703_v46  ;;  %11501 = vmatmul.mubr.msk.f32.gmra.mrb[74].mxu0 %vm759_vm2, %v13802_v6 }
0x154a   : > { %11511 = vmatprep.mubr.msk.f32.mxu1 %vm12847_vm0, %v12848_v1  ;;  %11520 = vmatprep.mubr.msk.f32.mxu0 %vm12847_vm0, %v12848_v1 }
0x154d   : > { %11512 = vmatmul.mubr.msk.f32.gmra.mrb[46].mxu1 %vm759_vm2, %v13689_v41 }
0x154e   : > { %11539 = vmatprep.mubr.msk.f32.mxu1 %vm12847_vm0, %v12848_v1 }
0x1614   : > { %v14027_v56 = vpop.f32.mrb[70].mxu0 }
0x1615   : > { %v11496_v32 = vpop.f32.mrb[71].mxu0 }
0x1618   : > { %v4568_v42 = vpop.f32.mrb[42].mxu1  ;;  %v14029_v19 = vpop.f32.mrb[72].mxu0 }
0x1619   : > { %v4582_v63 = vadd.f32 %v4568_v42, %v14027_v56  ;;  %v11507_v58 = vpop.f32.mrb[43].mxu1  ;;  %v11499_v61 = vpop.f32.mrb[73].mxu0 }
0x161b   : > { %v4591_v13 = vmul.f32 0.2, %v4582_v63  ;;  %vm4588_vm7 = vcmp.gt.f32.partialorder %v4582_v63, 0.0 }
0x161c   : > { %v4573_v22 = vpop.f32.mrb[44].mxu1  ;;  %v14033_v40 = vpop.f32.mrb[74].mxu0 }
0x161d   : > { %v4583_v44 = vadd.f32 %v4573_v22, %v14029_v19  ;;  %v11510_v4 = vpop.f32.mrb[45].mxu1  ;;  %v4594_v47 = vsel %vm4588_vm7, %v4582_v63, %v4591_v13  ;;  %v11502_v5 = vpop.f32.mrb[75].mxu0 }
0x161e   : > { %v4603_v12 = vmul.f32 %v10393_v62, %v4594_v47  ;;  %v14062_v5 = vld [vmem:[%s15263_s4] sm:$0xff] }
0x161f   : > { %v4592_v15 = vmul.f32 0.2, %v4583_v44  ;;  %vm4589_vm8 = vcmp.gt.f32.partialorder %v4583_v44, 0.0 }
0x1620   : > { %v4578_v17 = vpop.f32.mrb[46].mxu1  ;;  %4606 = vadd.xlane.f32.xlu0 %v4603_v12 }
0x1621   : > { %v4584_v18 = vadd.f32 %v4578_v17, %v14033_v40  ;;  %v11513_v25 = vpop.f32.mrb[47].mxu1  ;;  %v4595_v26 = vsel %vm4589_vm8, %v4583_v44, %v4592_v15 }
0x1622   : > { %v4604_v10 = vmul.f32 %v10393_v62, %v4595_v26  ;;  %v14070_v25 = vld [vmem:[%s15263_s4 + $0x10] sm:$0xf] }
0x1623   : > { %vm4590_vm15 = vcmp.gt.f32.partialorder %v4584_v18, 0.0  ;;  %v4593_v28 = vmul.f32 0.2, %v4584_v18 }
0x1624   : > { %4608 = vadd.xlane.f32.xlu1 %v4604_v10 }
0x1625   : > { %v4596_v30 = vsel %vm4590_vm15, %v4584_v18, %v4593_v28 }
0x1626   : > { %v4605_v33 = vmul.f32 %v10393_v62, %v4596_v30 }
0x1628   : > { %v4610_v39 = vsel %vm1055_vm9, %v4605_v33, 0.0 }
0x1629   : > { %4611 = vadd.xlane.f32.xlu0 %v4610_v39 }
0x16ad   : > { %v4607_v35 = vpop.xlane.xlu0 %4606 }
0x16ae   : > { %v4613_v53 = vsel %vm1059_vm11, %v4607_v35, -1e+30 }
0x16af   : > { %v4616_v34 = vsel %vm759_vm2, %v4613_v53, -inf }
0x16b1   : > { %v4609_v2 = vpop.xlane.xlu1 %4608 }
0x16b2   : > { %v4614_v50 = vsel %vm1060_vm10, %v4609_v2, -1e+30 }
0x16b3   : > { %v4617_v36 = vsel %vm759_vm2, %v4614_v50, -inf }
0x16b4   : > { %v4619_v51 = vmax.f32 %v4616_v34, %v4617_v36 }
0x16b6   : > { %v4612_v7 = vpop.xlane.xlu0 %4611 }
0x16b7   : > { %v4615_v3 = vsel %vm1061_vm12, %v4612_v7, -1e+30 }
0x16b8   : > { %v4618_v9 = vsel %vm1067_vm13, %v4615_v3, -inf }
0x16b9   : > { %v4620_v21 = vmax.f32 %v4619_v51, %v4618_v9 }
0x16bb   : > { %v4621_v59 = vrot.slane %v4620_v21, 4 }
0x16bd   : > { %v4622_v11 = vmax.f32 %v4620_v21, %v4621_v59  ;;  %v4769_v21 = vunpack.c.h.bf16 %v13958_v16 }
0x16bf   : > { %v4623_v37 = vrot.slane %v4622_v11, 2  ;;  %11538 = vmatpush3.msra.mxu1 %v4769_v21 }
0x16c0   : > { %11540 = vmatmul.mubr.msk.f32.vlgmr.msra.gmra.mrb[48].mxu1 %vm759_vm2, %v13726_v29  ;;  %11559 = vmatprep.subr.mxu1 %v12848_v1 }
0x16c1   : > { %v4624_v38 = vmax.f32 %v4622_v11, %v4623_v37  ;;  %11542 = vmatprep.mubr.msk.f32.mxu1 %vm12847_vm0, %v12848_v1 }
0x16c3   : > { %v4625_v14 = vrot.slane %v4624_v38, 1 }
0x16c4   : > { %11543 = vmatmul.mubr.msk.f32.gmra.mrb[50].mxu1 %vm759_vm2, %v13736_v60 }
0x16c5   : > { %v4626_v43 = vmax.f32 %v4624_v38, %v4625_v14  ;;  %11545 = vmatprep.mubr.msk.f32.mxu1 %vm12847_vm0, %v12848_v1 }
0x16c7   : > { %v4628_v45 = vmul.f32 %v13703_v46, %v4626_v43  ;;  %v4627_v48 = vmul.f32 %v13695_v57, %v4626_v43  ;;  %v4629_v54 = vmul.f32 %v13689_v41, %v4626_v43  ;;  %v14056_v41 = vld [vmem:[%s15263_s4 + $0x8] sm:$0xff] }
0x16c8   : > { %11546 = vmatmul.mubr.msk.f32.gmra.mrb[52].mxu1 %vm759_vm2, %v13745_v8 }
0x16c9   : > { %v4633_v49 = vsel %vm759_vm2, %v4628_v45, 0.0  ;;  %v4630_v55 = vsel %vm759_vm2, %v4627_v48, 0.0  ;;  %v4636_v32 = vsel %vm1067_vm13, %v4629_v54, 0.0  ;;  %11561 = vmatprep.mubr.msk.f32.mxu1 %vm12847_vm0, %v12848_v1 }
0x16ca   : > { %4634 = vadd.xlane.f32.xlu0 %v4633_v49  ;;  %4631 = vadd.xlane.f32.xlu1 %v4630_v55  ;;  %v10761_v55 = vld [vmem:[%s13156_s17 + $0x38] sm:$0xff]  }
0x16ce   : > { %4637 = vadd.xlane.f32.xlu1 %v4636_v32 }
0x1757   : > { %v4635_v42 = vpop.xlane.xlu0 %4634  ;;  %v4632_v63 = vpop.xlane.xlu1 %4631 }
0x1758   : > { %v4640_v58 = vsub.f32 %v4609_v2, %v4635_v42  ;;  %v4639_v61 = vsub.f32 %v4607_v35, %v4632_v63  ;;  %v10404_v42 = vld [vmem:[%s13231_s20 + $0x7] ss:$0 sm:$0xff] }
0x175a   : > { %v4644_v13 = vmul.f32 1.442695, %v4640_v58  ;;  %v4642_v62 = vmul.f32 1.442695, %v4639_v61 }
0x175b   : > { %v4638_v46 = vpop.xlane.xlu1 %4637 }
0x175c   : > { %12475 = vpow2.f32 %v4644_v13  ;;  %v4641_v57 = vsub.f32 %v4612_v7, %v4638_v46  ;;  %v10406_v13 = vld [vmem:[%s13238_s24 + $0x7] ss:$0 sm:$0xff] }
0x175d   : > { %12477 = vpow2.f32 %v4642_v62  ;;  %v14126_v46 = vld [vmem:[%s15192_s2] sm:$0xff] }
0x175e   : > { %v4646_v22 = vmul.f32 1.442695, %v4641_v57 }
0x1760   : > { %12479 = vpow2.f32 %v4646_v22 }
0x1766   : > { %v12476_v44 = vpop.eup %12475 }
0x1767   : > { %v12478_v4 = vpop.eup %12477  ;;  %v4649_v47 = vmul.f32 %v14056_v41, %v12476_v44 }
0x1768   : > { %v4648_v12 = vmul.f32 %v14062_v5, %v12478_v4 }
0x1769   : > { %v4652_v15 = vsel %vm759_vm2, %v4649_v47, 0.0 }
0x176a   : > { %v12480_v17 = vpop.eup %12479  ;;  %v4651_v18 = vsel %vm759_vm2, %v4648_v12, 0.0 }
0x176b   : > { %v4650_v26 = vmul.f32 %v14070_v25, %v12480_v17  ;;  %v4653_v10 = vadd.f32 %v4652_v15, %v4651_v18 }
0x176d   : > { %v4654_v28 = vsel %vm1067_vm13, %v4650_v26, 0.0 }
0x176e   : > { %v4655_v30 = vadd.f32 %v4654_v28, %v4653_v10 }
0x1770   : > { %v4656_v33 = vrot.slane %v4655_v30, 4 }
0x1772   : > { %v4657_v39 = vadd.f32 %v4656_v33, %v4655_v30 }
0x1774   : > { %v4658_v35 = vrot.slane %v4657_v39, 2 }
0x1776   : > { %v4659_v2 = vadd.f32 %v4658_v35, %v4657_v39 }
0x1778   : > { %v4660_v50 = vrot.slane %v4659_v2, 1 }
0x177a   : > { %v4661_v53 = vadd.f32 %v4660_v50, %v4659_v2 }
0x177c   : > { %v4663_v36 = vmul.f32 %v14056_v41, %v4661_v53  ;;  %v4662_v34 = vmul.f32 %v14062_v5, %v4661_v53  ;;  %v4664_v3 = vmul.f32 %v14070_v25, %v4661_v53 }
0x177e   : > { %v4668_v7 = vsel %vm759_vm2, %v4663_v36, 0.0  ;;  %v4665_v51 = vsel %vm759_vm2, %v4662_v34, 0.0  ;;  %v4671_v9 = vsel %vm1067_vm13, %v4664_v3, 0.0 }
0x177f   : > { %4669 = vadd.xlane.f32.xlu1 %v4668_v7  ;;  %4666 = vadd.xlane.f32.xlu0 %v4665_v51 }
0x1783   : > { %4672 = vadd.xlane.f32.xlu0 %v4671_v9 }
0x180c   : > { %v4670_v16 = vpop.xlane.xlu1 %4669  ;;  %v4667_v59 = vpop.xlane.xlu0 %4666 }
0x180d   : > { %12481 = vrcp.f32 %v4670_v16 }
0x180e   : > { %12483 = vrcp.f32 %v4667_v59 }
0x1810   : > { %v4673_v29 = vpop.xlane.xlu0 %4672 }
0x1811   : > { %12485 = vrcp.f32 %v4673_v29 }
0x1817   : > { %v12482_v11 = vpop.eup %12481 }
0x1818   : > { %v12484_v37 = vpop.eup %12483  ;;  %v4678_v38 = vmul.f32 %v12482_v11, %v12476_v44 }
0x1819   : > { %v4677_v60 = vmul.f32 %v12484_v37, %v12478_v4 }
0x181a   : > { %v4681_v14 = vmul.f32 %v4678_v38, %v14029_v19  ;;  %v14107_v19 = vld [vmem:[#allocation2] sm:$0xff] }
0x181b   : > { %v12486_v43 = vpop.eup %12485  ;;  %v4680_v8 = vmul.f32 %v4677_v60, %v14027_v56  ;;  %v10762_v56 = vld [vmem:[%s13163_s9 + $0x38] sm:$0xff]  }
0x181c   : > { %v4679_v45 = vmul.f32 %v12486_v43, %v12480_v17  ;;  %v10417_v17 = vld [vmem:[%s13373_s5 + $0x7] ss:$0 sm:$0xff] }
0x181d   : > { %v12088_v48 = vpack.c.bf16 %v4681_v14, %v4680_v8 }
0x181e   : > { %v4682_v49 = vmul.f32 %v4679_v45, %v14033_v40 }
0x181f   : > { %12089 = vmatpush3.bf16.msra.mxu0 %v12088_v48 }
0x1820   : > { %11518 = vmatprep.subr.mxu0 %v12848_v1 }
0x1823   : > { %11519 = vmatpush3.msk.msra.mxu0 %vm1055_vm9, %v4682_v49 }
0x1824   : > { %11521 = vmatmul.mubr.msk.f32.vlgmr.msra.gmra.mrb[76].mxu0 %vm1677_vm14, %v13487_v27  ;;  %12090 = vmatprep.subr.bf16.mxu0 %v12846_v0 }
0x1825   : > { %12092 = vmatpush3.bf16.msra.mxu0 %v10761_v55  ;;  %11527 = vmatprep.mubr.msk.f32.mxu0 %vm12847_vm0, %v12848_v1 }
0x1826   : > { %12093 = vmatprep.subr.bf16.mxu0 %v12846_v0 }
0x1828   : > { %11528 = vmatmul.mubr.msk.f32.vlgmr.msra.gmra.mrb[78].mxu0 %vm609_vm1, %v14107_v19 }
0x1829   : > { %12095 = vmatpush3.bf16.msra.mxu0 %v10762_v56  ;;  %11534 = vmatprep.mubr.msk.f32.mxu0 %vm12847_vm0, %v12848_v1 }
0x182a   : > { %11548 = vmatprep.subr.mxu0 %v12848_v1 }
0x182c   : > { %11535 = vmatmul.mubr.msk.f32.vlgmr.msra.gmra.mrb[80].mxu0 %vm609_vm1, %v14107_v19 }
0x182d   : > { %11550 = vmatprep.mubr.msk.f32.mxu0 %vm12847_vm0, %v12848_v1 }
0x18f7   : > { %v4752_v40 = vpop.f32.mrb[76].mxu0 }
0x18f8   : > { %v14119_v54 = vadd.f32 %v4752_v40, %v13997_v52  ;;  %v11522_v32 = vpop.f32.mrb[77].mxu0 }
0x18fb   : > { %v4848_v63 = vpop.f32.mrb[78].mxu0 }
0x18fc   : > { %v4849_v58 = vadd.f32 %v10404_v42, %v4848_v63  ;;  %v11529_v61 = vpop.f32.mrb[79].mxu0 }
0x18fe   : > { %11549 = vmatpush3.msra.mxu0 %v4849_v58 }
0x18ff   : > { %v4924_v62 = vpop.f32.mrb[80].mxu0  ;;  %11551 = vmatmul.mubr.msk.f32.vlgmr.msra.gmra.mrb[82].mxu0 %vm759_vm2, %v14126_v46  ;;  %12096 = vmatprep.subr.bf16.mxu0 %v12846_v0 }
0x1900   : > { %v4925_v52 = vadd.f32 %v10406_v13, %v4924_v62  ;;  %v11536_v57 = vpop.f32.mrb[81].mxu0  ;;  %11553 = vmatprep.mubr.msk.f32.mxu0 %vm12847_vm0, %v12848_v1 }
0x1902   : > { %11560 = vmatpush3.msra.mxu1 %v4925_v52 }
0x1903   : > { %11562 = vmatmul.mubr.msk.f32.vlgmr.msra.gmra.mrb[48].mxu1 %vm759_vm2, %v14062_v5  ;;  %11554 = vmatmul.mubr.msk.f32.gmra.mrb[84].mxu0 %vm759_vm2, %v13788_v31 }
0x1904   : > { %11564 = vmatprep.mubr.msk.f32.mxu1 %vm12847_vm0, %v12848_v1  ;;  %11556 = vmatprep.mubr.msk.f32.mxu0 %vm12847_vm0, %v12848_v1 }
0x1905   : > { %11593 = vmatprep.subr.mxu1 %v12848_v1 }
0x1907   : > { %11565 = vmatmul.mubr.msk.f32.gmra.mrb[50].mxu1 %vm759_vm2, %v14056_v41  ;;  %11557 = vmatmul.mubr.msk.f32.gmra.mrb[86].mxu0 %vm759_vm2, %v13802_v6 }
0x1908   : > { %11567 = vmatprep.mubr.msk.f32.mxu1 %vm12847_vm0, %v12848_v1  ;;  %11576 = vmatprep.mubr.msk.f32.mxu0 %vm12847_vm0, %v12848_v1 }
0x190b   : > { %11568 = vmatmul.mubr.msk.f32.gmra.mrb[52].mxu1 %vm759_vm2, %v14070_v25 }
0x190c   : > { %11595 = vmatprep.mubr.msk.f32.mxu1 %vm12847_vm0, %v12848_v1 }
0x19d2   : > { %v14154_v31 = vpop.f32.mrb[82].mxu0 }
0x19d3   : > { %v11552_v22 = vpop.f32.mrb[83].mxu0 }
0x19d6   : > { %v5154_v44 = vpop.f32.mrb[48].mxu1  ;;  %v14156_v4 = vpop.f32.mrb[84].mxu0 }
0x19d7   : > { %v5168_v6 = vadd.f32 %v5154_v44, %v14154_v31  ;;  %v11563_v47 = vpop.f32.mrb[49].mxu1  ;;  %v11555_v12 = vpop.f32.mrb[85].mxu0 }
0x19d9   : > { %v5177_v15 = vmul.f32 0.2, %v5168_v6  ;;  %vm5174_vm3 = vcmp.gt.f32.partialorder %v5168_v6, 0.0 }
0x19da   : > { %v5159_v18 = vpop.f32.mrb[50].mxu1  ;;  %v14160_v26 = vpop.f32.mrb[86].mxu0 }
0x19db   : > { %v5169_v10 = vadd.f32 %v5159_v18, %v14156_v4  ;;  %v11566_v28 = vpop.f32.mrb[51].mxu1  ;;  %v5180_v30 = vsel %vm5174_vm3, %v5168_v6, %v5177_v15  ;;  %v11558_v33 = vpop.f32.mrb[87].mxu0 }
0x19dc   : > { %v5189_v39 = vmul.f32 %v10417_v17, %v5180_v30 }
0x19dd   : > { %v5178_v35 = vmul.f32 0.2, %v5169_v10  ;;  %vm5175_vm4 = vcmp.gt.f32.partialorder %v5169_v10, 0.0 }
0x19de   : > { %v5164_v2 = vpop.f32.mrb[52].mxu1  ;;  %5192 = vadd.xlane.f32.xlu1 %v5189_v39 }
0x19df   : > { %v5170_v50 = vadd.f32 %v5164_v2, %v14160_v26  ;;  %v11569_v53 = vpop.f32.mrb[53].mxu1  ;;  %v5181_v36 = vsel %vm5175_vm4, %v5169_v10, %v5178_v35 }
0x19e0   : > { %v5190_v34 = vmul.f32 %v10417_v17, %v5181_v36 }
0x19e1   : > { %vm5176_vm5 = vcmp.gt.f32.partialorder %v5170_v50, 0.0  ;;  %v5179_v7 = vmul.f32 0.2, %v5170_v50 }
0x19e2   : > { %5194 = vadd.xlane.f32.xlu0 %v5190_v34 }
0x19e3   : > { %v5182_v51 = vsel %vm5176_vm5, %v5170_v50, %v5179_v7 }
0x19e4   : > { %v5191_v3 = vmul.f32 %v10417_v17, %v5182_v51 }
0x19e6   : > { %v5196_v9 = vsel %vm1055_vm9, %v5191_v3, 0.0 }
0x19e7   : > { %5197 = vadd.xlane.f32.xlu1 %v5196_v9 }
0x1a6b   : > { %v5193_v21 = vpop.xlane.xlu1 %5192 }
0x1a6c   : > { %v5199_v29 = vsel %vm1059_vm11, %v5193_v21, -1e+30 }
0x1a6d   : > { %v5202_v37 = vsel %vm759_vm2, %v5199_v29, -inf }
0x1a6f   : > { %v5195_v16 = vpop.xlane.xlu0 %5194 }
0x1a70   : > { %v5200_v59 = vsel %vm1060_vm10, %v5195_v16, -1e+30 }
0x1a71   : > { %v5203_v11 = vsel %vm759_vm2, %v5200_v59, -inf }
0x1a72   : > { %v5205_v60 = vmax.f32 %v5202_v37, %v5203_v11 }
0x1a74   : > { %v5198_v38 = vpop.xlane.xlu1 %5197 }
0x1a75   : > { %v5201_v14 = vsel %vm1061_vm12, %v5198_v38, -1e+30 }
0x1a76   : > { %v5204_v43 = vsel %vm1067_vm13, %v5201_v14, -inf  ;;  %v14199_v14 = vld [vmem:[%s15191_s1] sm:$0xff] }
0x1a77   : > { %v5206_v8 = vmax.f32 %v5205_v60, %v5204_v43  ;;  %v14209_v43 = vld [vmem:[%s15191_s1 + $0x8] sm:$0xff] }
0x1a79   : > { %v5207_v45 = vrot.slane %v5206_v8, 4 }
0x1a7b   : > { %v5208_v48 = vmax.f32 %v5206_v8, %v5207_v45  ;;  %v14218_v8 = vld [vmem:[%s15191_s1 + $0x10] sm:$0xf] }
0x1a7d   : > { %v5209_v49 = vrot.slane %v5208_v48, 2 }
0x1a7f   : > { %v5210_v55 = vmax.f32 %v5208_v48, %v5209_v49 }
0x1a81   : > { %v5211_v56 = vrot.slane %v5210_v55, 1 }
0x1a83   : > { %v5212_v40 = vmax.f32 %v5210_v55, %v5211_v56 }
0x1a85   : > { %v5214_v32 = vmul.f32 %v14056_v41, %v5212_v40  ;;  %v5213_v42 = vmul.f32 %v14062_v5, %v5212_v40  ;;  %v5215_v61 = vmul.f32 %v14070_v25, %v5212_v40 }
0x1a87   : > { %v5219_v63 = vsel %vm759_vm2, %v5214_v32, 0.0  ;;  %v5216_v58 = vsel %vm759_vm2, %v5213_v42, 0.0  ;;  %v5222_v13 = vsel %vm1067_vm13, %v5215_v61, 0.0 }
0x1a88   : > { %5220 = vadd.xlane.f32.xlu1 %v5219_v63  ;;  %5217 = vadd.xlane.f32.xlu0 %v5216_v58 }
0x1a8c   : > { %5223 = vadd.xlane.f32.xlu0 %v5222_v13 }
0x1b15   : > { %v5221_v62 = vpop.xlane.xlu1 %5220  ;;  %v5218_v52 = vpop.xlane.xlu0 %5217 }
0x1b16   : > { %v5226_v57 = vsub.f32 %v5195_v16, %v5221_v62  ;;  %v5225_v22 = vsub.f32 %v5193_v21, %v5218_v52  ;;  %v10763_v52 = vld [vmem:[%s13156_s17 + $0x40] sm:$0xff]  }
0x1b18   : > { %v5230_v44 = vmul.f32 1.442695, %v5226_v57  ;;  %v5228_v6 = vmul.f32 1.442695, %v5225_v22  ;;  %v10428_v22 = vld [vmem:[%s13231_s20 + $0x8] ss:$0 sm:$0xff] }
0x1b19   : > { %v5224_v47 = vpop.xlane.xlu0 %5223 }
0x1b1a   : > { %12487 = vpow2.f32 %v5230_v44  ;;  %v5227_v12 = vsub.f32 %v5198_v38, %v5224_v47  ;;  %v14193_v38 = vld [vmem:[%s13166_s10 + $0x20] sm:$0xff]  }
0x1b1b   : > { %12489 = vpow2.f32 %v5228_v6  ;;  %v5355_v60 = vunpack.c.l.bf16 %v14193_v38 }
0x1b1c   : > { %v5232_v15 = vmul.f32 1.442695, %v5227_v12  ;;  %v10430_v12 = vld [vmem:[%s13238_s24 + $0x8] ss:$0 sm:$0xff] }
0x1b1d   : > { %11594 = vmatpush3.msra.mxu1 %v5355_v60 }
0x1b1e   : > { %12491 = vpow2.f32 %v5232_v15  ;;  %11596 = vmatmul.mubr.msk.f32.vlgmr.msra.gmra.mrb[54].mxu1 %vm759_vm2, %v14199_v14  ;;  %11615 = vmatprep.subr.mxu1 %v12848_v1 }
0x1b1f   : > { %11598 = vmatprep.mubr.msk.f32.mxu1 %vm12847_vm0, %v12848_v1 }
0x1b22   : > { %11599 = vmatmul.mubr.msk.f32.gmra.mrb[56].mxu1 %vm759_vm2, %v14209_v43 }
0x1b23   : > { %11601 = vmatprep.mubr.msk.f32.mxu1 %vm12847_vm0, %v12848_v1 }
0x1b24   : > { %v12488_v17 = vpop.eup %12487 }
0x1b25   : > { %v12490_v18 = vpop.eup %12489  ;;  %v5235_v10 = vmul.f32 %v14056_v41, %v12488_v17 }
0x1b26   : > { %v5234_v28 = vmul.f32 %v14062_v5, %v12490_v18  ;;  %11602 = vmatmul.mubr.msk.f32.gmra.mrb[58].mxu1 %vm759_vm2, %v14218_v8 }
0x1b27   : > { %v5238_v30 = vsel %vm759_vm2, %v5235_v10, 0.0  ;;  %11617 = vmatprep.mubr.msk.f32.mxu1 %vm12847_vm0, %v12848_v1  ;;  %v14275_v10 = vld [vmem:[%s15192_s2 + $0x10] sm:$0xf] }
0x1b28   : > { %v12492_v33 = vpop.eup %12491  ;;  %v5237_v39 = vsel %vm759_vm2, %v5234_v28, 0.0 }
0x1b29   : > { %v5236_v35 = vmul.f32 %v14070_v25, %v12492_v33  ;;  %v5239_v2 = vadd.f32 %v5238_v30, %v5237_v39 }
0x1b2b   : > { %v5240_v50 = vsel %vm1067_vm13, %v5236_v35, 0.0 }
0x1b2c   : > { %v5241_v53 = vadd.f32 %v5240_v50, %v5239_v2 }
0x1b2e   : > { %v5242_v36 = vrot.slane %v5241_v53, 4 }
0x1b30   : > { %v5243_v34 = vadd.f32 %v5242_v36, %v5241_v53  ;;  %v10441_v36 = vld [vmem:[%s13373_s5 + $0x8] ss:$0 sm:$0xff] }
0x1b32   : > { %v5244_v7 = vrot.slane %v5243_v34, 2 }
0x1b34   : > { %v5245_v51 = vadd.f32 %v5244_v7, %v5243_v34 }
0x1b36   : > { %v5246_v3 = vrot.slane %v5245_v51, 1 }
0x1b38   : > { %v5247_v9 = vadd.f32 %v5246_v3, %v5245_v51 }
0x1b3a   : > { %v5249_v21 = vmul.f32 %v14056_v41, %v5247_v9  ;;  %v5248_v16 = vmul.f32 %v14062_v5, %v5247_v9  ;;  %v5250_v11 = vmul.f32 %v14070_v25, %v5247_v9 }
0x1b3c   : > { %v5254_v59 = vsel %vm759_vm2, %v5249_v21, 0.0  ;;  %v5251_v29 = vsel %vm759_vm2, %v5248_v16, 0.0  ;;  %v5257_v37 = vsel %vm1067_vm13, %v5250_v11, 0.0 }
0x1b3d   : > { %5255 = vadd.xlane.f32.xlu0 %v5254_v59  ;;  %5252 = vadd.xlane.f32.xlu1 %v5251_v29 }
0x1b41   : > { %5258 = vadd.xlane.f32.xlu1 %v5257_v37 }
0x1bca   : > { %v5256_v45 = vpop.xlane.xlu0 %5255  ;;  %v5253_v48 = vpop.xlane.xlu1 %5252 }
0x1bcb   : > { %12493 = vrcp.f32 %v5256_v45 }
0x1bcc   : > { %12495 = vrcp.f32 %v5253_v48 }
0x1bce   : > { %v5259_v49 = vpop.xlane.xlu1 %5258 }
0x1bcf   : > { %12497 = vrcp.f32 %v5259_v49 }
0x1bd5   : > { %v12494_v55 = vpop.eup %12493 }
0x1bd6   : > { %v12496_v56 = vpop.eup %12495  ;;  %v5264_v40 = vmul.f32 %v12494_v55, %v12488_v17 }
0x1bd7   : > { %v5263_v32 = vmul.f32 %v12496_v56, %v12490_v18 }
0x1bd8   : > { %v5267_v42 = vmul.f32 %v5264_v40, %v14156_v4 }
0x1bd9   : > { %v12498_v63 = vpop.eup %12497  ;;  %v5266_v58 = vmul.f32 %v5263_v32, %v14154_v31  ;;  %v10764_v31 = vld [vmem:[%s13163_s9 + $0x40] sm:$0xff]  }
0x1bda   : > { %v5265_v61 = vmul.f32 %v12498_v63, %v12492_v33 }
0x1bdb   : > { %v12097_v13 = vpack.c.bf16 %v5267_v42, %v5266_v58 }
0x1bdc   : > { %v5268_v62 = vmul.f32 %v5265_v61, %v14160_v26 }
0x1bdd   : > { %12098 = vmatpush3.bf16.msra.mxu0 %v12097_v13 }
0x1bde   : > { %11574 = vmatprep.subr.mxu0 %v12848_v1 }
0x1be1   : > { %11575 = vmatpush3.msk.msra.mxu0 %vm1055_vm9, %v5268_v62 }
0x1be2   : > { %11577 = vmatmul.mubr.msk.f32.vlgmr.msra.gmra.mrb[88].mxu0 %vm1677_vm14, %v13487_v27  ;;  %12099 = vmatprep.subr.bf16.mxu0 %v12846_v0 }
0x1be3   : > { %12101 = vmatpush3.bf16.msra.mxu0 %v10763_v52  ;;  %11583 = vmatprep.mubr.msk.f32.mxu0 %vm12847_vm0, %v12848_v1 }
0x1be4   : > { %12102 = vmatprep.subr.bf16.mxu0 %v12846_v0 }
0x1be6   : > { %11584 = vmatmul.mubr.msk.f32.vlgmr.msra.gmra.mrb[90].mxu0 %vm609_vm1, %v14107_v19 }
0x1be7   : > { %12104 = vmatpush3.bf16.msra.mxu0 %v10764_v31  ;;  %11590 = vmatprep.mubr.msk.f32.mxu0 %vm12847_vm0, %v12848_v1 }
0x1be8   : > { %11604 = vmatprep.subr.mxu0 %v12848_v1 }
0x1bea   : > { %11591 = vmatmul.mubr.msk.f32.vlgmr.msra.gmra.mrb[92].mxu0 %vm609_vm1, %v14107_v19 }
0x1beb   : > { %11606 = vmatprep.mubr.msk.f32.mxu0 %vm12847_vm0, %v12848_v1 }
0x1cb5   : > { %v5338_v4 = vpop.f32.mrb[88].mxu0 }
0x1cb6   : > { %v14247_v26 = vadd.f32 %v5338_v4, %v14119_v54  ;;  %v11578_v57 = vpop.f32.mrb[89].mxu0  ;;  %v14261_v54 = vld [vmem:[%s15192_s2 + $0x8] sm:$0xff] }
0x1cb9   : > { %v5434_v44 = vpop.f32.mrb[90].mxu0 }
0x1cba   : > { %v5435_v6 = vadd.f32 %v10428_v22, %v5434_v44  ;;  %v11585_v47 = vpop.f32.mrb[91].mxu0 }
0x1cbc   : > { %11605 = vmatpush3.msra.mxu0 %v5435_v6 }
0x1cbd   : > { %v5510_v15 = vpop.f32.mrb[92].mxu0  ;;  %11607 = vmatmul.mubr.msk.f32.vlgmr.msra.gmra.mrb[94].mxu0 %vm759_vm2, %v14126_v46  ;;  %12105 = vmatprep.subr.bf16.mxu0 %v12846_v0 }
0x1cbe   : > { %v5511_v17 = vadd.f32 %v10430_v12, %v5510_v15  ;;  %v11592_v18 = vpop.f32.mrb[93].mxu0  ;;  %11609 = vmatprep.mubr.msk.f32.mxu0 %vm12847_vm0, %v12848_v1 }
0x1cc0   : > { %11616 = vmatpush3.msra.mxu1 %v5511_v17 }
0x1cc1   : > { %11618 = vmatmul.mubr.msk.f32.vlgmr.msra.gmra.mrb[54].mxu1 %vm759_vm2, %v14062_v5  ;;  %11610 = vmatmul.mubr.msk.f32.gmra.mrb[96].mxu0 %vm759_vm2, %v14261_v54 }
0x1cc2   : > { %11620 = vmatprep.mubr.msk.f32.mxu1 %vm12847_vm0, %v12848_v1  ;;  %11612 = vmatprep.mubr.msk.f32.mxu0 %vm12847_vm0, %v12848_v1 }
0x1cc3   : > { %11649 = vmatprep.subr.mxu1 %v12848_v1 }
0x1cc5   : > { %11621 = vmatmul.mubr.msk.f32.gmra.mrb[56].mxu1 %vm759_vm2, %v14056_v41  ;;  %11613 = vmatmul.mubr.msk.f32.gmra.mrb[98].mxu0 %vm759_vm2, %v14275_v10 }
0x1cc6   : > { %11623 = vmatprep.mubr.msk.f32.mxu1 %vm12847_vm0, %v12848_v1  ;;  %11632 = vmatprep.mubr.msk.f32.mxu0 %vm12847_vm0, %v12848_v1 }
0x1cc9   : > { %11624 = vmatmul.mubr.msk.f32.gmra.mrb[58].mxu1 %vm759_vm2, %v14070_v25 }
0x1cca   : > { %11651 = vmatprep.mubr.msk.f32.mxu1 %vm12847_vm0, %v12848_v1 }
0x1d90   : > { %v14287_v28 = vpop.f32.mrb[94].mxu0 }
0x1d91   : > { %v11608_v30 = vpop.f32.mrb[95].mxu0 }
0x1d94   : > { %v5740_v33 = vpop.f32.mrb[54].mxu1  ;;  %v14289_v39 = vpop.f32.mrb[96].mxu0 }
0x1d95   : > { %v5754_v35 = vadd.f32 %v5740_v33, %v14287_v28  ;;  %v11619_v2 = vpop.f32.mrb[55].mxu1  ;;  %v11611_v50 = vpop.f32.mrb[97].mxu0 }
0x1d97   : > { %v5763_v53 = vmul.f32 0.2, %v5754_v35  ;;  %vm5760_vm6 = vcmp.gt.f32.partialorder %v5754_v35, 0.0 }
0x1d98   : > { %v5745_v34 = vpop.f32.mrb[56].mxu1  ;;  %v14293_v7 = vpop.f32.mrb[98].mxu0 }
0x1d99   : > { %v5755_v51 = vadd.f32 %v5745_v34, %v14289_v39  ;;  %v11622_v3 = vpop.f32.mrb[57].mxu1  ;;  %v5766_v9 = vsel %vm5760_vm6, %v5754_v35, %v5763_v53  ;;  %v11614_v21 = vpop.f32.mrb[99].mxu0 }
0x1d9a   : > { %v5775_v16 = vmul.f32 %v10441_v36, %v5766_v9 }
0x1d9b   : > { %v5764_v59 = vmul.f32 0.2, %v5755_v51  ;;  %vm5761_vm7 = vcmp.gt.f32.partialorder %v5755_v51, 0.0 }
0x1d9c   : > { %v5750_v29 = vpop.f32.mrb[58].mxu1  ;;  %5778 = vadd.xlane.f32.xlu0 %v5775_v16 }
0x1d9d   : > { %v5756_v11 = vadd.f32 %v5750_v29, %v14293_v7  ;;  %v11625_v37 = vpop.f32.mrb[59].mxu1  ;;  %v5767_v60 = vsel %vm5761_vm7, %v5755_v51, %v5764_v59 }
0x1d9e   : > { %v5776_v45 = vmul.f32 %v10441_v36, %v5767_v60 }
0x1d9f   : > { %vm5762_vm8 = vcmp.gt.f32.partialorder %v5756_v11, 0.0  ;;  %v5765_v48 = vmul.f32 0.2, %v5756_v11 }
0x1da0   : > { %5780 = vadd.xlane.f32.xlu1 %v5776_v45 }
0x1da1   : > { %v5768_v49 = vsel %vm5762_vm8, %v5756_v11, %v5765_v48 }
0x1da2   : > { %v5777_v55 = vmul.f32 %v10441_v36, %v5768_v49 }
0x1da4   : > { %v5782_v56 = vsel %vm1055_vm9, %v5777_v55, 0.0 }
0x1da5   : > { %5783 = vadd.xlane.f32.xlu0 %v5782_v56 }
0x1e29   : > { %v5779_v40 = vpop.xlane.xlu0 %5778 }
0x1e2a   : > { %v5785_v63 = vsel %vm1059_vm11, %v5779_v40, -1e+30 }
0x1e2b   : > { %v5788_v61 = vsel %vm759_vm2, %v5785_v63, -inf }
0x1e2d   : > { %v5781_v32 = vpop.xlane.xlu1 %5780 }
0x1e2e   : > { %v5786_v42 = vsel %vm1060_vm10, %v5781_v32, -1e+30 }
0x1e2f   : > { %v5789_v58 = vsel %vm759_vm2, %v5786_v42, -inf }
0x1e30   : > { %v5791_v62 = vmax.f32 %v5788_v61, %v5789_v58 }
0x1e32   : > { %v5784_v13 = vpop.xlane.xlu0 %5783 }
0x1e33   : > { %v5787_v52 = vsel %vm1061_vm12, %v5784_v13, -1e+30 }
0x1e34   : > { %v5790_v31 = vsel %vm1067_vm13, %v5787_v52, -inf }
0x1e35   : > { %v5792_v4 = vmax.f32 %v5791_v62, %v5790_v31 }
0x1e37   : > { %v5793_v57 = vrot.slane %v5792_v4, 4 }
0x1e39   : > { %v5794_v22 = vmax.f32 %v5792_v4, %v5793_v57 }
0x1e3b   : > { %v5795_v44 = vrot.slane %v5794_v22, 2 }
0x1e3d   : > { %v5796_v6 = vmax.f32 %v5794_v22, %v5795_v44  ;;  %v5941_v22 = vunpack.c.h.bf16 %v14193_v38 }
0x1e3f   : > { %v5797_v47 = vrot.slane %v5796_v6, 1  ;;  %11650 = vmatpush3.msra.mxu1 %v5941_v22 }
0x1e40   : > { %11652 = vmatmul.mubr.msk.f32.vlgmr.msra.gmra.mrb[60].mxu1 %vm759_vm2, %v14199_v14  ;;  %11671 = vmatprep.subr.mxu1 %v12848_v1 }
0x1e41   : > { %v5798_v12 = vmax.f32 %v5796_v6, %v5797_v47  ;;  %11654 = vmatprep.mubr.msk.f32.mxu1 %vm12847_vm0, %v12848_v1 }
0x1e43   : > { %v5800_v15 = vmul.f32 %v14056_v41, %v5798_v12  ;;  %v5799_v17 = vmul.f32 %v14062_v5, %v5798_v12  ;;  %v5801_v33 = vmul.f32 %v14070_v25, %v5798_v12 }
0x1e44   : > { %11655 = vmatmul.mubr.msk.f32.gmra.mrb[62].mxu1 %vm759_vm2, %v14209_v43 }
0x1e45   : > { %v5805_v18 = vsel %vm759_vm2, %v5800_v15, 0.0  ;;  %v5802_v30 = vsel %vm759_vm2, %v5799_v17, 0.0  ;;  %v5808_v35 = vsel %vm1067_vm13, %v5801_v33, 0.0  ;;  %11657 = vmatprep.mubr.msk.f32.mxu1 %vm12847_vm0, %v12848_v1 }
0x1e46   : > { %5806 = vadd.xlane.f32.xlu0 %v5805_v18  ;;  %5803 = vadd.xlane.f32.xlu1 %v5802_v30 }
0x1e48   : > { %11658 = vmatmul.mubr.msk.f32.gmra.mrb[64].mxu1 %vm759_vm2, %v14218_v8 }
0x1e49   : > { %11673 = vmatprep.mubr.msk.f32.mxu1 %vm12847_vm0, %v12848_v1 }
0x1e4a   : > { %5809 = vadd.xlane.f32.xlu1 %v5808_v35 }
0x1ed3   : > { %v5807_v2 = vpop.xlane.xlu0 %5806  ;;  %v5804_v50 = vpop.xlane.xlu1 %5803 }
0x1ed4   : > { %v5812_v53 = vsub.f32 %v5781_v32, %v5807_v2  ;;  %v5811_v36 = vsub.f32 %v5779_v40, %v5804_v50 }
0x1ed6   : > { %v5816_v34 = vmul.f32 1.442695, %v5812_v53  ;;  %v5814_v51 = vmul.f32 1.442695, %v5811_v36  ;;  %v10765_v53 = vld [vmem:[%s13156_s17 + $0x48] sm:$0xff]  }
0x1ed7   : > { %v5810_v3 = vpop.xlane.xlu1 %5809 }
0x1ed8   : > { %12499 = vpow2.f32 %v5816_v34  ;;  %v5813_v9 = vsub.f32 %v5784_v13, %v5810_v3  ;;  %v10452_v34 = vld [vmem:[%s13231_s20 + $0x9] ss:$0 sm:$0xff] }
0x1ed9   : > { %12501 = vpow2.f32 %v5814_v51 }
0x1eda   : > { %v5818_v21 = vmul.f32 1.442695, %v5813_v9 }
0x1edc   : > { %12503 = vpow2.f32 %v5818_v21  ;;  %v10454_v21 = vld [vmem:[%s13238_s24 + $0x9] ss:$0 sm:$0xff] }
0x1ee2   : > { %v12500_v16 = vpop.eup %12499 }
0x1ee3   : > { %v12502_v59 = vpop.eup %12501  ;;  %v5821_v29 = vmul.f32 %v14056_v41, %v12500_v16 }
0x1ee4   : > { %v5820_v11 = vmul.f32 %v14062_v5, %v12502_v59 }
0x1ee5   : > { %v5824_v37 = vsel %vm759_vm2, %v5821_v29, 0.0 }
0x1ee6   : > { %v12504_v60 = vpop.eup %12503  ;;  %v5823_v45 = vsel %vm759_vm2, %v5820_v11, 0.0 }
0x1ee7   : > { %v5822_v48 = vmul.f32 %v14070_v25, %v12504_v60  ;;  %v5825_v49 = vadd.f32 %v5824_v37, %v5823_v45 }
0x1ee9   : > { %v5826_v55 = vsel %vm1067_vm13, %v5822_v48, 0.0 }
0x1eea   : > { %v5827_v56 = vadd.f32 %v5826_v55, %v5825_v49 }
0x1eec   : > { %v5828_v40 = vrot.slane %v5827_v56, 4 }
0x1eee   : > { %v5829_v32 = vadd.f32 %v5828_v40, %v5827_v56  ;;  %v10465_v56 = vld [vmem:[%s13373_s5 + $0x9] ss:$0 sm:$0xff] }
0x1ef0   : > { %v5830_v42 = vrot.slane %v5829_v32, 2 }
0x1ef2   : > { %v5831_v63 = vadd.f32 %v5830_v42, %v5829_v32 }
0x1ef4   : > { %v5832_v58 = vrot.slane %v5831_v63, 1 }
0x1ef6   : > { %v5833_v61 = vadd.f32 %v5832_v58, %v5831_v63 }
0x1ef8   : > { %v5835_v13 = vmul.f32 %v14056_v41, %v5833_v61  ;;  %v5834_v62 = vmul.f32 %v14062_v5, %v5833_v61  ;;  %v5836_v4 = vmul.f32 %v14070_v25, %v5833_v61 }
0x1efa   : > { %v5840_v52 = vsel %vm759_vm2, %v5835_v13, 0.0  ;;  %v5837_v31 = vsel %vm759_vm2, %v5834_v62, 0.0  ;;  %v5843_v57 = vsel %vm1067_vm13, %v5836_v4, 0.0 }
0x1efb   : > { %5841 = vadd.xlane.f32.xlu1 %v5840_v52  ;;  %5838 = vadd.xlane.f32.xlu0 %v5837_v31 }
0x1eff   : > { %5844 = vadd.xlane.f32.xlu0 %v5843_v57 }
0x1f88   : > { %v5842_v38 = vpop.xlane.xlu1 %5841  ;;  %v5839_v44 = vpop.xlane.xlu0 %5838 }
0x1f89   : > { %12505 = vrcp.f32 %v5842_v38 }
0x1f8a   : > { %12507 = vrcp.f32 %v5839_v44 }
0x1f8c   : > { %v5845_v6 = vpop.xlane.xlu0 %5844 }
0x1f8d   : > { %12509 = vrcp.f32 %v5845_v6 }
0x1f93   : > { %v12506_v47 = vpop.eup %12505 }
0x1f94   : > { %v12508_v12 = vpop.eup %12507  ;;  %v5850_v15 = vmul.f32 %v12506_v47, %v12500_v16 }
0x1f95   : > { %v5849_v17 = vmul.f32 %v12508_v12, %v12502_v59 }
0x1f96   : > { %v5853_v18 = vmul.f32 %v5850_v15, %v14289_v39 }
0x1f97   : > { %v12510_v30 = vpop.eup %12509  ;;  %v5852_v33 = vmul.f32 %v5849_v17, %v14287_v28  ;;  %v10766_v28 = vld [vmem:[%s13163_s9 + $0x48] sm:$0xff]  }
0x1f98   : > { %v5851_v35 = vmul.f32 %v12510_v30, %v12504_v60 }
0x1f99   : > { %v12106_v2 = vpack.c.bf16 %v5853_v18, %v5852_v33 }
0x1f9a   : > { %v5854_v50 = vmul.f32 %v5851_v35, %v14293_v7 }
0x1f9b   : > { %12107 = vmatpush3.bf16.msra.mxu0 %v12106_v2 }
0x1f9c   : > { %11630 = vmatprep.subr.mxu0 %v12848_v1 }
0x1f9f   : > { %11631 = vmatpush3.msk.msra.mxu0 %vm1055_vm9, %v5854_v50 }
0x1fa0   : > { %11633 = vmatmul.mubr.msk.f32.vlgmr.msra.gmra.mrb[100].mxu0 %vm1677_vm14, %v13487_v27  ;;  %12108 = vmatprep.subr.bf16.mxu0 %v12846_v0 }
0x1fa1   : > { %12110 = vmatpush3.bf16.msra.mxu0 %v10765_v53  ;;  %11639 = vmatprep.mubr.msk.f32.mxu0 %vm12847_vm0, %v12848_v1 }
0x1fa2   : > { %12111 = vmatprep.subr.bf16.mxu0 %v12846_v0 }
0x1fa4   : > { %11640 = vmatmul.mubr.msk.f32.vlgmr.msra.gmra.mrb[102].mxu0 %vm609_vm1, %v14107_v19 }
0x1fa5   : > { %12113 = vmatpush3.bf16.msra.mxu0 %v10766_v28  ;;  %11646 = vmatprep.mubr.msk.f32.mxu0 %vm12847_vm0, %v12848_v1 }
0x1fa6   : > { %11660 = vmatprep.subr.mxu0 %v12848_v1 }
0x1fa8   : > { %11647 = vmatmul.mubr.msk.f32.vlgmr.msra.gmra.mrb[104].mxu0 %vm609_vm1, %v14107_v19 }
0x1fa9   : > { %11662 = vmatprep.mubr.msk.f32.mxu0 %vm12847_vm0, %v12848_v1 }
0x2073   : > { %v5924_v39 = vpop.f32.mrb[100].mxu0 }
0x2074   : > { %v14362_v7 = vadd.f32 %v5924_v39, %v14247_v26  ;;  %v11634_v36 = vpop.f32.mrb[101].mxu0 }
0x2077   : > { %v6020_v51 = vpop.f32.mrb[102].mxu0 }
0x2078   : > { %v6021_v3 = vadd.f32 %v10452_v34, %v6020_v51  ;;  %v11641_v9 = vpop.f32.mrb[103].mxu0 }
0x207a   : > { %11661 = vmatpush3.msra.mxu0 %v6021_v3 }
0x207b   : > { %v6096_v16 = vpop.f32.mrb[104].mxu0  ;;  %11663 = vmatmul.mubr.msk.f32.vlgmr.msra.gmra.mrb[106].mxu0 %vm759_vm2, %v14126_v46  ;;  %12114 = vmatprep.subr.bf16.mxu0 %v12846_v0 }
0x207c   : > { %v6097_v59 = vadd.f32 %v10454_v21, %v6096_v16  ;;  %v11648_v29 = vpop.f32.mrb[105].mxu0  ;;  %11665 = vmatprep.mubr.msk.f32.mxu0 %vm12847_vm0, %v12848_v1 }
0x207e   : > { %11672 = vmatpush3.msra.mxu1 %v6097_v59 }
0x207f   : > { %11674 = vmatmul.mubr.msk.f32.vlgmr.msra.gmra.mrb[60].mxu1 %vm759_vm2, %v14062_v5  ;;  %11666 = vmatmul.mubr.msk.f32.gmra.mrb[108].mxu0 %vm759_vm2, %v14261_v54 }
0x2080   : > { %11676 = vmatprep.mubr.msk.f32.mxu1 %vm12847_vm0, %v12848_v1  ;;  %11668 = vmatprep.mubr.msk.f32.mxu0 %vm12847_vm0, %v12848_v1 }
0x2081   : > { %11705 = vmatprep.subr.mxu1 %v12848_v1 }
0x2083   : > { %11677 = vmatmul.mubr.msk.f32.gmra.mrb[62].mxu1 %vm759_vm2, %v14056_v41  ;;  %11669 = vmatmul.mubr.msk.f32.gmra.mrb[110].mxu0 %vm759_vm2, %v14275_v10 }
0x2084   : > { %11679 = vmatprep.mubr.msk.f32.mxu1 %vm12847_vm0, %v12848_v1  ;;  %11688 = vmatprep.mubr.msk.f32.mxu0 %vm12847_vm0, %v12848_v1 }
0x2087   : > { %11680 = vmatmul.mubr.msk.f32.gmra.mrb[64].mxu1 %vm759_vm2, %v14070_v25 }
0x2088   : > { %11707 = vmatprep.mubr.msk.f32.mxu1 %vm12847_vm0, %v12848_v1 }
0x214e   : > { %v14392_v26 = vpop.f32.mrb[106].mxu0 }
0x214f   : > { %v11664_v11 = vpop.f32.mrb[107].mxu0 }
0x2152   : > { %v6326_v37 = vpop.f32.mrb[60].mxu1  ;;  %v14394_v60 = vpop.f32.mrb[108].mxu0 }
0x2153   : > { %v6340_v45 = vadd.f32 %v6326_v37, %v14392_v26  ;;  %v11675_v48 = vpop.f32.mrb[61].mxu1  ;;  %v11667_v49 = vpop.f32.mrb[109].mxu0 }
0x2155   : > { %vm6346_vm15 = vcmp.gt.f32.partialorder %v6340_v45, 0.0  ;;  %v6349_v55 = vmul.f32 0.2, %v6340_v45 }
0x2156   : > { %v6331_v40 = vpop.f32.mrb[62].mxu1  ;;  %v14398_v32 = vpop.f32.mrb[110].mxu0 }
0x2157   : > { %v6341_v42 = vadd.f32 %v6331_v40, %v14394_v60  ;;  %v11678_v63 = vpop.f32.mrb[63].mxu1  ;;  %v6352_v58 = vsel %vm6346_vm15, %v6340_v45, %v6349_v55  ;;  %v11670_v61 = vpop.f32.mrb[111].mxu0 }
0x2158   : > { %v6361_v13 = vmul.f32 %v10465_v56, %v6352_v58 }
0x2159   : > { %v6350_v62 = vmul.f32 0.2, %v6341_v42  ;;  %vm6347_vm3 = vcmp.gt.f32.partialorder %v6341_v42, 0.0 }
0x215a   : > { %v6336_v52 = vpop.f32.mrb[64].mxu1  ;;  %6364 = vadd.xlane.f32.xlu1 %v6361_v13 }
0x215b   : > { %v6342_v31 = vadd.f32 %v6336_v52, %v14398_v32  ;;  %v11681_v4 = vpop.f32.mrb[65].mxu1  ;;  %v6353_v57 = vsel %vm6347_vm3, %v6341_v42, %v6350_v62 }
0x215c   : > { %v6362_v22 = vmul.f32 %v10465_v56, %v6353_v57 }
0x215d   : > { %vm6348_vm4 = vcmp.gt.f32.partialorder %v6342_v31, 0.0  ;;  %v6351_v38 = vmul.f32 0.2, %v6342_v31 }
0x215e   : > { %6366 = vadd.xlane.f32.xlu0 %v6362_v22 }
0x215f   : > { %v6354_v44 = vsel %vm6348_vm4, %v6342_v31, %v6351_v38 }
0x2160   : > { %v6363_v6 = vmul.f32 %v10465_v56, %v6354_v44 }
0x2162   : > { %v6368_v47 = vsel %vm1055_vm9, %v6363_v6, 0.0 }
0x2163   : > { %6369 = vadd.xlane.f32.xlu1 %v6368_v47 }
0x21e7   : > { %v6365_v12 = vpop.xlane.xlu1 %6364 }
0x21e8   : > { %v6371_v18 = vsel %vm1059_vm11, %v6365_v12, -1e+30 }
0x21e9   : > { %v6374_v33 = vsel %vm759_vm2, %v6371_v18, -inf }
0x21eb   : > { %v6367_v15 = vpop.xlane.xlu0 %6366 }
0x21ec   : > { %v6372_v17 = vsel %vm1060_vm10, %v6367_v15, -1e+30 }
0x21ed   : > { %v6375_v30 = vsel %vm759_vm2, %v6372_v17, -inf }
0x21ee   : > { %v6377_v2 = vmax.f32 %v6374_v33, %v6375_v30 }
0x21f0   : > { %v6370_v35 = vpop.xlane.xlu1 %6369 }
0x21f1   : > { %v6373_v50 = vsel %vm1061_vm12, %v6370_v35, -1e+30 }
0x21f2   : > { %v6376_v53 = vsel %vm1067_vm13, %v6373_v50, -inf }
0x21f3   : > { %v6378_v28 = vmax.f32 %v6377_v2, %v6376_v53 }
0x21f5   : > { %v6379_v39 = vrot.slane %v6378_v28, 4 }
0x21f7   : > { %v6380_v36 = vmax.f32 %v6378_v28, %v6379_v39  ;;  %v14431_v39 = vld [vmem:[%s13166_s10 + $0x28] sm:$0xff]  }
0x21f9   : > { %v6381_v34 = vrot.slane %v6380_v36, 2 }
0x21fb   : > { %v6382_v51 = vmax.f32 %v6380_v36, %v6381_v34  ;;  %v6527_v36 = vunpack.c.l.bf16 %v14431_v39 }
0x21fd   : > { %v6383_v3 = vrot.slane %v6382_v51, 1  ;;  %11706 = vmatpush3.msra.mxu1 %v6527_v36 }
0x21fe   : > { %11708 = vmatmul.mubr.msk.f32.vlgmr.msra.gmra.mrb[66].mxu1 %vm759_vm2, %v14199_v14  ;;  %11727 = vmatprep.subr.mxu1 %v12848_v1 }
0x21ff   : > { %v6384_v9 = vmax.f32 %v6382_v51, %v6383_v3  ;;  %11710 = vmatprep.mubr.msk.f32.mxu1 %vm12847_vm0, %v12848_v1 }
0x2201   : > { %v6386_v21 = vmul.f32 %v14056_v41, %v6384_v9  ;;  %v6385_v16 = vmul.f32 %v14062_v5, %v6384_v9  ;;  %v6387_v11 = vmul.f32 %v14070_v25, %v6384_v9 }
0x2202   : > { %11711 = vmatmul.mubr.msk.f32.gmra.mrb[68].mxu1 %vm759_vm2, %v14209_v43 }
0x2203   : > { %v6391_v59 = vsel %vm759_vm2, %v6386_v21, 0.0  ;;  %v6388_v29 = vsel %vm759_vm2, %v6385_v16, 0.0  ;;  %v6394_v37 = vsel %vm1067_vm13, %v6387_v11, 0.0  ;;  %11713 = vmatprep.mubr.msk.f32.mxu1 %vm12847_vm0, %v12848_v1 }
0x2204   : > { %6392 = vadd.xlane.f32.xlu1 %v6391_v59  ;;  %6389 = vadd.xlane.f32.xlu0 %v6388_v29 }
0x2206   : > { %11714 = vmatmul.mubr.msk.f32.gmra.mrb[70].mxu1 %vm759_vm2, %v14218_v8 }
0x2207   : > { %11729 = vmatprep.mubr.msk.f32.mxu1 %vm12847_vm0, %v12848_v1 }
0x2208   : > { %6395 = vadd.xlane.f32.xlu0 %v6394_v37 }
0x2291   : > { %v6393_v45 = vpop.xlane.xlu1 %6392  ;;  %v6390_v48 = vpop.xlane.xlu0 %6389 }
0x2292   : > { %v6398_v49 = vsub.f32 %v6367_v15, %v6393_v45  ;;  %v6397_v55 = vsub.f32 %v6365_v12, %v6390_v48  ;;  %v10767_v45 = vld [vmem:[%s13156_s17 + $0x50] sm:$0xff]  }
0x2294   : > { %v6402_v56 = vmul.f32 1.442695, %v6398_v49  ;;  %v6400_v40 = vmul.f32 1.442695, %v6397_v55  ;;  %v10476_v49 = vld [vmem:[%s13231_s20 + $0xa] ss:$0 sm:$0xff] }
0x2295   : > { %v6396_v42 = vpop.xlane.xlu0 %6395 }
0x2296   : > { %12511 = vpow2.f32 %v6402_v56  ;;  %v6399_v63 = vsub.f32 %v6370_v35, %v6396_v42  ;;  %v10478_v42 = vld [vmem:[%s13238_s24 + $0xa] ss:$0 sm:$0xff] }
0x2297   : > { %12513 = vpow2.f32 %v6400_v40 }
0x2298   : > { %v6404_v58 = vmul.f32 1.442695, %v6399_v63 }
0x229a   : > { %12515 = vpow2.f32 %v6404_v58 }
0x22a0   : > { %v12512_v61 = vpop.eup %12511 }
0x22a1   : > { %v12514_v13 = vpop.eup %12513  ;;  %v6407_v62 = vmul.f32 %v14056_v41, %v12512_v61 }
0x22a2   : > { %v6406_v52 = vmul.f32 %v14062_v5, %v12514_v13 }
0x22a3   : > { %v6410_v31 = vsel %vm759_vm2, %v6407_v62, 0.0 }
0x22a4   : > { %v12516_v4 = vpop.eup %12515  ;;  %v6409_v57 = vsel %vm759_vm2, %v6406_v52, 0.0 }
0x22a5   : > { %v6408_v22 = vmul.f32 %v14070_v25, %v12516_v4  ;;  %v6411_v38 = vadd.f32 %v6410_v31, %v6409_v57 }
0x22a7   : > { %v6412_v44 = vsel %vm1067_vm13, %v6408_v22, 0.0 }
0x22a8   : > { %v6413_v6 = vadd.f32 %v6412_v44, %v6411_v38  ;;  %v10489_v44 = vld [vmem:[%s13373_s5 + $0xa] ss:$0 sm:$0xff] }
0x22aa   : > { %v6414_v47 = vrot.slane %v6413_v6, 4 }
0x22ac   : > { %v6415_v12 = vadd.f32 %v6414_v47, %v6413_v6 }
0x22ae   : > { %v6416_v15 = vrot.slane %v6415_v12, 2 }
0x22b0   : > { %v6417_v17 = vadd.f32 %v6416_v15, %v6415_v12 }
0x22b2   : > { %v6418_v18 = vrot.slane %v6417_v17, 1 }
0x22b4   : > { %v6419_v30 = vadd.f32 %v6418_v18, %v6417_v17 }
0x22b6   : > { %v6421_v33 = vmul.f32 %v14056_v41, %v6419_v30  ;;  %v6420_v35 = vmul.f32 %v14062_v5, %v6419_v30  ;;  %v6422_v53 = vmul.f32 %v14070_v25, %v6419_v30 }
0x22b8   : > { %v6426_v2 = vsel %vm759_vm2, %v6421_v33, 0.0  ;;  %v6423_v50 = vsel %vm759_vm2, %v6420_v35, 0.0  ;;  %v6429_v28 = vsel %vm1067_vm13, %v6422_v53, 0.0 }
0x22b9   : > { %6427 = vadd.xlane.f32.xlu0 %v6426_v2  ;;  %6424 = vadd.xlane.f32.xlu1 %v6423_v50 }
0x22bd   : > { %6430 = vadd.xlane.f32.xlu1 %v6429_v28 }
0x2346   : > { %v6428_v41 = vpop.xlane.xlu0 %6427  ;;  %v6425_v5 = vpop.xlane.xlu1 %6424 }
0x2347   : > { %12517 = vrcp.f32 %v6428_v41 }
0x2348   : > { %12519 = vrcp.f32 %v6425_v5 }
0x234a   : > { %v6431_v25 = vpop.xlane.xlu1 %6430 }
0x234b   : > { %12521 = vrcp.f32 %v6431_v25 }
0x2351   : > { %v12518_v34 = vpop.eup %12517 }
0x2352   : > { %v12520_v51 = vpop.eup %12519  ;;  %v6436_v3 = vmul.f32 %v12518_v34, %v12512_v61  ;;  %v14509_v61 = vld [vmem:[%s15263_s4 + $0x10] sm:$0xf] }
0x2353   : > { %v6435_v9 = vmul.f32 %v12520_v51, %v12514_v13 }
0x2354   : > { %v6439_v21 = vmul.f32 %v6436_v3, %v14394_v60 }
0x2355   : > { %v12522_v16 = vpop.eup %12521  ;;  %v6438_v59 = vmul.f32 %v6435_v9, %v14392_v26  ;;  %v10768_v26 = vld [vmem:[%s13163_s9 + $0x50] sm:$0xff]  }
0x2356   : > { %v6437_v29 = vmul.f32 %v12522_v16, %v12516_v4 }
0x2357   : > { %v12115_v11 = vpack.c.bf16 %v6439_v21, %v6438_v59 }
0x2358   : > { %v6440_v37 = vmul.f32 %v6437_v29, %v14398_v32 }
0x2359   : > { %12116 = vmatpush3.bf16.msra.mxu0 %v12115_v11 }
0x235a   : > { %11686 = vmatprep.subr.mxu0 %v12848_v1 }
0x235d   : > { %11687 = vmatpush3.msk.msra.mxu0 %vm1055_vm9, %v6440_v37 }
0x235e   : > { %11689 = vmatmul.mubr.msk.f32.vlgmr.msra.gmra.mrb[112].mxu0 %vm1677_vm14, %v13487_v27  ;;  %12117 = vmatprep.subr.bf16.mxu0 %v12846_v0 }
0x235f   : > { %12119 = vmatpush3.bf16.msra.mxu0 %v10767_v45  ;;  %11695 = vmatprep.mubr.msk.f32.mxu0 %vm12847_vm0, %v12848_v1 }
0x2360   : > { %12120 = vmatprep.subr.bf16.mxu0 %v12846_v0 }
0x2362   : > { %11696 = vmatmul.mubr.msk.f32.vlgmr.msra.gmra.mrb[114].mxu0 %vm609_vm1, %v14107_v19 }
0x2363   : > { %12122 = vmatpush3.bf16.msra.mxu0 %v10768_v26  ;;  %11702 = vmatprep.mubr.msk.f32.mxu0 %vm12847_vm0, %v12848_v1 }
0x2364   : > { %11716 = vmatprep.subr.mxu0 %v12848_v1 }
0x2366   : > { %11703 = vmatmul.mubr.msk.f32.vlgmr.msra.gmra.mrb[116].mxu0 %vm609_vm1, %v14107_v19 }
0x2367   : > { %11718 = vmatprep.mubr.msk.f32.mxu0 %vm12847_vm0, %v12848_v1 }
0x2431   : > { %v6510_v60 = vpop.f32.mrb[112].mxu0 }
0x2432   : > { %v14470_v32 = vadd.f32 %v6510_v60, %v14362_v7  ;;  %v11690_v48 = vpop.f32.mrb[113].mxu0  ;;  %v14482_v7 = vld [vmem:[%s15263_s4] sm:$0xff] }
0x2435   : > { %v6606_v55 = vpop.f32.mrb[114].mxu0 }
0x2436   : > { %v6607_v56 = vadd.f32 %v10476_v49, %v6606_v55  ;;  %v11697_v40 = vpop.f32.mrb[115].mxu0 }
0x2438   : > { %11717 = vmatpush3.msra.mxu0 %v6607_v56 }
0x2439   : > { %v6682_v63 = vpop.f32.mrb[116].mxu0  ;;  %11719 = vmatmul.mubr.msk.f32.vlgmr.msra.gmra.mrb[118].mxu0 %vm759_vm2, %v14126_v46  ;;  %12123 = vmatprep.subr.bf16.mxu0 %v12846_v0  ;;  %v14496_v46 = vld [vmem:[%s15263_s4 + $0x8] sm:$0xff] }
0x243a   : > { %v6683_v19 = vadd.f32 %v10478_v42, %v6682_v63  ;;  %v11704_v58 = vpop.f32.mrb[117].mxu0  ;;  %11721 = vmatprep.mubr.msk.f32.mxu0 %vm12847_vm0, %v12848_v1 }
0x243c   : > { %11728 = vmatpush3.msra.mxu1 %v6683_v19 }
0x243d   : > { %11730 = vmatmul.mubr.msk.f32.vlgmr.msra.gmra.mrb[66].mxu1 %vm759_vm2, %v14482_v7  ;;  %11722 = vmatmul.mubr.msk.f32.gmra.mrb[120].mxu0 %vm759_vm2, %v14261_v54 }
0x243e   : > { %11732 = vmatprep.mubr.msk.f32.mxu1 %vm12847_vm0, %v12848_v1  ;;  %11724 = vmatprep.mubr.msk.f32.mxu0 %vm12847_vm0, %v12848_v1 }
0x243f   : > { %11761 = vmatprep.subr.mxu1 %v12848_v1 }
0x2441   : > { %11733 = vmatmul.mubr.msk.f32.gmra.mrb[68].mxu1 %vm759_vm2, %v14496_v46  ;;  %11725 = vmatmul.mubr.msk.f32.gmra.mrb[122].mxu0 %vm759_vm2, %v14275_v10 }
0x2442   : > { %11735 = vmatprep.mubr.msk.f32.mxu1 %vm12847_vm0, %v12848_v1  ;;  %11744 = vmatprep.mubr.msk.f32.mxu0 %vm12847_vm0, %v12848_v1 }
0x2445   : > { %11736 = vmatmul.mubr.msk.f32.gmra.mrb[70].mxu1 %vm759_vm2, %v14509_v61 }
0x2446   : > { %11763 = vmatprep.mubr.msk.f32.mxu1 %vm12847_vm0, %v12848_v1 }
0x250c   : > { %v14515_v13 = vpop.f32.mrb[118].mxu0 }
0x250d   : > { %v11720_v62 = vpop.f32.mrb[119].mxu0 }
0x2510   : > { %v6912_v52 = vpop.f32.mrb[66].mxu1  ;;  %v14517_v31 = vpop.f32.mrb[120].mxu0 }
0x2511   : > { %v6926_v4 = vadd.f32 %v6912_v52, %v14515_v13  ;;  %v11731_v57 = vpop.f32.mrb[67].mxu1  ;;  %v11723_v22 = vpop.f32.mrb[121].mxu0 }
0x2513   : > { %v6935_v38 = vmul.f32 0.2, %v6926_v4  ;;  %vm6932_vm5 = vcmp.gt.f32.partialorder %v6926_v4, 0.0 }
0x2514   : > { %v6917_v6 = vpop.f32.mrb[68].mxu1  ;;  %v14521_v47 = vpop.f32.mrb[122].mxu0 }
0x2515   : > { %v6927_v12 = vadd.f32 %v6917_v6, %v14517_v31  ;;  %v11734_v15 = vpop.f32.mrb[69].mxu1  ;;  %v6938_v17 = vsel %vm6932_vm5, %v6926_v4, %v6935_v38  ;;  %v11726_v18 = vpop.f32.mrb[123].mxu0 }
0x2516   : > { %v6947_v30 = vmul.f32 %v10489_v44, %v6938_v17 }
0x2517   : > { %vm6933_vm6 = vcmp.gt.f32.partialorder %v6927_v12, 0.0  ;;  %v6936_v33 = vmul.f32 0.2, %v6927_v12 }
0x2518   : > { %v6922_v35 = vpop.f32.mrb[70].mxu1  ;;  %6950 = vadd.xlane.f32.xlu0 %v6947_v30 }
0x2519   : > { %v6928_v2 = vadd.f32 %v6922_v35, %v14521_v47  ;;  %v11737_v50 = vpop.f32.mrb[71].mxu1  ;;  %v6939_v53 = vsel %vm6933_vm6, %v6927_v12, %v6936_v33 }
0x251a   : > { %v6948_v28 = vmul.f32 %v10489_v44, %v6939_v53 }
0x251b   : > { %vm6934_vm7 = vcmp.gt.f32.partialorder %v6928_v2, 0.0  ;;  %v6937_v36 = vmul.f32 0.2, %v6928_v2 }
0x251c   : > { %6952 = vadd.xlane.f32.xlu1 %v6948_v28 }
0x251d   : > { %v6940_v41 = vsel %vm6934_vm7, %v6928_v2, %v6937_v36 }
0x251e   : > { %v6949_v5 = vmul.f32 %v10489_v44, %v6940_v41 }
0x2520   : > { %v6954_v25 = vsel %vm1055_vm9, %v6949_v5, 0.0 }
0x2521   : > { %6955 = vadd.xlane.f32.xlu0 %v6954_v25 }
0x25a5   : > { %v6951_v34 = vpop.xlane.xlu0 %6950 }
0x25a6   : > { %v6957_v9 = vsel %vm1059_vm11, %v6951_v34, -1e+30 }
0x25a7   : > { %v6960_v16 = vsel %vm759_vm2, %v6957_v9, -inf }
0x25a9   : > { %v6953_v51 = vpop.xlane.xlu1 %6952 }
0x25aa   : > { %v6958_v3 = vsel %vm1060_vm10, %v6953_v51, -1e+30 }
0x25ab   : > { %v6961_v21 = vsel %vm759_vm2, %v6958_v3, -inf }
0x25ac   : > { %v6963_v29 = vmax.f32 %v6960_v16, %v6961_v21 }
0x25ae   : > { %v6956_v59 = vpop.xlane.xlu0 %6955 }
0x25af   : > { %v6959_v11 = vsel %vm1061_vm12, %v6956_v59, -1e+30 }
0x25b0   : > { %v6962_v37 = vsel %vm1067_vm13, %v6959_v11, -inf }
0x25b1   : > { %v6964_v45 = vmax.f32 %v6963_v29, %v6962_v37 }
0x25b3   : > { %v6965_v26 = vrot.slane %v6964_v45, 4 }
0x25b5   : > { %v6966_v60 = vmax.f32 %v6964_v45, %v6965_v26  ;;  %v7113_v45 = vunpack.c.h.bf16 %v14431_v39 }
0x25b7   : > { %v6967_v48 = vrot.slane %v6966_v60, 2  ;;  %11762 = vmatpush3.msra.mxu1 %v7113_v45 }
0x25b8   : > { %11764 = vmatmul.mubr.msk.f32.vlgmr.msra.gmra.mrb[72].mxu1 %vm759_vm2, %v14199_v14  ;;  %11783 = vmatprep.subr.mxu1 %v12848_v1 }
0x25b9   : > { %v6968_v49 = vmax.f32 %v6966_v60, %v6967_v48  ;;  %11766 = vmatprep.mubr.msk.f32.mxu1 %vm12847_vm0, %v12848_v1 }
0x25bb   : > { %v6969_v55 = vrot.slane %v6968_v49, 1 }
0x25bc   : > { %11767 = vmatmul.mubr.msk.f32.gmra.mrb[74].mxu1 %vm759_vm2, %v14209_v43 }
0x25bd   : > { %v6970_v56 = vmax.f32 %v6968_v49, %v6969_v55  ;;  %11769 = vmatprep.mubr.msk.f32.mxu1 %vm12847_vm0, %v12848_v1 }
0x25bf   : > { %v6972_v40 = vmul.f32 %v14496_v46, %v6970_v56  ;;  %v6971_v42 = vmul.f32 %v14482_v7, %v6970_v56  ;;  %v6973_v58 = vmul.f32 %v14509_v61, %v6970_v56 }
0x25c0   : > { %11770 = vmatmul.mubr.msk.f32.gmra.mrb[76].mxu1 %vm759_vm2, %v14218_v8 }
0x25c1   : > { %v6977_v63 = vsel %vm759_vm2, %v6972_v40, 0.0  ;;  %v6974_v19 = vsel %vm759_vm2, %v6971_v42, 0.0  ;;  %v6980_v62 = vsel %vm1067_vm13, %v6973_v58, 0.0  ;;  %11785 = vmatprep.mubr.msk.f32.mxu1 %vm12847_vm0, %v12848_v1 }
0x25c2   : > { %6978 = vadd.xlane.f32.xlu0 %v6977_v63  ;;  %6975 = vadd.xlane.f32.xlu1 %v6974_v19  ;;  %v10769_v19 = vld [vmem:[%s13156_s17 + $0x58] sm:$0xff]  }
0x25c6   : > { %6981 = vadd.xlane.f32.xlu1 %v6980_v62 }
0x264f   : > { %v6979_v52 = vpop.xlane.xlu0 %6978  ;;  %v6976_v4 = vpop.xlane.xlu1 %6975 }
0x2650   : > { %v6984_v57 = vsub.f32 %v6953_v51, %v6979_v52  ;;  %v6983_v22 = vsub.f32 %v6951_v34, %v6976_v4  ;;  %v10500_v52 = vld [vmem:[%s13231_s20 + $0xb] ss:$0 sm:$0xff] }
0x2652   : > { %v6988_v38 = vmul.f32 1.442695, %v6984_v57  ;;  %v6986_v44 = vmul.f32 1.442695, %v6983_v22 }
0x2653   : > { %v6982_v6 = vpop.xlane.xlu1 %6981 }
0x2654   : > { %12523 = vpow2.f32 %v6988_v38  ;;  %v6985_v12 = vsub.f32 %v6956_v59, %v6982_v6  ;;  %v10502_v38 = vld [vmem:[%s13238_s24 + $0xb] ss:$0 sm:$0xff]  ;;  %v14599_v6 = vld [vmem:[%s15192_s2] sm:$0xff] }
0x2655   : > { %12525 = vpow2.f32 %v6986_v44 }
0x2656   : > { %v6990_v15 = vmul.f32 1.442695, %v6985_v12 }
0x2658   : > { %12527 = vpow2.f32 %v6990_v15 }
0x265e   : > { %v12524_v17 = vpop.eup %12523 }
0x265f   : > { %v12526_v18 = vpop.eup %12525  ;;  %v6993_v30 = vmul.f32 %v14496_v46, %v12524_v17 }
0x2660   : > { %v6992_v33 = vmul.f32 %v14482_v7, %v12526_v18 }
0x2661   : > { %v6996_v35 = vsel %vm759_vm2, %v6993_v30, 0.0 }
0x2662   : > { %v12528_v2 = vpop.eup %12527  ;;  %v6995_v50 = vsel %vm759_vm2, %v6992_v33, 0.0 }
0x2663   : > { %v6994_v53 = vmul.f32 %v14509_v61, %v12528_v2  ;;  %v6997_v28 = vadd.f32 %v6996_v35, %v6995_v50 }
0x2665   : > { %v6998_v36 = vsel %vm1067_vm13, %v6994_v53, 0.0 }
0x2666   : > { %v6999_v41 = vadd.f32 %v6998_v36, %v6997_v28 }
0x2668   : > { %v7000_v5 = vrot.slane %v6999_v41, 4 }
0x266a   : > { %v7001_v25 = vadd.f32 %v7000_v5, %v6999_v41 }
0x266c   : > { %v7002_v34 = vrot.slane %v7001_v25, 2 }
0x266e   : > { %v7003_v51 = vadd.f32 %v7002_v34, %v7001_v25 }
0x2670   : > { %v7004_v3 = vrot.slane %v7003_v51, 1 }
0x2672   : > { %v7005_v9 = vadd.f32 %v7004_v3, %v7003_v51 }
0x2674   : > { %v7007_v21 = vmul.f32 %v14496_v46, %v7005_v9  ;;  %v7006_v16 = vmul.f32 %v14482_v7, %v7005_v9  ;;  %v7008_v11 = vmul.f32 %v14509_v61, %v7005_v9 }
0x2676   : > { %v7012_v59 = vsel %vm759_vm2, %v7007_v21, 0.0  ;;  %v7009_v29 = vsel %vm759_vm2, %v7006_v16, 0.0  ;;  %v7015_v37 = vsel %vm1067_vm13, %v7008_v11, 0.0 }
0x2677   : > { %7013 = vadd.xlane.f32.xlu1 %v7012_v59  ;;  %7010 = vadd.xlane.f32.xlu0 %v7009_v29 }
0x267b   : > { %7016 = vadd.xlane.f32.xlu0 %v7015_v37 }
0x2704   : > { %v7014_v39 = vpop.xlane.xlu1 %7013  ;;  %v7011_v26 = vpop.xlane.xlu0 %7010 }
0x2705   : > { %12529 = vrcp.f32 %v7014_v39 }
0x2706   : > { %12531 = vrcp.f32 %v7011_v26 }
0x2708   : > { %v7017_v14 = vpop.xlane.xlu0 %7016 }
0x2709   : > { %12533 = vrcp.f32 %v7017_v14 }
0x270f   : > { %v12530_v60 = vpop.eup %12529 }
0x2710   : > { %v12532_v48 = vpop.eup %12531  ;;  %v7022_v49 = vmul.f32 %v12530_v60, %v12524_v17 }
0x2711   : > { %v7021_v43 = vmul.f32 %v12532_v48, %v12526_v18 }
0x2712   : > { %v7025_v55 = vmul.f32 %v7022_v49, %v14517_v31  ;;  %v14580_v31 = vld [vmem:[#allocation2] sm:$0xff] }
0x2713   : > { %v12534_v56 = vpop.eup %12533  ;;  %v7024_v8 = vmul.f32 %v7021_v43, %v14515_v13  ;;  %v10770_v13 = vld [vmem:[%s13163_s9 + $0x58] sm:$0xff]  }
0x2714   : > { %v7023_v40 = vmul.f32 %v12534_v56, %v12528_v2  ;;  %v10513_v2 = vld [vmem:[%s13373_s5 + $0xb] ss:$0 sm:$0xff] }
0x2715   : > { %v12124_v42 = vpack.c.bf16 %v7025_v55, %v7024_v8 }
0x2716   : > { %v7026_v63 = vmul.f32 %v7023_v40, %v14521_v47 }
0x2717   : > { %12125 = vmatpush3.bf16.msra.mxu0 %v12124_v42 }
0x2718   : > { %11742 = vmatprep.subr.mxu0 %v12848_v1 }
0x271b   : > { %11743 = vmatpush3.msk.msra.mxu0 %vm1055_vm9, %v7026_v63 }
0x271c   : > { %11745 = vmatmul.mubr.msk.f32.vlgmr.msra.gmra.mrb[124].mxu0 %vm1677_vm14, %v13487_v27  ;;  %12126 = vmatprep.subr.bf16.mxu0 %v12846_v0 }
0x271d   : > { %12128 = vmatpush3.bf16.msra.mxu0 %v10769_v19  ;;  %11751 = vmatprep.mubr.msk.f32.mxu0 %vm12847_vm0, %v12848_v1 }
0x271e   : > { %12129 = vmatprep.subr.bf16.mxu0 %v12846_v0 }
0x2720   : > { %11752 = vmatmul.mubr.msk.f32.vlgmr.msra.gmra.mrb[126].mxu0 %vm609_vm1, %v14580_v31 }
0x2721   : > { %12131 = vmatpush3.bf16.msra.mxu0 %v10770_v13  ;;  %11758 = vmatprep.mubr.msk.f32.mxu0 %vm12847_vm0, %v12848_v1 }
0x2722   : > { %11772 = vmatprep.subr.mxu0 %v12848_v1 }
0x2724   : > { %11759 = vmatmul.mubr.msk.f32.vlgmr.msra.gmra.mrb[128].mxu0 %vm609_vm1, %v14580_v31 }
0x2725   : > { %11774 = vmatprep.mubr.msk.f32.mxu0 %vm12847_vm0, %v12848_v1 }
0x27ef   : > { %v7096_v47 = vpop.f32.mrb[124].mxu0 }
0x27f0   : > { %v14592_v58 = vadd.f32 %v7096_v47, %v14470_v32  ;;  %v11746_v62 = vpop.f32.mrb[125].mxu0 }
0x27f3   : > { %v7192_v4 = vpop.f32.mrb[126].mxu0 }
0x27f4   : > { %v7193_v57 = vadd.f32 %v10500_v52, %v7192_v4  ;;  %v11753_v22 = vpop.f32.mrb[127].mxu0 }
0x27f6   : > { %11773 = vmatpush3.msra.mxu0 %v7193_v57 }
0x27f7   : > { %v7268_v44 = vpop.f32.mrb[128].mxu0  ;;  %11775 = vmatmul.mubr.msk.f32.vlgmr.msra.gmra.mrb[130].mxu0 %vm759_vm2, %v14599_v6  ;;  %12132 = vmatprep.subr.bf16.mxu0 %v12846_v0 }
0x27f8   : > { %v7269_v32 = vadd.f32 %v10502_v38, %v7268_v44  ;;  %v11760_v12 = vpop.f32.mrb[129].mxu0  ;;  %11777 = vmatprep.mubr.msk.f32.mxu0 %vm12847_vm0, %v12848_v1 }
0x27fa   : > { %11784 = vmatpush3.msra.mxu1 %v7269_v32 }
0x27fb   : > { %11786 = vmatmul.mubr.msk.f32.vlgmr.msra.gmra.mrb[72].mxu1 %vm759_vm2, %v14482_v7  ;;  %11778 = vmatmul.mubr.msk.f32.gmra.mrb[132].mxu0 %vm759_vm2, %v14261_v54 }
0x27fc   : > { %11788 = vmatprep.mubr.msk.f32.mxu1 %vm12847_vm0, %v12848_v1  ;;  %11780 = vmatprep.mubr.msk.f32.mxu0 %vm12847_vm0, %v12848_v1 }
0x27fd   : > { %11817 = vmatprep.subr.mxu1 %v12848_v1 }
0x27ff   : > { %11789 = vmatmul.mubr.msk.f32.gmra.mrb[74].mxu1 %vm759_vm2, %v14496_v46  ;;  %11781 = vmatmul.mubr.msk.f32.gmra.mrb[134].mxu0 %vm759_vm2, %v14275_v10 }
0x2800   : > { %11791 = vmatprep.mubr.msk.f32.mxu1 %vm12847_vm0, %v12848_v1  ;;  %11800 = vmatprep.mubr.msk.f32.mxu0 %vm12847_vm0, %v12848_v1 }
0x2803   : > { %11792 = vmatmul.mubr.msk.f32.gmra.mrb[76].mxu1 %vm759_vm2, %v14509_v61 }
0x2804   : > { %11819 = vmatprep.mubr.msk.f32.mxu1 %vm12847_vm0, %v12848_v1 }
0x28ca   : > { %v14627_v54 = vpop.f32.mrb[130].mxu0 }
0x28cb   : > { %v11776_v15 = vpop.f32.mrb[131].mxu0 }
0x28ce   : > { %v7498_v17 = vpop.f32.mrb[72].mxu1  ;;  %v14629_v18 = vpop.f32.mrb[132].mxu0 }
0x28cf   : > { %v7512_v10 = vadd.f32 %v7498_v17, %v14627_v54  ;;  %v11787_v30 = vpop.f32.mrb[73].mxu1  ;;  %v11779_v33 = vpop.f32.mrb[133].mxu0 }
0x28d1   : > { %vm7518_vm8 = vcmp.gt.f32.partialorder %v7512_v10, 0.0  ;;  %v7521_v35 = vmul.f32 0.2, %v7512_v10 }
0x28d2   : > { %v7503_v50 = vpop.f32.mrb[74].mxu1  ;;  %v14633_v53 = vpop.f32.mrb[134].mxu0 }
0x28d3   : > { %v7513_v28 = vadd.f32 %v7503_v50, %v14629_v18  ;;  %v11790_v36 = vpop.f32.mrb[75].mxu1  ;;  %v7524_v41 = vsel %vm7518_vm8, %v7512_v10, %v7521_v35  ;;  %v11782_v5 = vpop.f32.mrb[135].mxu0 }
0x28d4   : > { %v7533_v25 = vmul.f32 %v10513_v2, %v7524_v41 }
0x28d5   : > { %v7522_v34 = vmul.f32 0.2, %v7513_v28  ;;  %vm7519_vm15 = vcmp.gt.f32.partialorder %v7513_v28, 0.0 }
0x28d6   : > { %v7508_v51 = vpop.f32.mrb[76].mxu1  ;;  %7536 = vadd.xlane.f32.xlu1 %v7533_v25 }
0x28d7   : > { %v7514_v3 = vadd.f32 %v7508_v51, %v14633_v53  ;;  %v11793_v9 = vpop.f32.mrb[77].mxu1  ;;  %v7525_v21 = vsel %vm7519_vm15, %v7513_v28, %v7522_v34 }
0x28d8   : > { %v7534_v16 = vmul.f32 %v10513_v2, %v7525_v21 }
0x28d9   : > { %vm7520_vm3 = vcmp.gt.f32.partialorder %v7514_v3, 0.0  ;;  %v7523_v59 = vmul.f32 0.2, %v7514_v3 }
0x28da   : > { %7538 = vadd.xlane.f32.xlu0 %v7534_v16 }
0x28db   : > { %v7526_v29 = vsel %vm7520_vm3, %v7514_v3, %v7523_v59 }
0x28dc   : > { %v7535_v11 = vmul.f32 %v10513_v2, %v7526_v29 }
0x28de   : > { %v7540_v37 = vsel %vm1055_vm9, %v7535_v11, 0.0 }
0x28df   : > { %7541 = vadd.xlane.f32.xlu1 %v7540_v37 }
0x2963   : > { %v7537_v45 = vpop.xlane.xlu1 %7536 }
0x2964   : > { %v7543_v14 = vsel %vm1059_vm11, %v7537_v45, -1e+30 }
0x2965   : > { %v7546_v48 = vsel %vm759_vm2, %v7543_v14, -inf }
0x2967   : > { %v7539_v39 = vpop.xlane.xlu0 %7538 }
0x2968   : > { %v7544_v26 = vsel %vm1060_vm10, %v7539_v39, -1e+30 }
0x2969   : > { %v7547_v60 = vsel %vm759_vm2, %v7544_v26, -inf }
0x296a   : > { %v7549_v43 = vmax.f32 %v7546_v48, %v7547_v60 }
0x296c   : > { %v7542_v49 = vpop.xlane.xlu1 %7541 }
0x296d   : > { %v7545_v55 = vsel %vm1061_vm12, %v7542_v49, -1e+30 }
0x296e   : > { %v7548_v56 = vsel %vm1067_vm13, %v7545_v55, -inf  ;;  %v14672_v55 = vld [vmem:[%s15191_s1] sm:$0xff] }
0x296f   : > { %v7550_v8 = vmax.f32 %v7549_v43, %v7548_v56  ;;  %v14682_v56 = vld [vmem:[%s15191_s1 + $0x8] sm:$0xff] }
0x2971   : > { %v7551_v40 = vrot.slane %v7550_v8, 4 }
0x2973   : > { %v7552_v42 = vmax.f32 %v7550_v8, %v7551_v40  ;;  %v14691_v8 = vld [vmem:[%s15191_s1 + $0x10] sm:$0xf] }
0x2975   : > { %v7553_v63 = vrot.slane %v7552_v42, 2 }
0x2977   : > { %v7554_v19 = vmax.f32 %v7552_v42, %v7553_v63 }
0x2979   : > { %v7555_v13 = vrot.slane %v7554_v19, 1 }
0x297b   : > { %v7556_v47 = vmax.f32 %v7554_v19, %v7555_v13 }
0x297d   : > { %v7558_v62 = vmul.f32 %v14496_v46, %v7556_v47  ;;  %v7557_v52 = vmul.f32 %v14482_v7, %v7556_v47  ;;  %v7559_v22 = vmul.f32 %v14509_v61, %v7556_v47 }
0x297f   : > { %v7563_v4 = vsel %vm759_vm2, %v7558_v62, 0.0  ;;  %v7560_v57 = vsel %vm759_vm2, %v7557_v52, 0.0  ;;  %v7566_v38 = vsel %vm1067_vm13, %v7559_v22, 0.0 }
0x2980   : > { %7564 = vadd.xlane.f32.xlu1 %v7563_v4  ;;  %7561 = vadd.xlane.f32.xlu0 %v7560_v57 }
0x2984   : > { %7567 = vadd.xlane.f32.xlu0 %v7566_v38 }
0x2a0d   : > { %v7565_v44 = vpop.xlane.xlu1 %7564  ;;  %v7562_v32 = vpop.xlane.xlu0 %7561 }
0x2a0e   : > { %v7570_v12 = vsub.f32 %v7539_v39, %v7565_v44  ;;  %v7569_v15 = vsub.f32 %v7537_v45, %v7562_v32  ;;  %v10771_v32 = vld [vmem:[%s13156_s17 + $0x60] sm:$0xff]  }
0x2a10   : > { %v7574_v17 = vmul.f32 1.442695, %v7570_v12  ;;  %v7572_v10 = vmul.f32 1.442695, %v7569_v15  ;;  %v10524_v15 = vld [vmem:[%s13231_s20 + $0xc] ss:$0 sm:$0xff] }
0x2a11   : > { %v7568_v30 = vpop.xlane.xlu0 %7567 }
0x2a12   : > { %12535 = vpow2.f32 %v7574_v17  ;;  %v7571_v33 = vsub.f32 %v7542_v49, %v7568_v30  ;;  %v14666_v49 = vld [vmem:[%s13166_s10 + $0x30] sm:$0xff]  }
0x2a13   : > { %12537 = vpow2.f32 %v7572_v10  ;;  %v7699_v43 = vunpack.c.l.bf16 %v14666_v49 }
0x2a14   : > { %v7576_v35 = vmul.f32 1.442695, %v7571_v33  ;;  %v10526_v33 = vld [vmem:[%s13238_s24 + $0xc] ss:$0 sm:$0xff] }
0x2a15   : > { %11818 = vmatpush3.msra.mxu1 %v7699_v43 }
0x2a16   : > { %12539 = vpow2.f32 %v7576_v35  ;;  %11820 = vmatmul.mubr.msk.f32.vlgmr.msra.gmra.mrb[78].mxu1 %vm759_vm2, %v14672_v55  ;;  %11839 = vmatprep.subr.mxu1 %v12848_v1 }
0x2a17   : > { %11822 = vmatprep.mubr.msk.f32.mxu1 %vm12847_vm0, %v12848_v1 }
0x2a1a   : > { %11823 = vmatmul.mubr.msk.f32.gmra.mrb[80].mxu1 %vm759_vm2, %v14682_v56 }
0x2a1b   : > { %11825 = vmatprep.mubr.msk.f32.mxu1 %vm12847_vm0, %v12848_v1 }
0x2a1c   : > { %v12536_v2 = vpop.eup %12535 }
0x2a1d   : > { %v12538_v50 = vpop.eup %12537  ;;  %v7579_v28 = vmul.f32 %v14496_v46, %v12536_v2 }
0x2a1e   : > { %v7578_v36 = vmul.f32 %v14482_v7, %v12538_v50  ;;  %11826 = vmatmul.mubr.msk.f32.gmra.mrb[82].mxu1 %vm759_vm2, %v14691_v8 }
0x2a1f   : > { %v7582_v41 = vsel %vm759_vm2, %v7579_v28, 0.0  ;;  %11841 = vmatprep.mubr.msk.f32.mxu1 %vm12847_vm0, %v12848_v1  ;;  %v14748_v28 = vld [vmem:[%s15192_s2 + $0x10] sm:$0xf] }
0x2a20   : > { %v12540_v5 = vpop.eup %12539  ;;  %v7581_v25 = vsel %vm759_vm2, %v7578_v36, 0.0 }
0x2a21   : > { %v7580_v34 = vmul.f32 %v14509_v61, %v12540_v5  ;;  %v7583_v51 = vadd.f32 %v7582_v41, %v7581_v25 }
0x2a23   : > { %v7584_v3 = vsel %vm1067_vm13, %v7580_v34, 0.0 }
0x2a24   : > { %v7585_v9 = vadd.f32 %v7584_v3, %v7583_v51 }
0x2a26   : > { %v7586_v21 = vrot.slane %v7585_v9, 4 }
0x2a28   : > { %v7587_v16 = vadd.f32 %v7586_v21, %v7585_v9  ;;  %v10537_v21 = vld [vmem:[%s13373_s5 + $0xc] ss:$0 sm:$0xff] }
0x2a2a   : > { %v7588_v59 = vrot.slane %v7587_v16, 2 }
0x2a2c   : > { %v7589_v29 = vadd.f32 %v7588_v59, %v7587_v16 }
0x2a2e   : > { %v7590_v11 = vrot.slane %v7589_v29, 1 }
0x2a30   : > { %v7591_v37 = vadd.f32 %v7590_v11, %v7589_v29 }
0x2a32   : > { %v7593_v45 = vmul.f32 %v14496_v46, %v7591_v37  ;;  %v7592_v39 = vmul.f32 %v14482_v7, %v7591_v37  ;;  %v7594_v60 = vmul.f32 %v14509_v61, %v7591_v37 }
0x2a34   : > { %v7598_v26 = vsel %vm759_vm2, %v7593_v45, 0.0  ;;  %v7595_v14 = vsel %vm759_vm2, %v7592_v39, 0.0  ;;  %v7601_v48 = vsel %vm1067_vm13, %v7594_v60, 0.0 }
0x2a35   : > { %7599 = vadd.xlane.f32.xlu0 %v7598_v26  ;;  %7596 = vadd.xlane.f32.xlu1 %v7595_v14 }
0x2a39   : > { %7602 = vadd.xlane.f32.xlu1 %v7601_v48 }
0x2ac2   : > { %v7600_v40 = vpop.xlane.xlu0 %7599  ;;  %v7597_v42 = vpop.xlane.xlu1 %7596 }
0x2ac3   : > { %12541 = vrcp.f32 %v7600_v40 }
0x2ac4   : > { %12543 = vrcp.f32 %v7597_v42 }
0x2ac6   : > { %v7603_v63 = vpop.xlane.xlu1 %7602 }
0x2ac7   : > { %12545 = vrcp.f32 %v7603_v63 }
0x2acd   : > { %v12542_v19 = vpop.eup %12541 }
0x2ace   : > { %v12544_v13 = vpop.eup %12543  ;;  %v7608_v47 = vmul.f32 %v12542_v19, %v12536_v2 }
0x2acf   : > { %v7607_v62 = vmul.f32 %v12544_v13, %v12538_v50 }
0x2ad0   : > { %v7611_v52 = vmul.f32 %v7608_v47, %v14629_v18 }
0x2ad1   : > { %v12546_v4 = vpop.eup %12545  ;;  %v7610_v57 = vmul.f32 %v7607_v62, %v14627_v54  ;;  %v10772_v54 = vld [vmem:[%s13163_s9 + $0x60] sm:$0xff]  }
0x2ad2   : > { %v7609_v22 = vmul.f32 %v12546_v4, %v12540_v5 }
0x2ad3   : > { %v12133_v38 = vpack.c.bf16 %v7611_v52, %v7610_v57 }
0x2ad4   : > { %v7612_v44 = vmul.f32 %v7609_v22, %v14633_v53 }
0x2ad5   : > { %12134 = vmatpush3.bf16.msra.mxu0 %v12133_v38 }
0x2ad6   : > { %11798 = vmatprep.subr.mxu0 %v12848_v1 }
0x2ad9   : > { %11799 = vmatpush3.msk.msra.mxu0 %vm1055_vm9, %v7612_v44 }
0x2ada   : > { %11801 = vmatmul.mubr.msk.f32.vlgmr.msra.gmra.mrb[136].mxu0 %vm1677_vm14, %v13487_v27  ;;  %12135 = vmatprep.subr.bf16.mxu0 %v12846_v0 }
0x2adb   : > { %12137 = vmatpush3.bf16.msra.mxu0 %v10771_v32  ;;  %11807 = vmatprep.mubr.msk.f32.mxu0 %vm12847_vm0, %v12848_v1 }
0x2adc   : > { %12138 = vmatprep.subr.bf16.mxu0 %v12846_v0 }
0x2ade   : > { %11808 = vmatmul.mubr.msk.f32.vlgmr.msra.gmra.mrb[138].mxu0 %vm609_vm1, %v14580_v31 }
0x2adf   : > { %12140 = vmatpush3.bf16.msra.mxu0 %v10772_v54  ;;  %11814 = vmatprep.mubr.msk.f32.mxu0 %vm12847_vm0, %v12848_v1 }
0x2ae0   : > { %11828 = vmatprep.subr.mxu0 %v12848_v1 }
0x2ae2   : > { %11815 = vmatmul.mubr.msk.f32.vlgmr.msra.gmra.mrb[140].mxu0 %vm609_vm1, %v14580_v31 }
0x2ae3   : > { %11830 = vmatprep.mubr.msk.f32.mxu0 %vm12847_vm0, %v12848_v1 }
0x2bad   : > { %v7682_v18 = vpop.f32.mrb[136].mxu0 }
0x2bae   : > { %v14720_v53 = vadd.f32 %v7682_v18, %v14592_v58  ;;  %v11802_v12 = vpop.f32.mrb[137].mxu0  ;;  %v14734_v58 = vld [vmem:[%s15192_s2 + $0x8] sm:$0xff] }
0x2bb1   : > { %v7778_v17 = vpop.f32.mrb[138].mxu0 }
0x2bb2   : > { %v7779_v10 = vadd.f32 %v10524_v15, %v7778_v17  ;;  %v11809_v30 = vpop.f32.mrb[139].mxu0 }
0x2bb4   : > { %11829 = vmatpush3.msra.mxu0 %v7779_v10 }
0x2bb5   : > { %v7854_v35 = vpop.f32.mrb[140].mxu0  ;;  %11831 = vmatmul.mubr.msk.f32.vlgmr.msra.gmra.mrb[142].mxu0 %vm759_vm2, %v14599_v6  ;;  %12141 = vmatprep.subr.bf16.mxu0 %v12846_v0 }
0x2bb6   : > { %v7855_v2 = vadd.f32 %v10526_v33, %v7854_v35  ;;  %v11816_v50 = vpop.f32.mrb[141].mxu0  ;;  %11833 = vmatprep.mubr.msk.f32.mxu0 %vm12847_vm0, %v12848_v1 }
0x2bb8   : > { %11840 = vmatpush3.msra.mxu1 %v7855_v2 }
0x2bb9   : > { %11842 = vmatmul.mubr.msk.f32.vlgmr.msra.gmra.mrb[78].mxu1 %vm759_vm2, %v14482_v7  ;;  %11834 = vmatmul.mubr.msk.f32.gmra.mrb[144].mxu0 %vm759_vm2, %v14734_v58 }
0x2bba   : > { %11844 = vmatprep.mubr.msk.f32.mxu1 %vm12847_vm0, %v12848_v1  ;;  %11836 = vmatprep.mubr.msk.f32.mxu0 %vm12847_vm0, %v12848_v1 }
0x2bbb   : > { %11873 = vmatprep.subr.mxu1 %v12848_v1 }
0x2bbd   : > { %11845 = vmatmul.mubr.msk.f32.gmra.mrb[80].mxu1 %vm759_vm2, %v14496_v46  ;;  %11837 = vmatmul.mubr.msk.f32.gmra.mrb[146].mxu0 %vm759_vm2, %v14748_v28 }
0x2bbe   : > { %11847 = vmatprep.mubr.msk.f32.mxu1 %vm12847_vm0, %v12848_v1  ;;  %11856 = vmatprep.mubr.msk.f32.mxu0 %vm12847_vm0, %v12848_v1 }
0x2bc1   : > { %11848 = vmatmul.mubr.msk.f32.gmra.mrb[82].mxu1 %vm759_vm2, %v14509_v61 }
0x2bc2   : > { %11875 = vmatprep.mubr.msk.f32.mxu1 %vm12847_vm0, %v12848_v1 }
0x2c88   : > { %v14760_v36 = vpop.f32.mrb[142].mxu0 }
0x2c89   : > { %v11832_v41 = vpop.f32.mrb[143].mxu0 }
0x2c8c   : > { %v8084_v5 = vpop.f32.mrb[78].mxu1  ;;  %v14762_v25 = vpop.f32.mrb[144].mxu0 }
0x2c8d   : > { %v8098_v34 = vadd.f32 %v8084_v5, %v14760_v36  ;;  %v11843_v51 = vpop.f32.mrb[79].mxu1  ;;  %v11835_v3 = vpop.f32.mrb[145].mxu0 }
0x2c8f   : > { %v8107_v9 = vmul.f32 0.2, %v8098_v34  ;;  %vm8104_vm4 = vcmp.gt.f32.partialorder %v8098_v34, 0.0 }
0x2c90   : > { %v8089_v16 = vpop.f32.mrb[80].mxu1  ;;  %v14766_v59 = vpop.f32.mrb[146].mxu0 }
0x2c91   : > { %v8099_v29 = vadd.f32 %v8089_v16, %v14762_v25  ;;  %v11846_v11 = vpop.f32.mrb[81].mxu1  ;;  %v8110_v37 = vsel %vm8104_vm4, %v8098_v34, %v8107_v9  ;;  %v11838_v45 = vpop.f32.mrb[147].mxu0 }
0x2c92   : > { %v8119_v39 = vmul.f32 %v10537_v21, %v8110_v37 }
0x2c93   : > { %vm8105_vm5 = vcmp.gt.f32.partialorder %v8099_v29, 0.0  ;;  %v8108_v26 = vmul.f32 0.2, %v8099_v29 }
0x2c94   : > { %v8094_v14 = vpop.f32.mrb[82].mxu1  ;;  %8122 = vadd.xlane.f32.xlu0 %v8119_v39 }
0x2c95   : > { %v8100_v60 = vadd.f32 %v8094_v14, %v14766_v59  ;;  %v11849_v48 = vpop.f32.mrb[83].mxu1  ;;  %v8111_v43 = vsel %vm8105_vm5, %v8099_v29, %v8108_v26 }
0x2c96   : > { %v8120_v40 = vmul.f32 %v10537_v21, %v8111_v43 }
0x2c97   : > { %vm8106_vm6 = vcmp.gt.f32.partialorder %v8100_v60, 0.0  ;;  %v8109_v42 = vmul.f32 0.2, %v8100_v60 }
0x2c98   : > { %8124 = vadd.xlane.f32.xlu1 %v8120_v40 }
0x2c99   : > { %v8112_v63 = vsel %vm8106_vm6, %v8100_v60, %v8109_v42 }
0x2c9a   : > { %v8121_v19 = vmul.f32 %v10537_v21, %v8112_v63 }
0x2c9c   : > { %v8126_v13 = vsel %vm1055_vm9, %v8121_v19, 0.0 }
0x2c9d   : > { %8127 = vadd.xlane.f32.xlu0 %v8126_v13 }
0x2d21   : > { %v8123_v47 = vpop.xlane.xlu0 %8122 }
0x2d22   : > { %v8129_v4 = vsel %vm1059_vm11, %v8123_v47, -1e+30 }
0x2d23   : > { %v8132_v22 = vsel %vm759_vm2, %v8129_v4, -inf }
0x2d25   : > { %v8125_v62 = vpop.xlane.xlu1 %8124 }
0x2d26   : > { %v8130_v52 = vsel %vm1060_vm10, %v8125_v62, -1e+30 }
0x2d27   : > { %v8133_v57 = vsel %vm759_vm2, %v8130_v52, -inf }
0x2d28   : > { %v8135_v44 = vmax.f32 %v8132_v22, %v8133_v57 }
0x2d2a   : > { %v8128_v38 = vpop.xlane.xlu0 %8127 }
0x2d2b   : > { %v8131_v32 = vsel %vm1061_vm12, %v8128_v38, -1e+30 }
0x2d2c   : > { %v8134_v54 = vsel %vm1067_vm13, %v8131_v32, -inf }
0x2d2d   : > { %v8136_v18 = vmax.f32 %v8135_v44, %v8134_v54 }
0x2d2f   : > { %v8137_v12 = vrot.slane %v8136_v18, 4 }
0x2d31   : > { %v8138_v15 = vmax.f32 %v8136_v18, %v8137_v12 }
0x2d33   : > { %v8139_v17 = vrot.slane %v8138_v15, 2 }
0x2d35   : > { %v8140_v10 = vmax.f32 %v8138_v15, %v8139_v17  ;;  %v8285_v15 = vunpack.c.h.bf16 %v14666_v49 }
0x2d37   : > { %v8141_v30 = vrot.slane %v8140_v10, 1  ;;  %11874 = vmatpush3.msra.mxu1 %v8285_v15 }
0x2d38   : > { %11876 = vmatmul.mubr.msk.f32.vlgmr.msra.gmra.mrb[84].mxu1 %vm759_vm2, %v14672_v55  ;;  %11895 = vmatprep.subr.mxu1 %v12848_v1 }
0x2d39   : > { %v8142_v33 = vmax.f32 %v8140_v10, %v8141_v30  ;;  %11878 = vmatprep.mubr.msk.f32.mxu1 %vm12847_vm0, %v12848_v1 }
0x2d3b   : > { %v8144_v35 = vmul.f32 %v14496_v46, %v8142_v33  ;;  %v8143_v2 = vmul.f32 %v14482_v7, %v8142_v33  ;;  %v8145_v5 = vmul.f32 %v14509_v61, %v8142_v33 }
0x2d3c   : > { %11879 = vmatmul.mubr.msk.f32.gmra.mrb[86].mxu1 %vm759_vm2, %v14682_v56 }
0x2d3d   : > { %v8149_v50 = vsel %vm759_vm2, %v8144_v35, 0.0  ;;  %v8146_v41 = vsel %vm759_vm2, %v8143_v2, 0.0  ;;  %v8152_v34 = vsel %vm1067_vm13, %v8145_v5, 0.0  ;;  %11881 = vmatprep.mubr.msk.f32.mxu1 %vm12847_vm0, %v12848_v1 }
0x2d3e   : > { %8150 = vadd.xlane.f32.xlu0 %v8149_v50  ;;  %8147 = vadd.xlane.f32.xlu1 %v8146_v41 }
0x2d40   : > { %11882 = vmatmul.mubr.msk.f32.gmra.mrb[88].mxu1 %vm759_vm2, %v14691_v8 }
0x2d41   : > { %11897 = vmatprep.mubr.msk.f32.mxu1 %vm12847_vm0, %v12848_v1 }
0x2d42   : > { %8153 = vadd.xlane.f32.xlu1 %v8152_v34 }
0x2dcb   : > { %v8151_v51 = vpop.xlane.xlu0 %8150  ;;  %v8148_v3 = vpop.xlane.xlu1 %8147 }
0x2dcc   : > { %v8156_v9 = vsub.f32 %v8125_v62, %v8151_v51  ;;  %v8155_v21 = vsub.f32 %v8123_v47, %v8148_v3 }
0x2dce   : > { %v8160_v16 = vmul.f32 1.442695, %v8156_v9  ;;  %v8158_v29 = vmul.f32 1.442695, %v8155_v21  ;;  %v10773_v9 = vld [vmem:[%s13156_s17 + $0x68] sm:$0xff]  }
0x2dcf   : > { %v8154_v11 = vpop.xlane.xlu1 %8153 }
0x2dd0   : > { %12547 = vpow2.f32 %v8160_v16  ;;  %v8157_v37 = vsub.f32 %v8128_v38, %v8154_v11  ;;  %v10548_v16 = vld [vmem:[%s13231_s20 + $0xd] ss:$0 sm:$0xff] }
0x2dd1   : > { %12549 = vpow2.f32 %v8158_v29 }
0x2dd2   : > { %v8162_v45 = vmul.f32 1.442695, %v8157_v37 }
0x2dd4   : > { %12551 = vpow2.f32 %v8162_v45  ;;  %v10550_v45 = vld [vmem:[%s13238_s24 + $0xd] ss:$0 sm:$0xff] }
0x2dda   : > { %v12548_v39 = vpop.eup %12547 }
0x2ddb   : > { %v12550_v26 = vpop.eup %12549  ;;  %v8165_v14 = vmul.f32 %v14496_v46, %v12548_v39 }
0x2ddc   : > { %v8164_v60 = vmul.f32 %v14482_v7, %v12550_v26 }
0x2ddd   : > { %v8168_v48 = vsel %vm759_vm2, %v8165_v14, 0.0 }
0x2dde   : > { %v12552_v43 = vpop.eup %12551  ;;  %v8167_v40 = vsel %vm759_vm2, %v8164_v60, 0.0 }
0x2ddf   : > { %v8166_v42 = vmul.f32 %v14509_v61, %v12552_v43  ;;  %v8169_v63 = vadd.f32 %v8168_v48, %v8167_v40 }
0x2de1   : > { %v8170_v19 = vsel %vm1067_vm13, %v8166_v42, 0.0 }
0x2de2   : > { %v8171_v13 = vadd.f32 %v8170_v19, %v8169_v63  ;;  %v10561_v63 = vld [vmem:[%s13373_s5 + $0xd] ss:$0 sm:$0xff] }
0x2de4   : > { %v8172_v47 = vrot.slane %v8171_v13, 4 }
0x2de6   : > { %v8173_v62 = vadd.f32 %v8172_v47, %v8171_v13 }
0x2de8   : > { %v8174_v52 = vrot.slane %v8173_v62, 2 }
0x2dea   : > { %v8175_v4 = vadd.f32 %v8174_v52, %v8173_v62 }
0x2dec   : > { %v8176_v57 = vrot.slane %v8175_v4, 1 }
0x2dee   : > { %v8177_v22 = vadd.f32 %v8176_v57, %v8175_v4 }
0x2df0   : > { %v8179_v38 = vmul.f32 %v14496_v46, %v8177_v22  ;;  %v8178_v44 = vmul.f32 %v14482_v7, %v8177_v22  ;;  %v8180_v18 = vmul.f32 %v14509_v61, %v8177_v22 }
0x2df2   : > { %v8184_v32 = vsel %vm759_vm2, %v8179_v38, 0.0  ;;  %v8181_v54 = vsel %vm759_vm2, %v8178_v44, 0.0  ;;  %v8187_v12 = vsel %vm1067_vm13, %v8180_v18, 0.0 }
0x2df3   : > { %8185 = vadd.xlane.f32.xlu1 %v8184_v32  ;;  %8182 = vadd.xlane.f32.xlu0 %v8181_v54 }
0x2df7   : > { %8188 = vadd.xlane.f32.xlu0 %v8187_v12 }
0x2e80   : > { %v8186_v49 = vpop.xlane.xlu1 %8185  ;;  %v8183_v17 = vpop.xlane.xlu0 %8182 }
0x2e81   : > { %12553 = vrcp.f32 %v8186_v49 }
0x2e82   : > { %12555 = vrcp.f32 %v8183_v17 }
0x2e84   : > { %v8189_v10 = vpop.xlane.xlu0 %8188 }
0x2e85   : > { %12557 = vrcp.f32 %v8189_v10 }
0x2e8b   : > { %v12554_v30 = vpop.eup %12553 }
0x2e8c   : > { %v12556_v33 = vpop.eup %12555  ;;  %v8194_v35 = vmul.f32 %v12554_v30, %v12548_v39 }
0x2e8d   : > { %v8193_v2 = vmul.f32 %v12556_v33, %v12550_v26 }
0x2e8e   : > { %v8197_v50 = vmul.f32 %v8194_v35, %v14762_v25 }
0x2e8f   : > { %v12558_v41 = vpop.eup %12557  ;;  %v8196_v5 = vmul.f32 %v8193_v2, %v14760_v36  ;;  %v10774_v36 = vld [vmem:[%s13163_s9 + $0x68] sm:$0xff]  }
0x2e90   : > { %v8195_v34 = vmul.f32 %v12558_v41, %v12552_v43 }
0x2e91   : > { %v12142_v51 = vpack.c.bf16 %v8197_v50, %v8196_v5 }
0x2e92   : > { %v8198_v3 = vmul.f32 %v8195_v34, %v14766_v59 }
0x2e93   : > { %12143 = vmatpush3.bf16.msra.mxu0 %v12142_v51 }
0x2e94   : > { %11854 = vmatprep.subr.mxu0 %v12848_v1 }
0x2e97   : > { %11855 = vmatpush3.msk.msra.mxu0 %vm1055_vm9, %v8198_v3 }
0x2e98   : > { %11857 = vmatmul.mubr.msk.f32.vlgmr.msra.gmra.mrb[148].mxu0 %vm1677_vm14, %v13487_v27  ;;  %12144 = vmatprep.subr.bf16.mxu0 %v12846_v0 }
0x2e99   : > { %12146 = vmatpush3.bf16.msra.mxu0 %v10773_v9  ;;  %11863 = vmatprep.mubr.msk.f32.mxu0 %vm12847_vm0, %v12848_v1 }
0x2e9a   : > { %12147 = vmatprep.subr.bf16.mxu0 %v12846_v0 }
0x2e9c   : > { %11864 = vmatmul.mubr.msk.f32.vlgmr.msra.gmra.mrb[150].mxu0 %vm609_vm1, %v14580_v31 }
0x2e9d   : > { %12149 = vmatpush3.bf16.msra.mxu0 %v10774_v36  ;;  %11870 = vmatprep.mubr.msk.f32.mxu0 %vm12847_vm0, %v12848_v1 }
0x2e9e   : > { %11884 = vmatprep.subr.mxu0 %v12848_v1 }
0x2ea0   : > { %11871 = vmatmul.mubr.msk.f32.vlgmr.msra.gmra.mrb[152].mxu0 %vm609_vm1, %v14580_v31 }
0x2ea1   : > { %11886 = vmatprep.mubr.msk.f32.mxu0 %vm12847_vm0, %v12848_v1 }
0x2f6b   : > { %v8268_v25 = vpop.f32.mrb[148].mxu0 }
0x2f6c   : > { %v14835_v59 = vadd.f32 %v8268_v25, %v14720_v53  ;;  %v11858_v21 = vpop.f32.mrb[149].mxu0 }
0x2f6f   : > { %v8364_v29 = vpop.f32.mrb[150].mxu0 }
0x2f70   : > { %v8365_v11 = vadd.f32 %v10548_v16, %v8364_v29  ;;  %v11865_v37 = vpop.f32.mrb[151].mxu0  ;;  %v14888_v29 = vld [vmem:[%s15263_s4 + $0x8] sm:$0xff] }
0x2f71   : > { %v14894_v37 = vld [vmem:[%s15263_s4] sm:$0xff] }
0x2f72   : > { %11885 = vmatpush3.msra.mxu0 %v8365_v11 }
0x2f73   : > { %v8440_v39 = vpop.f32.mrb[152].mxu0  ;;  %11887 = vmatmul.mubr.msk.f32.vlgmr.msra.gmra.mrb[154].mxu0 %vm759_vm2, %v14599_v6  ;;  %12150 = vmatprep.subr.bf16.mxu0 %v12846_v0 }
0x2f74   : > { %v8441_v26 = vadd.f32 %v10550_v45, %v8440_v39  ;;  %v11872_v14 = vpop.f32.mrb[153].mxu0  ;;  %11889 = vmatprep.mubr.msk.f32.mxu0 %vm12847_vm0, %v12848_v1 }
0x2f75   : > { %v14902_v14 = vld [vmem:[%s15263_s4 + $0x10] sm:$0xf] }
0x2f76   : > { %11896 = vmatpush3.msra.mxu1 %v8441_v26 }
0x2f77   : > { %11898 = vmatmul.mubr.msk.f32.vlgmr.msra.gmra.mrb[84].mxu1 %vm759_vm2, %v14482_v7  ;;  %11890 = vmatmul.mubr.msk.f32.gmra.mrb[156].mxu0 %vm759_vm2, %v14734_v58 }
0x2f78   : > { %11900 = vmatprep.mubr.msk.f32.mxu1 %vm12847_vm0, %v12848_v1  ;;  %11892 = vmatprep.mubr.msk.f32.mxu0 %vm12847_vm0, %v12848_v1 }
0x2f79   : > { %11929 = vmatprep.subr.mxu1 %v12848_v1 }
0x2f7b   : > { %11901 = vmatmul.mubr.msk.f32.gmra.mrb[86].mxu1 %vm759_vm2, %v14496_v46  ;;  %11893 = vmatmul.mubr.msk.f32.gmra.mrb[158].mxu0 %vm759_vm2, %v14748_v28 }
0x2f7c   : > { %11903 = vmatprep.mubr.msk.f32.mxu1 %vm12847_vm0, %v12848_v1  ;;  %11912 = vmatprep.mubr.msk.f32.mxu0 %vm12847_vm0, %v12848_v1 }
0x2f7f   : > { %11904 = vmatmul.mubr.msk.f32.gmra.mrb[88].mxu1 %vm759_vm2, %v14509_v61 }
0x2f80   : > { %11931 = vmatprep.mubr.msk.f32.mxu1 %vm12847_vm0, %v12848_v1 }
0x3046   : > { %v14865_v7 = vpop.f32.mrb[154].mxu0 }
0x3047   : > { %v11888_v53 = vpop.f32.mrb[155].mxu0 }
0x304a   : > { %v8670_v60 = vpop.f32.mrb[84].mxu1  ;;  %v14867_v46 = vpop.f32.mrb[156].mxu0 }
0x304b   : > { %v8684_v48 = vadd.f32 %v8670_v60, %v14865_v7  ;;  %v11899_v43 = vpop.f32.mrb[85].mxu1  ;;  %v11891_v40 = vpop.f32.mrb[157].mxu0 }
0x304d   : > { %vm8690_vm7 = vcmp.gt.f32.partialorder %v8684_v48, 0.0  ;;  %v8693_v42 = vmul.f32 0.2, %v8684_v48 }
0x304e   : > { %v8675_v19 = vpop.f32.mrb[86].mxu1  ;;  %v14871_v13 = vpop.f32.mrb[158].mxu0 }
0x304f   : > { %v8685_v61 = vadd.f32 %v8675_v19, %v14867_v46  ;;  %v11902_v47 = vpop.f32.mrb[87].mxu1  ;;  %v8696_v62 = vsel %vm8690_vm7, %v8684_v48, %v8693_v42  ;;  %v11894_v52 = vpop.f32.mrb[159].mxu0 }
0x3050   : > { %v8705_v4 = vmul.f32 %v10561_v63, %v8696_v62 }
0x3051   : > { %v8694_v57 = vmul.f32 0.2, %v8685_v61  ;;  %vm8691_vm8 = vcmp.gt.f32.partialorder %v8685_v61, 0.0 }
0x3052   : > { %v8680_v22 = vpop.f32.mrb[88].mxu1  ;;  %8708 = vadd.xlane.f32.xlu1 %v8705_v4 }
0x3053   : > { %v8686_v38 = vadd.f32 %v8680_v22, %v14871_v13  ;;  %v11905_v44 = vpop.f32.mrb[89].mxu1  ;;  %v8697_v32 = vsel %vm8691_vm8, %v8685_v61, %v8694_v57 }
0x3054   : > { %v8706_v54 = vmul.f32 %v10561_v63, %v8697_v32 }
0x3055   : > { %vm8692_vm15 = vcmp.gt.f32.partialorder %v8686_v38, 0.0  ;;  %v8695_v18 = vmul.f32 0.2, %v8686_v38 }
0x3056   : > { %8710 = vadd.xlane.f32.xlu0 %v8706_v54 }
0x3057   : > { %v8698_v12 = vsel %vm8692_vm15, %v8686_v38, %v8695_v18 }
0x3058   : > { %v8707_v15 = vmul.f32 %v10561_v63, %v8698_v12 }
0x305a   : > { %v8712_v49 = vsel %vm1055_vm9, %v8707_v15, 0.0 }
0x305b   : > { %8713 = vadd.xlane.f32.xlu1 %v8712_v49 }
0x30df   : > { %v8709_v17 = vpop.xlane.xlu1 %8708 }
0x30e0   : > { %v8715_v33 = vsel %vm1059_vm11, %v8709_v17, -1e+30 }
0x30e1   : > { %v8718_v2 = vsel %vm759_vm2, %v8715_v33, -inf }
0x30e3   : > { %v8711_v10 = vpop.xlane.xlu0 %8710 }
0x30e4   : > { %v8716_v30 = vsel %vm1060_vm10, %v8711_v10, -1e+30 }
0x30e5   : > { %v8719_v35 = vsel %vm759_vm2, %v8716_v30, -inf }
0x30e6   : > { %v8721_v41 = vmax.f32 %v8718_v2, %v8719_v35 }
0x30e8   : > { %v8714_v50 = vpop.xlane.xlu1 %8713 }
0x30e9   : > { %v8717_v5 = vsel %vm1061_vm12, %v8714_v50, -1e+30 }
0x30ea   : > { %v8720_v34 = vsel %vm1067_vm13, %v8717_v5, -inf }
0x30eb   : > { %v8722_v51 = vmax.f32 %v8721_v41, %v8720_v34 }
0x30ed   : > { %v8723_v3 = vrot.slane %v8722_v51, 4 }
0x30ef   : > { %v8724_v9 = vmax.f32 %v8722_v51, %v8723_v3  ;;  %v14919_v3 = vld [vmem:[%s13166_s10 + $0x38] sm:$0xff]   ;;  %s15265_s10 = sld [smem:[#allocation21_spill]] }
0x30f1   : > { %v8725_v36 = vrot.slane %v8724_v9, 2 }
0x30f3   : > { %v8726_v25 = vmax.f32 %v8724_v9, %v8725_v36  ;;  %v8871_v9 = vunpack.c.l.bf16 %v14919_v3 }
0x30f5   : > { %v8727_v21 = vrot.slane %v8726_v25, 1  ;;  %11930 = vmatpush3.msra.mxu1 %v8871_v9  ;;  %p15267_p2 = scmp.ne.s32.totalorder %s15265_s10, 0 }
0x30f6   : > { %11932 = vmatmul.mubr.msk.f32.vlgmr.msra.gmra.mrb[90].mxu1 %vm759_vm2, %v14672_v55  ;;  %11951 = vmatprep.subr.mxu1 %v12848_v1 }
0x30f7   : > { %v8728_v16 = vmax.f32 %v8726_v25, %v8727_v21  ;;  %11934 = vmatprep.mubr.msk.f32.mxu1 %vm12847_vm0, %v12848_v1 }
0x30f9   : > { %v8730_v11 = vmul.f32 %v14888_v29, %v8728_v16  ;;  %v8729_v45 = vmul.f32 %v14894_v37, %v8728_v16  ;;  %v8731_v53 = vmul.f32 %v14902_v14, %v8728_v16 }
0x30fa   : > { %11935 = vmatmul.mubr.msk.f32.gmra.mrb[92].mxu1 %vm759_vm2, %v14682_v56 }
0x30fb   : > { %v8735_v39 = vsel %vm759_vm2, %v8730_v11, 0.0  ;;  %v8732_v26 = vsel %vm759_vm2, %v8729_v45, 0.0  ;;  %v8738_v60 = vsel %vm1067_vm13, %v8731_v53, 0.0  ;;  %11937 = vmatprep.mubr.msk.f32.mxu1 %vm12847_vm0, %v12848_v1 }
0x30fc   : > { %8736 = vadd.xlane.f32.xlu1 %v8735_v39  ;;  %8733 = vadd.xlane.f32.xlu0 %v8732_v26 }
0x30fe   : > { %11938 = vmatmul.mubr.msk.f32.gmra.mrb[94].mxu1 %vm759_vm2, %v14691_v8 }
0x30ff   : > { %11953 = vmatprep.mubr.msk.f32.mxu1 %vm12847_vm0, %v12848_v1 }
0x3100   : > { %8739 = vadd.xlane.f32.xlu0 %v8738_v60 }
0x3189   : > { %v8737_v48 = vpop.xlane.xlu1 %8736  ;;  %v8734_v43 = vpop.xlane.xlu0 %8733 }
0x318a   : > { %v8742_v40 = vsub.f32 %v8711_v10, %v8737_v48  ;;  %v8741_v42 = vsub.f32 %v8709_v17, %v8734_v43 }
0x318c   : > { %v8746_v63 = vmul.f32 1.442695, %v8742_v40  ;;  %v8744_v19 = vmul.f32 1.442695, %v8741_v42  ;;  %v10775_v42 = vld [vmem:[%s13156_s17 + $0x70] sm:$0xff]  }
0x318d   : > { %v8740_v61 = vpop.xlane.xlu0 %8739 }
0x318e   : > { %12559 = vpow2.f32 %v8746_v63  ;;  %v8743_v47 = vsub.f32 %v8714_v50, %v8740_v61 }
0x318f   : > { %12561 = vpow2.f32 %v8744_v19  ;;  %v10572_v19 = vld [vmem:[%s13231_s20 + $0xe] ss:$0 sm:$0xff] }
0x3190   : > { %v8748_v62 = vmul.f32 1.442695, %v8743_v47 }
0x3192   : > { %12563 = vpow2.f32 %v8748_v62 }
0x3198   : > { %v12560_v52 = vpop.eup %12559 }
0x3199   : > { %v12562_v4 = vpop.eup %12561  ;;  %v8751_v57 = vmul.f32 %v14888_v29, %v12560_v52 }
0x319a   : > { %v8750_v22 = vmul.f32 %v14894_v37, %v12562_v4 }
0x319b   : > { %v8754_v38 = vsel %vm759_vm2, %v8751_v57, 0.0 }
0x319c   : > { %v12564_v44 = vpop.eup %12563  ;;  %v8753_v32 = vsel %vm759_vm2, %v8750_v22, 0.0 }
0x319d   : > { %v8752_v54 = vmul.f32 %v14902_v14, %v12564_v44  ;;  %v8755_v18 = vadd.f32 %v8754_v38, %v8753_v32 }
0x319f   : > { %v8756_v12 = vsel %vm1067_vm13, %v8752_v54, 0.0 }
0x31a0   : > { %v8757_v15 = vadd.f32 %v8756_v12, %v8755_v18  ;;  %v10585_v12 = vld [vmem:[%s13373_s5 + $0xe] ss:$0 sm:$0xff] }
0x31a2   : > { %v8758_v49 = vrot.slane %v8757_v15, 4 }
0x31a4   : > { %v8759_v17 = vadd.f32 %v8758_v49, %v8757_v15 }
0x31a6   : > { %v8760_v10 = vrot.slane %v8759_v17, 2 }
0x31a8   : > { %v8761_v30 = vadd.f32 %v8760_v10, %v8759_v17 }
0x31aa   : > { %v8762_v33 = vrot.slane %v8761_v30, 1 }
0x31ac   : > { %v8763_v35 = vadd.f32 %v8762_v33, %v8761_v30 }
0x31ae   : > { %v8765_v2 = vmul.f32 %v14888_v29, %v8763_v35  ;;  %v8764_v50 = vmul.f32 %v14894_v37, %v8763_v35  ;;  %v8766_v34 = vmul.f32 %v14902_v14, %v8763_v35 }
0x31b0   : > { %v8770_v41 = vsel %vm759_vm2, %v8765_v2, 0.0  ;;  %v8767_v5 = vsel %vm759_vm2, %v8764_v50, 0.0  ;;  %v8773_v51 = vsel %vm1067_vm13, %v8766_v34, 0.0 }
0x31b1   : > { %8771 = vadd.xlane.f32.xlu0 %v8770_v41  ;;  %8768 = vadd.xlane.f32.xlu1 %v8767_v5 }
0x31b5   : > { %8774 = vadd.xlane.f32.xlu1 %v8773_v51 }
0x323e   : > { %v8772_v36 = vpop.xlane.xlu0 %8771  ;;  %v8769_v25 = vpop.xlane.xlu1 %8768 }
0x323f   : > { %12565 = vrcp.f32 %v8772_v36 }
0x3240   : > { %12567 = vrcp.f32 %v8769_v25 }
0x3242   : > { %v8775_v21 = vpop.xlane.xlu1 %8774 }
0x3243   : > { %12569 = vrcp.f32 %v8775_v21 }
0x3249   : > { %v12566_v16 = vpop.eup %12565 }
0x324a   : > { %v12568_v11 = vpop.eup %12567  ;;  %v8780_v45 = vmul.f32 %v12566_v16, %v12560_v52  ;;  %v10574_v52 = vld [vmem:[%s13238_s24 + $0xe] ss:$0 sm:$0xff] }
0x324b   : > { %v8779_v39 = vmul.f32 %v12568_v11, %v12562_v4 }
0x324c   : > { %v8783_v26 = vmul.f32 %v8780_v45, %v14867_v46 }
0x324d   : > { %v12570_v53 = vpop.eup %12569  ;;  %v8782_v60 = vmul.f32 %v8779_v39, %v14865_v7  ;;  %v10776_v7 = vld [vmem:[%s13163_s9 + $0x70] sm:$0xff]  }
0x324e   : > { %v8781_v48 = vmul.f32 %v12570_v53, %v12564_v44 }
0x324f   : > { %v12151_v43 = vpack.c.bf16 %v8783_v26, %v8782_v60 }
0x3250   : > { %v8784_v40 = vmul.f32 %v8781_v48, %v14871_v13 }
0x3251   : > { %12152 = vmatpush3.bf16.msra.mxu0 %v12151_v43 }
0x3252   : > { %11910 = vmatprep.subr.mxu0 %v12848_v1 }
0x3255   : > { %11911 = vmatpush3.msk.msra.mxu0 %vm1055_vm9, %v8784_v40 }
0x3256   : > { %11913 = vmatmul.mubr.msk.f32.vlgmr.msra.gmra.mrb[160].mxu0 %vm1677_vm14, %v13487_v27  ;;  %12153 = vmatprep.subr.bf16.mxu0 %v12846_v0 }
0x3257   : > { %12155 = vmatpush3.bf16.msra.mxu0 %v10775_v42  ;;  %11919 = vmatprep.mubr.msk.f32.mxu0 %vm12847_vm0, %v12848_v1 }
0x3258   : > { %12156 = vmatprep.subr.bf16.mxu0 %v12846_v0 }
0x325a   : > { %11920 = vmatmul.mubr.msk.f32.vlgmr.msra.gmra.mrb[162].mxu0 %vm609_vm1, %v14580_v31 }
0x325b   : > { %12158 = vmatpush3.bf16.msra.mxu0 %v10776_v7  ;;  %11926 = vmatprep.mubr.msk.f32.mxu0 %vm12847_vm0, %v12848_v1 }
0x325c   : > { %11940 = vmatprep.subr.mxu0 %v12848_v1 }
0x325e   : > { %11927 = vmatmul.mubr.msk.f32.vlgmr.msra.gmra.mrb[164].mxu0 %vm609_vm1, %v14580_v31 }
0x325f   : > { %11942 = vmatprep.mubr.msk.f32.mxu0 %vm12847_vm0, %v12848_v1 }
0x3329   : > { %v8854_v46 = vpop.f32.mrb[160].mxu0 }
0x332a   : > { %v14958_v13 = vadd.f32 %v8854_v46, %v14835_v59  ;;  %v11914_v63 = vpop.f32.mrb[161].mxu0 }
0x332d   : > { %v8950_v61 = vpop.f32.mrb[162].mxu0 }
0x332e   : > { %v8951_v47 = vadd.f32 %v10572_v19, %v8950_v61  ;;  %v11921_v62 = vpop.f32.mrb[163].mxu0 }
0x3330   : > { %11941 = vmatpush3.msra.mxu0 %v8951_v47 }
0x3331   : > { %v9026_v4 = vpop.f32.mrb[164].mxu0  ;;  %11943 = vmatmul.mubr.msk.f32.vlgmr.msra.gmra.mrb[166].mxu0 %vm759_vm2, %v14599_v6  ;;  %12159 = vmatprep.subr.bf16.mxu0 %v12846_v0 }
0x3332   : > { %v9027_v31 = vadd.f32 %v10574_v52, %v9026_v4  ;;  %v11928_v57 = vpop.f32.mrb[165].mxu0  ;;  %11945 = vmatprep.mubr.msk.f32.mxu0 %vm12847_vm0, %v12848_v1 }
0x3334   : > { %11952 = vmatpush3.msra.mxu1 %v9027_v31 }
0x3335   : > { %11954 = vmatmul.mubr.msk.f32.vlgmr.msra.gmra.mrb[90].mxu1 %vm759_vm2, %v14894_v37  ;;  %11946 = vmatmul.mubr.msk.f32.gmra.mrb[168].mxu0 %vm759_vm2, %v14734_v58 }
0x3336   : > { %11956 = vmatprep.mubr.msk.f32.mxu1 %vm12847_vm0, %v12848_v1  ;;  %11948 = vmatprep.mubr.msk.f32.mxu0 %vm12847_vm0, %v12848_v1 }
0x3337   : > { %11985 = vmatprep.subr.mxu1 %v12848_v1 }
0x3339   : > { %11957 = vmatmul.mubr.msk.f32.gmra.mrb[92].mxu1 %vm759_vm2, %v14888_v29  ;;  %11949 = vmatmul.mubr.msk.f32.gmra.mrb[170].mxu0 %vm759_vm2, %v14748_v28 }
0x333a   : > { %11959 = vmatprep.mubr.msk.f32.mxu1 %vm12847_vm0, %v12848_v1  ;;  %11968 = vmatprep.mubr.msk.f32.mxu0 %vm12847_vm0, %v12848_v1 }
0x333d   : > { %11960 = vmatmul.mubr.msk.f32.gmra.mrb[94].mxu1 %vm759_vm2, %v14902_v14 }
0x333e   : > { %11987 = vmatprep.mubr.msk.f32.mxu1 %vm12847_vm0, %v12848_v1 }
0x3404   : > { %v14988_v6 = vpop.f32.mrb[166].mxu0 }
0x3405   : > { %v11944_v59 = vpop.f32.mrb[167].mxu0 }
0x3408   : > { %v9256_v22 = vpop.f32.mrb[90].mxu1  ;;  %v14990_v38 = vpop.f32.mrb[168].mxu0 }
0x3409   : > { %v9270_v44 = vadd.f32 %v9256_v22, %v14988_v6  ;;  %v11955_v32 = vpop.f32.mrb[91].mxu1  ;;  %v11947_v54 = vpop.f32.mrb[169].mxu0 }
0x340b   : > { %vm9276_vm3 = vcmp.gt.f32.partialorder %v9270_v44, 0.0  ;;  %v9279_v18 = vmul.f32 0.2, %v9270_v44 }
0x340c   : > { %v9261_v15 = vpop.f32.mrb[92].mxu1  ;;  %v14994_v49 = vpop.f32.mrb[170].mxu0 }
0x340d   : > { %v9271_v17 = vadd.f32 %v9261_v15, %v14990_v38  ;;  %v11958_v10 = vpop.f32.mrb[93].mxu1  ;;  %v9282_v30 = vsel %vm9276_vm3, %v9270_v44, %v9279_v18  ;;  %v11950_v33 = vpop.f32.mrb[171].mxu0 }
0x340e   : > { %v9291_v35 = vmul.f32 %v10585_v12, %v9282_v30 }
0x340f   : > { %vm9277_vm4 = vcmp.gt.f32.partialorder %v9271_v17, 0.0  ;;  %v9280_v2 = vmul.f32 0.2, %v9271_v17 }
0x3410   : > { %v9266_v50 = vpop.f32.mrb[94].mxu1  ;;  %9294 = vadd.xlane.f32.xlu0 %v9291_v35 }
0x3411   : > { %v9272_v41 = vadd.f32 %v9266_v50, %v14994_v49  ;;  %v11961_v5 = vpop.f32.mrb[95].mxu1  ;;  %v9283_v34 = vsel %vm9277_vm4, %v9271_v17, %v9280_v2 }
0x3412   : > { %v9292_v51 = vmul.f32 %v10585_v12, %v9283_v34 }
0x3413   : > { %vm9278_vm5 = vcmp.gt.f32.partialorder %v9272_v41, 0.0  ;;  %v9281_v9 = vmul.f32 0.2, %v9272_v41 }
0x3414   : > { %9296 = vadd.xlane.f32.xlu1 %v9292_v51 }
0x3415   : > { %v9284_v36 = vsel %vm9278_vm5, %v9272_v41, %v9281_v9 }
0x3416   : > { %v9293_v25 = vmul.f32 %v10585_v12, %v9284_v36 }
0x3418   : > { %v9298_v21 = vsel %vm1055_vm9, %v9293_v25, 0.0 }
0x3419   : > { %9299 = vadd.xlane.f32.xlu0 %v9298_v21 }
0x349d   : > { %v9295_v16 = vpop.xlane.xlu0 %9294 }
0x349e   : > { %v9301_v39 = vsel %vm1059_vm11, %v9295_v16, -1e+30 }
0x349f   : > { %v9304_v53 = vsel %vm759_vm2, %v9301_v39, -inf }
0x34a1   : > { %v9297_v11 = vpop.xlane.xlu1 %9296 }
0x34a2   : > { %v9302_v45 = vsel %vm1060_vm10, %v9297_v11, -1e+30 }
0x34a3   : > { %v9305_v26 = vsel %vm759_vm2, %v9302_v45, -inf }
0x34a4   : > { %v9307_v48 = vmax.f32 %v9304_v53, %v9305_v26 }
0x34a6   : > { %v9300_v60 = vpop.xlane.xlu0 %9299 }
0x34a7   : > { %v9303_v43 = vsel %vm1061_vm12, %v9300_v60, -1e+30 }
0x34a8   : > { %v9306_v40 = vsel %vm1067_vm13, %v9303_v43, -inf }
0x34a9   : > { %v9308_v42 = vmax.f32 %v9307_v48, %v9306_v40 }
0x34ab   : > { %v9309_v7 = vrot.slane %v9308_v42, 4 }
0x34ad   : > { %v9310_v46 = vmax.f32 %v9308_v42, %v9309_v7  ;;  %v9457_v42 = vunpack.c.h.bf16 %v14919_v3 }
0x34af   : > { %v9311_v63 = vrot.slane %v9310_v46, 2  ;;  %11986 = vmatpush3.msra.mxu1 %v9457_v42 }
0x34b0   : > { %11988 = vmatmul.mubr.msk.f32.vlgmr.msra.gmra.mrb[96].mxu1 %vm759_vm2, %v14672_v55  ;;  %12007 = vmatprep.subr.mxu1 %v12848_v1 }
0x34b1   : > { %v9312_v19 = vmax.f32 %v9310_v46, %v9311_v63  ;;  %11990 = vmatprep.mubr.msk.f32.mxu1 %vm12847_vm0, %v12848_v1 }
0x34b3   : > { %v9313_v61 = vrot.slane %v9312_v19, 1 }
0x34b4   : > { %11991 = vmatmul.mubr.msk.f32.gmra.mrb[98].mxu1 %vm759_vm2, %v14682_v56 }
0x34b5   : > { %v9314_v47 = vmax.f32 %v9312_v19, %v9313_v61  ;;  %11993 = vmatprep.mubr.msk.f32.mxu1 %vm12847_vm0, %v12848_v1 }
0x34b7   : > { %v9316_v62 = vmul.f32 %v14888_v29, %v9314_v47  ;;  %v9315_v52 = vmul.f32 %v14894_v37, %v9314_v47  ;;  %v9317_v57 = vmul.f32 %v14902_v14, %v9314_v47 }
0x34b8   : > { %11994 = vmatmul.mubr.msk.f32.gmra.mrb[100].mxu1 %vm759_vm2, %v14691_v8 }
0x34b9   : > { %v9321_v4 = vsel %vm759_vm2, %v9316_v62, 0.0  ;;  %v9318_v31 = vsel %vm759_vm2, %v9315_v52, 0.0  ;;  %v9324_v59 = vsel %vm1067_vm13, %v9317_v57, 0.0  ;;  %12009 = vmatprep.mubr.msk.f32.mxu1 %vm12847_vm0, %v12848_v1 }
0x34ba   : > { %9322 = vadd.xlane.f32.xlu0 %v9321_v4  ;;  %9319 = vadd.xlane.f32.xlu1 %v9318_v31  ;;  %v10777_v31 = vld [vmem:[%s13156_s17 + $0x78] sm:$0xff]  }
0x34be   : > { %9325 = vadd.xlane.f32.xlu1 %v9324_v59 }
0x3547   : > { %v9323_v22 = vpop.xlane.xlu0 %9322  ;;  %v9320_v44 = vpop.xlane.xlu1 %9319 }
0x3548   : > { %v9328_v32 = vsub.f32 %v9297_v11, %v9323_v22  ;;  %v9327_v54 = vsub.f32 %v9295_v16, %v9320_v44  ;;  %v10596_v22 = vld [vmem:[%s13231_s20 + $0xf] ss:$0 sm:$0xff]  ;;  %s10232_s20 = sshll.u32 %s13153_s27, 3 }
0x354a   : > { %v9332_v18 = vmul.f32 1.442695, %v9328_v32  ;;  %v9330_v12 = vmul.f32 1.442695, %v9327_v54 }
0x354b   : > { %v9326_v15 = vpop.xlane.xlu1 %9325 }
0x354c   : > { %12571 = vpow2.f32 %v9332_v18  ;;  %v9329_v17 = vsub.f32 %v9300_v60, %v9326_v15  ;;  %v10598_v18 = vld [vmem:[%s13238_s24 + $0xf] ss:$0 sm:$0xff]  ;;  %v12629_v15 = vld [vmem:[%s15192_s2] sm:$0xff]  ;;  %s10613_s24 = sshll.u32 %s12830_s16, 7  ;;  %s12849_s16 = smov [#allocation10]  }
0x354d   : > { %12573 = vpow2.f32 %v9330_v12  ;;  %s15141_s13 = scalar_lea.hbm %s15266_s3, %s10613_s24  ;;  %s12752_s21 = sshll.u32 %s12849_s16, 4  ;;  %s12753_s21 = int_to_ptr.vmem [resolvable:$false] %s12752_s21 }
0x354e   : > { %v9334_v10 = vmul.f32 1.442695, %v9329_v17  ;;  %s12754_s29 = scalar_lea.vmem %s12753_s21, 256 }
0x3550   : > { %12575 = vpow2.f32 %v9334_v10 }
0x3556   : > { %v12572_v30 = vpop.eup %12571 }
0x3557   : > { %v12574_v33 = vpop.eup %12573  ;;  %v9337_v35 = vmul.f32 %v14888_v29, %v12572_v30 }
0x3558   : > { %v9336_v2 = vmul.f32 %v14894_v37, %v12574_v33 }
0x3559   : > { %v9340_v50 = vsel %vm759_vm2, %v9337_v35, 0.0 }
0x355a   : > { %v12576_v41 = vpop.eup %12575  ;;  %v9339_v5 = vsel %vm759_vm2, %v9336_v2, 0.0 }
0x355b   : > { %v9338_v34 = vmul.f32 %v14902_v14, %v12576_v41  ;;  %v9341_v51 = vadd.f32 %v9340_v50, %v9339_v5  ;;  %v10609_v50 = vld [vmem:[%s13373_s5 + $0xf] ss:$0 sm:$0xff]  ;;  %s547_s5 = scalar_lea.vmem [#allocation10], %s10232_s20 }
0x355c   : > { %s10048_s26 = sshll.u32 %s547_s5, 4  ;;  %s15143_s26 = int_to_ptr.vmem [resolvable:$true] %s10048_s26 }
0x355d   : > { %v9342_v9 = vsel %vm1067_vm13, %v9338_v34, 0.0  ;;  %s12748_s12 = scalar_lea.vmem %s15143_s26, 128  ;;  %p12755_p8 = scmp.lt.s32.totalorder %s15143_s26, %s12753_s21 }
0x355e   : > { %v9343_v36 = vadd.f32 %v9342_v9, %v9341_v51  ;;  %p12749_p1 = scmp.ne.s32.totalorder %s15143_s26, %s12748_s12  ;;  %p12756_p6 = scmp.lt.s32.totalorder %s12754_s29, %s12748_s12 }
0x3560   : > { %v9344_v25 = vrot.slane %v9343_v36, 4  ;;  %p12750_p5 = pnand %p12749_p1, %p15267_p2  ;;  %p12757_p9 = por %p12756_p6, %p12755_p8 }
0x3562   : > { %v9345_v21 = vadd.f32 %v9344_v25, %v9343_v36  ;;  %p12751_p3 = pneg %p12750_p5 }
0x3564   : > { %v9346_v16 = vrot.slane %v9345_v21, 2  ;;  %p12758_p12 = pnand %p12757_p9, %p12751_p3 }
0x3566   : > { %v9347_v11 = vadd.f32 %v9346_v16, %v9345_v21 }
0x3568   : > { %v9348_v45 = vrot.slane %v9347_v11, 1 }
0x356a   : > { %v9349_v39 = vadd.f32 %v9348_v45, %v9347_v11 }
0x356c   : > { %v9351_v26 = vmul.f32 %v14888_v29, %v9349_v39  ;;  %v9350_v53 = vmul.f32 %v14894_v37, %v9349_v39  ;;  %v9352_v43 = vmul.f32 %v14902_v14, %v9349_v39 }
0x356e   : > { %v9356_v60 = vsel %vm759_vm2, %v9351_v26, 0.0  ;;  %v9353_v48 = vsel %vm759_vm2, %v9350_v53, 0.0  ;;  %v9359_v40 = vsel %vm1067_vm13, %v9352_v43, 0.0 }
0x356f   : > { %9357 = vadd.xlane.f32.xlu1 %v9356_v60  ;;  %9354 = vadd.xlane.f32.xlu0 %v9353_v48 }
0x3573   : > { %9360 = vadd.xlane.f32.xlu0 %v9359_v40 }
0x35fc   : > { %v9358_v3 = vpop.xlane.xlu1 %9357  ;;  %v9355_v7 = vpop.xlane.xlu0 %9354 }
0x35fd   : > { %12577 = vrcp.f32 %v9358_v3 }
0x35fe   : > { %12579 = vrcp.f32 %v9355_v7 }
0x3600   : > { %v9361_v55 = vpop.xlane.xlu0 %9360 }
0x3601   : > { %12581 = vrcp.f32 %v9361_v55 }
0x3607   : > { %v12578_v46 = vpop.eup %12577 }
0x3608   : > { %v12580_v63 = vpop.eup %12579  ;;  %v9366_v19 = vmul.f32 %v12578_v46, %v12572_v30 }
0x3609   : > { %v9365_v56 = vmul.f32 %v12580_v63, %v12574_v33 }
0x360a   : > { %v9369_v61 = vmul.f32 %v9366_v19, %v14990_v38  ;;  %v12628_v38 = vld [vmem:[#allocation2] sm:$0xff] }
0x360b   : > { %v12582_v47 = vpop.eup %12581  ;;  %v9368_v8 = vmul.f32 %v9365_v56, %v14988_v6  ;;  %v10778_v6 = vld [vmem:[%s13163_s9 + $0x78] sm:$0xff]  }
0x360c   : > { %v9367_v62 = vmul.f32 %v12582_v47, %v12576_v41 }
0x360d   : > { %v12160_v52 = vpack.c.bf16 %v9369_v61, %v9368_v8 }
0x360e   : > { %v9370_v4 = vmul.f32 %v9367_v62, %v14994_v49 }
0x360f   : > { %12161 = vmatpush3.bf16.msra.mxu0 %v12160_v52 }
0x3610   : > { %11966 = vmatprep.subr.mxu0 %v12848_v1 }
0x3613   : > { %11967 = vmatpush3.msk.msra.mxu0 %vm1055_vm9, %v9370_v4 }
0x3614   : > { %11969 = vmatmul.mubr.msk.f32.vlgmr.msra.gmra.mrb[172].mxu0 %vm1677_vm14, %v13487_v27  ;;  %12162 = vmatprep.subr.bf16.mxu0 %v12846_v0 }
0x3615   : > { %12164 = vmatpush3.bf16.msra.mxu0 %v10777_v31  ;;  %11975 = vmatprep.mubr.msk.f32.mxu0 %vm12847_vm0, %v12848_v1 }
0x3616   : > { %12165 = vmatprep.subr.bf16.mxu0 %v12846_v0 }
0x3618   : > { %11976 = vmatmul.mubr.msk.f32.vlgmr.msra.gmra.mrb[174].mxu0 %vm609_vm1, %v12628_v38 }
0x3619   : > { %12167 = vmatpush3.bf16.msra.mxu0 %v10778_v6  ;;  %11982 = vmatprep.mubr.msk.f32.mxu0 %vm12847_vm0, %v12848_v1 }
0x361a   : > { %11996 = vmatprep.subr.mxu0 %v12848_v1 }
0x361c   : > { %11983 = vmatmul.mubr.msk.f32.vlgmr.msra.gmra.mrb[176].mxu0 %vm609_vm1, %v12628_v38 }
0x361d   : > { %11998 = vmatprep.mubr.msk.f32.mxu0 %vm12847_vm0, %v12848_v1 }
0x36e7   : > { %v9440_v49 = vpop.f32.mrb[172].mxu0 }
0x36e8   : > { %v15061_v57 = vadd.f32 %v9440_v49, %v14958_v13  ;;  %v11970_v59 = vpop.f32.mrb[173].mxu0 }
0x36eb   : > { %v9536_v44 = vpop.f32.mrb[174].mxu0 }
0x36ec   : > { %v9537_v32 = vadd.f32 %v10596_v22, %v9536_v44  ;;  %v11977_v54 = vpop.f32.mrb[175].mxu0 }
0x36ee   : > { %11997 = vmatpush3.msra.mxu0 %v9537_v32 }
0x36ef   : > { %v9612_v12 = vpop.f32.mrb[176].mxu0  ;;  %11999 = vmatmul.mubr.msk.f32.vlgmr.msra.gmra.mrb[178].mxu0 %vm759_vm2, %v12629_v15  ;;  %12168 = vmatprep.subr.bf16.mxu0 %v12846_v0 }
0x36f0   : > { %v9613_v17 = vadd.f32 %v10598_v18, %v9612_v12  ;;  %v11984_v10 = vpop.f32.mrb[177].mxu0  ;;  %12001 = vmatprep.mubr.msk.f32.mxu0 %vm12847_vm0, %v12848_v1 }
0x36f2   : > { %12008 = vmatpush3.msra.mxu1 %v9613_v17 }
0x36f3   : > { %12010 = vmatmul.mubr.msk.f32.vlgmr.msra.gmra.mrb[96].mxu1 %vm759_vm2, %v14894_v37  ;;  %12002 = vmatmul.mubr.msk.f32.gmra.mrb[180].mxu0 %vm759_vm2, %v14734_v58 }
0x36f4   : > { %12012 = vmatprep.mubr.msk.f32.mxu1 %vm12847_vm0, %v12848_v1  ;;  %12004 = vmatprep.mubr.msk.f32.mxu0 %vm12847_vm0, %v12848_v1 }
0x36f7   : > { %12013 = vmatmul.mubr.msk.f32.gmra.mrb[98].mxu1 %vm759_vm2, %v14888_v29  ;;  %12005 = vmatmul.mubr.msk.f32.gmra.mrb[182].mxu0 %vm759_vm2, %v14748_v28 }
0x36f8   : > { %12015 = vmatprep.mubr.msk.f32.mxu1 %vm12847_vm0, %v12848_v1  ;;  %12024 = vmatprep.mubr.msk.f32.mxu0 %vm12847_vm0, %v12848_v1 }
0x36fb   : > { %12016 = vmatmul.mubr.msk.f32.gmra.mrb[100].mxu1 %vm759_vm2, %v14902_v14 }
0x37c2   : > { %v15090_v0 = vpop.f32.mrb[178].mxu0 }
0x37c3   : > { %v12000_v58 = vpop.f32.mrb[179].mxu0 }
0x37c6   : > { %v9842_v13 = vpop.f32.mrb[96].mxu1  ;;  %v15092_v30 = vpop.f32.mrb[180].mxu0 }
0x37c7   : > { %v9856_v33 = vadd.f32 %v9842_v13, %v15090_v0  ;;  %v12011_v35 = vpop.f32.mrb[97].mxu1  ;;  %v12003_v2 = vpop.f32.mrb[181].mxu0 }
0x37c9   : > { %vm9862_vm1 = vcmp.gt.f32.partialorder %v9856_v33, 0.0  ;;  %v9865_v28 = vmul.f32 0.2, %v9856_v33 }
0x37ca   : > { %v9847_v41 = vpop.f32.mrb[98].mxu1  ;;  %v15096_v5 = vpop.f32.mrb[182].mxu0 }
0x37cb   : > { %v9857_v34 = vadd.f32 %v9847_v41, %v15092_v30  ;;  %v12014_v51 = vpop.f32.mrb[99].mxu1  ;;  %v9868_v9 = vsel %vm9862_vm1, %v9856_v33, %v9865_v28  ;;  %v12006_v36 = vpop.f32.mrb[183].mxu0 }
0x37cc   : > { %v9877_v25 = vmul.f32 %v10609_v50, %v9868_v9 }
0x37cd   : > { %vm9863_vm0 = vcmp.gt.f32.partialorder %v9857_v34, 0.0  ;;  %v9866_v21 = vmul.f32 0.2, %v9857_v34 }
0x37ce   : > { %v9852_v16 = vpop.f32.mrb[100].mxu1  ;;  %9880 = vadd.xlane.f32.xlu1 %v9877_v25 }
0x37cf   : > { %v9858_v11 = vadd.f32 %v9852_v16, %v15096_v5  ;;  %v12017_v45 = vpop.f32.mrb[101].mxu1  ;;  %v9869_v39 = vsel %vm9863_vm0, %v9857_v34, %v9866_v21 }
0x37d0   : > { %v9878_v26 = vmul.f32 %v10609_v50, %v9869_v39 }
0x37d1   : > { %vm9864_vm6 = vcmp.gt.f32.partialorder %v9858_v11, 0.0  ;;  %v9867_v53 = vmul.f32 0.2, %v9858_v11 }
0x37d2   : > { %9882 = vadd.xlane.f32.xlu0 %v9878_v26 }
0x37d3   : > { %v9870_v60 = vsel %vm9864_vm6, %v9858_v11, %v9867_v53 }
0x37d4   : > { %v9879_v48 = vmul.f32 %v10609_v50, %v9870_v60 }
0x37d6   : > { %v9884_v43 = vsel %vm1055_vm9, %v9879_v48, 0.0 }
0x37d7   : > { %9885 = vadd.xlane.f32.xlu1 %v9884_v43 }
0x385b   : > { %v9881_v40 = vpop.xlane.xlu1 %9880 }
0x385c   : > { %v9887_v7 = vsel %vm1059_vm11, %v9881_v40, -1e+30 }
0x385d   : > { %v9890_v46 = vsel %vm759_vm2, %v9887_v7, -inf }
0x385f   : > { %v9883_v42 = vpop.xlane.xlu0 %9882 }
0x3860   : > { %v9888_v3 = vsel %vm1060_vm10, %v9883_v42, -1e+30 }
0x3861   : > { %v9891_v55 = vsel %vm759_vm2, %v9888_v3, -inf }
0x3862   : > { %v9893_v19 = vmax.f32 %v9890_v46, %v9891_v55 }
0x3864   : > { %v9886_v63 = vpop.xlane.xlu1 %9885 }
0x3865   : > { %v9889_v56 = vsel %vm1061_vm12, %v9886_v63, -1e+30 }
0x3866   : > { %v9892_v61 = vsel %vm1067_vm13, %v9889_v56, -inf }
0x3867   : > { %v9894_v47 = vmax.f32 %v9893_v19, %v9892_v61 }
0x3869   : > { %v9895_v8 = vrot.slane %v9894_v47, 4 }
0x386b   : > { %v9896_v62 = vmax.f32 %v9894_v47, %v9895_v8 }
0x386d   : > { %v9897_v52 = vrot.slane %v9896_v62, 2 }
0x386f   : > { %v9898_v23 = vmax.f32 %v9896_v62, %v9897_v52 }
0x3871   : > { %v9899_v4 = vrot.slane %v9898_v23, 1 }
0x3873   : > { %v9900_v31 = vmax.f32 %v9898_v23, %v9899_v4 }
0x3875   : > { %v9902_v20 = vmul.f32 %v14888_v29, %v9900_v31  ;;  %v9901_v6 = vmul.f32 %v14894_v37, %v9900_v31  ;;  %v9903_v24 = vmul.f32 %v14902_v14, %v9900_v31 }
0x3877   : > { %v9907_v38 = vsel %vm759_vm2, %v9902_v20, 0.0  ;;  %v9904_v49 = vsel %vm759_vm2, %v9901_v6, 0.0  ;;  %v9910_v59 = vsel %vm1067_vm13, %v9903_v24, 0.0 }
0x3878   : > { %9908 = vadd.xlane.f32.xlu1 %v9907_v38  ;;  %9905 = vadd.xlane.f32.xlu0 %v9904_v49 }
0x387c   : > { %9911 = vadd.xlane.f32.xlu0 %v9910_v59 }
0x3905   : > { %v9909_v22 = vpop.xlane.xlu1 %9908  ;;  %v9906_v44 = vpop.xlane.xlu0 %9905 }
0x3906   : > { %v9914_v32 = vsub.f32 %v9883_v42, %v9909_v22  ;;  %v9913_v54 = vsub.f32 %v9881_v40, %v9906_v44 }
0x3908   : > { %v9918_v18 = vmul.f32 1.442695, %v9914_v32  ;;  %v9916_v12 = vmul.f32 1.442695, %v9913_v54 }
0x3909   : > { %v9912_v15 = vpop.xlane.xlu0 %9911 }
0x390a   : > { %12583 = vpow2.f32 %v9918_v18  ;;  %v9915_v17 = vsub.f32 %v9886_v63, %v9912_v15 }
0x390b   : > { %12585 = vpow2.f32 %v9916_v12 }
0x390c   : > { %v9920_v10 = vmul.f32 1.442695, %v9915_v17 }
0x390e   : > { %12587 = vpow2.f32 %v9920_v10 }
0x3914   : > { %v12584_v58 = vpop.eup %12583 }
0x3915   : > { %v12586_v13 = vpop.eup %12585  ;;  %v9923_v33 = vmul.f32 %v14888_v29, %v12584_v58 }
0x3916   : > { %v9922_v35 = vmul.f32 %v14894_v37, %v12586_v13 }
0x3917   : > { %v9926_v2 = vsel %vm759_vm2, %v9923_v33, 0.0 }
0x3918   : > { %v12588_v28 = vpop.eup %12587  ;;  %v9925_v50 = vsel %vm759_vm2, %v9922_v35, 0.0 }
0x3919   : > { %v9924_v41 = vmul.f32 %v14902_v14, %v12588_v28  ;;  %v9927_v34 = vadd.f32 %v9926_v2, %v9925_v50 }
0x391b   : > { %v9928_v51 = vsel %vm1067_vm13, %v9924_v41, 0.0 }
0x391c   : > { %v9929_v9 = vadd.f32 %v9928_v51, %v9927_v34 }
0x391e   : > { %v9930_v36 = vrot.slane %v9929_v9, 4 }
0x3920   : > { %v9931_v25 = vadd.f32 %v9930_v36, %v9929_v9 }
0x3922   : > { %v9932_v21 = vrot.slane %v9931_v25, 2 }
0x3924   : > { %v9933_v16 = vadd.f32 %v9932_v21, %v9931_v25 }
0x3926   : > { %v9934_v11 = vrot.slane %v9933_v16, 1 }
0x3928   : > { %v9935_v45 = vadd.f32 %v9934_v11, %v9933_v16 }
0x392a   : > { %v9937_v39 = vmul.f32 %v14888_v29, %v9935_v45  ;;  %v9936_v26 = vmul.f32 %v14894_v37, %v9935_v45  ;;  %v9938_v48 = vmul.f32 %v14902_v14, %v9935_v45 }
0x392c   : > { %v9942_v53 = vsel %vm759_vm2, %v9937_v39, 0.0  ;;  %v9939_v60 = vsel %vm759_vm2, %v9936_v26, 0.0  ;;  %v9945_v43 = vsel %vm1067_vm13, %v9938_v48, 0.0 }
0x392d   : > { %9943 = vadd.xlane.f32.xlu0 %v9942_v53  ;;  %9940 = vadd.xlane.f32.xlu1 %v9939_v60 }
0x3931   : > { %9946 = vadd.xlane.f32.xlu1 %v9945_v43 }
0x39ba   : > { %v9944_v40 = vpop.xlane.xlu0 %9943  ;;  %v9941_v42 = vpop.xlane.xlu1 %9940 }
0x39bb   : > { %12589 = vrcp.f32 %v9944_v40 }
0x39bc   : > { %12591 = vrcp.f32 %v9941_v42 }
0x39be   : > { %v9947_v3 = vpop.xlane.xlu1 %9946 }
0x39bf   : > { %12593 = vrcp.f32 %v9947_v3 }
0x39c5   : > { %v12590_v29 = vpop.eup %12589 }
0x39c6   : > { %v12592_v37 = vpop.eup %12591  ;;  %v9952_v7 = vmul.f32 %v12590_v29, %v12584_v58 }
0x39c7   : > { %v9951_v55 = vmul.f32 %v12592_v37, %v12586_v13 }
0x39c8   : > { %v9955_v46 = vmul.f32 %v9952_v7, %v15092_v30 }
0x39c9   : > { %v12594_v14 = vpop.eup %12593  ;;  %v9954_v63 = vmul.f32 %v9951_v55, %v15090_v0 }
0x39ca   : > { %v9953_v19 = vmul.f32 %v12594_v14, %v12588_v28 }
0x39cb   : > { %v12169_v56 = vpack.c.bf16 %v9955_v46, %v9954_v63 }
0x39cc   : > { %v9956_v61 = vmul.f32 %v9953_v19, %v15096_v5 }
0x39cd   : > { %12170 = vmatpush3.bf16.msra.mxu0 %v12169_v56 }
0x39ce   : > { %12022 = vmatprep.subr.mxu0 %v12848_v1 }
0x39d1   : > { %12023 = vmatpush3.msk.msra.mxu0 %vm1055_vm9, %v9956_v61 }
0x39d2   : > { %12025 = vmatmul.mubr.msk.f32.vlgmr.msra.gmra.mrb[184].mxu0 %vm1677_vm14, %v13487_v27 }
0x3aa5   : > { %v10026_v47 = vpop.f32.mrb[184].mxu0 }
0x3aa6   : > { %v10030_v0 = vadd.f32 %v10026_v47, %v15061_v57  ;;  %v12026_v30 = vpop.f32.mrb[185].mxu0 }
0x3aa8   : > { %10033 = vst [vmem:[%s547_s5] sm:$0xff] %v10030_v0 }
0x3aa9   : > { %12761 = shalt.err (!%p12758_p12)
}
0x3aaa   : > { %s12762_s27 = scalar_lea.hbm %s15141_s13, 128  ;;  %s12766_s18 = scalar_lea.hbm %s15266_s3, 256 }
0x3aab   : > { %p12763_p4 = scmp.ne.s32.totalorder %s15141_s13, %s12762_s27  ;;  %p12767_p10 = scmp.lt.u32.totalorder %s15141_s13, %s15266_s3 }
0x3aac   : > { %p12768_p11 = scmp.lt.u32.totalorder %s12766_s18, %s12762_s27  ;;  %p12770_p1 = scmp.lt.u32.totalorder %s12762_s27, %s15141_s13 }
0x3aad   : > { %p12764_p7 = pnand %p12763_p4, %p15267_p2 }
0x3aae   : > { %p12769_p0 = por %p12768_p11, %p12767_p10 }
0x3aaf   : > { %p12765_p13 = pneg %p12764_p7 }
0x3ab0   : > { %p12771_p5 = por %p12770_p1, %p12769_p0 }
0x3ab2   : > { %p12772_p3 = pnand %p12771_p5, %p12765_p13 }
0x3ab4   : > { %12775 = shalt.err (!%p12772_p3)
}
0x3ab5   : > { %12325 = dma.vmem_to_hbm [thread:$0]  (%p15267_p2), %s15143_s26, 128, %s15141_s13, %s10035_s15  }
0x3ab6 PF: > { %s15268_s28 = sld [smem:[#allocation15_spill]]  ;;  %s15269_s17 = sld [smem:[#allocation22_spill]] }
0x3ab7   : > { %s15270_s9 = sld [smem:[#allocation18_spill]] }
0x3abc   : > { %s10060_s20 = sand.u32 1, %s15268_s28   ;;  %p15271_p8 = scmp.ne.s32.totalorder %s15269_s17, 0 }
0x3abd   : > { %p15272_p6 = scmp.ge.s32.totalorder %s15270_s9, 2  ;;  %s10061_s24 = scalar_lea.sflag [#allocation4], %s10060_s20 }
0x3abf   : > { %p12342_p9 = pnand %p15272_p6, %p15271_p8 }
0x3ac1   : > { %12813 = dma.done.wait (!%p12342_p9), %s10061_s24, 128  }
0x3ac2   : > { %12815 = vsyncadd (!%p12342_p9), %s10061_s24, 4294967168  ;;  %s30_s18 = sadd.s32 1, %s15270_s9   ;;  %s15273_s5 = sld [smem:[#allocation16_spill]] }
0x3ac3   : > { %p27_p12 = scmp.ge.s32.totalorder %s30_s18, 4   ;;  %s15274_s15 = sld [smem:[#allocation20_spill]] }
0x3ac4   : > { %s15275_s16 = sld [smem:[#allocation17_spill]]  ;;  %s15276_s17 = sld [smem:[#allocation19_spill]] }
0x3ac5   : > { %s15277_s13 = smov %s12822_s14  ;;  %29 = sbr.rel (!%p27_p12) target bundleno = 15 (0xf), region = 237 }
0x3ac8   : > { %s15278_s14 = smov %s15273_s5 }
0x3acc   :  { %10066 = vsyncpa [#allocation3], 1 }
0x3acd   :  { %10068 = vsyncpa [#allocation3 + $0x1], 1 }
0x3ace   :  { %10069 = vsyncpa [#allocation6], 1 }
0x3acf   :  { %10071 = vsyncpa [#allocation6 + $0x1], 1 }
0x3ad0   :  { %10072 = vsyncpa [#allocation9], 1 }
0x3ad1   :  { %10074 = vsyncpa [#allocation9 + $0x1], 1 }
0x3ad2   :  { %10075 = vsyncpa [#allocation4], 1 }
0x3ad3   :  { %10077 = vsyncpa [#allocation4 + $0x1], 1 }

</bundles_post_ra>
